<compile_context>
chip_gen: v7x
topology: tpu7x:2x2x1
jax: 0.10.0
libtpu: 0.0.40
codegen_flags: <defaults>
</compile_context>

<pallas_src>
import jax
import jax.numpy as jnp
from jax.experimental import pallas as pl
from jax.experimental.pallas import tpu as pltpu


TM = 128          # batch tile: >=2 grid steps at realistic batches -> megacore
FEAT = 784        # 28 * 28
H_GEN = 1024
H_DISC = 256
LANE = 128
LEAK = 0.2

_COMPILER_PARAMS = pltpu.CompilerParams(
    dimension_semantics=("parallel",),   # batch tiles shard across v7x's 2 TCs
    vmem_limit_bytes=48 << 20,           # safe on v5e/v6e (128 MiB) and v7x (64 MiB)
)


def _round_up(x, m):
    return pl.cdiv(x, m) * m


def _pad_batch(x, n_pad):
    n = x.shape[0]
    if n == n_pad:                       # no extra HBM pass when TM | n
        return x
    return jnp.zeros((n_pad,) + x.shape[1:], x.dtype).at[:n].set(x)


# ---------------------------------------------------------------------------
# Kernel bodies (shared between the standalone and fused kernels)
# ---------------------------------------------------------------------------

def _generator_body(z_ref, w1_ref, b1_ref, w2_ref, b2_ref, w3_ref, b3_ref):
    """Generator MLP: latent -> (TM, 784) bf16 image rows (tanh applied)."""
    # --- Linear(latent_dim, 1024) + ReLU ------------------------------------
    # latent_dim is tiny (2): a K=2 MXU matmul wastes the systolic array, so
    # do VPU broadcast FMAs (outer product) in bf16 (bf16 VPU on v6e/v7x).
    z = z_ref[...].astype(jnp.bfloat16)              # (TM, d)
    tm, d = z.shape
    h = jnp.broadcast_to(b1_ref[...], (tm, H_GEN))   # (TM, 1024) bf16
    for j in range(d):                               # static trip count
        h = h + z[:, j:j + 1] * w1_ref[j:j + 1, :]
    h = jnp.maximum(h, 0.0)

    # --- Linear(1024, 1024) + ReLU (bf16 MXU, f32 accumulate) ---------------
    h = jnp.dot(h, w2_ref[...], preferred_element_type=jnp.float32) + b2_ref[...]
    h = jnp.maximum(h, 0.0)

    # --- Linear(1024, 784) + Tanh (tanh in bf16 -> bf16 EUP on v6e/v7x) -----
    h = jnp.dot(h.astype(jnp.bfloat16), w3_ref[...],
                preferred_element_type=jnp.float32) + b3_ref[...]
    return jnp.tanh(h.astype(jnp.bfloat16))          # (TM, 784) bf16


def _discriminator_body(x, w1_ref, b1_ref, w2_ref, b2_ref, w3_ref, b3_ref):
    """Discriminator MLP on bf16 (TM, 784) rows -> (TM, 1) f32 logits."""
    # --- Linear(784, 256) + LeakyReLU(0.2) ----------------------------------
    h = jnp.dot(x, w1_ref[...], preferred_element_type=jnp.float32) + b1_ref[...]
    h = jnp.where(h > 0, h, LEAK * h)

    # --- Linear(256, 256) + LeakyReLU(0.2) ----------------------------------
    h = jnp.dot(h.astype(jnp.bfloat16), w2_ref[...],
                preferred_element_type=jnp.float32) + b2_ref[...]
    h = jnp.where(h > 0, h, LEAK * h)

    # --- Linear(256, 1): N=1 MXU matmul is degenerate -> VPU mul + XLU reduce
    return jnp.sum(h * w3_ref[...].astype(jnp.float32),
                   axis=-1, keepdims=True) + b3_ref[...]


# ---------------------------------------------------------------------------
# Kernels
# ---------------------------------------------------------------------------

def _generator_kernel(z_ref, w1_ref, b1_ref, w2_ref, b2_ref, w3_ref, b3_ref,
                      out_ref):
    out_ref[...] = _generator_body(z_ref, w1_ref, b1_ref, w2_ref, b2_ref,
                                   w3_ref, b3_ref)


def _discriminator_kernel(x_ref, w1_ref, b1_ref, w2_ref, b2_ref, w3_ref,
                          b3_ref, out_ref):
    # bf16 cast happens here (not in the wrapper) -> no extra HBM pass.
    logit = _discriminator_body(x_ref[...].astype(jnp.bfloat16),
                                w1_ref, b1_ref, w2_ref, b2_ref, w3_ref, b3_ref)
    # Lane-dense (TM, 128) store; the wrapper slices column 0.
    out_ref[...] = jnp.broadcast_to(logit, out_ref.shape)


def _gan_fake_kernel(z_ref, gw1_ref, gb1_ref, gw2_ref, gb2_ref, gw3_ref,
                     gb3_ref, dw1_ref, db1_ref, dw2_ref, db2_ref, dw3_ref,
                     db3_ref, img_ref, logit_ref):
    # Fused generator -> discriminator: the tanh'd image tile stays in VMEM
    # and feeds the disc layer-1 dot directly (no HBM round trip).
    img = _generator_body(z_ref, gw1_ref, gb1_ref, gw2_ref, gb2_ref, gw3_ref,
                          gb3_ref)
    img_ref[...] = img
    logit = _discriminator_body(img, dw1_ref, db1_ref, dw2_ref, db2_ref,
                                dw3_ref, db3_ref)
    logit_ref[...] = jnp.broadcast_to(logit, logit_ref.shape)


# ---------------------------------------------------------------------------
# Wrappers
# ---------------------------------------------------------------------------

def _const_spec(p):
    # Full-array block, constant block index -> stays VMEM-resident.
    return pl.BlockSpec(p.shape, lambda i: (0, 0))


def generator_forward(z, gen_params):
    """z: (n, latent_dim) -> images (n, 1, 28, 28) bf16."""
    n, d = z.shape
    n_pad = _round_up(max(n, 1), TM)
    z_p = _pad_batch(z.astype(jnp.float32), n_pad)

    out = pl.pallas_call(
        _generator_kernel,
        out_shape=jax.ShapeDtypeStruct((n_pad, FEAT), jnp.bfloat16),
        grid=(n_pad // TM,),
        in_specs=[pl.BlockSpec((TM, d), lambda i: (i, 0))]
                 + [_const_spec(p) for p in gen_params],
        out_specs=pl.BlockSpec((TM, FEAT), lambda i: (i, 0)),
        compiler_params=_COMPILER_PARAMS,
    )(z_p, *gen_params)

    return out[:n].reshape(n, 1, 28, 28)             # Reshape(1, 28, 28)


def discriminator_forward(x, disc_params):
    """x: (n, 1, 28, 28) -> logits (n, 1) f32."""
    n = x.shape[0]
    x_flat = x.reshape(n, FEAT)                      # nn.Flatten(); no pad/cast
    n_pad = _round_up(max(n, 1), TM)
    x_p = _pad_batch(x_flat, n_pad)

    out = pl.pallas_call(
        _discriminator_kernel,
        out_shape=jax.ShapeDtypeStruct((n_pad, LANE), jnp.float32),
        grid=(n_pad // TM,),
        in_specs=[pl.BlockSpec((TM, FEAT), lambda i: (i, 0))]
                 + [_const_spec(p) for p in disc_params],
        out_specs=pl.BlockSpec((TM, LANE), lambda i: (i, 0)),
        compiler_params=_COMPILER_PARAMS,
    )(x_p, *disc_params)

    return out[:n, :1]


def gan_fake_forward(z, gen_params, disc_params):
    """Fused fake path: z -> (images (n,1,28,28) bf16, logits (n,1) f32)."""
    n, d = z.shape
    n_pad = _round_up(max(n, 1), TM)
    z_p = _pad_batch(z.astype(jnp.float32), n_pad)

    imgs, logits = pl.pallas_call(
        _gan_fake_kernel,
        out_shape=(jax.ShapeDtypeStruct((n_pad, FEAT), jnp.bfloat16),
                   jax.ShapeDtypeStruct((n_pad, LANE), jnp.float32)),
        grid=(n_pad // TM,),
        in_specs=[pl.BlockSpec((TM, d), lambda i: (i, 0))]
                 + [_const_spec(p) for p in gen_params]
                 + [_const_spec(p) for p in disc_params],
        out_specs=[pl.BlockSpec((TM, FEAT), lambda i: (i, 0)),
                   pl.BlockSpec((TM, LANE), lambda i: (i, 0))],
        compiler_params=_COMPILER_PARAMS,
    )(z_p, *gen_params, *disc_params)

    return imgs[:n].reshape(n, 1, 28, 28), logits[:n, :1]


# ---------------------------------------------------------------------------
# Deterministic parameter initialization (PyTorch nn.Linear default:
# U(-1/sqrt(fan_in), 1/sqrt(fan_in)) for weight and bias), computed in f32,
# then cast to the kernel layout / dtypes. No zero-padded regions remain.
# ---------------------------------------------------------------------------

def _init_linear(key, fan_in, fan_out):
    kw, kb = jax.random.split(key)
    bound = 1.0 / (float(fan_in) ** 0.5)
    w = jax.random.uniform(kw, (fan_in, fan_out), jnp.float32, -bound, bound)
    b = jax.random.uniform(kb, (1, fan_out), jnp.float32, -bound, bound)
    return w, b


def init_gan_fc_params(key, latent_dim=2):
    keys = jax.random.split(key, 6)

    # discriminator: 784 -> 256 -> 256 -> 1
    dw1, db1 = _init_linear(keys[0], FEAT, H_DISC)
    dw2, db2 = _init_linear(keys[1], H_DISC, H_DISC)
    dw3, db3 = _init_linear(keys[2], H_DISC, 1)
    disc = (dw1.astype(jnp.bfloat16), db1,
            dw2.astype(jnp.bfloat16), db2,
            dw3.reshape(1, H_DISC).astype(jnp.bfloat16),   # row for VPU reduce
            db3.reshape(1, 1))

    # generator: latent_dim -> 1024 -> 1024 -> 784
    gw1, gb1 = _init_linear(keys[3], latent_dim, H_GEN)
    gw2, gb2 = _init_linear(keys[4], H_GEN, H_GEN)
    gw3, gb3 = _init_linear(keys[5], H_GEN, FEAT)
    gen = (gw1.astype(jnp.bfloat16), gb1.astype(jnp.bfloat16),  # bf16 VPU layer
           gw2.astype(jnp.bfloat16), gb2,
           gw3.astype(jnp.bfloat16), gb3)

    return disc, gen


def gan_sample(key, gen_params, n=1, latent_dim=2):
    """GAN_FC.sample: z ~ N(0, I) prior, then generator(z)."""
    z = jax.random.normal(key, (n, latent_dim), jnp.float32)
    return generator_forward(z, gen_params)


# ---------------------------------------------------------------------------
# Pure-JAX references (f32) for tolerance checks against the bf16 kernels.
# ---------------------------------------------------------------------------

def _ref_generator(z, gen_params):
    w1, b1, w2, b2, w3, b3 = [p.astype(jnp.float32) for p in gen_params]
    h = jnp.maximum(z.astype(jnp.float32) @ w1 + b1, 0.0)
    h = jnp.maximum(h @ w2 + b2, 0.0)
    return jnp.tanh(h @ w3 + b3).reshape(-1, 1, 28, 28)


def _ref_discriminator(x, disc_params):
    w1, b1, w2, b2, w3, b3 = [p.astype(jnp.float32) for p in disc_params]
    h = x.reshape(x.shape[0], FEAT).astype(jnp.float32) @ w1 + b1
    h = jnp.where(h > 0, h, LEAK * h)
    h = h @ w2 + b2
    h = jnp.where(h > 0, h, LEAK * h)
    return h @ w3.T + b3


if __name__ == "__main__":
    # GAN_FC.forward raises NotImplemented in the reference; the meaningful
    # compute paths are generator(z) (via .sample) and discriminator(x).
    # TODO(synk): td.Independent(Normal).log_prob of the prior is not used in
    # any forward path and is left unimplemented (sampling uses jax.random).
    latent_dim = 2
    n = 2

    root = jax.random.PRNGKey(0)
    k_params, k_prior, k_x = jax.random.split(root, 3)

    disc_params, gen_params = init_gan_fc_params(k_params, latent_dim)

    # sample path: prior -> generator (Pallas kernel) -> (n, 1, 28, 28)
    imgs = jax.block_until_ready(gan_sample(k_prior, gen_params, n=n,
                                            latent_dim=latent_dim))
    assert imgs.shape == (n, 1, 28, 28)
    assert bool(jnp.all(jnp.abs(imgs.astype(jnp.float32)) <= 1.0))  # tanh range

    # fused fake path: same z (same key) -> images + logits in one pallas_call
    z = jax.random.normal(k_prior, (n, latent_dim), jnp.float32)
    imgs_fused, logits_fake = gan_fake_forward(z, gen_params, disc_params)
    imgs_fused, logits_fake = jax.block_until_ready((imgs_fused, logits_fake))
    assert imgs_fused.shape == (n, 1, 28, 28)
    assert logits_fake.shape == (n, 1)
    assert bool(jnp.allclose(imgs.astype(jnp.float32),
                             imgs_fused.astype(jnp.float32),
                             atol=1e-2, rtol=1e-2))

    # real-image discriminator path
    x = jax.random.normal(k_x, (n, 1, 28, 28), jnp.float32)
    logits_real = jax.block_until_ready(discriminator_forward(x, disc_params))
    assert logits_real.shape == (n, 1)

    # f32-reference tolerance checks (bf16 kernel vs pure-JAX f32 math)
    assert bool(jnp.allclose(imgs.astype(jnp.float32),
                             _ref_generator(z, gen_params), atol=0.1))
    assert bool(jnp.allclose(logits_real,
                             _ref_discriminator(x, disc_params), atol=0.1))

    print("KERNEL_OK")
</pallas_src>

<mosaic_0001>
module attributes {stable_mosaic.version = 11 : i64} {
  func.func @_generator_kernel(%arg0: i32, %arg1: memref<128x2xf32, #tpu.memory_space<vmem>>, %arg2: memref<2x1024xbf16, #tpu.memory_space<vmem>>, %arg3: memref<1x1024xbf16, #tpu.memory_space<vmem>>, %arg4: memref<1024x1024xbf16, #tpu.memory_space<vmem>>, %arg5: memref<1x1024xf32, #tpu.memory_space<vmem>>, %arg6: memref<1024x784xbf16, #tpu.memory_space<vmem>>, %arg7: memref<1x784xf32, #tpu.memory_space<vmem>>, %arg8: memref<128x784xbf16, #tpu.memory_space<vmem>>) attributes {dimension_semantics = [#tpu.dimension_semantics<parallel>], iteration_bounds = array<i64: 1>, scalar_prefetch = 0 : i64, scratch_operands = 0 : i64, tpu.core_type = #tpu.core_type<tc>, window_params = [{transform_indices = @transform_0, window_bounds = array<i64: 128, 2>}, {pipeline_mode = #tpu.pipeline_mode<synchronous>, transform_indices = @transform_1, window_bounds = array<i64: 2, 1024>}, {pipeline_mode = #tpu.pipeline_mode<synchronous>, transform_indices = @transform_2, window_bounds = array<i64: 1, 1024>}, {pipeline_mode = #tpu.pipeline_mode<synchronous>, transform_indices = @transform_3, window_bounds = array<i64: 1024, 1024>}, {pipeline_mode = #tpu.pipeline_mode<synchronous>, transform_indices = @transform_4, window_bounds = array<i64: 1, 1024>}, {pipeline_mode = #tpu.pipeline_mode<synchronous>, transform_indices = @transform_5, window_bounds = array<i64: 1024, 784>}, {pipeline_mode = #tpu.pipeline_mode<synchronous>, transform_indices = @transform_6, window_bounds = array<i64: 1, 784>}, {transform_indices = @transform_7, window_bounds = array<i64: 128, 784>}]} {
    %c0 = arith.constant 0 : index
    %c0_0 = arith.constant 0 : index
    %0 = vector.load %arg1[%c0, %c0_0] : memref<128x2xf32, #tpu.memory_space<vmem>>, vector<128x2xf32>
    %1 = arith.truncf %0 : vector<128x2xf32> to vector<128x2xbf16>
    %c0_1 = arith.constant 0 : index
    %c0_2 = arith.constant 0 : index
    %2 = vector.load %arg3[%c0_1, %c0_2] : memref<1x1024xbf16, #tpu.memory_space<vmem>>, vector<1x1024xbf16>
    %3 = vector.shape_cast %2 : vector<1x1024xbf16> to vector<1x1024xbf16>
    %4 = vector.broadcast %3 : vector<1x1024xbf16> to vector<128x1024xbf16>
    %5 = vector.extract_strided_slice %1 {offsets = [0, 0], sizes = [128, 1], strides = [1, 1]} : vector<128x2xbf16> to vector<128x1xbf16>
    %c0_3 = arith.constant 0 : index
    %c0_4 = arith.constant 0 : index
    %6 = vector.load %arg2[%c0_3, %c0_4] : memref<2x1024xbf16, #tpu.memory_space<vmem>>, vector<1x1024xbf16>
    %7 = vector.broadcast %5 : vector<128x1xbf16> to vector<128x1024xbf16>
    %8 = vector.broadcast %6 : vector<1x1024xbf16> to vector<128x1024xbf16>
    %9 = arith.mulf %7, %8 : vector<128x1024xbf16>
    %10 = arith.addf %4, %9 : vector<128x1024xbf16>
    %11 = vector.extract_strided_slice %1 {offsets = [0, 1], sizes = [128, 1], strides = [1, 1]} : vector<128x2xbf16> to vector<128x1xbf16>
    %c1 = arith.constant 1 : index
    %c0_5 = arith.constant 0 : index
    %12 = vector.load %arg2[%c1, %c0_5] : memref<2x1024xbf16, #tpu.memory_space<vmem>>, vector<1x1024xbf16>
    %13 = vector.broadcast %11 : vector<128x1xbf16> to vector<128x1024xbf16>
    %14 = vector.broadcast %12 : vector<1x1024xbf16> to vector<128x1024xbf16>
    %15 = arith.mulf %13, %14 : vector<128x1024xbf16>
    %16 = arith.addf %10, %15 : vector<128x1024xbf16>
    %cst = arith.constant 0.000000e+00 : bf16
    %17 = vector.broadcast %cst : bf16 to vector<128x1024xbf16>
    %18 = arith.maximumf %16, %17 : vector<128x1024xbf16>
    %c0_6 = arith.constant 0 : index
    %c0_7 = arith.constant 0 : index
    %19 = vector.load %arg4[%c0_6, %c0_7] : memref<1024x1024xbf16, #tpu.memory_space<vmem>>, vector<1024x1024xbf16>
    %cst_8 = arith.constant dense<0.000000e+00> : vector<128x1024xf32>
    %20 = tpu.matmul %18, %19, %cst_8 {dimension_numbers = #tpu.dot_dimension_numbers<[1], [0], [0], [1], [0, 0, 1, 1], [], []>} : vector<128x1024xbf16>, vector<1024x1024xbf16>, vector<128x1024xf32> -> vector<128x1024xf32>
    %c0_9 = arith.constant 0 : index
    %c0_10 = arith.constant 0 : index
    %21 = vector.load %arg5[%c0_9, %c0_10] : memref<1x1024xf32, #tpu.memory_space<vmem>>, vector<1x1024xf32>
    %22 = vector.broadcast %21 : vector<1x1024xf32> to vector<128x1024xf32>
    %23 = arith.addf %20, %22 : vector<128x1024xf32>
    %cst_11 = arith.constant 0.000000e+00 : f32
    %24 = vector.broadcast %cst_11 : f32 to vector<128x1024xf32>
    %25 = arith.maximumf %23, %24 : vector<128x1024xf32>
    %26 = arith.truncf %25 : vector<128x1024xf32> to vector<128x1024xbf16>
    %c0_12 = arith.constant 0 : index
    %c0_13 = arith.constant 0 : index
    %27 = vector.load %arg6[%c0_12, %c0_13] : memref<1024x784xbf16, #tpu.memory_space<vmem>>, vector<1024x784xbf16>
    %cst_14 = arith.constant dense<0.000000e+00> : vector<128x784xf32>
    %28 = tpu.matmul %26, %27, %cst_14 {dimension_numbers = #tpu.dot_dimension_numbers<[1], [0], [0], [1], [0, 0, 1, 1], [], []>} : vector<128x1024xbf16>, vector<1024x784xbf16>, vector<128x784xf32> -> vector<128x784xf32>
    %c0_15 = arith.constant 0 : index
    %c0_16 = arith.constant 0 : index
    %29 = vector.load %arg7[%c0_15, %c0_16] : memref<1x784xf32, #tpu.memory_space<vmem>>, vector<1x784xf32>
    %30 = vector.broadcast %29 : vector<1x784xf32> to vector<128x784xf32>
    %31 = arith.addf %28, %30 : vector<128x784xf32>
    %32 = arith.truncf %31 : vector<128x784xf32> to vector<128x784xbf16>
    %33 = math.tanh %32 : vector<128x784xbf16>
    %c0_17 = arith.constant 0 : index
    %c0_18 = arith.constant 0 : index
    %34 = vector.load %arg8[%c0_17, %c0_18] : memref<128x784xbf16, #tpu.memory_space<vmem>>, vector<128x784xbf16>
    tpu.vector_store %arg8[%c0_17, %c0_18], %33 {strides = array<i32>} : memref<128x784xbf16, #tpu.memory_space<vmem>>, vector<128x784xbf16>,
    return
  }
  func.func @transform_0(%arg0: i32) -> (i32, i32) {
    %c0_i32 = arith.constant 0 : i32
    %c0_i32_0 = arith.constant 0 : i32
    return %arg0, %c0_i32 : i32, i32
  }
  func.func @transform_1(%arg0: i32) -> (i32, i32) {
    %c0_i32 = arith.constant 0 : i32
    %c0_i32_0 = arith.constant 0 : i32
    %c0_i32_1 = arith.constant 0 : i32
    return %c0_i32, %c0_i32_0 : i32, i32
  }
  func.func @transform_2(%arg0: i32) -> (i32, i32) {
    %c0_i32 = arith.constant 0 : i32
    %c0_i32_0 = arith.constant 0 : i32
    %c0_i32_1 = arith.constant 0 : i32
    return %c0_i32, %c0_i32_0 : i32, i32
  }
  func.func @transform_3(%arg0: i32) -> (i32, i32) {
    %c0_i32 = arith.constant 0 : i32
    %c0_i32_0 = arith.constant 0 : i32
    %c0_i32_1 = arith.constant 0 : i32
    return %c0_i32, %c0_i32_0 : i32, i32
  }
  func.func @transform_4(%arg0: i32) -> (i32, i32) {
    %c0_i32 = arith.constant 0 : i32
    %c0_i32_0 = arith.constant 0 : i32
    %c0_i32_1 = arith.constant 0 : i32
    return %c0_i32, %c0_i32_0 : i32, i32
  }
  func.func @transform_5(%arg0: i32) -> (i32, i32) {
    %c0_i32 = arith.constant 0 : i32
    %c0_i32_0 = arith.constant 0 : i32
    %c0_i32_1 = arith.constant 0 : i32
    return %c0_i32, %c0_i32_0 : i32, i32
  }
  func.func @transform_6(%arg0: i32) -> (i32, i32) {
    %c0_i32 = arith.constant 0 : i32
    %c0_i32_0 = arith.constant 0 : i32
    %c0_i32_1 = arith.constant 0 : i32
    return %c0_i32, %c0_i32_0 : i32, i32
  }
  func.func @transform_7(%arg0: i32) -> (i32, i32) {
    %c0_i32 = arith.constant 0 : i32
    %c0_i32_0 = arith.constant 0 : i32
    return %arg0, %c0_i32 : i32, i32
  }
}

</mosaic_0001>

<bundles_post_ra>
// kernel: tpu_custom_call.1
= control target key start
LH: loop header
LB: loop body
LE: loop exit
PB: predicated region body
PF: predicated region fallthrough
CT: control target
= control target key end

     0   :  { %v19933_v0 = vmov 0   ;;  %v13901_v16 = vmov 1   ;;  %vm10894_vm0 = vcmask 125952   ;;  %s19925_s0 = inlined_call_operand.vmem [shape: f32[128,2], index: 0, kind: input, shape index: {}]   ;;  %s19926_s3 = inlined_call_operand.vmem [shape: bf16[1024,1024], index: 3, kind: input, shape index: {}]   ;;  %s19927_s2 = inlined_call_operand.vmem [shape: bf16[1,1024], index: 2, kind: input, shape index: {}]   ;;  %s19928_s1 = inlined_call_operand.vmem [shape: bf16[2,1024], index: 1, kind: input, shape index: {}]   ;;  %s19929_s5 = inlined_call_operand.vmem [shape: bf16[1024,784], index: 5, kind: input, shape index: {}]   ;;  %s19930_s4 = inlined_call_operand.vmem [shape: f32[1,1024], index: 4, kind: input, shape index: {}]   ;;  %s19931_s6 = inlined_call_operand.vmem [shape: f32[1,784], index: 6, kind: input, shape index: {}]   ;;  %s19932_s7 = inlined_call_operand.vmem [shape: bf16[128,784], index: 7, kind: output, shape index: {}]  }
   0x1   :  { %13141 = vset.pattern.permute.xlu1 %v19933_v0  ;;  %13139 = vset.pattern.permute.xlu0 %v19933_v0  ;;  %v29_v1 = vld [vmem:[%s19925_s0 + $0x10] sm:$0xff]  ;;  %v30_v2 = vld [vmem:[%s19925_s0 + $0x18] sm:$0xff]  ;;  %v27_v3 = vld [vmem:[%s19925_s0] sm:$0xff] }
   0x2   :  { %v44_v4 = vpack.c.bf16 %v30_v2, %v29_v1  ;;  %v28_v5 = vld [vmem:[%s19925_s0 + $0x8] sm:$0xff]  ;;  %v31_v7 = vld [vmem:[%s19925_s0 + $0x20] sm:$0xff]  ;;  %v33_v29 = vld [vmem:[%s19925_s0 + $0x30] sm:$0xff] }
   0x3   :  { %v43_v6 = vpack.c.bf16 %v28_v5, %v27_v3  ;;  %v32_v8 = vld [vmem:[%s19925_s0 + $0x28] sm:$0xff]  ;;  %v772_v9 = vld [vmem:[%s19926_s3] sm:$0xff]  ;;  %v34_v30 = vld [vmem:[%s19925_s0 + $0x38] sm:$0xff] }
   0x4   :  { %166 = vperm.xlu1 %13141, %v44_v4   ;;  %v776_v10 = vld [vmem:[%s19926_s3 + $0x20] sm:$0xff]  ;;  %v773_v13 = vld [vmem:[%s19926_s3 + $0x8] sm:$0xff]  ;;  %v45_v26 = vpack.c.bf16 %v32_v8, %v31_v7  ;;  %v46_v37 = vpack.c.bf16 %v34_v30, %v33_v29  ;;  %v37_v51 = vld [vmem:[%s19925_s0 + $0x50] sm:$0xff] }
   0x5   :  { %161 = vperm.xlu0 %13139, %v43_v6   ;;  %v10961_v11 = vcombine.high %v772_v9, %v776_v10  ;;  %v10960_v12 = vcombine.low %v772_v9, %v776_v10  ;;  %v777_v14 = vld [vmem:[%s19926_s3 + $0x28] sm:$0xff]  ;;  %v780_v15 = vld [vmem:[%s19926_s3 + $0x40] sm:$0xff]  ;;  %v38_v52 = vld [vmem:[%s19925_s0 + $0x58] sm:$0xff] }
   0x6   :  { %v10963_v17 = vcombine.high %v773_v13, %v777_v14  ;;  %v10962_v18 = vcombine.low %v773_v13, %v777_v14  ;;  %v784_v19 = vld [vmem:[%s19926_s3 + $0x60] sm:$0xff]  ;;  %v781_v20 = vld [vmem:[%s19926_s3 + $0x48] sm:$0xff]  ;;  %v48_v59 = vpack.c.bf16 %v38_v52, %v37_v51  ;;  %v41_v10 = vld [vmem:[%s19925_s0 + $0x70] sm:$0xff] }
   0x7   :  { %v785_v21 = vld [vmem:[%s19926_s3 + $0x68] sm:$0xff]  ;;  %v10969_v22 = vcombine.high %v780_v15, %v784_v19  ;;  %v788_v24 = vld [vmem:[%s19926_s3 + $0x80] sm:$0xff]  ;;  %3886 = vmatprep.subr.bf16.mxu0 %v10961_v11  ;;  %v10968_v31 = vcombine.low %v780_v15, %v784_v19  ;;  %v42_v11 = vld [vmem:[%s19925_s0 + $0x78] sm:$0xff] }
   0x8   :  { %13142 = vset.pattern.permute.xlu1 %v13901_v16  ;;  %v10971_v23 = vcombine.high %v781_v20, %v785_v21  ;;  %v792_v25 = vld [vmem:[%s19926_s3 + $0xa0] sm:$0xff]  ;;  %v789_v27 = vld [vmem:[%s19926_s3 + $0x88] sm:$0xff]  ;;  %3887 = vmatpush1.bf16.msra.mxu0 %v10960_v12  ;;  %v10970_v32 = vcombine.low %v781_v20, %v785_v21 }
   0x9   :  { %13140 = vset.pattern.permute.xlu0 %v13901_v16  ;;  %439 = vperm.xlu1 %13142, %v44_v4   ;;  %v793_v28 = vld [vmem:[%s19926_s3 + $0xa8] sm:$0xff]  ;;  %v10977_v33 = vcombine.high %v788_v24, %v792_v25  ;;  %v796_v35 = vld [vmem:[%s19926_s3 + $0xc0] sm:$0xff]  ;;  %v10976_v42 = vcombine.low %v788_v24, %v792_v25 }
   0xa   :  { %435 = vperm.xlu0 %13140, %v43_v6   ;;  %4338 = vmatprep.subr.bf16.mxu1 %v10963_v17  ;;  %v10979_v34 = vcombine.high %v789_v27, %v793_v28  ;;  %v800_v36 = vld [vmem:[%s19926_s3 + $0xe0] sm:$0xff]  ;;  %v797_v38 = vld [vmem:[%s19926_s3 + $0xc8] sm:$0xff]  ;;  %v10978_v43 = vcombine.low %v789_v27, %v793_v28 }
   0xb   :  { %4339 = vmatpush1.bf16.msra.mxu1 %v10962_v18  ;;  %3888 = vmatprep.subr.bf16.mxu0 %v10969_v22  ;;  %v801_v39 = vld [vmem:[%s19926_s3 + $0xe8] sm:$0xff]  ;;  %v35_v40 = vld [vmem:[%s19925_s0 + $0x40] sm:$0xff]  ;;  %v10985_v44 = vcombine.high %v796_v35, %v800_v36  ;;  %v10984_v53 = vcombine.low %v796_v35, %v800_v36 }
   0xc   :  { %4340 = vmatprep.subr.bf16.mxu1 %v10971_v23  ;;  %v36_v41 = vld [vmem:[%s19925_s0 + $0x48] sm:$0xff]  ;;  %3889 = vmatpush1.bf16.msra.mxu0 %v10968_v31  ;;  %v10987_v45 = vcombine.high %v797_v38, %v801_v39  ;;  %v804_v46 = vld [vmem:[%s19926_s3 + $0x100] sm:$0xff]  ;;  %v10986_v54 = vcombine.low %v797_v38, %v801_v39  ;;  %v50_v23 = vpack.c.bf16 %v42_v11, %v41_v10 }
   0xd   :  { %13143 = vset.pattern.permute.xlu1 %v19933_v0  ;;  %3890 = vmatprep.subr.bf16.mxu0 %v10977_v33  ;;  %v808_v47 = vld [vmem:[%s19926_s3 + $0x120] sm:$0xff]  ;;  %v47_v48 = vpack.c.bf16 %v36_v41, %v35_v40  ;;  %v805_v49 = vld [vmem:[%s19926_s3 + $0x108] sm:$0xff]  ;;  %v13902_v41 = vmov 1966171168  }
   0xe   :  { %443 = vperm.xlu0 %13140, %v45_v26   ;;  %171 = vperm.xlu1 %13143, %v45_v26   ;;  %v809_v50 = vld [vmem:[%s19926_s3 + $0x128] sm:$0xff]  ;;  %v10993_v55 = vcombine.high %v804_v46, %v808_v47  ;;  %v812_v57 = vld [vmem:[%s19926_s3 + $0x140] sm:$0xff]  ;;  %v10992_v1 = vcombine.low %v804_v46, %v808_v47 }
   0xf   :  { %4341 = vmatpush1.bf16.msra.mxu1 %v10970_v32  ;;  %v10995_v56 = vcombine.high %v805_v49, %v809_v50  ;;  %v816_v58 = vld [vmem:[%s19926_s3 + $0x160] sm:$0xff]  ;;  %v813_v60 = vld [vmem:[%s19926_s3 + $0x148] sm:$0xff]  ;;  %v10994_v2 = vcombine.low %v805_v49, %v809_v50 }
  0x10   :  { %4342 = vmatprep.subr.bf16.mxu1 %v10979_v34  ;;  %3891 = vmatpush1.bf16.msra.mxu0 %v10976_v42  ;;  %v817_v61 = vld [vmem:[%s19926_s3 + $0x168] sm:$0xff]  ;;  %v39_v62 = vld [vmem:[%s19925_s0 + $0x60] sm:$0xff]  ;;  %v11001_v3 = vcombine.high %v812_v57, %v816_v58  ;;  %v11000_v12 = vcombine.low %v812_v57, %v816_v58  ;;  %v55_v42 = vunpack.c.l.s4 %v13902_v41 }
  0x11   :  { %3892 = vmatprep.subr.bf16.mxu0 %v10985_v44  ;;  %v40_v63 = vld [vmem:[%s19925_s0 + $0x68] sm:$0xff]  ;;  %v11003_v4 = vcombine.high %v813_v60, %v817_v61  ;;  %v820_v5 = vld [vmem:[%s19926_s3 + $0x180] sm:$0xff]  ;;  %v11002_v13 = vcombine.low %v813_v60, %v817_v61 }
  0x12   :  { %447 = vperm.xlu0 %13140, %v46_v37   ;;  %176 = vperm.xlu1 %13143, %v46_v37   ;;  %v824_v6 = vld [vmem:[%s19926_s3 + $0x1a0] sm:$0xff]  ;;  %v49_v7 = vpack.c.bf16 %v40_v63, %v39_v62  ;;  %v821_v8 = vld [vmem:[%s19926_s3 + $0x188] sm:$0xff] }
  0x13   :  { %4343 = vmatpush1.bf16.msra.mxu1 %v10978_v43  ;;  %v825_v9 = vld [vmem:[%s19926_s3 + $0x1a8] sm:$0xff]  ;;  %v11009_v14 = vcombine.high %v820_v5, %v824_v6  ;;  %v828_v15 = vld [vmem:[%s19926_s3 + $0x1c0] sm:$0xff]  ;;  %v11008_v27 = vcombine.low %v820_v5, %v824_v6  ;;  %v57_v43 = vlaneseq }
  0x14   :  { %4344 = vmatprep.subr.bf16.mxu1 %v10987_v45  ;;  %3893 = vmatpush1.bf16.msra.mxu0 %v10984_v53  ;;  %v14084_v16 = vld [vmem:[%s19926_s3 + $0x400] sm:$0xff]  ;;  %v11011_v18 = vcombine.high %v821_v8, %v825_v9  ;;  %v14099_v21 = vld [vmem:[%s19926_s3 + $0x408] sm:$0xff]  ;;  %v11010_v28 = vcombine.low %v821_v8, %v825_v9  ;;  %v56_v53 = vunpack.c.0.s8 %v55_v42 }
  0x15   :  { %3894 = vmatprep.subr.bf16.mxu0 %v10993_v55  ;;  %v14089_v17 = vld [vmem:[%s19926_s3 + $0x420] sm:$0xff]  ;;  %v14104_v22 = vld [vmem:[%s19926_s3 + $0x428] sm:$0xff] }
  0x16   :  { %451 = vperm.xlu0 %13140, %v47_v48   ;;  %181 = vperm.xlu1 %13143, %v47_v48   ;;  %v832_v19 = vld [vmem:[%s19926_s3 + $0x1e0] sm:$0xff]  ;;  %v829_v24 = vld [vmem:[%s19926_s3 + $0x1c8] sm:$0xff] }
  0x17   :  { %4345 = vmatpush1.bf16.msra.mxu1 %v10986_v54  ;;  %v833_v25 = vld [vmem:[%s19926_s3 + $0x1e8] sm:$0xff]  ;;  %v11017_v29 = vcombine.high %v828_v15, %v832_v19  ;;  %v836_v31 = vld [vmem:[%s19926_s3 + $0x200] sm:$0xff]  ;;  %v11016_v35 = vcombine.low %v828_v15, %v832_v19  ;;  %v14149_v54 = vshrl.u32 %v57_v43, 7 }
  0x18   :  { %4346 = vmatprep.subr.bf16.mxu1 %v10995_v56  ;;  %3895 = vmatpush1.bf16.msra.mxu0 %v10992_v1  ;;  %v11019_v30 = vcombine.high %v829_v24, %v833_v25  ;;  %v840_v32 = vld [vmem:[%s19926_s3 + $0x220] sm:$0xff]  ;;  %v837_v33 = vld [vmem:[%s19926_s3 + $0x208] sm:$0xff]  ;;  %v11018_v36 = vcombine.low %v829_v24, %v833_v25 }
  0x19   :  { %3896 = vmatprep.subr.bf16.mxu0 %v11001_v3  ;;  %v841_v34 = vld [vmem:[%s19926_s3 + $0x228] sm:$0xff]  ;;  %v11025_v37 = vcombine.high %v836_v31, %v840_v32  ;;  %v844_v39 = vld [vmem:[%s19926_s3 + $0x240] sm:$0xff]  ;;  %v11024_v46 = vcombine.low %v836_v31, %v840_v32  ;;  %20111 = vst [vmem:[#allocation2_spill] sm:$0xff] %v14149_v54 }
  0x1a   :  { %455 = vperm.xlu0 %13140, %v48_v59   ;;  %186 = vperm.xlu1 %13143, %v48_v59   ;;  %v11027_v38 = vcombine.high %v837_v33, %v841_v34  ;;  %v848_v40 = vld [vmem:[%s19926_s3 + $0x260] sm:$0xff]  ;;  %v845_v44 = vld [vmem:[%s19926_s3 + $0x248] sm:$0xff]  ;;  %v11026_v47 = vcombine.low %v837_v33, %v841_v34 }
  0x1b   :  { %4347 = vmatpush1.bf16.msra.mxu1 %v10994_v2  ;;  %v849_v45 = vld [vmem:[%s19926_s3 + $0x268] sm:$0xff]  ;;  %v11033_v48 = vcombine.high %v844_v39, %v848_v40  ;;  %v14141_v49 = vld [vmem:[%s19927_s2] sm:$0xff]  ;;  %v11032_v57 = vcombine.low %v844_v39, %v848_v40  ;;  %v14171_v2 = vsub.s32 %v56_v53, %v14149_v54 }
  0x1c   :  { %4348 = vmatprep.subr.bf16.mxu1 %v11003_v4  ;;  %3897 = vmatpush1.bf16.msra.mxu0 %v11000_v12  ;;  %v11035_v50 = vcombine.high %v845_v44, %v849_v45  ;;  %v852_v51 = vld [vmem:[%s19926_s3 + $0x280] sm:$0xff]  ;;  %v853_v55 = vld [vmem:[%s19926_s3 + $0x288] sm:$0xff]  ;;  %v53_v58 = vcombine.high %v14141_v49, %v14141_v49  ;;  %v11034_v59 = vcombine.low %v845_v44, %v849_v45 }
  0x1d   :  { %3898 = vmatprep.subr.bf16.mxu0 %v11009_v14  ;;  %v856_v52 = vld [vmem:[%s19926_s3 + $0x2a0] sm:$0xff]  ;;  %v857_v56 = vld [vmem:[%s19926_s3 + $0x2a8] sm:$0xff] }
  0x1e   :  { %459 = vperm.xlu0 %13140, %v49_v7   ;;  %191 = vperm.xlu1 %13143, %v49_v7   ;;  %v11041_v60 = vcombine.high %v852_v51, %v856_v52  ;;  %v14162_v61 = vld [vmem:[%s19928_s1] sm:$0xff]  ;;  %v11043_v62 = vcombine.high %v853_v55, %v857_v56  ;;  %v861_v3 = vld [vmem:[%s19926_s3 + $0x2c8] sm:$0xff]  ;;  %v11040_v5 = vcombine.low %v852_v51, %v856_v52 }
  0x1f   :  { %4349 = vmatpush1.bf16.msra.mxu1 %v11002_v13  ;;  %v860_v63 = vld [vmem:[%s19926_s3 + $0x2c0] sm:$0xff]  ;;  %v865_v4 = vld [vmem:[%s19926_s3 + $0x2e8] sm:$0xff]  ;;  %v67_v6 = vrot.slane %v53_v58, %v14171_v2  ;;  %v200_v7 = vcombine.high %v14162_v61, %v14162_v61  ;;  %v11042_v8 = vcombine.low %v853_v55, %v857_v56 }
  0x20   :  { %4350 = vmatprep.subr.bf16.mxu1 %v11011_v18  ;;  %3899 = vmatpush1.bf16.msra.mxu0 %v11008_v27  ;;  %v864_v1 = vld [vmem:[%s19926_s3 + $0x2e0] sm:$0xff]  ;;  %v11051_v10 = vcombine.high %v861_v3, %v865_v4  ;;  %v869_v14 = vld [vmem:[%s19926_s3 + $0x308] sm:$0xff]  ;;  %v11050_v25 = vcombine.low %v861_v3, %v865_v4 }
  0x21   :  { %3900 = vmatprep.subr.bf16.mxu0 %v11017_v29  ;;  %v11049_v9 = vcombine.high %v860_v63, %v864_v1  ;;  %v868_v11 = vld [vmem:[%s19926_s3 + $0x300] sm:$0xff]  ;;  %v69_v13 = vcombine.high %v67_v6, %v67_v6  ;;  %v873_v15 = vld [vmem:[%s19926_s3 + $0x328] sm:$0xff]  ;;  %v214_v18 = vrot.slane %v200_v7, %v14171_v2  ;;  %v14196_v19 = vrot.slane %v67_v6, %v14171_v2 }
  0x22   :  { %463 = vperm.xlu0 %13140, %v50_v23   ;;  %196 = vperm.xlu1 %13143, %v50_v23   ;;  %v872_v12 = vld [vmem:[%s19926_s3 + $0x320] sm:$0xff]  ;;  %v11048_v23 = vcombine.low %v860_v63, %v864_v1  ;;  %v11059_v29 = vcombine.high %v869_v14, %v873_v15  ;;  %v877_v32 = vld [vmem:[%s19926_s3 + $0x348] sm:$0xff]  ;;  %v207_v63 = vrot.slane %v14162_v61, %v14171_v2  ;;  %v14261_v61 = vsub.s32 0, %v14149_v54 }
  0x23   :  { %4351 = vmatpush1.bf16.msra.mxu1 %v11010_v28  ;;  %v14199_v24 = vrot.slane %v69_v13, %v14171_v2  ;;  %v11057_v27 = vcombine.high %v868_v11, %v872_v12  ;;  %v216_v28 = vcombine.high %v214_v18, %v214_v18  ;;  %v880_v31 = vld [vmem:[%s19926_s3 + $0x360] sm:$0xff]  ;;  %v881_v33 = vld [vmem:[%s19926_s3 + $0x368] sm:$0xff]  ;;  %v60_v1 = vrot.slane %v14141_v49, %v14171_v2 }
  0x24   :  { %4352 = vmatprep.subr.bf16.mxu1 %v11019_v30  ;;  %3901 = vmatpush1.bf16.msra.mxu0 %v11016_v35  ;;  %v876_v30 = vld [vmem:[%s19926_s3 + $0x340] sm:$0xff]  ;;  %v14217_v35 = vrot.slane %v214_v18, %v14171_v2  ;;  %v11067_v39 = vcombine.high %v877_v32, %v881_v33  ;;  %v885_v42 = vld [vmem:[%s19926_s3 + $0x388] sm:$0xff]  ;;  %v11066_v45 = vcombine.low %v877_v32, %v881_v33 }
  0x25   :  { %3902 = vmatprep.subr.bf16.mxu0 %v11025_v37  ;;  %v14214_v34 = vrot.slane %v216_v28, %v14171_v2  ;;  %v11058_v37 = vcombine.low %v869_v14, %v873_v15  ;;  %v884_v40 = vld [vmem:[%s19926_s3 + $0x380] sm:$0xff]  ;;  %v889_v43 = vld [vmem:[%s19926_s3 + $0x3a8] sm:$0xff]  ;;  %v11064_v44 = vcombine.low %v876_v30, %v880_v31  ;;  %v215_v3 = vcombine.high %v207_v63, %v207_v63 }
  0x26   :  { %v888_v41 = vld [vmem:[%s19926_s3 + $0x3a0] sm:$0xff]  ;;  %v893_v51 = vld [vmem:[%s19926_s3 + $0x3c8] sm:$0xff]  ;;  %v11074_v55 = vcombine.low %v885_v42, %v889_v43  ;;  %v68_v4 = vcombine.high %v60_v1, %v60_v1  ;;  %v76_v7 = vrot.slane %v60_v1, %v14171_v2  ;;  %20112 = vst [vmem:[#allocation3_spill] sm:$0xff] %v14261_v61 }
  0x27   :  { %4353 = vmatpush1.bf16.msra.mxu1 %v11018_v36  ;;  %v11056_v36 = vcombine.low %v868_v11, %v872_v12  ;;  %v897_v52 = vld [vmem:[%s19926_s3 + $0x3e8] sm:$0xff]  ;;  %v11072_v53 = vcombine.low %v884_v40, %v888_v41  ;;  %v14253_v6 = vrot.slane %v215_v3, %v14171_v2  ;;  %v14268_v13 = vld [vmem:[%s19926_s3 + $0x440] sm:$0xff] }
  0x28   :  { %4354 = vmatprep.subr.bf16.mxu1 %v11027_v38  ;;  %3903 = vmatpush1.bf16.msra.mxu0 %v11024_v46  ;;  %v11065_v38 = vcombine.high %v876_v30, %v880_v31  ;;  %v11073_v46 = vcombine.high %v884_v40, %v888_v41  ;;  %v103_v11 = vpack.i.b16 %v76_v7, %v76_v7  ;;  %v14280_v18 = vld [vmem:[%s19926_s3 + $0x448] sm:$0xff]  ;;  %v14296_v30 = vld [vmem:[%s19926_s3 + $0x480] sm:$0xff] }
  0x29   :  { %3904 = vmatprep.subr.bf16.mxu0 %v11033_v48  ;;  %v892_v48 = vld [vmem:[%s19926_s3 + $0x3c0] sm:$0xff]  ;;  %v257_v49 = vpack.i.b16 %v14253_v6, %v14253_v6  ;;  %v14306_v32 = vld [vmem:[%s19926_s3 + $0x488] sm:$0xff] }
  0x2a   :  { %v14301_v31 = vld [vmem:[%s19926_s3 + $0x4a0] sm:$0xff]  ;;  %v14457_v1 = vld [vmem:[%s19926_s3 + $0x5a8] sm:$0xff] }
  0x2b   :  { %4355 = vmatpush1.bf16.msra.mxu1 %v11026_v47  ;;  %v11075_v47 = vcombine.high %v885_v42, %v889_v43  ;;  %v14309_v33 = vrot.slane %v257_v49, %v14261_v61  ;;  %v14327_v40 = vld [vmem:[%s19926_s3 + $0x4c0] sm:$0xff]  ;;  %v14452_v49 = vld [vmem:[%s19926_s3 + $0x588] sm:$0xff] }
  0x2c   :  { %4356 = vmatprep.subr.bf16.mxu1 %v11035_v50  ;;  %3905 = vmatpush1.bf16.msra.mxu0 %v11032_v57  ;;  %v896_v50 = vld [vmem:[%s19926_s3 + $0x3e0] sm:$0xff]  ;;  %v11083_v57 = vcombine.high %v893_v51, %v897_v52 }
  0x2d   :  { %3906 = vmatprep.subr.bf16.mxu0 %v11041_v60  ;;  %v11081_v56 = vcombine.high %v892_v48, %v896_v50  ;;  %v11080_v58 = vcombine.low %v892_v48, %v896_v50  ;;  %v11089_v60 = vcombine.high %v14084_v16, %v14089_v17  ;;  %v14332_v41 = vld [vmem:[%s19926_s3 + $0x4e0] sm:$0xff] }
  0x2e   :  { %v14356_v48 = vld [vmem:[%s19926_s3 + $0x500] sm:$0xff] }
  0x2f   :  { %4357 = vmatpush1.bf16.msra.mxu1 %v11034_v59  ;;  %v11082_v59 = vcombine.low %v893_v51, %v897_v52  ;;  %v14397_v3 = vld [vmem:[%s19926_s3 + $0x540] sm:$0xff] }
  0x30   :  { %4358 = vmatprep.subr.bf16.mxu1 %v11043_v62  ;;  %3907 = vmatpush1.bf16.msra.mxu0 %v11040_v5  ;;  %v11091_v62 = vcombine.high %v14099_v21, %v14104_v22  ;;  %v223_v5 = vrot.slane %v207_v63, %v14171_v2 }
  0x31   :  { %3908 = vmatprep.subr.bf16.mxu0 %v11049_v9  ;;  %v14257_v9 = vrot.slane %v68_v4, %v14171_v2  ;;  %v14273_v2 = vld [vmem:[%s19926_s3 + $0x460] sm:$0xff] }
  0x32   :  { %v250_v12 = vpack.i.b16 %v223_v5, %v223_v5  ;;  %v14289_v28 = vcombine.high %v223_v5, %v223_v5  ;;  %v14402_v4 = vld [vmem:[%s19926_s3 + $0x560] sm:$0xff] }
  0x33   :  { %4359 = vmatpush1.bf16.msra.mxu1 %v11042_v8  ;;  %v517_v8 = vshrl.u32 %v223_v5, 16  ;;  %v110_v14 = vpack.i.b16 %v14257_v9, %v14257_v9  ;;  %v14407_v5 = vld [vmem:[%s19926_s3 + $0x548] sm:$0xff]  ;;  %v100_v0 = vcombine.high %v14257_v9, %v14257_v9  ;;  %v247_v9 = vcombine.high %v14253_v6, %v14253_v6 }
  0x34   :  { %4360 = vmatprep.subr.bf16.mxu1 %v11051_v10  ;;  %3909 = vmatpush1.bf16.msra.mxu0 %v11048_v23  ;;  %v525_v10 = vshrl.u32 %v14253_v6, 16  ;;  %v14285_v23 = vld [vmem:[%s19926_s3 + $0x468] sm:$0xff]  ;;  %v264_v20 = vpack.i.b16 %v14289_v28, %v14289_v28 }
  0x35   :  { %3910 = vmatprep.subr.bf16.mxu0 %v11057_v27  ;;  %v518_v15 = vpack.i.b16 %v517_v8, %v517_v8  ;;  %v14287_v27 = vcombine.high %v76_v7, %v76_v7  ;;  %v14337_v43 = vrot.slane %v110_v14, %v14261_v61  ;;  %v14430_v14 = vld [vmem:[%s19926_s3 + $0x5a0] sm:$0xff] }
  0x37   :  { %4361 = vmatpush1.bf16.msra.mxu1 %v11050_v25  ;;  %v526_v25 = vpack.i.b16 %v525_v10, %v525_v10  ;;  %v14362_v52 = vrot.slane %v518_v15, %v14261_v61 }
  0x38   :  { %4362 = vmatprep.subr.bf16.mxu1 %v11059_v29  ;;  %3911 = vmatpush1.bf16.msra.mxu0 %v11056_v36  ;;  %v14312_v36 = vrot.slane %v103_v11, %v14261_v61  ;;  %v14420_v11 = vld [vmem:[%s19926_s3 + $0x568] sm:$0xff] }
  0x39   :  { %3912 = vmatprep.subr.bf16.mxu0 %v11065_v38  ;;  %v14504_v38 = vld [vmem:[%s19926_s3 + $0x5c8] sm:$0xff] }
  0x3b   :  { %4363 = vmatpush1.bf16.msra.mxu1 %v11058_v37  ;;  %v14315_v37 = vrot.slane %v250_v12, %v14261_v61  ;;  %v14425_v12 = vld [vmem:[%s19926_s3 + $0x580] sm:$0xff] }
  0x3c   :  { %4364 = vmatprep.subr.bf16.mxu1 %v11067_v39  ;;  %3913 = vmatpush1.bf16.msra.mxu0 %v11064_v44  ;;  %v14322_v39 = vld [vmem:[%s19926_s3 + $0x4a8] sm:$0xff] }
  0x3d   :  { %3914 = vmatprep.subr.bf16.mxu0 %v11073_v46  ;;  %v14346_v46 = vld [vmem:[%s19926_s3 + $0x4c8] sm:$0xff] }
  0x3f   :  { %4365 = vmatpush1.bf16.msra.mxu1 %v11066_v45 }
  0x40   :  { %4366 = vmatprep.subr.bf16.mxu1 %v11075_v47  ;;  %3915 = vmatpush1.bf16.msra.mxu0 %v11072_v53  ;;  %v14351_v47 = vld [vmem:[%s19926_s3 + $0x4e8] sm:$0xff] }
  0x41   :  { %3916 = vmatprep.subr.bf16.mxu0 %v11081_v56 }
  0x43   :  { %4367 = vmatpush1.bf16.msra.mxu1 %v11074_v55 }
  0x44   :  { %4368 = vmatprep.subr.bf16.mxu1 %v11083_v57  ;;  %3917 = vmatpush1.bf16.msra.mxu0 %v11080_v58  ;;  %v14373_v57 = vld [vmem:[%s19926_s3 + $0x520] sm:$0xff]  ;;  %v14378_v58 = vld [vmem:[%s19926_s3 + $0x508] sm:$0xff] }
  0x45   :  { %3999 = vmatprep.subr.bf16.mxu0 %v11089_v60  ;;  %v14386_v60 = vrot.slane %v526_v25, %v14261_v61  ;;  %v14483_v25 = vld [vmem:[%s19926_s3 + $0x5e0] sm:$0xff] }
  0x47   :  { %4369 = vmatpush1.bf16.msra.mxu1 %v11082_v59  ;;  %v14383_v59 = vld [vmem:[%s19926_s3 + $0x528] sm:$0xff] }
  0x48   :  { %4451 = vmatprep.subr.bf16.mxu1 %v11091_v62 }
  0x83   :  { %v14334_v42 = vpop.permute.xlu1 %166 }
  0x84   :  { %20113 = vst [vmem:[#allocation4_spill] sm:$0xff] %v14334_v42  ;;  %v14359_v51 = vpop.permute.xlu0 %161  ;;  %v314_v53 = vmul.bf16 %v14309_v33, %v14334_v42 }
  0x85   :  { %20114 = vst [vmem:[#allocation5_spill] sm:$0xff] %v14359_v51  ;;  %v306_v7 = vmul.bf16 %v14309_v33, %v14359_v51  ;;  %v305_v8 = vmul.bf16 %v14315_v37, %v14359_v51  ;;  %v124_v51 = vpack.i.b16 %v100_v0, %v100_v0  ;;  %v20125_v0 = vcombine.low %v14084_v16, %v14089_v17  ;;  %v14573_v16 = vld [vmem:[%s19926_s3 + $0x628] sm:$0xff] }
  0x86   :  { %v378_v15 = vadd.bf16 %v314_v53, %v14337_v43  ;;  %v14478_v53 = vld [vmem:[%s19926_s3 + $0x5c0] sm:$0xff]  ;;  %v14576_v17 = vrot.slane %v264_v20, %v14261_v61  ;;  %v20130_v20 = vcombine.high %v14280_v18, %v14285_v23 }
  0x87   :  { %v370_v56 = vadd.bf16 %v306_v7, %v14337_v43  ;;  %v369_v29 = vadd.bf16 %v305_v8, %v14312_v36  ;;  %v313_v7 = vmul.bf16 %v14315_v37, %v14334_v42 }
  0x88   :  { %v14439_v10 = vpop.permute.xlu1 %439  ;;  %20127 = vst [vmem:[#allocation15_spill] sm:$0xff] %v14576_v17  ;;  %v14594_v17 = vrot.slane %v124_v51, %v14261_v61 }
  0x89   :  { %20115 = vst [vmem:[#allocation6_spill] sm:$0xff] %v14439_v10  ;;  %v14459_v62 = vpop.permute.xlu0 %435  ;;  %v589_v55 = vmul.bf16 %v14386_v60, %v14439_v10  ;;  %v377_v6 = vadd.bf16 %v313_v7, %v14312_v36 }
  0x8a   :  { %20116 = vst [vmem:[#allocation7_spill] sm:$0xff] %v14459_v62  ;;  %v581_v44 = vmul.bf16 %v14386_v60, %v14459_v62  ;;  %v580_v45 = vmul.bf16 %v14362_v52, %v14459_v62  ;;  %v20126_v62 = vcombine.low %v14099_v21, %v14104_v22  ;;  %v20128_v21 = vshrl.u32 %v14289_v28, 16  ;;  %20131 = vst [vmem:[#allocation16_spill] sm:$0xff] %v14594_v17 }
  0x8b   :  { %v653_v63 = vadd.bf16 %v589_v55, %v378_v15 }
  0x8c   :  { %v645_v50 = vadd.bf16 %v581_v44, %v370_v56  ;;  %v644_v26 = vadd.bf16 %v580_v45, %v369_v29  ;;  %v14509_v29 = vld [vmem:[%s19926_s3 + $0x5e8] sm:$0xff]  ;;  %v117_v44 = vpack.i.b16 %v14287_v27, %v14287_v27  ;;  %v20118_v45 = vmov 0  }
  0x8d   :  { %v14495_v54 = vpop.permute.xlu1 %171  ;;  %v14525_v8 = vpop.permute.xlu0 %443  ;;  %v14528_v42 = vmax.bf16 %v20118_v45, %v653_v63  ;;  %v588_v27 = vmul.bf16 %v14362_v52, %v14439_v10  ;;  %v14547_v10 = vld [vmem:[%s19926_s3 + $0x600] sm:$0xff]  ;;  %v534_v22 = vpack.i.b16 %v20128_v21, %v20128_v21 }
  0x8e   :  { %20117 = vst [vmem:[#allocation8_spill] sm:$0xff] %v14495_v54  ;;  %v14516_v56 = vmax.bf16 %v20118_v45, %v645_v50  ;;  %v14519_v55 = vmax.bf16 %v20118_v45, %v644_v26  ;;  %v322_v15 = vmul.bf16 %v14309_v33, %v14495_v54  ;;  %20121 = vst [vmem:[#allocation11_spill] sm:$0xff] %v14525_v8  ;;  %v541_v50 = vshrl.u32 %v247_v9, 16 }
  0x8f   :  { %20122 = vst [vmem:[#allocation12_spill] sm:$0xff] %v14528_v42  ;;  %v597_v7 = vmul.bf16 %v14386_v60, %v14525_v8 }
  0x90   :  { %20119 = vst [vmem:[#allocation9_spill] sm:$0xff] %v14516_v56  ;;  %20120 = vst [vmem:[#allocation10_spill] sm:$0xff] %v14519_v55  ;;  %3918 = vmatprep.mubr.bf16.mxu0 %v14516_v56  ;;  %4370 = vmatprep.mubr.bf16.mxu1 %v14516_v56  ;;  %v386_v26 = vadd.bf16 %v322_v15, %v14337_v43  ;;  %v271_v56 = vpack.i.b16 %v247_v9, %v247_v9  ;;  %v14568_v9 = vld [vmem:[%s19926_s3 + $0x608] sm:$0xff] }
  0x91   :  { %3919 = vmatmul.mubr.bf16.vlgmr.msra.gmra.mrb[0].mxu0 %v14519_v55  ;;  %4371 = vmatmul.mubr.bf16.vlgmr.msra.gmra.mrb[0].mxu1 %v14519_v55  ;;  %v14540_v63 = vpop.permute.xlu1 %176  ;;  %v14550_v15 = vrot.slane %v117_v44, %v14261_v61  ;;  %v14563_v55 = vld [vmem:[%s19926_s3 + $0x620] sm:$0xff]  ;;  %v652_v44 = vadd.bf16 %v588_v27, %v377_v6  ;;  %v14626_v6 = vld [vmem:[%s19926_s3 + $0x648] sm:$0xff] }
  0x92   :  { %20123 = vst [vmem:[#allocation13_spill] sm:$0xff] %v14540_v63  ;;  %4000 = vmatpush1.bf16.msra.mxu0 %v20125_v0  ;;  %4452 = vmatpush1.bf16.msra.mxu1 %v20126_v62  ;;  %v20129_v62 = vcombine.high %v14268_v13, %v14273_v2  ;;  %v321_v0 = vmul.bf16 %v14315_v37, %v14495_v54 }
  0x93   :  { %20124 = vst [vmem:[#allocation14_spill] sm:$0xff] %v14550_v15  ;;  %3928 = vmatprep.mubr.bf16.mxu0 %v14528_v42  ;;  %v542_v15 = vpack.i.b16 %v541_v50, %v541_v50  ;;  %4380 = vmatprep.mubr.bf16.mxu1 %v14528_v42  ;;  %v661_v28 = vadd.bf16 %v597_v7, %v386_v26  ;;  %v14610_v26 = vld [vmem:[%s19926_s3 + $0x660] sm:$0xff] }
  0x94   :  { %4001 = vmatprep.subr.bf16.mxu0 %v20129_v62  ;;  %4453 = vmatprep.subr.bf16.mxu1 %v20130_v20  ;;  %v330_v21 = vmul.bf16 %v14309_v33, %v14540_v63  ;;  %v14605_v62 = vld [vmem:[%s19926_s3 + $0x640] sm:$0xff]  ;;  %v14613_v51 = vrot.slane %v271_v56, %v14261_v61  ;;  %v20133_v7 = vcombine.low %v14268_v13, %v14273_v2  ;;  %v14631_v56 = vld [vmem:[%s19926_s3 + $0x668] sm:$0xff] }
  0x95   :  { %v20134_v20 = vcombine.low %v14280_v18, %v14285_v23  ;;  %v14634_v13 = vrot.slane %v534_v22, %v14261_v61  ;;  %v138_v2 = vpack.i.b16 %v14199_v24, %v14199_v24  ;;  %v14638_v18 = vpop.permute.xlu0 %447  ;;  %v20137_v23 = vcombine.high %v14296_v30, %v14301_v31 }
  0x96   :  { %20132 = vst [vmem:[#allocation17_spill] sm:$0xff] %v14613_v51  ;;  %4002 = vmatpush1.bf16.msra.mxu0 %v20133_v7  ;;  %20136 = vst [vmem:[#allocation19_spill] sm:$0xff] %v14638_v18  ;;  %v14644_v7 = vmax.bf16 %v20118_v45, %v652_v44  ;;  %v385_v50 = vadd.bf16 %v321_v0, %v14312_v36  ;;  %v14651_v22 = vrot.slane %v542_v15, %v14261_v61  ;;  %v14682_v44 = vld [vmem:[%s19926_s3 + $0x680] sm:$0xff] }
  0x97   :  { %4454 = vmatpush1.bf16.msra.mxu1 %v20134_v20  ;;  %20135 = vst [vmem:[#allocation18_spill] sm:$0xff] %v14634_v13  ;;  %4003 = vmatprep.subr.bf16.mxu0 %v20137_v23  ;;  %v20139_v20 = vcombine.high %v14306_v32, %v14322_v39  ;;  %v14654_v27 = vmax.bf16 %v20118_v45, %v661_v28  ;;  %v14661_v13 = vpop.permute.xlu1 %181  ;;  %v14687_v0 = vld [vmem:[%s19926_s3 + $0x6a0] sm:$0xff] }
  0x98   :  { %20138 = vst [vmem:[#allocation20_spill] sm:$0xff] %v14644_v7  ;;  %20140 = vst [vmem:[#allocation21_spill] sm:$0xff] %v14651_v22  ;;  %v394_v42 = vadd.bf16 %v330_v21, %v14337_v43  ;;  %v596_v15 = vmul.bf16 %v14362_v52, %v14525_v8  ;;  %v131_v28 = vpack.i.b16 %v14196_v19, %v14196_v19  ;;  %v14762_v8 = vld [vmem:[%s19926_s3 + $0x6e0] sm:$0xff] }
  0x99   :  { %4455 = vmatprep.subr.bf16.mxu1 %v20139_v20  ;;  %20141 = vst [vmem:[#allocation22_spill] sm:$0xff] %v14654_v27  ;;  %20142 = vst [vmem:[#allocation23_spill] sm:$0xff] %v14661_v13  ;;  %3929 = vmatmul.mubr.bf16.gmra.mrb[4].mxu0 %v14644_v7  ;;  %v20143_v21 = vcombine.low %v14296_v30, %v14301_v31  ;;  %v605_v20 = vmul.bf16 %v14386_v60, %v14638_v18  ;;  %v14742_v51 = vpop.permute.xlu0 %451 }
  0x9a   :  { %4381 = vmatmul.mubr.bf16.gmra.mrb[4].mxu1 %v14644_v7  ;;  %3938 = vmatprep.mubr.bf16.mxu0 %v14654_v27  ;;  %v14690_v30 = vrot.slane %v138_v2, %v14261_v61  ;;  %v20144_v31 = vcombine.low %v14306_v32, %v14322_v39  ;;  %v329_v23 = vmul.bf16 %v14315_v37, %v14540_v63  ;;  %v14701_v7 = vld [vmem:[%s19926_s3 + $0x688] sm:$0xff] }
  0x9b   :  { %4004 = vmatpush1.bf16.msra.mxu0 %v20143_v21  ;;  %4390 = vmatprep.mubr.bf16.mxu1 %v14654_v27  ;;  %v660_v21 = vadd.bf16 %v596_v15, %v385_v50  ;;  %v14706_v2 = vld [vmem:[%s19926_s3 + $0x6a8] sm:$0xff]  ;;  %v285_v27 = vpack.i.b16 %v14214_v34, %v14214_v34  ;;  %v20145_v32 = vcombine.high %v14327_v40, %v14332_v41  ;;  %v14777_v17 = vpop.permute.xlu1 %186 }
  0x9c   :  { %4456 = vmatpush1.bf16.msra.mxu1 %v20144_v31  ;;  %v20146_v39 = vcombine.high %v14346_v46, %v14351_v47  ;;  %v669_v50 = vadd.bf16 %v605_v20, %v394_v42  ;;  %v338_v15 = vmul.bf16 %v14309_v33, %v14661_v13  ;;  %v557_v31 = vshrl.u32 %v14214_v34, 16  ;;  %20148 = vst [vmem:[#allocation24_spill] sm:$0xff] %v14742_v51 }
  0x9d   :  { %4005 = vmatprep.subr.bf16.mxu0 %v20145_v32  ;;  %v278_v63 = vpack.i.b16 %v14217_v35, %v14217_v35  ;;  %v14724_v22 = vrot.slane %v131_v28, %v14261_v61  ;;  %v549_v32 = vshrl.u32 %v14217_v35, 16  ;;  %v20147_v42 = vcombine.low %v14327_v40, %v14332_v41  ;;  %20154 = vst [vmem:[#allocation27_spill] sm:$0xff] %v14777_v17 }
  0x9e   :  { %4457 = vmatprep.subr.bf16.mxu1 %v20146_v39  ;;  %v101_v39 = vcombine.high %v14199_v24, %v14199_v24  ;;  %v14740_v28 = vcombine.high %v14214_v34, %v14214_v34  ;;  %v20149_v24 = vcombine.low %v14346_v46, %v14351_v47  ;;  %v20150_v40 = vcombine.high %v14356_v48, %v14373_v57  ;;  %v14757_v34 = vld [vmem:[%s19926_s3 + $0x6c0] sm:$0xff] }
  0x9f   :  { %4006 = vmatpush1.bf16.msra.mxu0 %v20147_v42  ;;  %v14751_v41 = vmax.bf16 %v20118_v45, %v660_v21  ;;  %v393_v42 = vadd.bf16 %v329_v23, %v14312_v36  ;;  %v14765_v46 = vrot.slane %v285_v27, %v14261_v61  ;;  %v20152_v47 = vcombine.high %v14378_v58, %v14383_v59 }
  0xa0   :  { %4458 = vmatpush1.bf16.msra.mxu1 %v20149_v24  ;;  %4007 = vmatprep.subr.bf16.mxu0 %v20150_v40  ;;  %v14771_v21 = vmax.bf16 %v20118_v45, %v669_v50  ;;  %v402_v23 = vadd.bf16 %v338_v15, %v14337_v43  ;;  %v558_v24 = vpack.i.b16 %v557_v31, %v557_v31  ;;  %v14794_v31 = vld [vmem:[%s19926_s3 + $0x6c8] sm:$0xff] }
  0xa1   :  { %20151 = vst [vmem:[#allocation25_spill] sm:$0xff] %v14751_v41  ;;  %4459 = vmatprep.subr.bf16.mxu1 %v20152_v47  ;;  %v14775_v40 = vrot.slane %v278_v63, %v14261_v61  ;;  %3939 = vmatmul.mubr.bf16.gmra.mrb[8].mxu0 %v14751_v41  ;;  %v604_v27 = vmul.bf16 %v14362_v52, %v14638_v18  ;;  %v14819_v18 = vld [vmem:[%s19926_s3 + $0x720] sm:$0xff] }
  0xa2   :  { %20153 = vst [vmem:[#allocation26_spill] sm:$0xff] %v14771_v21  ;;  %4391 = vmatmul.mubr.bf16.gmra.mrb[8].mxu1 %v14751_v41  ;;  %v550_v20 = vpack.i.b16 %v549_v32, %v549_v32  ;;  %v152_v47 = vpack.i.b16 %v101_v39, %v101_v39  ;;  %v20155_v50 = vcombine.low %v14356_v48, %v14373_v57  ;;  %v14799_v32 = vld [vmem:[%s19926_s3 + $0x6e8] sm:$0xff]  ;;  %v14804_v48 = vld [vmem:[%s19926_s3 + $0x700] sm:$0xff] }
  0xa3   :  { %3948 = vmatprep.mubr.bf16.mxu0 %v14771_v21  ;;  %v613_v63 = vmul.bf16 %v14386_v60, %v14742_v51  ;;  %20156 = vst [vmem:[#allocation28_spill] sm:$0xff] %v14799_v32  ;;  %v299_v57 = vpack.i.b16 %v14740_v28, %v14740_v28  ;;  %4400 = vmatprep.mubr.bf16.mxu1 %v14771_v21  ;;  %v14824_v21 = vld [vmem:[%s19926_s3 + $0x708] sm:$0xff] }
  0xa4   :  { %4008 = vmatpush1.bf16.msra.mxu0 %v20155_v50  ;;  %v20157_v39 = vcombine.low %v14378_v58, %v14383_v59  ;;  %v668_v50 = vadd.bf16 %v604_v27, %v393_v42  ;;  %v337_v15 = vmul.bf16 %v14315_v37, %v14661_v13  ;;  %v14829_v58 = vld [vmem:[%s19926_s3 + $0x728] sm:$0xff]  ;;  %v20159_v59 = vcombine.high %v14397_v3, %v14402_v4 }
  0xa5   :  { %20158 = vst [vmem:[#allocation29_spill] sm:$0xff] %v14829_v58  ;;  %v20160_v42 = vcombine.high %v14407_v5, %v14420_v11  ;;  %v677_v27 = vadd.bf16 %v613_v63, %v402_v23  ;;  %v14840_v41 = vrot.slane %v558_v24, %v14261_v61  ;;  %v14854_v23 = vld [vmem:[%s19926_s3 + $0x760] sm:$0xff]  ;;  %v14857_v63 = vrot.slane %v550_v20, %v14261_v61  ;;  %v14874_v20 = vld [vmem:[%s19926_s3 + $0x748] sm:$0xff] }
  0xa6   :  { %4460 = vmatpush1.bf16.msra.mxu1 %v20157_v39  ;;  %4009 = vmatprep.subr.bf16.mxu0 %v20159_v59  ;;  %v346_v39 = vmul.bf16 %v14309_v33, %v14777_v17  ;;  %v14849_v59 = vld [vmem:[%s19926_s3 + $0x740] sm:$0xff]  ;;  %20162 = vst [vmem:[#allocation31_spill] sm:$0xff] %v14854_v23  ;;  %v14860_v24 = vrot.slane %v152_v47, %v14261_v61  ;;  %20165 = vst [vmem:[#allocation33_spill] sm:$0xff] %v14874_v20  ;;  %v14879_v47 = vld [vmem:[%s19926_s3 + $0x768] sm:$0xff] }
  0xa7   :  { %4461 = vmatprep.subr.bf16.mxu1 %v20160_v42  ;;  %20161 = vst [vmem:[#allocation30_spill] sm:$0xff] %v14849_v59  ;;  %v20164_v42 = vcombine.low %v14397_v3, %v14402_v4  ;;  %20166 = vst [vmem:[#allocation34_spill] sm:$0xff] %v14879_v47  ;;  %v14882_v3 = vrot.slane %v299_v57, %v14261_v61  ;;  %v14884_v4 = vpop.permute.xlu0 %455  ;;  %v20170_v32 = vcombine.high %v14425_v12, %v14430_v14  ;;  %v14901_v57 = vld [vmem:[%s19926_s3 + $0x780] sm:$0xff]  ;;  %v14962_v20 = vld [vmem:[%s19926_s3 + $0x7c8] sm:$0xff] }
  0xa8   :  { %20163 = vst [vmem:[#allocation32_spill] sm:$0xff] %v14860_v24  ;;  %20168 = vst [vmem:[#allocation36_spill] sm:$0xff] %v14884_v4  ;;  %v14893_v13 = vmax.bf16 %v20118_v45, %v668_v50  ;;  %v401_v54 = vadd.bf16 %v337_v15, %v14312_v36  ;;  %v14914_v15 = vmax.bf16 %v20118_v45, %v677_v27  ;;  %v14942_v24 = vld [vmem:[%s19926_s3 + $0x7c0] sm:$0xff]  ;;  %v15040_v23 = vld [vmem:[%s19926_s3 + $0x848] sm:$0xff] }
  0xa9   :  { %4010 = vmatpush1.bf16.msra.mxu0 %v20164_v42  ;;  %20167 = vst [vmem:[#allocation35_spill] sm:$0xff] %v14882_v3  ;;  %v20169_v42 = vcombine.low %v14407_v5, %v14420_v11  ;;  %20172 = vst [vmem:[#allocation38_spill] sm:$0xff] %v14901_v57  ;;  %v14906_v5 = vld [vmem:[%s19926_s3 + $0x7a0] sm:$0xff]  ;;  %v14908_v11 = vpop.permute.xlu1 %191  ;;  %v410_v50 = vadd.bf16 %v346_v39, %v14337_v43  ;;  %v14924_v3 = vld [vmem:[%s19926_s3 + $0x788] sm:$0xff]  ;;  %v612_v27 = vmul.bf16 %v14362_v52, %v14742_v51 }
  0xaa   :  { %4011 = vmatprep.subr.bf16.mxu0 %v20170_v32  ;;  %20171 = vst [vmem:[#allocation37_spill] sm:$0xff] %v14893_v13  ;;  %20173 = vst [vmem:[#allocation39_spill] sm:$0xff] %v14906_v5  ;;  %v20174_v32 = vcombine.high %v14452_v49, %v14457_v1  ;;  %3949 = vmatmul.mubr.bf16.gmra.mrb[12].mxu0 %v14893_v13  ;;  %v20176_v39 = vcombine.low %v14425_v12, %v14430_v14  ;;  %v14967_v12 = vld [vmem:[%s19926_s3 + $0x7e8] sm:$0xff]  ;;  %v14972_v14 = vld [vmem:[%s19926_s3 + $0x800] sm:$0xff] }
  0xab   :  { %4462 = vmatpush1.bf16.msra.mxu1 %v20169_v42  ;;  %20175 = vst [vmem:[#allocation40_spill] sm:$0xff] %v14914_v15  ;;  %v14937_v42 = vld [vmem:[%s19926_s3 + $0x7a8] sm:$0xff]  ;;  %3958 = vmatprep.mubr.bf16.mxu0 %v14914_v15  ;;  %v345_v51 = vmul.bf16 %v14315_v37, %v14777_v17  ;;  %v676_v47 = vadd.bf16 %v612_v27, %v401_v54  ;;  %v14985_v59 = vld [vmem:[%s19926_s3 + $0x820] sm:$0xff]  ;;  %20183 = vst [vmem:[#allocation43_spill] sm:$0xff] %v15040_v23 }
  0xac   :  { %4463 = vmatprep.subr.bf16.mxu1 %v20174_v32  ;;  %4401 = vmatmul.mubr.bf16.gmra.mrb[12].mxu1 %v14893_v13  ;;  %v14947_v13 = vld [vmem:[%s19926_s3 + $0x7e0] sm:$0xff]  ;;  %v621_v32 = vmul.bf16 %v14386_v60, %v14884_v4  ;;  %v354_v17 = vmul.bf16 %v14309_v33, %v14908_v11  ;;  %20178 = vst [vmem:[#allocation41_spill] sm:$0xff] %v14985_v59  ;;  %v14995_v54 = vld [vmem:[%s19926_s3 + $0x828] sm:$0xff] }
  0xad   :  { %4012 = vmatpush1.bf16.msra.mxu0 %v20176_v39  ;;  %4410 = vmatprep.mubr.bf16.mxu1 %v14914_v15  ;;  %v20177_v39 = vcombine.low %v14452_v49, %v14457_v1  ;;  %v14990_v15 = vld [vmem:[%s19926_s3 + $0x808] sm:$0xff]  ;;  %v20179_v1 = vcombine.high %v14478_v53, %v14483_v25  ;;  %v20180_v49 = vcombine.high %v14504_v38, %v14509_v29 }
  0xae   :  { %v685_v27 = vadd.bf16 %v621_v32, %v410_v50  ;;  %v15018_v50 = vld [vmem:[%s19926_s3 + $0x840] sm:$0xff]  ;;  %v20182_v5 = vcombine.low %v14478_v53, %v14483_v25  ;;  %v15045_v25 = vld [vmem:[%s19926_s3 + $0x868] sm:$0xff]  ;;  %v20185_v53 = vcombine.low %v14504_v38, %v14509_v29  ;;  %v20188_v57 = vcombine.high %v14568_v9, %v14573_v16 }
  0xaf   :  { %4464 = vmatpush1.bf16.msra.mxu1 %v20177_v39  ;;  %4013 = vmatprep.subr.bf16.mxu0 %v20179_v1  ;;  %v15023_v32 = vld [vmem:[%s19926_s3 + $0x860] sm:$0xff]  ;;  %v409_v1 = vadd.bf16 %v345_v51, %v14312_v36  ;;  %20184 = vst [vmem:[#allocation44_spill] sm:$0xff] %v15045_v25  ;;  %v20186_v51 = vcombine.high %v14547_v10, %v14563_v55 }
  0xb0   :  { %4465 = vmatprep.subr.bf16.mxu1 %v20180_v49  ;;  %20181 = vst [vmem:[#allocation42_spill] sm:$0xff] %v15023_v32  ;;  %v15025_v49 = vpop.permute.xlu0 %459  ;;  %v418_v39 = vadd.bf16 %v354_v17, %v14337_v43  ;;  %v15063_v59 = vmax.bf16 %v20118_v45, %v685_v27  ;;  %v620_v38 = vmul.bf16 %v14362_v52, %v14884_v4  ;;  %v15071_v17 = vpop.permute.xlu1 %196  ;;  %v15104_v32 = vld [vmem:[%s19926_s3 + $0x888] sm:$0xff] }
  0xb1   :  { %4014 = vmatpush1.bf16.msra.mxu0 %v20182_v5  ;;  %v15054_v5 = vmax.bf16 %v20118_v45, %v676_v47  ;;  %v15091_v29 = vcombine.high %v14217_v35, %v14217_v35  ;;  %v20191_v47 = vcombine.low %v14547_v10, %v14563_v55  ;;  %v353_v58 = vmul.bf16 %v14315_v37, %v14908_v11  ;;  %v15109_v35 = vld [vmem:[%s19926_s3 + $0x8a8] sm:$0xff] }
  0xb2   :  { %4015 = vmatprep.subr.bf16.mxu0 %v20186_v51  ;;  %20189 = vst [vmem:[#allocation46_spill] sm:$0xff] %v15063_v59  ;;  %v15087_v51 = vld [vmem:[%s19926_s3 + $0x8a0] sm:$0xff]  ;;  %v684_v27 = vadd.bf16 %v620_v38, %v409_v1  ;;  %20192 = vst [vmem:[#allocation48_spill] sm:$0xff] %v15109_v35  ;;  %v20193_v10 = vcombine.low %v14568_v9, %v14573_v16  ;;  %v20194_v1 = vld [vmem:[#allocation5_spill] sm:$0xff]  ;;  %v20196_v25 = vcombine.high %v14605_v62, %v14610_v26 }
  0xb3   :  { %4466 = vmatpush1.bf16.msra.mxu1 %v20185_v53  ;;  %20187 = vst [vmem:[#allocation45_spill] sm:$0xff] %v15054_v5  ;;  %3959 = vmatmul.mubr.bf16.gmra.mrb[16].mxu0 %v15054_v5  ;;  %v15082_v53 = vld [vmem:[%s19926_s3 + $0x880] sm:$0xff]  ;;  %20190 = vst [vmem:[#allocation47_spill] sm:$0xff] %v15087_v51  ;;  %v310_v38 = vmul.bf16 %v14765_v46, %v20194_v1  ;;  %v20197_v23 = vcombine.high %v14626_v6, %v14631_v56  ;;  %v573_v35 = vshrl.u32 %v14740_v28, 16 }
  0xb4   :  { %4467 = vmatprep.subr.bf16.mxu1 %v20188_v57  ;;  %4411 = vmatmul.mubr.bf16.gmra.mrb[16].mxu1 %v15054_v5  ;;  %v629_v57 = vmul.bf16 %v14386_v60, %v15025_v49  ;;  %v15144_v9 = vmax.bf16 %v20118_v45, %v684_v27  ;;  %v417_v16 = vadd.bf16 %v353_v58, %v14312_v36 }
  0xb5   :  { %4016 = vmatpush1.bf16.msra.mxu0 %v20191_v47  ;;  %3968 = vmatprep.mubr.bf16.mxu0 %v15063_v59  ;;  %v20195_v47 = vld [vmem:[#allocation7_spill] sm:$0xff]  ;;  %v20201_v51 = vcombine.high %v14682_v44, %v14687_v0  ;;  %v20204_v27 = vcombine.high %v14701_v7, %v14706_v2 }
  0xb6   :  { %4420 = vmatprep.mubr.bf16.mxu1 %v15063_v59  ;;  %v693_v55 = vadd.bf16 %v629_v57, %v418_v39  ;;  %v585_v5 = vmul.bf16 %v14840_v41, %v20195_v47  ;;  %4017 = vmatprep.subr.bf16.mxu0 %v20196_v25  ;;  %v362_v59 = vmul.bf16 %v14309_v33, %v15071_v17 }
  0xb7   :  { %4468 = vmatpush1.bf16.msra.mxu1 %v20193_v10  ;;  %v374_v57 = vadd.bf16 %v310_v38, %v14690_v30  ;;  %v99_v25 = vcombine.high %v14196_v19, %v14196_v19  ;;  %v15138_v10 = vpop.permute.xlu0 %463  ;;  %v20198_v33 = vcombine.low %v14605_v62, %v14610_v26  ;;  %20199 = vst [vmem:[#allocation5_spill] sm:$0xff] %v15144_v9 }
  0xb8   :  { %4469 = vmatprep.subr.bf16.mxu1 %v20197_v23  ;;  %v292_v23 = vpack.i.b16 %v15091_v29, %v15091_v29  ;;  %v309_v19 = vmul.bf16 %v14775_v40, %v20194_v1  ;;  %v20200_v39 = vcombine.low %v14626_v6, %v14631_v56  ;;  %v15158_v62 = vmax.bf16 %v20118_v45, %v693_v55  ;;  %v15171_v6 = vld [vmem:[%s19926_s3 + $0x8c0] sm:$0xff] }
  0xb9   :  { %4018 = vmatpush1.bf16.msra.mxu0 %v20198_v33  ;;  %v15160_v26 = vadd.bf16 %v585_v5, %v374_v57  ;;  %v584_v58 = vmul.bf16 %v14857_v63, %v20195_v47  ;;  %v426_v33 = vadd.bf16 %v362_v59, %v14337_v43  ;;  %v15176_v56 = vld [vmem:[%s19926_s3 + $0x8e0] sm:$0xff]  ;;  %v628_v43 = vmul.bf16 %v14362_v52, %v15025_v49 }
  0xba   :  { %4019 = vmatprep.subr.bf16.mxu0 %v20201_v51  ;;  %20202 = vst [vmem:[#allocation49_spill] sm:$0xff] %v15158_v62  ;;  %v373_v5 = vadd.bf16 %v309_v19, %v14724_v22  ;;  %v20205_v51 = vld [vmem:[#allocation4_spill] sm:$0xff]  ;;  %v637_v59 = vmul.bf16 %v14386_v60, %v15138_v10  ;;  %v20207_v19 = vcombine.low %v14682_v44, %v14687_v0 }
  0xbb   :  { %4470 = vmatpush1.bf16.msra.mxu1 %v20200_v39  ;;  %20203 = vst [vmem:[#allocation50_spill] sm:$0xff] %v15160_v26  ;;  %v318_v55 = vmul.bf16 %v14765_v46, %v20205_v51  ;;  %v20206_v39 = vld [vmem:[#allocation6_spill] sm:$0xff]  ;;  %3969 = vmatmul.mubr.bf16.gmra.mrb[20].mxu0 %v15144_v9  ;;  %v361_v38 = vmul.bf16 %v14315_v37, %v15071_v17 }
  0xbc   :  { %4471 = vmatprep.subr.bf16.mxu1 %v20204_v27  ;;  %v593_v57 = vmul.bf16 %v14840_v41, %v20206_v39  ;;  %4421 = vmatmul.mubr.bf16.gmra.mrb[20].mxu1 %v15144_v9  ;;  %v145_v27 = vpack.i.b16 %v99_v25, %v99_v25  ;;  %v15195_v26 = vadd.bf16 %v584_v58, %v373_v5  ;;  %v20212_v58 = vld [vmem:[#allocation28_spill] sm:$0xff] }
  0xbd   :  { %4020 = vmatpush1.bf16.msra.mxu0 %v20207_v19  ;;  %3978 = vmatprep.mubr.bf16.mxu0 %v15158_v62  ;;  %v382_v9 = vadd.bf16 %v318_v55, %v14690_v30  ;;  %v20209_v60 = vcombine.low %v14701_v7, %v14706_v2  ;;  %v692_v25 = vadd.bf16 %v628_v43, %v417_v16  ;;  %v20223_v2 = vld [vmem:[#allocation29_spill] sm:$0xff] }
  0xbe   :  { %20208 = vst [vmem:[#allocation6_spill] sm:$0xff] %v15195_v26  ;;  %4430 = vmatprep.mubr.bf16.mxu1 %v15158_v62  ;;  %v15206_v0 = vrot.slane %v292_v23, %v14261_v61  ;;  %v20211_v37 = vcombine.high %v14757_v34, %v14762_v8  ;;  %v20213_v28 = vcombine.high %v14794_v31, %v20212_v58  ;;  %v20215_v23 = vld [vmem:[#allocation8_spill] sm:$0xff]  ;;  %v565_v62 = vshrl.u32 %v15091_v29, 16 }
  0xbf   :  { %4472 = vmatpush1.bf16.msra.mxu1 %v20209_v60  ;;  %v701_v5 = vadd.bf16 %v637_v59, %v426_v33  ;;  %v15214_v55 = vadd.bf16 %v593_v57, %v382_v9  ;;  %v317_v7 = vmul.bf16 %v14775_v40, %v20205_v51  ;;  %v592_v16 = vmul.bf16 %v14857_v63, %v20206_v39  ;;  %v20218_v57 = vld [vmem:[#allocation17_spill] sm:$0xff]  ;;  %v15236_v60 = vld [vmem:[%s19926_s3 + $0x8c8] sm:$0xff] }
  0xc0   :  { %20210 = vst [vmem:[#allocation51_spill] sm:$0xff] %v15206_v0  ;;  %4021 = vmatprep.subr.bf16.mxu0 %v20211_v37  ;;  %4473 = vmatprep.subr.bf16.mxu1 %v20213_v28  ;;  %v326_v43 = vmul.bf16 %v14765_v46, %v20215_v23  ;;  %v15225_v19 = vrot.slane %v145_v27, %v14261_v61  ;;  %v15241_v37 = vld [vmem:[%s19926_s3 + $0x8e8] sm:$0xff] }
  0xc1   :  { %20214 = vst [vmem:[#allocation28_spill] sm:$0xff] %v15214_v55  ;;  %v20217_v33 = vcombine.low %v14757_v34, %v14762_v8  ;;  %v425_v9 = vadd.bf16 %v361_v38, %v14312_v36  ;;  %v308_v59 = vmul.bf16 %v20218_v57, %v20194_v1  ;;  %v381_v27 = vadd.bf16 %v317_v7, %v14724_v22 }
  0xc2   :  { %20216 = vst [vmem:[#allocation52_spill] sm:$0xff] %v15225_v19  ;;  %v574_v28 = vpack.i.b16 %v573_v35, %v573_v35  ;;  %v20219_v8 = vcombine.low %v14794_v31, %v20212_v58  ;;  %v20220_v36 = vcombine.high %v14804_v48, %v14819_v18  ;;  %v15251_v34 = vmax.bf16 %v20118_v45, %v692_v25  ;;  %v20226_v58 = vld [vmem:[#allocation21_spill] sm:$0xff]  ;;  %v20242_v19 = vld [vmem:[#allocation19_spill] sm:$0xff] }
  0xc3   :  { %4022 = vmatpush1.bf16.msra.mxu0 %v20217_v33  ;;  %v390_v38 = vadd.bf16 %v326_v43, %v14690_v30  ;;  %v20222_v33 = vld [vmem:[#allocation11_spill] sm:$0xff]  ;;  %v20224_v7 = vcombine.high %v14824_v21, %v20223_v2  ;;  %v15260_v35 = vmax.bf16 %v20118_v45, %v701_v5  ;;  %v636_v31 = vmul.bf16 %v14362_v52, %v15138_v10 }
  0xc4   :  { %4474 = vmatpush1.bf16.msra.mxu1 %v20219_v8  ;;  %4023 = vmatprep.subr.bf16.mxu0 %v20220_v36  ;;  %20221 = vst [vmem:[#allocation17_spill] sm:$0xff] %v15251_v34  ;;  %v601_v44 = vmul.bf16 %v14840_v41, %v20222_v33  ;;  %v583_v8 = vmul.bf16 %v20226_v58, %v20195_v47 }
  0xc5   :  { %4475 = vmatprep.subr.bf16.mxu1 %v20224_v7  ;;  %20225 = vst [vmem:[#allocation11_spill] sm:$0xff] %v15260_v35  ;;  %v15266_v25 = vadd.bf16 %v592_v16, %v381_v27  ;;  %3979 = vmatmul.mubr.bf16.gmra.mrb[24].mxu0 %v15251_v34  ;;  %v325_v5 = vmul.bf16 %v14775_v40, %v20215_v23  ;;  %v20230_v27 = vld [vmem:[#allocation16_spill] sm:$0xff] }
  0xc6   :  { %4431 = vmatmul.mubr.bf16.gmra.mrb[24].mxu1 %v15251_v34  ;;  %v15272_v36 = vadd.bf16 %v601_v44, %v390_v38  ;;  %v20229_v52 = vcombine.low %v14804_v48, %v14819_v18  ;;  %3988 = vmatprep.mubr.bf16.mxu0 %v15260_v35  ;;  %v700_v16 = vadd.bf16 %v636_v31, %v425_v9  ;;  %v15291_v18 = vld [vmem:[%s19926_s3 + $0x900] sm:$0xff] }
  0xc7   :  { %20227 = vst [vmem:[#allocation29_spill] sm:$0xff] %v15266_v25  ;;  %v372_v7 = vadd.bf16 %v308_v59, %v20230_v27  ;;  %4440 = vmatprep.mubr.bf16.mxu1 %v15260_v35  ;;  %v20231_v44 = vcombine.low %v14824_v21, %v20223_v2  ;;  %v15296_v48 = vld [vmem:[%s19926_s3 + $0x920] sm:$0xff]  ;;  %v389_v9 = vadd.bf16 %v325_v5, %v14724_v22  ;;  %v20232_v59 = vld [vmem:[#allocation13_spill] sm:$0xff]  ;;  %v20234_v2 = vld [vmem:[#allocation31_spill] sm:$0xff] }
  0xc8   :  { %20228 = vst [vmem:[#allocation21_spill] sm:$0xff] %v15272_v36  ;;  %4024 = vmatpush1.bf16.msra.mxu0 %v20229_v52  ;;  %v600_v29 = vmul.bf16 %v14857_v63, %v20222_v33  ;;  %v334_v38 = vmul.bf16 %v14765_v46, %v20232_v59  ;;  %v20233_v21 = vld [vmem:[#allocation30_spill] sm:$0xff]  ;;  %v20236_v52 = vld [vmem:[#allocation33_spill] sm:$0xff]  ;;  %v316_v35 = vmul.bf16 %v20218_v57, %v20205_v51  ;;  %v20240_v36 = vld [vmem:[#allocation15_spill] sm:$0xff] }
  0xc9   :  { %4476 = vmatpush1.bf16.msra.mxu1 %v20231_v44  ;;  %v20235_v31 = vcombine.high %v20233_v21, %v20234_v2  ;;  %v20237_v44 = vld [vmem:[#allocation34_spill] sm:$0xff]  ;;  %v647_v34 = vadd.bf16 %v583_v8, %v372_v7  ;;  %v15312_v5 = vrot.slane %v574_v28, %v14261_v61  ;;  %v307_v25 = vmul.bf16 %v20240_v36, %v20194_v1 }
  0xca   :  { %v20238_v43 = vcombine.high %v20236_v52, %v20237_v44  ;;  %v15316_v55 = vadd.bf16 %v600_v29, %v389_v9  ;;  %v398_v26 = vadd.bf16 %v334_v38, %v14690_v30  ;;  %v315_v8 = vmul.bf16 %v20240_v36, %v20205_v51  ;;  %v20245_v38 = vld [vmem:[#allocation38_spill] sm:$0xff] }
  0xcb   :  { %4025 = vmatprep.subr.bf16.mxu0 %v20235_v31  ;;  %20239 = vst [vmem:[#allocation16_spill] sm:$0xff] %v15312_v5  ;;  %v609_v31 = vmul.bf16 %v14840_v41, %v20242_v19  ;;  %v333_v7 = vmul.bf16 %v14775_v40, %v20232_v59  ;;  %v566_v9 = vpack.i.b16 %v565_v62, %v565_v62 }
  0xcc   :  { %4477 = vmatprep.subr.bf16.mxu1 %v20238_v43  ;;  %20241 = vst [vmem:[#allocation13_spill] sm:$0xff] %v15316_v55  ;;  %v20243_v43 = vcombine.low %v20233_v21, %v20234_v2  ;;  %v20244_v29 = vcombine.low %v20236_v52, %v20237_v44  ;;  %v20246_v55 = vld [vmem:[#allocation39_spill] sm:$0xff]  ;;  %v15337_v21 = vmax.bf16 %v20118_v45, %v700_v16  ;;  %v20249_v2 = vld [vmem:[#allocation18_spill] sm:$0xff] }
  0xcd   :  { %v20247_v0 = vcombine.high %v20245_v38, %v20246_v55  ;;  %v15341_v51 = vadd.bf16 %v609_v31, %v398_v26  ;;  %v20251_v28 = vcombine.high %v14924_v3, %v14937_v42  ;;  %v15347_v62 = vmax.bf16 %v20118_v45, %v647_v34  ;;  %v20253_v44 = vld [vmem:[#allocation23_spill] sm:$0xff]  ;;  %v20254_v26 = vld [vmem:[#allocation14_spill] sm:$0xff] }
  0xce   :  { %4026 = vmatpush1.bf16.msra.mxu0 %v20243_v43  ;;  %4478 = vmatpush1.bf16.msra.mxu1 %v20244_v29  ;;  %20248 = vst [vmem:[#allocation30_spill] sm:$0xff] %v15337_v21  ;;  %v582_v43 = vmul.bf16 %v20249_v2, %v20195_v47  ;;  %v397_v52 = vadd.bf16 %v333_v7, %v14724_v22  ;;  %v15367_v7 = vld [vmem:[%s19926_s3 + $0x908] sm:$0xff] }
  0xcf   :  { %4027 = vmatprep.subr.bf16.mxu0 %v20247_v0  ;;  %20250 = vst [vmem:[#allocation31_spill] sm:$0xff] %v15341_v51  ;;  %4479 = vmatprep.subr.bf16.mxu1 %v20251_v28  ;;  %20252 = vst [vmem:[#allocation33_spill] sm:$0xff] %v15347_v62  ;;  %v608_v0 = vmul.bf16 %v14857_v63, %v20242_v19  ;;  %v342_v16 = vmul.bf16 %v14765_v46, %v20253_v44  ;;  %v20257_v51 = vld [vmem:[#allocation24_spill] sm:$0xff] }
  0xd0   :  { %3989 = vmatmul.mubr.bf16.gmra.mrb[28].mxu0 %v15337_v21  ;;  %4441 = vmatmul.mubr.bf16.gmra.mrb[28].mxu1 %v15337_v21  ;;  %v371_v31 = vadd.bf16 %v307_v25, %v20254_v26  ;;  %v380_v29 = vadd.bf16 %v316_v35, %v20230_v27  ;;  %v591_v34 = vmul.bf16 %v20226_v58, %v20206_v39  ;;  %v15372_v25 = vld [vmem:[%s19926_s3 + $0x928] sm:$0xff] }
  0xd1   :  { %v20255_v28 = vcombine.low %v20245_v38, %v20246_v55  ;;  %4031 = vmatprep.mubr.bf16.mxu0 %v15347_v62  ;;  %v15374_v35 = vadd.bf16 %v608_v0, %v397_v52  ;;  %v406_v21 = vadd.bf16 %v342_v16, %v14690_v30  ;;  %v617_v55 = vmul.bf16 %v14840_v41, %v20257_v51 }
  0xd2   :  { %v20258_v38 = vcombine.low %v14924_v3, %v14937_v42  ;;  %4483 = vmatprep.mubr.bf16.mxu1 %v15347_v62  ;;  %v379_v5 = vadd.bf16 %v315_v8, %v20254_v26  ;;  %v20259_v52 = vcombine.high %v14942_v24, %v14947_v13  ;;  %v20260_v0 = vcombine.high %v14962_v20, %v14967_v12 }
  0xd3   :  { %4028 = vmatpush1.bf16.msra.mxu0 %v20255_v28  ;;  %20256 = vst [vmem:[#allocation34_spill] sm:$0xff] %v15374_v35  ;;  %v646_v28 = vadd.bf16 %v582_v43, %v371_v31  ;;  %v590_v3 = vmul.bf16 %v20249_v2, %v20206_v39  ;;  %v15394_v42 = vadd.bf16 %v617_v55, %v406_v21  ;;  %v15410_v21 = vld [vmem:[%s19926_s3 + $0x960] sm:$0xff]  ;;  %v20264_v55 = vld [vmem:[#allocation27_spill] sm:$0xff] }
  0xd4   :  { %4480 = vmatpush1.bf16.msra.mxu1 %v20258_v38  ;;  %4029 = vmatprep.subr.bf16.mxu0 %v20259_v52  ;;  %v341_v43 = vmul.bf16 %v14775_v40, %v20253_v44  ;;  %v655_v8 = vadd.bf16 %v591_v34, %v380_v29  ;;  %v324_v16 = vmul.bf16 %v20218_v57, %v20215_v23  ;;  %v15405_v38 = vld [vmem:[%s19926_s3 + $0x940] sm:$0xff] }
  0xd5   :  { %4481 = vmatprep.subr.bf16.mxu1 %v20260_v0  ;;  %20261 = vst [vmem:[#allocation15_spill] sm:$0xff] %v15394_v42  ;;  %20262 = vst [vmem:[#allocation19_spill] sm:$0xff] %v15405_v38  ;;  %v350_v52 = vmul.bf16 %v14765_v46, %v20264_v55  ;;  %v20265_v29 = vcombine.low %v14942_v24, %v14947_v13  ;;  %v616_v31 = vmul.bf16 %v14857_v63, %v20257_v51  ;;  %v20267_v42 = vld [vmem:[#allocation41_spill] sm:$0xff] }
  0xd6   :  { %20263 = vst [vmem:[#allocation38_spill] sm:$0xff] %v15410_v21  ;;  %v405_v0 = vadd.bf16 %v341_v43, %v14724_v22  ;;  %v15423_v47 = vrot.slane %v566_v9, %v14261_v61  ;;  %v20266_v62 = vcombine.low %v14962_v20, %v14967_v12  ;;  %v20268_v35 = vcombine.high %v14972_v14, %v20267_v42  ;;  %v20276_v12 = vld [vmem:[#allocation42_spill] sm:$0xff] }
  0xd7   :  { %4030 = vmatpush1.bf16.msra.mxu0 %v20265_v29  ;;  %v15432_v13 = vmax.bf16 %v20118_v45, %v646_v28  ;;  %v414_v24 = vadd.bf16 %v350_v52, %v14690_v30  ;;  %v625_v43 = vmul.bf16 %v14840_v41, %v14884_v4  ;;  %v20270_v9 = vcombine.high %v14990_v15, %v14995_v54  ;;  %v15454_v52 = vld [vmem:[%s19926_s3 + $0x948] sm:$0xff] }
  0xd8   :  { %4482 = vmatpush1.bf16.msra.mxu1 %v20266_v62  ;;  %4112 = vmatprep.subr.bf16.mxu0 %v20268_v35  ;;  %v654_v29 = vadd.bf16 %v590_v3, %v379_v5  ;;  %v15444_v62 = vadd.bf16 %v616_v31, %v405_v0  ;;  %v15448_v35 = vmax.bf16 %v20118_v45, %v655_v8  ;;  %v15459_v5 = vld [vmem:[%s19926_s3 + $0x968] sm:$0xff] }
  0xd9   :  { %20269 = vst [vmem:[#allocation39_spill] sm:$0xff] %v15432_v13  ;;  %4564 = vmatprep.subr.bf16.mxu1 %v20270_v9  ;;  %v388_v28 = vadd.bf16 %v324_v16, %v20230_v27  ;;  %v15461_v3 = vadd.bf16 %v625_v43, %v414_v24  ;;  %v349_v31 = vmul.bf16 %v14775_v40, %v20264_v55  ;;  %v15476_v24 = vld [vmem:[%s19926_s3 + $0x980] sm:$0xff] }
  0xda   :  { %20271 = vst [vmem:[#allocation18_spill] sm:$0xff] %v15444_v62  ;;  %4032 = vmatmul.mubr.bf16.vlgmr.msra.gmra.mrb[0].mxu0 %v15432_v13  ;;  %20272 = vst [vmem:[#allocation23_spill] sm:$0xff] %v15448_v35  ;;  %v20274_v8 = vcombine.low %v14972_v14, %v20267_v42  ;;  %v323_v16 = vmul.bf16 %v20240_v36, %v20215_v23  ;;  %v332_v0 = vmul.bf16 %v20218_v57, %v20232_v59  ;;  %v15481_v43 = vld [vmem:[%s19926_s3 + $0x9a0] sm:$0xff] }
  0xdb   :  { %20273 = vst [vmem:[#allocation14_spill] sm:$0xff] %v15461_v3  ;;  %4484 = vmatmul.mubr.bf16.vlgmr.msra.gmra.mrb[0].mxu1 %v15432_v13  ;;  %v358_v14 = vmul.bf16 %v14765_v46, %v14908_v11  ;;  %4041 = vmatprep.mubr.bf16.mxu0 %v15448_v35  ;;  %v599_v42 = vmul.bf16 %v20226_v58, %v20222_v33 }
  0xdc   :  { %4113 = vmatpush1.bf16.msra.mxu0 %v20274_v8  ;;  %4493 = vmatprep.mubr.bf16.mxu1 %v15448_v35  ;;  %v413_v9 = vadd.bf16 %v349_v31, %v14724_v22  ;;  %v624_v8 = vmul.bf16 %v14857_v63, %v14884_v4  ;;  %v20275_v20 = vcombine.low %v14990_v15, %v14995_v54  ;;  %v15503_v35 = vld [vmem:[%s19926_s3 + $0x988] sm:$0xff] }
  0xdd   :  { %v20277_v34 = vcombine.high %v15018_v50, %v20276_v12  ;;  %v15508_v31 = vld [vmem:[%s19926_s3 + $0x9a8] sm:$0xff]  ;;  %v422_v15 = vadd.bf16 %v358_v14, %v14690_v30  ;;  %v633_v54 = vmul.bf16 %v14840_v41, %v15025_v49  ;;  %v663_v61 = vadd.bf16 %v599_v42, %v388_v28 }
  0xde   :  { %4565 = vmatpush1.bf16.msra.mxu1 %v20275_v20  ;;  %v20278_v20 = vld [vmem:[#allocation43_spill] sm:$0xff]  ;;  %v15520_v4 = vadd.bf16 %v624_v8, %v413_v9  ;;  %v20281_v23 = vcombine.low %v15018_v50, %v20276_v12  ;;  %v387_v14 = vadd.bf16 %v323_v16, %v20254_v26  ;;  %v396_v21 = vadd.bf16 %v332_v0, %v20230_v27 }
  0xdf   :  { %4114 = vmatprep.subr.bf16.mxu0 %v20277_v34  ;;  %v20279_v34 = vld [vmem:[#allocation44_spill] sm:$0xff]  ;;  %v15527_v38 = vadd.bf16 %v633_v54, %v422_v15  ;;  %v20282_v28 = vld [vmem:[#allocation47_spill] sm:$0xff]  ;;  %v15535_v9 = vmax.bf16 %v20118_v45, %v654_v29  ;;  %v366_v12 = vmul.bf16 %v14765_v46, %v15071_v17  ;;  %v598_v0 = vmul.bf16 %v20249_v2, %v20222_v33 }
  0xe0   :  { %v20280_v13 = vcombine.high %v20278_v20, %v20279_v34  ;;  %4115 = vmatpush1.bf16.msra.mxu0 %v20281_v23  ;;  %v20283_v42 = vcombine.high %v15082_v53, %v20282_v28  ;;  %v20285_v16 = vcombine.low %v20278_v20, %v20279_v34  ;;  %v607_v29 = vmul.bf16 %v20226_v58, %v20242_v19  ;;  %v20286_v54 = vld [vmem:[#allocation48_spill] sm:$0xff]  ;;  %v15563_v34 = vld [vmem:[%s19926_s3 + $0x9c0] sm:$0xff] }
  0xe1   :  { %20284 = vst [vmem:[#allocation24_spill] sm:$0xff] %v15535_v9  ;;  %v632_v15 = vmul.bf16 %v14857_v63, %v15025_v49  ;;  %v20287_v46 = vcombine.high %v15104_v32, %v20286_v54  ;;  %v15558_v20 = vmax.bf16 %v20118_v45, %v663_v61  ;;  %v662_v61 = vadd.bf16 %v598_v0, %v387_v14 }
  0xe2   :  { %4566 = vmatprep.subr.bf16.mxu1 %v20280_v13  ;;  %v357_v13 = vmul.bf16 %v14775_v40, %v14908_v11  ;;  %4116 = vmatprep.subr.bf16.mxu0 %v20283_v42  ;;  %v430_v42 = vadd.bf16 %v366_v12, %v14690_v30  ;;  %v671_v23 = vadd.bf16 %v607_v29, %v396_v21 }
  0xe3   :  { %4567 = vmatpush1.bf16.msra.mxu1 %v20285_v16  ;;  %4042 = vmatmul.mubr.bf16.gmra.mrb[4].mxu0 %v15535_v9  ;;  %20288 = vst [vmem:[#allocation27_spill] sm:$0xff] %v15558_v20  ;;  %v641_v16 = vmul.bf16 %v14840_v41, %v15138_v10  ;;  %v331_v30 = vmul.bf16 %v20240_v36, %v20232_v59  ;;  %v15586_v41 = vld [vmem:[%s19926_s3 + $0x9c8] sm:$0xff] }
  0xe4   :  { %v421_v8 = vadd.bf16 %v357_v13, %v14724_v22  ;;  %4568 = vmatprep.subr.bf16.mxu1 %v20287_v46  ;;  %v15568_v13 = vld [vmem:[%s19926_s3 + $0x9e0] sm:$0xff]  ;;  %v20289_v46 = vcombine.low %v15082_v53, %v20282_v28  ;;  %4494 = vmatmul.mubr.bf16.gmra.mrb[4].mxu1 %v15535_v9  ;;  %v15591_v53 = vld [vmem:[%s19926_s3 + $0x9e8] sm:$0xff]  ;;  %v365_v14 = vmul.bf16 %v14775_v40, %v15071_v17 }
  0xe5   :  { %4051 = vmatprep.mubr.bf16.mxu0 %v15558_v20  ;;  %4503 = vmatprep.mubr.bf16.mxu1 %v15558_v20  ;;  %v15593_v21 = vadd.bf16 %v641_v16, %v430_v42  ;;  %v20291_v28 = vcombine.low %v15104_v32, %v20286_v54  ;;  %v20292_v12 = vcombine.high %v15171_v6, %v15176_v56  ;;  %v20294_v42 = vld [vmem:[#allocation35_spill] sm:$0xff] }
  0xe6   :  { %4117 = vmatpush1.bf16.msra.mxu0 %v20289_v46  ;;  %v15577_v62 = vadd.bf16 %v632_v15, %v421_v8  ;;  %v340_v29 = vmul.bf16 %v20218_v57, %v20253_v44  ;;  %v20293_v40 = vcombine.high %v15236_v60, %v15241_v37  ;;  %v429_v15 = vadd.bf16 %v365_v14, %v14724_v22  ;;  %v20297_v22 = vld [vmem:[#allocation7_spill] sm:$0xff]  ;;  %v20298_v14 = vld [vmem:[#allocation16_spill] sm:$0xff] }
  0xe7   :  { %20290 = vst [vmem:[#allocation41_spill] sm:$0xff] %v15593_v21  ;;  %4569 = vmatpush1.bf16.msra.mxu1 %v20291_v28  ;;  %4118 = vmatprep.subr.bf16.mxu0 %v20292_v12  ;;  %v640_v54 = vmul.bf16 %v14857_v63, %v15138_v10  ;;  %v312_v16 = vmul.bf16 %v20294_v42, %v20194_v1 }
  0xe8   :  { %4570 = vmatprep.subr.bf16.mxu1 %v20293_v40  ;;  %v20295_v46 = vcombine.low %v15171_v6, %v15176_v56  ;;  %v15623_v28 = vmax.bf16 %v20118_v45, %v662_v61  ;;  %v587_v8 = vmul.bf16 %v20298_v14, %v20297_v22  ;;  %v20299_v63 = vcombine.high %v15291_v18, %v15296_v48  ;;  %v20302_v61 = vld [vmem:[#allocation32_spill] sm:$0xff] }
  0xe9   :  { %v15635_v32 = vmax.bf16 %v20118_v45, %v671_v23  ;;  %v395_v6 = vadd.bf16 %v331_v30, %v20254_v26  ;;  %v15638_v56 = vadd.bf16 %v640_v54, %v429_v15  ;;  %v20303_v12 = vcombine.low %v15236_v60, %v15241_v37  ;;  %v15650_v23 = vld [vmem:[%s19926_s3 + $0xa00] sm:$0xff]  ;;  %v20304_v15 = vld [vmem:[#allocation51_spill] sm:$0xff] }
  0xea   :  { %4119 = vmatpush1.bf16.msra.mxu0 %v20295_v46  ;;  %20296 = vst [vmem:[#allocation42_spill] sm:$0xff] %v15623_v28  ;;  %v376_v46 = vadd.bf16 %v312_v16, %v20302_v61  ;;  %v606_v40 = vmul.bf16 %v20249_v2, %v20242_v19  ;;  %v404_v0 = vadd.bf16 %v340_v29, %v20230_v27  ;;  %v15655_v30 = vld [vmem:[%s19926_s3 + $0xa20] sm:$0xff] }
  0xeb   :  { %4120 = vmatprep.subr.bf16.mxu0 %v20299_v63  ;;  %20300 = vst [vmem:[#allocation43_spill] sm:$0xff] %v15635_v32  ;;  %20301 = vst [vmem:[#allocation44_spill] sm:$0xff] %v15638_v56  ;;  %4571 = vmatpush1.bf16.msra.mxu1 %v20303_v12  ;;  %v311_v54 = vmul.bf16 %v20304_v15, %v20194_v1  ;;  %v586_v60 = vmul.bf16 %v15423_v47, %v20297_v22  ;;  %v15678_v22 = vld [vmem:[%s19926_s3 + $0xa08] sm:$0xff] }
  0xec   :  { %4052 = vmatmul.mubr.bf16.gmra.mrb[8].mxu0 %v15623_v28  ;;  %v20305_v37 = vcombine.high %v15367_v7, %v15372_v25  ;;  %v615_v29 = vmul.bf16 %v20226_v58, %v20257_v51  ;;  %v339_v16 = vmul.bf16 %v20240_v36, %v20253_v44  ;;  %v15669_v12 = vadd.bf16 %v587_v8, %v376_v46  ;;  %v15683_v63 = vld [vmem:[%s19926_s3 + $0xa28] sm:$0xff]  ;;  %v20309_v8 = vld [vmem:[#allocation4_spill] sm:$0xff] }
  0xed   :  { %v20307_v1 = vcombine.low %v15291_v18, %v15296_v48  ;;  %4504 = vmatmul.mubr.bf16.gmra.mrb[8].mxu1 %v15623_v28  ;;  %v320_v46 = vmul.bf16 %v20294_v42, %v20309_v8  ;;  %v595_v18 = vmul.bf16 %v20298_v14, %v20206_v39  ;;  %4061 = vmatprep.mubr.bf16.mxu0 %v15635_v32  ;;  %v15704_v28 = vld [vmem:[%s19926_s3 + $0xa60] sm:$0xff] }
  0xee   :  { %4572 = vmatprep.subr.bf16.mxu1 %v20305_v37  ;;  %20306 = vst [vmem:[#allocation47_spill] sm:$0xff] %v15669_v12  ;;  %v20308_v37 = vld [vmem:[#allocation52_spill] sm:$0xff]  ;;  %4513 = vmatprep.mubr.bf16.mxu1 %v15635_v32  ;;  %v670_v48 = vadd.bf16 %v606_v40, %v395_v6  ;;  %v348_v3 = vmul.bf16 %v20218_v57, %v20264_v55  ;;  %v20311_v40 = vld [vmem:[#allocation19_spill] sm:$0xff]  ;;  %v20312_v6 = vld [vmem:[#allocation38_spill] sm:$0xff] }
  0xef   :  { %4121 = vmatpush1.bf16.msra.mxu0 %v20307_v1  ;;  %v375_v50 = vadd.bf16 %v311_v54, %v20308_v37  ;;  %v15699_v54 = vld [vmem:[%s19926_s3 + $0xa40] sm:$0xff]  ;;  %v20310_v32 = vcombine.low %v15367_v7, %v15372_v25  ;;  %v20313_v1 = vcombine.high %v20311_v40, %v20312_v6  ;;  %v679_v20 = vadd.bf16 %v615_v29, %v404_v0 }
  0xf0   :  { %v384_v12 = vadd.bf16 %v320_v46, %v20302_v61  ;;  %v20314_v56 = vcombine.high %v15454_v52, %v15459_v5  ;;  %v11281_v21 = vcombine.high %v15650_v23, %v15655_v30  ;;  %v319_v0 = vmul.bf16 %v20304_v15, %v20309_v8 }
  0xf1   :  { %4573 = vmatpush1.bf16.msra.mxu1 %v20310_v32  ;;  %4122 = vmatprep.subr.bf16.mxu0 %v20313_v1  ;;  %v15712_v9 = vadd.bf16 %v586_v60, %v375_v50  ;;  %v20315_v50 = vcombine.low %v20311_v40, %v20312_v6  ;;  %v403_v32 = vadd.bf16 %v339_v16, %v20254_v26  ;;  %v15746_v16 = vld [vmem:[%s19926_s3 + $0xa48] sm:$0xff] }
  0xf2   :  { %4574 = vmatprep.subr.bf16.mxu1 %v20314_v56  ;;  %v15732_v60 = vadd.bf16 %v595_v18, %v384_v12  ;;  %v594_v29 = vmul.bf16 %v15423_v47, %v20206_v39  ;;  %v20316_v46 = vcombine.high %v15476_v24, %v15481_v43  ;;  %v15740_v8 = vmax.bf16 %v20118_v45, %v670_v48  ;;  %v15751_v12 = vld [vmem:[%s19926_s3 + $0xa68] sm:$0xff]  ;;  %v20318_v18 = vld [vmem:[#allocation8_spill] sm:$0xff] }
  0xf3   :  { %4123 = vmatpush1.bf16.msra.mxu0 %v20315_v50  ;;  %v412_v1 = vadd.bf16 %v348_v3, %v20230_v27  ;;  %v383_v39 = vadd.bf16 %v319_v0, %v20308_v37  ;;  %v328_v40 = vmul.bf16 %v20294_v42, %v20318_v18  ;;  %v20319_v48 = vcombine.low %v15454_v52, %v15459_v5  ;;  %v20321_v50 = vld [vmem:[#allocation36_spill] sm:$0xff]  ;;  %v15807_v56 = vld [vmem:[%s19926_s3 + $0xaa8] sm:$0xff] }
  0xf4   :  { %4124 = vmatprep.subr.bf16.mxu0 %v20316_v46  ;;  %20317 = vst [vmem:[#allocation48_spill] sm:$0xff] %v15740_v8  ;;  %v15760_v3 = vmax.bf16 %v20118_v45, %v679_v20  ;;  %v614_v6 = vmul.bf16 %v20249_v2, %v20257_v51  ;;  %v623_v46 = vmul.bf16 %v20226_v58, %v20321_v50 }
  0xf5   :  { %4575 = vmatpush1.bf16.msra.mxu1 %v20319_v48  ;;  %4062 = vmatmul.mubr.bf16.gmra.mrb[12].mxu0 %v15740_v8  ;;  %v20322_v0 = vcombine.high %v15503_v35, %v15508_v31  ;;  %v15772_v52 = vadd.bf16 %v594_v29, %v383_v39  ;;  %v392_v5 = vadd.bf16 %v328_v40, %v20302_v61  ;;  %v15791_v29 = vld [vmem:[%s19926_s3 + $0xaa0] sm:$0xff] }
  0xf6   :  { %20320 = vst [vmem:[#allocation35_spill] sm:$0xff] %v15760_v3  ;;  %v603_v20 = vmul.bf16 %v20298_v14, %v20222_v33  ;;  %v20323_v48 = vcombine.low %v15476_v24, %v15481_v43  ;;  %4514 = vmatmul.mubr.bf16.gmra.mrb[12].mxu1 %v15740_v8  ;;  %v347_v39 = vmul.bf16 %v20240_v36, %v20264_v55 }
  0xf7   :  { %4576 = vmatprep.subr.bf16.mxu1 %v20322_v0  ;;  %v15786_v0 = vld [vmem:[%s19926_s3 + $0xa80] sm:$0xff]  ;;  %v327_v24 = vmul.bf16 %v20304_v15, %v20318_v18  ;;  %4071 = vmatprep.mubr.bf16.mxu0 %v15760_v3  ;;  %v678_v43 = vadd.bf16 %v614_v6, %v403_v32  ;;  %v687_v40 = vadd.bf16 %v623_v46, %v412_v1 }
  0xf8   :  { %4125 = vmatpush1.bf16.msra.mxu0 %v20323_v48  ;;  %4523 = vmatprep.mubr.bf16.mxu1 %v15760_v3  ;;  %v15802_v48 = vld [vmem:[%s19926_s3 + $0xa88] sm:$0xff]  ;;  %v15809_v7 = vadd.bf16 %v603_v20, %v392_v5  ;;  %v20324_v18 = vcombine.low %v15503_v35, %v15508_v31  ;;  %v20325_v32 = vcombine.high %v15563_v34, %v15568_v13 }
  0xf9   :  { %v356_v1 = vmul.bf16 %v20218_v57, %v14908_v11  ;;  %v391_v6 = vadd.bf16 %v327_v24, %v20308_v37  ;;  %v602_v46 = vmul.bf16 %v15423_v47, %v20222_v33  ;;  %v20326_v5 = vcombine.high %v15586_v41, %v15591_v53 }
  0xfa   :  { %4577 = vmatpush1.bf16.msra.mxu1 %v20324_v18  ;;  %4126 = vmatprep.subr.bf16.mxu0 %v20325_v32  ;;  %v11291_v35 = vcombine.high %v15746_v16, %v15751_v12  ;;  %v11297_v20 = vcombine.high %v15786_v0, %v15791_v29  ;;  %v336_v18 = vmul.bf16 %v20294_v42, %v20232_v59 }
  0xfb   :  { %4578 = vmatprep.subr.bf16.mxu1 %v20326_v5  ;;  %v20327_v24 = vcombine.low %v15563_v34, %v15568_v13  ;;  %v411_v33 = vadd.bf16 %v347_v39, %v20254_v26  ;;  %v11299_v5 = vcombine.high %v15802_v48, %v15807_v56  ;;  %v15841_v25 = vadd.bf16 %v602_v46, %v391_v6  ;;  %v15863_v6 = vld [vmem:[%s19926_s3 + $0xac0] sm:$0xff] }
  0xfc   :  { %v15844_v31 = vmax.bf16 %v20118_v45, %v678_v43  ;;  %v400_v3 = vadd.bf16 %v336_v18, %v20302_v61  ;;  %v611_v34 = vmul.bf16 %v20298_v14, %v20242_v19  ;;  %v335_v13 = vmul.bf16 %v20304_v15, %v20232_v59 }
  0xfd   :  { %4127 = vmatpush1.bf16.msra.mxu0 %v20327_v24  ;;  %v20328_v39 = vcombine.low %v15586_v41, %v15591_v53  ;;  %v15855_v24 = vmax.bf16 %v20118_v45, %v687_v40  ;;  %v420_v43 = vadd.bf16 %v356_v1, %v20230_v27  ;;  %v610_v59 = vmul.bf16 %v15423_v47, %v20242_v19  ;;  %v15874_v53 = vld [vmem:[%s19926_s3 + $0xae0] sm:$0xff]  ;;  %v15879_v40 = vld [vmem:[%s19926_s3 + $0xac8] sm:$0xff] }
  0xfe   :  { %4128 = vmatprep.subr.bf16.mxu0 %v11281_v21  ;;  %v622_v21 = vmul.bf16 %v20249_v2, %v20321_v50  ;;  %4072 = vmatmul.mubr.bf16.gmra.mrb[16].mxu0 %v15844_v31  ;;  %v20329_v41 = vcombine.high %v15678_v22, %v15683_v63  ;;  %v15884_v19 = vld [vmem:[%s19926_s3 + $0xae8] sm:$0xff]  ;;  %v15886_v1 = vadd.bf16 %v611_v34, %v400_v3  ;;  %v15904_v3 = vld [vmem:[%s19926_s3 + $0xb00] sm:$0xff] }
  0xff   :  { %4579 = vmatpush1.bf16.msra.mxu1 %v20328_v39  ;;  %v399_v46 = vadd.bf16 %v335_v13, %v20308_v37  ;;  %v344_v18 = vmul.bf16 %v20294_v42, %v20253_v44  ;;  %v20330_v39 = vcombine.low %v15650_v23, %v15655_v30  ;;  %v631_v32 = vmul.bf16 %v20226_v58, %v15025_v49  ;;  %v15909_v23 = vld [vmem:[%s19926_s3 + $0xb20] sm:$0xff] }
 0x100   :  { %4580 = vmatprep.subr.bf16.mxu1 %v20329_v41  ;;  %4524 = vmatmul.mubr.bf16.gmra.mrb[16].mxu1 %v15844_v31  ;;  %v686_v41 = vadd.bf16 %v622_v21, %v411_v33  ;;  %v355_v8 = vmul.bf16 %v20240_v36, %v14908_v11  ;;  %v619_v34 = vmul.bf16 %v20298_v14, %v20257_v51 }
 0x101   :  { %4129 = vmatpush1.bf16.msra.mxu0 %v20330_v39  ;;  %4081 = vmatprep.mubr.bf16.mxu0 %v15855_v24  ;;  %v15911_v30 = vadd.bf16 %v610_v59, %v399_v46  ;;  %v408_v33 = vadd.bf16 %v344_v18, %v20302_v61  ;;  %v20331_v13 = vcombine.low %v15678_v22, %v15683_v63  ;;  %v15931_v22 = vld [vmem:[%s19926_s3 + $0xb08] sm:$0xff] }
 0x102   :  { %4533 = vmatprep.mubr.bf16.mxu1 %v15855_v24  ;;  %v20332_v21 = vcombine.high %v15699_v54, %v15704_v28  ;;  %v11304_v39 = vcombine.low %v15863_v6, %v15874_v53  ;;  %v11305_v59 = vcombine.high %v15863_v6, %v15874_v53  ;;  %v11306_v46 = vcombine.low %v15879_v40, %v15884_v19  ;;  %v15936_v63 = vld [vmem:[%s19926_s3 + $0xb28] sm:$0xff] }
 0x103   :  { %4581 = vmatpush1.bf16.msra.mxu1 %v20331_v13  ;;  %v695_v18 = vadd.bf16 %v631_v32, %v420_v43  ;;  %v364_v13 = vmul.bf16 %v20218_v57, %v15071_v17  ;;  %v343_v6 = vmul.bf16 %v20304_v15, %v20253_v44  ;;  %v11307_v32 = vcombine.high %v15879_v40, %v15884_v19 }
 0x104   :  { %4130 = vmatprep.subr.bf16.mxu0 %v20332_v21  ;;  %4582 = vmatprep.subr.bf16.mxu1 %v11291_v35  ;;  %v15940_v21 = vadd.bf16 %v619_v34, %v408_v33  ;;  %v20333_v35 = vcombine.low %v15699_v54, %v15704_v28  ;;  %v11312_v43 = vcombine.low %v15904_v3, %v15909_v23 }
 0x105   :  { %v11313_v53 = vcombine.high %v15904_v3, %v15909_v23  ;;  %v352_v57 = vmul.bf16 %v20294_v42, %v20264_v55  ;;  %v15956_v33 = vmax.bf16 %v20118_v45, %v686_v41  ;;  %v419_v44 = vadd.bf16 %v355_v8, %v20254_v26 }
 0x106   :  { %4131 = vmatpush1.bf16.msra.mxu0 %v20333_v35  ;;  %v407_v28 = vadd.bf16 %v343_v6, %v20308_v37  ;;  %v618_v54 = vmul.bf16 %v15423_v47, %v20257_v51  ;;  %v20334_v40 = vcombine.low %v15746_v16, %v15751_v12  ;;  %v630_v19 = vmul.bf16 %v20249_v2, %v15025_v49 }
 0x107   :  { %4132 = vmatprep.subr.bf16.mxu0 %v11297_v20  ;;  %v11314_v20 = vcombine.low %v15931_v22, %v15936_v63  ;;  %v416_v41 = vadd.bf16 %v352_v57, %v20302_v61  ;;  %v627_v8 = vmul.bf16 %v20298_v14, %v20321_v50  ;;  %4082 = vmatmul.mubr.bf16.gmra.mrb[20].mxu0 %v15956_v33 }
 0x108   :  { %4583 = vmatpush1.bf16.msra.mxu1 %v20334_v40  ;;  %v15974_v51 = vmax.bf16 %v20118_v45, %v695_v18  ;;  %v428_v16 = vadd.bf16 %v364_v13, %v20230_v27  ;;  %v15977_v12 = vadd.bf16 %v618_v54, %v407_v28  ;;  %v20335_v34 = vcombine.low %v15786_v0, %v15791_v29  ;;  %v1136_v27 = vld [vmem:[%s19926_s3 + $0xb60] sm:$0xff] }
 0x109   :  { %4584 = vmatprep.subr.bf16.mxu1 %v11299_v5  ;;  %4534 = vmatmul.mubr.bf16.gmra.mrb[20].mxu1 %v15956_v33  ;;  %v639_v6 = vmul.bf16 %v20226_v58, %v15138_v10  ;;  %v15988_v5 = vld [vmem:[%s19926_s3 + $0xb40] sm:$0xff]  ;;  %v15993_v18 = vadd.bf16 %v627_v8, %v416_v41  ;;  %v351_v0 = vmul.bf16 %v20304_v15, %v20264_v55 }
 0x10a   :  { %4133 = vmatpush1.bf16.msra.mxu0 %v20335_v34  ;;  %4091 = vmatprep.mubr.bf16.mxu0 %v15974_v51  ;;  %v694_v29 = vadd.bf16 %v630_v19, %v419_v44  ;;  %v363_v58 = vmul.bf16 %v20240_v36, %v15071_v17  ;;  %v360_v13 = vmul.bf16 %v20294_v42, %v14908_v11  ;;  %v1140_v34 = vld [vmem:[%s19926_s3 + $0xb80] sm:$0xff] }
 0x10b   :  { %4543 = vmatprep.mubr.bf16.mxu1 %v15974_v51  ;;  %v20336_v35 = vcombine.low %v15802_v48, %v15807_v56  ;;  %4134 = vmatprep.subr.bf16.mxu0 %v11305_v59  ;;  %v11315_v57 = vcombine.high %v15931_v22, %v15936_v63  ;;  %v415_v55 = vadd.bf16 %v351_v0, %v20308_v37  ;;  %v1133_v48 = vld [vmem:[%s19926_s3 + $0xb48] sm:$0xff] }
 0x10c   :  { %v626_v28 = vmul.bf16 %v15423_v47, %v20321_v50  ;;  %v703_v44 = vadd.bf16 %v639_v6, %v428_v16  ;;  %v11320_v36 = vcombine.low %v15988_v5, %v1136_v27  ;;  %v424_v54 = vadd.bf16 %v360_v13, %v20302_v61  ;;  %v1137_v50 = vld [vmem:[%s19926_s3 + $0xb68] sm:$0xff] }
 0x10d   :  { %4585 = vmatpush1.bf16.msra.mxu1 %v20336_v35  ;;  %v635_v40 = vmul.bf16 %v20298_v14, %v15025_v49  ;;  %v11321_v56 = vcombine.high %v15988_v5, %v1136_v27  ;;  %v368_v19 = vmul.bf16 %v20294_v42, %v15071_v17  ;;  %v427_v41 = vadd.bf16 %v363_v58, %v20254_v26  ;;  %v1153_v22 = vld [vmem:[%s19926_s3 + $0xbe8] sm:$0xff]  ;;  %v1156_v35 = vld [vmem:[%s19926_s3 + $0xc00] sm:$0xff] }
 0x10e   :  { %4586 = vmatprep.subr.bf16.mxu1 %v11307_v32  ;;  %4135 = vmatpush1.bf16.msra.mxu0 %v11304_v39  ;;  %v16022_v59 = vadd.bf16 %v626_v28, %v415_v55  ;;  %v359_v32 = vmul.bf16 %v20304_v15, %v14908_v11  ;;  %v16029_v39 = vmax.bf16 %v20118_v45, %v694_v29  ;;  %v1144_v11 = vld [vmem:[%s19926_s3 + $0xba0] sm:$0xff] }
 0x10f   :  { %4136 = vmatprep.subr.bf16.mxu0 %v11313_v53  ;;  %v16032_v8 = vadd.bf16 %v635_v40, %v424_v54  ;;  %v634_v16 = vmul.bf16 %v15423_v47, %v15025_v49  ;;  %v432_v53 = vadd.bf16 %v368_v19, %v20302_v61  ;;  %v643_v26 = vmul.bf16 %v20298_v14, %v15138_v10  ;;  %v1145_v14 = vld [vmem:[%s19926_s3 + $0xba8] sm:$0xff]  ;;  %v1152_v29 = vld [vmem:[%s19926_s3 + $0xbe0] sm:$0xff] }
 0x110   :  { %v423_v42 = vadd.bf16 %v359_v32, %v20308_v37  ;;  %v367_v6 = vmul.bf16 %v20304_v15, %v15071_v17  ;;  %4092 = vmatmul.mubr.bf16.gmra.mrb[24].mxu0 %v16029_v39  ;;  %v16050_v49 = vmax.bf16 %v20118_v45, %v703_v44  ;;  %v638_v5 = vmul.bf16 %v20249_v2, %v15138_v10  ;;  %v1141_v17 = vld [vmem:[%s19926_s3 + $0xb88] sm:$0xff]  ;;  %v20337_v55 = vld [vmem:[#allocation50_spill] sm:$0xff] }
 0x111   :  { %4587 = vmatpush1.bf16.msra.mxu1 %v11306_v46  ;;  %v11323_v46 = vcombine.high %v1133_v48, %v1137_v50  ;;  %v16066_v15 = vadd.bf16 %v643_v26, %v432_v53  ;;  %v11329_v3 = vcombine.high %v1140_v34, %v1144_v11  ;;  %v11322_v27 = vcombine.low %v1133_v48, %v1137_v50  ;;  %v1157_v54 = vld [vmem:[%s19926_s3 + $0xc08] sm:$0xff]  ;;  %v1164_v50 = vld [vmem:[%s19926_s3 + $0xc40] sm:$0xff] }
 0x112   :  { %4588 = vmatprep.subr.bf16.mxu1 %v11315_v57  ;;  %4137 = vmatpush1.bf16.msra.mxu0 %v11312_v43  ;;  %v16064_v61 = vadd.bf16 %v634_v16, %v423_v42  ;;  %v431_v2 = vadd.bf16 %v367_v6, %v20308_v37  ;;  %v702_v23 = vadd.bf16 %v638_v5, %v427_v41  ;;  %v1148_v37 = vld [vmem:[%s19926_s3 + $0xbc0] sm:$0xff]  ;;  %v1161_v40 = vld [vmem:[%s19926_s3 + $0xc28] sm:$0xff]  ;;  %v20339_v6 = vld [vmem:[#allocation28_spill] sm:$0xff] }
 0x113   :  { %4544 = vmatmul.mubr.bf16.gmra.mrb[24].mxu1 %v16029_v39  ;;  %4101 = vmatprep.mubr.bf16.mxu0 %v16050_v49  ;;  %v642_v43 = vmul.bf16 %v15423_v47, %v15138_v10  ;;  %v11331_v0 = vcombine.high %v1141_v17, %v1145_v14  ;;  %v11328_v47 = vcombine.low %v1140_v34, %v1144_v11  ;;  %v1149_v10 = vld [vmem:[%s19926_s3 + $0xbc8] sm:$0xff]  ;;  %v1160_v57 = vld [vmem:[%s19926_s3 + $0xc20] sm:$0xff] }
 0x114   :  { %4553 = vmatprep.mubr.bf16.mxu1 %v16050_v49  ;;  %4138 = vmatprep.subr.bf16.mxu0 %v11321_v56  ;;  %v16091_v63 = vmax.bf16 %v20118_v45, %v702_v23  ;;  %v11337_v13 = vcombine.high %v1148_v37, %v1152_v29  ;;  %v16102_v28 = vmax.bf16 %v20118_v45, %v20337_v55  ;;  %v1168_v32 = vld [vmem:[%s19926_s3 + $0xc60] sm:$0xff]  ;;  %v1165_v16 = vld [vmem:[%s19926_s3 + $0xc48] sm:$0xff]  ;;  %v20341_v55 = vld [vmem:[#allocation21_spill] sm:$0xff] }
 0x115   :  { %4589 = vmatpush1.bf16.msra.mxu1 %v11314_v20  ;;  %v16082_v58 = vadd.bf16 %v642_v43, %v431_v2  ;;  %v11330_v20 = vcombine.low %v1141_v17, %v1145_v14  ;;  %v11339_v44 = vcombine.high %v1149_v10, %v1153_v22  ;;  %v11345_v56 = vcombine.high %v1156_v35, %v1160_v57  ;;  %v1169_v34 = vld [vmem:[%s19926_s3 + $0xc68] sm:$0xff]  ;;  %v20338_v11 = vld [vmem:[#allocation6_spill] sm:$0xff] }
 0x116   :  { %4590 = vmatprep.subr.bf16.mxu1 %v11323_v46  ;;  %4139 = vmatpush1.bf16.msra.mxu0 %v11320_v36  ;;  %v11336_v36 = vcombine.low %v1148_v37, %v1152_v29  ;;  %v11338_v48 = vcombine.low %v1149_v10, %v1153_v22  ;;  %v11347_v19 = vcombine.high %v1157_v54, %v1161_v40  ;;  %v1172_v5 = vld [vmem:[%s19926_s3 + $0xc80] sm:$0xff]  ;;  %v1177_v23 = vld [vmem:[%s19926_s3 + $0xca8] sm:$0xff] }
 0x117   :  { %4140 = vmatprep.subr.bf16.mxu0 %v11329_v3  ;;  %v11344_v41 = vcombine.low %v1156_v35, %v1160_v57  ;;  %v16127_v42 = vmax.bf16 %v20118_v45, %v20338_v11  ;;  %v11353_v53 = vcombine.high %v1164_v50, %v1168_v32  ;;  %v11346_v26 = vcombine.low %v1157_v54, %v1161_v40  ;;  %v1176_v17 = vld [vmem:[%s19926_s3 + $0xca0] sm:$0xff]  ;;  %v1173_v3 = vld [vmem:[%s19926_s3 + $0xc88] sm:$0xff] }
 0x118   :  { %4102 = vmatmul.mubr.bf16.gmra.mrb[28].mxu0 %v16091_v63  ;;  %v16131_v46 = vmax.bf16 %v20118_v45, %v20339_v6  ;;  %v11355_v14 = vcombine.high %v1165_v16, %v1169_v34  ;;  %v11352_v2 = vcombine.low %v1164_v50, %v1168_v32  ;;  %v11361_v43 = vcombine.high %v1172_v5, %v1176_v17  ;;  %v1184_v37 = vld [vmem:[%s19926_s3 + $0xce0] sm:$0xff]  ;;  %v1181_v10 = vld [vmem:[%s19926_s3 + $0xcc8] sm:$0xff]  ;;  %v20342_v6 = vld [vmem:[#allocation13_spill] sm:$0xff] }
 0x119   :  { %4591 = vmatpush1.bf16.msra.mxu1 %v11322_v27  ;;  %4144 = vmatprep.mubr.bf16.mxu0 %v16102_v28  ;;  %v11354_v27 = vcombine.low %v1165_v16, %v1169_v34  ;;  %v11363_v29 = vcombine.high %v1173_v3, %v1177_v23  ;;  %v1185_v22 = vld [vmem:[%s19926_s3 + $0xce8] sm:$0xff]  ;;  %v11362_v57 = vcombine.low %v1173_v3, %v1177_v23  ;;  %v1192_v54 = vld [vmem:[%s19926_s3 + $0xd20] sm:$0xff] }
 0x11a   :  { %4592 = vmatprep.subr.bf16.mxu1 %v11331_v0  ;;  %4141 = vmatpush1.bf16.msra.mxu0 %v11328_v47  ;;  %v1180_v0 = vld [vmem:[%s19926_s3 + $0xcc0] sm:$0xff]  ;;  %v11360_v47 = vcombine.low %v1172_v5, %v1176_v17  ;;  %v11371_v40 = vcombine.high %v1181_v10, %v1185_v22  ;;  %v1193_v50 = vld [vmem:[%s19926_s3 + $0xd28] sm:$0xff]  ;;  %v16199_v5 = vmax.bf16 %v20118_v45, %v20342_v6 }
 0x11b   :  { %4554 = vmatmul.mubr.bf16.gmra.mrb[28].mxu1 %v16091_v63  ;;  %4142 = vmatprep.subr.bf16.mxu0 %v11337_v13  ;;  %v11369_v35 = vcombine.high %v1180_v0, %v1184_v37  ;;  %v1200_v16 = vld [vmem:[%s19926_s3 + $0xd60] sm:$0xff] }
 0x11c   :  { %4596 = vmatprep.mubr.bf16.mxu1 %v16102_v28  ;;  %v1204_v23 = vld [vmem:[%s19926_s3 + $0xd80] sm:$0xff] }
 0x11d   :  { %4593 = vmatpush1.bf16.msra.mxu1 %v11330_v20  ;;  %v20340_v20 = vld [vmem:[#allocation29_spill] sm:$0xff] }
 0x11e   :  { %4594 = vmatprep.subr.bf16.mxu1 %v11339_v44  ;;  %4143 = vmatpush1.bf16.msra.mxu0 %v11336_v36  ;;  %v16163_v13 = vmax.bf16 %v20118_v45, %v20340_v20  ;;  %v16167_v44 = vmax.bf16 %v20118_v45, %v20341_v55  ;;  %v1188_v36 = vld [vmem:[%s19926_s3 + $0xd00] sm:$0xff]  ;;  %v1213_v55 = vld [vmem:[%s19926_s3 + $0xdc8] sm:$0xff] }
 0x11f   :  { %4225 = vmatprep.subr.bf16.mxu0 %v11345_v56  ;;  %v11368_v56 = vcombine.low %v1180_v0, %v1184_v37  ;;  %v11377_v32 = vcombine.high %v1188_v36, %v1192_v54  ;;  %v11376_v11 = vcombine.low %v1188_v36, %v1192_v54  ;;  %v1205_v37 = vld [vmem:[%s19926_s3 + $0xd88] sm:$0xff]  ;;  %v1216_v20 = vld [vmem:[%s19926_s3 + $0xde0] sm:$0xff] }
 0x120   :  { %v1217_v36 = vld [vmem:[%s19926_s3 + $0xde8] sm:$0xff]  ;;  %v20344_v54 = vld [vmem:[#allocation34_spill] sm:$0xff] }
 0x121   :  { %4595 = vmatpush1.bf16.msra.mxu1 %v11338_v48  ;;  %4145 = vmatmul.mubr.bf16.vlgmr.msra.gmra.mrb[0].mxu0 %v16127_v42  ;;  %v1189_v48 = vld [vmem:[%s19926_s3 + $0xd08] sm:$0xff]  ;;  %v11402_v6 = vcombine.low %v1213_v55, %v1217_v36 }
 0x122   :  { %4677 = vmatprep.subr.bf16.mxu1 %v11347_v19  ;;  %4226 = vmatpush1.bf16.msra.mxu0 %v11344_v41  ;;  %v11370_v19 = vcombine.low %v1181_v10, %v1185_v22  ;;  %v1196_v41 = vld [vmem:[%s19926_s3 + $0xd40] sm:$0xff]  ;;  %v11379_v34 = vcombine.high %v1189_v48, %v1193_v50 }
 0x123   :  { %4154 = vmatprep.mubr.bf16.mxu0 %v16131_v46  ;;  %4227 = vmatprep.subr.bf16.mxu0 %v11353_v53  ;;  %v1197_v53 = vld [vmem:[%s19926_s3 + $0xd48] sm:$0xff]  ;;  %v11385_v17 = vcombine.high %v1196_v41, %v1200_v16  ;;  %v11384_v0 = vcombine.low %v1196_v41, %v1200_v16  ;;  %v1212_v22 = vld [vmem:[%s19926_s3 + $0xdc0] sm:$0xff]  ;;  %v11403_v16 = vcombine.high %v1213_v55, %v1217_v36 }
 0x124   :  { %4597 = vmatmul.mubr.bf16.vlgmr.msra.gmra.mrb[0].mxu1 %v16127_v42  ;;  %v1224_v41 = vld [vmem:[%s19926_s3 + $0xe20] sm:$0xff]  ;;  %v1237_v36 = vld [vmem:[%s19926_s3 + $0xe88] sm:$0xff] }
 0x125   :  { %4606 = vmatprep.mubr.bf16.mxu1 %v16131_v46  ;;  %4678 = vmatpush1.bf16.msra.mxu1 %v11346_v26  ;;  %v1201_v26 = vld [vmem:[%s19926_s3 + $0xd68] sm:$0xff] }
 0x126   :  { %4679 = vmatprep.subr.bf16.mxu1 %v11355_v14  ;;  %4228 = vmatpush1.bf16.msra.mxu0 %v11352_v2  ;;  %v11378_v14 = vcombine.low %v1189_v48, %v1193_v50  ;;  %v20343_v2 = vld [vmem:[#allocation31_spill] sm:$0xff]  ;;  %v11386_v10 = vcombine.low %v1197_v53, %v1201_v26 }
 0x127   :  { %4229 = vmatprep.subr.bf16.mxu0 %v11361_v43  ;;  %v16203_v3 = vmax.bf16 %v20118_v45, %v20343_v2  ;;  %v1208_v43 = vld [vmem:[%s19926_s3 + $0xda0] sm:$0xff]  ;;  %v20345_v50 = vld [vmem:[#allocation15_spill] sm:$0xff] }
 0x129   :  { %4680 = vmatpush1.bf16.msra.mxu1 %v11354_v27  ;;  %4155 = vmatmul.mubr.bf16.gmra.mrb[4].mxu0 %v16163_v13  ;;  %v11387_v27 = vcombine.high %v1197_v53, %v1201_v26  ;;  %v1225_v53 = vld [vmem:[%s19926_s3 + $0xe28] sm:$0xff] }
 0x12a   :  { %4681 = vmatprep.subr.bf16.mxu1 %v11363_v29  ;;  %4230 = vmatpush1.bf16.msra.mxu0 %v11360_v47  ;;  %v1209_v29 = vld [vmem:[%s19926_s3 + $0xda8] sm:$0xff]  ;;  %v11393_v47 = vcombine.high %v1204_v23, %v1208_v43 }
 0x12b   :  { %4164 = vmatprep.mubr.bf16.mxu0 %v16167_v44  ;;  %4231 = vmatprep.subr.bf16.mxu0 %v11369_v35  ;;  %v11395_v35 = vcombine.high %v1205_v37, %v1209_v29  ;;  %v11394_v48 = vcombine.low %v1205_v37, %v1209_v29 }
 0x12c   :  { %4607 = vmatmul.mubr.bf16.gmra.mrb[4].mxu1 %v16163_v13 }
 0x12d   :  { %4616 = vmatprep.mubr.bf16.mxu1 %v16167_v44  ;;  %4682 = vmatpush1.bf16.msra.mxu1 %v11362_v57  ;;  %v11392_v57 = vcombine.low %v1204_v23, %v1208_v43  ;;  %v1229_v43 = vld [vmem:[%s19926_s3 + $0xe48] sm:$0xff] }
 0x12e   :  { %4683 = vmatprep.subr.bf16.mxu1 %v11371_v40  ;;  %4232 = vmatpush1.bf16.msra.mxu0 %v11368_v56  ;;  %v16235_v40 = vmax.bf16 %v20118_v45, %v20344_v54  ;;  %v11401_v56 = vcombine.high %v1212_v22, %v1216_v20  ;;  %v1241_v54 = vld [vmem:[%s19926_s3 + $0xea8] sm:$0xff] }
 0x12f   :  { %4233 = vmatprep.subr.bf16.mxu0 %v11377_v32  ;;  %v16239_v32 = vmax.bf16 %v20118_v45, %v20345_v50  ;;  %v1244_v50 = vld [vmem:[%s19926_s3 + $0xec0] sm:$0xff] }
 0x131   :  { %4684 = vmatpush1.bf16.msra.mxu1 %v11370_v19  ;;  %4165 = vmatmul.mubr.bf16.gmra.mrb[8].mxu0 %v16199_v5  ;;  %v1220_v19 = vld [vmem:[%s19926_s3 + $0xe00] sm:$0xff] }
 0x132   :  { %4685 = vmatprep.subr.bf16.mxu1 %v11379_v34  ;;  %4234 = vmatpush1.bf16.msra.mxu0 %v11376_v11  ;;  %v11400_v34 = vcombine.low %v1212_v22, %v1216_v20  ;;  %v1221_v11 = vld [vmem:[%s19926_s3 + $0xe08] sm:$0xff]  ;;  %v11409_v26 = vcombine.high %v1220_v19, %v1224_v41  ;;  %v11408_v23 = vcombine.low %v1220_v19, %v1224_v41  ;;  %v1236_v20 = vld [vmem:[%s19926_s3 + $0xe80] sm:$0xff] }
 0x133   :  { %4174 = vmatprep.mubr.bf16.mxu0 %v16203_v3  ;;  %4235 = vmatprep.subr.bf16.mxu0 %v11385_v17  ;;  %v1228_v17 = vld [vmem:[%s19926_s3 + $0xe40] sm:$0xff]  ;;  %v11411_v2 = vcombine.high %v1221_v11, %v1225_v53  ;;  %v11427_v41 = vcombine.high %v1237_v36, %v1241_v54 }
 0x134   :  { %4617 = vmatmul.mubr.bf16.gmra.mrb[8].mxu1 %v16199_v5  ;;  %v1248_v19 = vld [vmem:[%s19926_s3 + $0xee0] sm:$0xff] }
 0x135   :  { %4626 = vmatprep.mubr.bf16.mxu1 %v16203_v3  ;;  %4686 = vmatpush1.bf16.msra.mxu1 %v11378_v14  ;;  %v1232_v14 = vld [vmem:[%s19926_s3 + $0xe60] sm:$0xff] }
 0x136   :  { %4687 = vmatprep.subr.bf16.mxu1 %v11387_v27  ;;  %4236 = vmatpush1.bf16.msra.mxu0 %v11384_v0  ;;  %v1233_v27 = vld [vmem:[%s19926_s3 + $0xe68] sm:$0xff]  ;;  %v20346_v0 = vld [vmem:[#allocation18_spill] sm:$0xff]  ;;  %v11417_v29 = vcombine.high %v1228_v17, %v1232_v14  ;;  %v11416_v55 = vcombine.low %v1228_v17, %v1232_v14  ;;  %v16311_v17 = vmax.bf16 %v20118_v45, %v15527_v38 }
 0x137   :  { %4237 = vmatprep.subr.bf16.mxu0 %v11393_v47  ;;  %v16271_v37 = vmax.bf16 %v20118_v45, %v20346_v0  ;;  %v11410_v47 = vcombine.low %v1221_v11, %v1225_v53  ;;  %v1249_v11 = vld [vmem:[%s19926_s3 + $0xee8] sm:$0xff]  ;;  %v16307_v53 = vmax.bf16 %v20118_v45, %v15520_v4  ;;  %v1252_v14 = vld [vmem:[%s19926_s3 + $0xf00] sm:$0xff] }
 0x138   :  { %v1253_v38 = vld [vmem:[%s19926_s3 + $0xf08] sm:$0xff] }
 0x139   :  { %4688 = vmatpush1.bf16.msra.mxu1 %v11386_v10  ;;  %4175 = vmatmul.mubr.bf16.gmra.mrb[12].mxu0 %v16235_v40  ;;  %v20347_v10 = vld [vmem:[#allocation14_spill] sm:$0xff] }
 0x13a   :  { %4689 = vmatprep.subr.bf16.mxu1 %v11395_v35  ;;  %4238 = vmatpush1.bf16.msra.mxu0 %v11392_v57  ;;  %v16275_v22 = vmax.bf16 %v20118_v45, %v20347_v10  ;;  %v1240_v35 = vld [vmem:[%s19926_s3 + $0xea0] sm:$0xff]  ;;  %v11419_v57 = vcombine.high %v1229_v43, %v1233_v27 }
 0x13b   :  { %4184 = vmatprep.mubr.bf16.mxu0 %v16239_v32  ;;  %4239 = vmatprep.subr.bf16.mxu0 %v11401_v56  ;;  %v11425_v56 = vcombine.high %v1236_v20, %v1240_v35 }
 0x13c   :  { %4627 = vmatmul.mubr.bf16.gmra.mrb[12].mxu1 %v16235_v40 }
 0x13d   :  { %4636 = vmatprep.mubr.bf16.mxu1 %v16239_v32  ;;  %4690 = vmatpush1.bf16.msra.mxu1 %v11394_v48  ;;  %v11418_v48 = vcombine.low %v1229_v43, %v1233_v27  ;;  %v1257_v43 = vld [vmem:[%s19926_s3 + $0xf28] sm:$0xff] }
 0x13e   :  { %4691 = vmatprep.subr.bf16.mxu1 %v11403_v16  ;;  %4240 = vmatpush1.bf16.msra.mxu0 %v11400_v34  ;;  %v11424_v16 = vcombine.low %v1236_v20, %v1240_v35  ;;  %v1245_v34 = vld [vmem:[%s19926_s3 + $0xec8] sm:$0xff]  ;;  %v11443_v10 = vcombine.high %v1253_v38, %v1257_v43 }
 0x13f   :  { %4241 = vmatprep.subr.bf16.mxu0 %v11409_v26  ;;  %v11433_v26 = vcombine.high %v1244_v50, %v1248_v19  ;;  %v11435_v4 = vcombine.high %v1245_v34, %v1249_v11  ;;  %v11434_v0 = vcombine.low %v1245_v34, %v1249_v11  ;;  %v1261_v35 = vld [vmem:[%s19926_s3 + $0xf48] sm:$0xff] }
 0x140   :  { %v1273_v34 = vld [vmem:[%s19926_s3 + $0xfa8] sm:$0xff] }
 0x141   :  { %4692 = vmatpush1.bf16.msra.mxu1 %v11402_v6  ;;  %4185 = vmatmul.mubr.bf16.gmra.mrb[16].mxu0 %v16271_v37  ;;  %v11426_v6 = vcombine.low %v1237_v36, %v1241_v54  ;;  %v11442_v54 = vcombine.low %v1253_v38, %v1257_v43  ;;  %v1281_v38 = vld [vmem:[%s19926_s3 + $0xfe8] sm:$0xff]  ;;  %v20349_v43 = vld [vmem:[#allocation44_spill] sm:$0xff] }
 0x142   :  { %4693 = vmatprep.subr.bf16.mxu1 %v11411_v2  ;;  %4242 = vmatpush1.bf16.msra.mxu0 %v11408_v23  ;;  %v1256_v2 = vld [vmem:[%s19926_s3 + $0xf20] sm:$0xff]  ;;  %v11432_v23 = vcombine.low %v1244_v50, %v1248_v19 }
 0x143   :  { %4194 = vmatprep.mubr.bf16.mxu0 %v16275_v22  ;;  %4243 = vmatprep.subr.bf16.mxu0 %v11417_v29  ;;  %v11441_v27 = vcombine.high %v1252_v14, %v1256_v2  ;;  %v1260_v29 = vld [vmem:[%s19926_s3 + $0xf40] sm:$0xff]  ;;  %v11440_v20 = vcombine.low %v1252_v14, %v1256_v2 }
 0x144   :  { %4637 = vmatmul.mubr.bf16.gmra.mrb[16].mxu1 %v16271_v37  ;;  %v1268_v50 = vld [vmem:[%s19926_s3 + $0xf80] sm:$0xff] }
 0x145   :  { %4646 = vmatprep.mubr.bf16.mxu1 %v16275_v22  ;;  %4694 = vmatpush1.bf16.msra.mxu1 %v11410_v47  ;;  %v1264_v47 = vld [vmem:[%s19926_s3 + $0xf60] sm:$0xff] }
 0x146   :  { %4695 = vmatprep.subr.bf16.mxu1 %v11419_v57  ;;  %4244 = vmatpush1.bf16.msra.mxu0 %v11416_v55  ;;  %v1265_v57 = vld [vmem:[%s19926_s3 + $0xf68] sm:$0xff]  ;;  %v16343_v55 = vmax.bf16 %v20118_v45, %v15577_v62  ;;  %v11449_v36 = vcombine.high %v1260_v29, %v1264_v47  ;;  %v1272_v19 = vld [vmem:[%s19926_s3 + $0xfa0] sm:$0xff] }
 0x147   :  { %4245 = vmatprep.subr.bf16.mxu0 %v11425_v56  ;;  %v20348_v56 = vld [vmem:[#allocation41_spill] sm:$0xff]  ;;  %v11451_v62 = vcombine.high %v1261_v35, %v1265_v57  ;;  %v11457_v11 = vcombine.high %v1268_v50, %v1272_v19  ;;  %v1280_v14 = vld [vmem:[%s19926_s3 + $0xfe0] sm:$0xff] }
 0x149   :  { %4696 = vmatpush1.bf16.msra.mxu1 %v11418_v48  ;;  %4195 = vmatmul.mubr.bf16.gmra.mrb[20].mxu0 %v16307_v53  ;;  %v16347_v48 = vmax.bf16 %v20118_v45, %v20348_v56  ;;  %v779_v56 = vld [vmem:[%s19926_s3 + $0x38] sm:$0xff] }
 0x14a   :  { %4697 = vmatprep.subr.bf16.mxu1 %v11427_v41  ;;  %4246 = vmatpush1.bf16.msra.mxu0 %v11424_v16  ;;  %v11448_v41 = vcombine.low %v1260_v29, %v1264_v47  ;;  %v1269_v16 = vld [vmem:[%s19926_s3 + $0xf88] sm:$0xff] }
 0x14b   :  { %4204 = vmatprep.mubr.bf16.mxu0 %v16311_v17  ;;  %4247 = vmatprep.subr.bf16.mxu0 %v11433_v26  ;;  %v11450_v26 = vcombine.low %v1261_v35, %v1265_v57  ;;  %v11459_v2 = vcombine.high %v1269_v16, %v1273_v34  ;;  %v11458_v29 = vcombine.low %v1269_v16, %v1273_v34  ;;  %v20350_v47 = vld [vmem:[#allocation47_spill] sm:$0xff]  ;;  %v778_v35 = vld [vmem:[%s19926_s3 + $0x30] sm:$0xff] }
 0x14c   :  { %4647 = vmatmul.mubr.bf16.gmra.mrb[20].mxu1 %v16307_v53 }
 0x14d   :  { %4656 = vmatprep.mubr.bf16.mxu1 %v16311_v17  ;;  %4698 = vmatpush1.bf16.msra.mxu1 %v11426_v6  ;;  %v1276_v6 = vld [vmem:[%s19926_s3 + $0xfc0] sm:$0xff] }
 0x14e   :  { %4699 = vmatprep.subr.bf16.mxu1 %v11435_v4  ;;  %4248 = vmatpush1.bf16.msra.mxu0 %v11432_v23  ;;  %v11456_v4 = vcombine.low %v1268_v50, %v1272_v19  ;;  %v1277_v23 = vld [vmem:[%s19926_s3 + $0xfc8] sm:$0xff] }
 0x14f   :  { %4249 = vmatprep.subr.bf16.mxu0 %v11441_v27  ;;  %v16379_v27 = vmax.bf16 %v20118_v45, %v20349_v43  ;;  %v11467_v57 = vcombine.high %v1277_v23, %v1281_v38  ;;  %v11466_v19 = vcombine.low %v1277_v23, %v1281_v38  ;;  %v790_v23 = vld [vmem:[%s19926_s3 + $0x90] sm:$0xff] }
 0x150   :  { %v794_v38 = vld [vmem:[%s19926_s3 + $0xb0] sm:$0xff] }
 0x151   :  { %4700 = vmatpush1.bf16.msra.mxu1 %v11434_v0  ;;  %4205 = vmatmul.mubr.bf16.gmra.mrb[24].mxu0 %v16343_v55  ;;  %v11465_v0 = vcombine.high %v1276_v6, %v1280_v14 }
 0x152   :  { %4701 = vmatprep.subr.bf16.mxu1 %v11443_v10  ;;  %4250 = vmatpush1.bf16.msra.mxu0 %v11440_v20  ;;  %v16383_v10 = vmax.bf16 %v20118_v45, %v20350_v47  ;;  %v774_v20 = vld [vmem:[%s19926_s3 + $0x10] sm:$0xff] }
 0x153   :  { %4214 = vmatprep.mubr.bf16.mxu0 %v16347_v48  ;;  %4251 = vmatprep.subr.bf16.mxu0 %v11449_v36  ;;  %v11464_v36 = vcombine.low %v1276_v6, %v1280_v14  ;;  %v10965_v50 = vcombine.high %v774_v20, %v778_v35  ;;  %v10964_v34 = vcombine.low %v774_v20, %v778_v35  ;;  %v798_v20 = vld [vmem:[%s19926_s3 + $0xd0] sm:$0xff] }
 0x154   :  { %4657 = vmatmul.mubr.bf16.gmra.mrb[24].mxu1 %v16343_v55  ;;  %v16415_v6 = vmax.bf16 %v20118_v45, %v15712_v9  ;;  %v802_v35 = vld [vmem:[%s19926_s3 + $0xf0] sm:$0xff] }
 0x155   :  { %4666 = vmatprep.mubr.bf16.mxu1 %v16347_v48  ;;  %4702 = vmatpush1.bf16.msra.mxu1 %v11442_v54  ;;  %v775_v54 = vld [vmem:[%s19926_s3 + $0x18] sm:$0xff] }
 0x156   :  { %4703 = vmatprep.subr.bf16.mxu1 %v11451_v62  ;;  %4252 = vmatpush1.bf16.msra.mxu0 %v11448_v41  ;;  %v782_v62 = vld [vmem:[%s19926_s3 + $0x50] sm:$0xff]  ;;  %v10967_v16 = vcombine.high %v775_v54, %v779_v56 }
 0x157   :  { %4253 = vmatprep.subr.bf16.mxu0 %v11457_v11  ;;  %v786_v41 = vld [vmem:[%s19926_s3 + $0x70] sm:$0xff]  ;;  %v783_v11 = vld [vmem:[%s19926_s3 + $0x58] sm:$0xff] }
 0x158   :  { %v10973_v14 = vcombine.high %v782_v62, %v786_v41  ;;  %v10972_v43 = vcombine.low %v782_v62, %v786_v41  ;;  %v16455_v41 = vmax.bf16 %v20118_v45, %v15809_v7  ;;  %v807_v7 = vld [vmem:[%s19926_s3 + $0x118] sm:$0xff] }
 0x159   :  { %4704 = vmatpush1.bf16.msra.mxu1 %v11450_v26  ;;  %4215 = vmatmul.mubr.bf16.gmra.mrb[28].mxu0 %v16379_v27  ;;  %v787_v26 = vld [vmem:[%s19926_s3 + $0x78] sm:$0xff] }
 0x15a   :  { %4705 = vmatprep.subr.bf16.mxu1 %v11459_v2  ;;  %4254 = vmatpush1.bf16.msra.mxu0 %v11456_v4  ;;  %v10966_v2 = vcombine.low %v775_v54, %v779_v56  ;;  %v16419_v4 = vmax.bf16 %v20118_v45, %v15732_v60  ;;  %v10975_v9 = vcombine.high %v783_v11, %v787_v26  ;;  %v791_v60 = vld [vmem:[%s19926_s3 + $0x98] sm:$0xff] }
 0x15b   :  { %4257 = vmatprep.mubr.bf16.mxu0 %v16383_v10  ;;  %4255 = vmatprep.subr.bf16.mxu0 %v11465_v0  ;;  %v795_v0 = vld [vmem:[%s19926_s3 + $0xb8] sm:$0xff]  ;;  %v10974_v47 = vcombine.low %v783_v11, %v787_v26  ;;  %v10988_v11 = vcombine.low %v798_v20, %v802_v35 }
 0x15c   :  { %4667 = vmatmul.mubr.bf16.gmra.mrb[28].mxu1 %v16379_v27  ;;  %v799_v54 = vld [vmem:[%s19926_s3 + $0xd8] sm:$0xff]  ;;  %v10982_v62 = vcombine.low %v791_v60, %v795_v0 }
 0x15d   :  { %4706 = vmatpush1.bf16.msra.mxu1 %v11458_v29  ;;  %4709 = vmatprep.mubr.bf16.mxu1 %v16383_v10  ;;  %v10981_v29 = vcombine.high %v790_v23, %v794_v38  ;;  %v803_v56 = vld [vmem:[%s19926_s3 + $0xf8] sm:$0xff] }
 0x15e   :  { %4707 = vmatprep.subr.bf16.mxu1 %v11467_v57  ;;  %4256 = vmatpush1.bf16.msra.mxu0 %v11464_v36  ;;  %v10983_v57 = vcombine.high %v791_v60, %v795_v0  ;;  %v10980_v36 = vcombine.low %v790_v23, %v794_v38  ;;  %v811_v26 = vld [vmem:[%s19926_s3 + $0x138] sm:$0xff]  ;;  %v814_v23 = vld [vmem:[%s19926_s3 + $0x150] sm:$0xff] }
 0x15f   :  { %4790 = vmatprep.subr.bf16.mxu0 %v10965_v50  ;;  %v16451_v50 = vmax.bf16 %v20118_v45, %v15772_v52  ;;  %v10991_v52 = vcombine.high %v799_v54, %v803_v56  ;;  %v818_v38 = vld [vmem:[%s19926_s3 + $0x170] sm:$0xff]  ;;  %v815_v60 = vld [vmem:[%s19926_s3 + $0x158] sm:$0xff] }
 0x160   :  { %v819_v0 = vld [vmem:[%s19926_s3 + $0x178] sm:$0xff] }
 0x161   :  { %4708 = vmatpush1.bf16.msra.mxu1 %v11466_v19  ;;  %4258 = vmatmul.mubr.bf16.vlgmr.msra.gmra.mrb[0].mxu0 %v16415_v6  ;;  %v10989_v19 = vcombine.high %v798_v20, %v802_v35  ;;  %v10998_v20 = vcombine.low %v807_v7, %v811_v26  ;;  %v16491_v35 = vmax.bf16 %v20118_v45, %v15886_v1  ;;  %v823_v1 = vld [vmem:[%s19926_s3 + $0x198] sm:$0xff] }
 0x162   :  { %5242 = vmatprep.subr.bf16.mxu1 %v10967_v16  ;;  %4791 = vmatpush1.bf16.msra.mxu0 %v10964_v34  ;;  %v806_v16 = vld [vmem:[%s19926_s3 + $0x110] sm:$0xff] }
 0x163   :  { %4267 = vmatprep.mubr.bf16.mxu0 %v16419_v4  ;;  %4792 = vmatprep.subr.bf16.mxu0 %v10973_v14  ;;  %v810_v34 = vld [vmem:[%s19926_s3 + $0x130] sm:$0xff] }
 0x164   :  { %4710 = vmatmul.mubr.bf16.vlgmr.msra.gmra.mrb[0].mxu1 %v16415_v6  ;;  %v10997_v14 = vcombine.high %v806_v16, %v810_v34 }
 0x165   :  { %4719 = vmatprep.mubr.bf16.mxu1 %v16419_v4  ;;  %5243 = vmatpush1.bf16.msra.mxu1 %v10966_v2  ;;  %v10990_v2 = vcombine.low %v799_v54, %v803_v56  ;;  %v11004_v54 = vcombine.low %v814_v23, %v818_v38  ;;  %v827_v56 = vld [vmem:[%s19926_s3 + $0x1b8] sm:$0xff] }
 0x166   :  { %5244 = vmatprep.subr.bf16.mxu1 %v10975_v9  ;;  %4793 = vmatpush1.bf16.msra.mxu0 %v10972_v43  ;;  %v10999_v9 = vcombine.high %v807_v7, %v811_v26  ;;  %v10996_v43 = vcombine.low %v806_v16, %v810_v34  ;;  %v830_v16 = vld [vmem:[%s19926_s3 + $0x1d0] sm:$0xff]  ;;  %v831_v7 = vld [vmem:[%s19926_s3 + $0x1d8] sm:$0xff] }
 0x167   :  { %4794 = vmatprep.subr.bf16.mxu0 %v10981_v29  ;;  %v16487_v29 = vmax.bf16 %v20118_v45, %v15841_v25  ;;  %v11007_v25 = vcombine.high %v815_v60, %v819_v0  ;;  %v834_v34 = vld [vmem:[%s19926_s3 + $0x1f0] sm:$0xff]  ;;  %v835_v26 = vld [vmem:[%s19926_s3 + $0x1f8] sm:$0xff] }
 0x169   :  { %5245 = vmatpush1.bf16.msra.mxu1 %v10974_v47  ;;  %4268 = vmatmul.mubr.bf16.gmra.mrb[4].mxu0 %v16451_v50  ;;  %v11005_v47 = vcombine.high %v814_v23, %v818_v38  ;;  %v11014_v23 = vcombine.low %v823_v1, %v827_v56  ;;  %v16527_v38 = vmax.bf16 %v20118_v45, %v15940_v21  ;;  %v839_v21 = vld [vmem:[%s19926_s3 + $0x218] sm:$0xff] }
 0x16a   :  { %5246 = vmatprep.subr.bf16.mxu1 %v10983_v57  ;;  %4795 = vmatpush1.bf16.msra.mxu0 %v10980_v36  ;;  %v822_v57 = vld [vmem:[%s19926_s3 + $0x190] sm:$0xff] }
 0x16b   :  { %4277 = vmatprep.mubr.bf16.mxu0 %v16455_v41  ;;  %4796 = vmatprep.subr.bf16.mxu0 %v10989_v19  ;;  %v826_v36 = vld [vmem:[%s19926_s3 + $0x1b0] sm:$0xff] }
 0x16c   :  { %4720 = vmatmul.mubr.bf16.gmra.mrb[4].mxu1 %v16451_v50  ;;  %v11013_v19 = vcombine.high %v822_v57, %v826_v36 }
 0x16d   :  { %4729 = vmatprep.mubr.bf16.mxu1 %v16455_v41  ;;  %5247 = vmatpush1.bf16.msra.mxu1 %v10982_v62  ;;  %v11006_v62 = vcombine.low %v815_v60, %v819_v0  ;;  %v11020_v60 = vcombine.low %v830_v16, %v834_v34  ;;  %v843_v0 = vld [vmem:[%s19926_s3 + $0x238] sm:$0xff] }
 0x16e   :  { %5248 = vmatprep.subr.bf16.mxu1 %v10991_v52  ;;  %4797 = vmatpush1.bf16.msra.mxu0 %v10988_v11  ;;  %v11015_v52 = vcombine.high %v823_v1, %v827_v56  ;;  %v11012_v11 = vcombine.low %v822_v57, %v826_v36  ;;  %v846_v57 = vld [vmem:[%s19926_s3 + $0x250] sm:$0xff]  ;;  %v847_v1 = vld [vmem:[%s19926_s3 + $0x258] sm:$0xff] }
 0x16f   :  { %4798 = vmatprep.subr.bf16.mxu0 %v10997_v14  ;;  %v16523_v14 = vmax.bf16 %v20118_v45, %v15911_v30  ;;  %v11023_v30 = vcombine.high %v831_v7, %v835_v26  ;;  %v850_v36 = vld [vmem:[%s19926_s3 + $0x270] sm:$0xff]  ;;  %v851_v56 = vld [vmem:[%s19926_s3 + $0x278] sm:$0xff] }
 0x171   :  { %5249 = vmatpush1.bf16.msra.mxu1 %v10990_v2  ;;  %4278 = vmatmul.mubr.bf16.gmra.mrb[8].mxu0 %v16487_v29  ;;  %v11021_v2 = vcombine.high %v830_v16, %v834_v34  ;;  %v11030_v16 = vcombine.low %v839_v21, %v843_v0  ;;  %v16563_v34 = vmax.bf16 %v20118_v45, %v15993_v18  ;;  %v855_v18 = vld [vmem:[%s19926_s3 + $0x298] sm:$0xff] }
 0x172   :  { %5250 = vmatprep.subr.bf16.mxu1 %v10999_v9  ;;  %4799 = vmatpush1.bf16.msra.mxu0 %v10996_v43  ;;  %v838_v9 = vld [vmem:[%s19926_s3 + $0x210] sm:$0xff] }
 0x173   :  { %4287 = vmatprep.mubr.bf16.mxu0 %v16491_v35  ;;  %4800 = vmatprep.subr.bf16.mxu0 %v11005_v47  ;;  %v842_v43 = vld [vmem:[%s19926_s3 + $0x230] sm:$0xff] }
 0x174   :  { %4730 = vmatmul.mubr.bf16.gmra.mrb[8].mxu1 %v16487_v29  ;;  %v11029_v47 = vcombine.high %v838_v9, %v842_v43 }
 0x175   :  { %4739 = vmatprep.mubr.bf16.mxu1 %v16491_v35  ;;  %5251 = vmatpush1.bf16.msra.mxu1 %v10998_v20  ;;  %v11022_v20 = vcombine.low %v831_v7, %v835_v26  ;;  %v11036_v7 = vcombine.low %v846_v57, %v850_v36  ;;  %v859_v26 = vld [vmem:[%s19926_s3 + $0x2b8] sm:$0xff] }
 0x176   :  { %5252 = vmatprep.subr.bf16.mxu1 %v11007_v25  ;;  %4801 = vmatpush1.bf16.msra.mxu0 %v11004_v54  ;;  %v11031_v25 = vcombine.high %v839_v21, %v843_v0  ;;  %v11028_v54 = vcombine.low %v838_v9, %v842_v43  ;;  %v862_v9 = vld [vmem:[%s19926_s3 + $0x2d0] sm:$0xff]  ;;  %v863_v21 = vld [vmem:[%s19926_s3 + $0x2d8] sm:$0xff] }
 0x177   :  { %4802 = vmatprep.subr.bf16.mxu0 %v11013_v19  ;;  %v16559_v19 = vmax.bf16 %v20118_v45, %v15977_v12  ;;  %v11039_v12 = vcombine.high %v847_v1, %v851_v56  ;;  %v866_v43 = vld [vmem:[%s19926_s3 + $0x2f0] sm:$0xff]  ;;  %v867_v0 = vld [vmem:[%s19926_s3 + $0x2f8] sm:$0xff] }
 0x179   :  { %5253 = vmatpush1.bf16.msra.mxu1 %v11006_v62  ;;  %4288 = vmatmul.mubr.bf16.gmra.mrb[12].mxu0 %v16523_v14  ;;  %v11037_v62 = vcombine.high %v846_v57, %v850_v36  ;;  %v11046_v57 = vcombine.low %v855_v18, %v859_v26  ;;  %v16599_v36 = vmax.bf16 %v20118_v45, %v16032_v8  ;;  %v871_v8 = vld [vmem:[%s19926_s3 + $0x318] sm:$0xff] }
 0x17a   :  { %5254 = vmatprep.subr.bf16.mxu1 %v11015_v52  ;;  %4803 = vmatpush1.bf16.msra.mxu0 %v11012_v11  ;;  %v854_v52 = vld [vmem:[%s19926_s3 + $0x290] sm:$0xff] }
 0x17b   :  { %4297 = vmatprep.mubr.bf16.mxu0 %v16527_v38  ;;  %4804 = vmatprep.subr.bf16.mxu0 %v11021_v2  ;;  %v858_v11 = vld [vmem:[%s19926_s3 + $0x2b0] sm:$0xff] }
 0x17c   :  { %4740 = vmatmul.mubr.bf16.gmra.mrb[12].mxu1 %v16523_v14  ;;  %v11045_v2 = vcombine.high %v854_v52, %v858_v11 }
 0x17d   :  { %4749 = vmatprep.mubr.bf16.mxu1 %v16527_v38  ;;  %5255 = vmatpush1.bf16.msra.mxu1 %v11014_v23  ;;  %v11038_v23 = vcombine.low %v847_v1, %v851_v56  ;;  %v11052_v1 = vcombine.low %v862_v9, %v866_v43  ;;  %v875_v56 = vld [vmem:[%s19926_s3 + $0x338] sm:$0xff] }
 0x17e   :  { %5256 = vmatprep.subr.bf16.mxu1 %v11023_v30  ;;  %4805 = vmatpush1.bf16.msra.mxu0 %v11020_v60  ;;  %v11047_v30 = vcombine.high %v855_v18, %v859_v26  ;;  %v11044_v60 = vcombine.low %v854_v52, %v858_v11  ;;  %v878_v52 = vld [vmem:[%s19926_s3 + $0x350] sm:$0xff]  ;;  %v879_v18 = vld [vmem:[%s19926_s3 + $0x358] sm:$0xff] }
 0x17f   :  { %4806 = vmatprep.subr.bf16.mxu0 %v11029_v47  ;;  %v16595_v47 = vmax.bf16 %v20118_v45, %v16022_v59  ;;  %v11055_v59 = vcombine.high %v863_v21, %v867_v0  ;;  %v882_v11 = vld [vmem:[%s19926_s3 + $0x370] sm:$0xff]  ;;  %v883_v26 = vld [vmem:[%s19926_s3 + $0x378] sm:$0xff] }
 0x181   :  { %5257 = vmatpush1.bf16.msra.mxu1 %v11022_v20  ;;  %4298 = vmatmul.mubr.bf16.gmra.mrb[16].mxu0 %v16559_v19  ;;  %v11053_v20 = vcombine.high %v862_v9, %v866_v43  ;;  %v11062_v9 = vcombine.low %v871_v8, %v875_v56  ;;  %v16635_v43 = vmax.bf16 %v20118_v45, %v16066_v15  ;;  %v887_v15 = vld [vmem:[%s19926_s3 + $0x398] sm:$0xff] }
 0x182   :  { %5258 = vmatprep.subr.bf16.mxu1 %v11031_v25  ;;  %4807 = vmatpush1.bf16.msra.mxu0 %v11028_v54  ;;  %v870_v25 = vld [vmem:[%s19926_s3 + $0x310] sm:$0xff] }
 0x183   :  { %4307 = vmatprep.mubr.bf16.mxu0 %v16563_v34  ;;  %4808 = vmatprep.subr.bf16.mxu0 %v11037_v62  ;;  %v874_v54 = vld [vmem:[%s19926_s3 + $0x330] sm:$0xff] }
 0x184   :  { %4750 = vmatmul.mubr.bf16.gmra.mrb[16].mxu1 %v16559_v19  ;;  %v11061_v62 = vcombine.high %v870_v25, %v874_v54 }
 0x185   :  { %4759 = vmatprep.mubr.bf16.mxu1 %v16563_v34  ;;  %5259 = vmatpush1.bf16.msra.mxu1 %v11030_v16  ;;  %v11054_v16 = vcombine.low %v863_v21, %v867_v0  ;;  %v11068_v21 = vcombine.low %v878_v52, %v882_v11  ;;  %v891_v0 = vld [vmem:[%s19926_s3 + $0x3b8] sm:$0xff] }
 0x186   :  { %5260 = vmatprep.subr.bf16.mxu1 %v11039_v12  ;;  %4809 = vmatpush1.bf16.msra.mxu0 %v11036_v7  ;;  %v11063_v12 = vcombine.high %v871_v8, %v875_v56  ;;  %v11060_v7 = vcombine.low %v870_v25, %v874_v54  ;;  %v894_v25 = vld [vmem:[%s19926_s3 + $0x3d0] sm:$0xff]  ;;  %v895_v8 = vld [vmem:[%s19926_s3 + $0x3d8] sm:$0xff] }
 0x187   :  { %4810 = vmatprep.subr.bf16.mxu0 %v11045_v2  ;;  %v16631_v2 = vmax.bf16 %v20118_v45, %v16064_v61  ;;  %v11071_v61 = vcombine.high %v879_v18, %v883_v26  ;;  %v898_v54 = vld [vmem:[%s19926_s3 + $0x3f0] sm:$0xff]  ;;  %v899_v56 = vld [vmem:[%s19926_s3 + $0x3f8] sm:$0xff] }
 0x189   :  { %5261 = vmatpush1.bf16.msra.mxu1 %v11038_v23  ;;  %4308 = vmatmul.mubr.bf16.gmra.mrb[20].mxu0 %v16595_v47  ;;  %v11069_v23 = vcombine.high %v878_v52, %v882_v11  ;;  %v11078_v52 = vcombine.low %v887_v15, %v891_v0  ;;  %v902_v11 = vld [vmem:[%s19926_s3 + $0x410] sm:$0xff] }
 0x18a   :  { %5262 = vmatprep.subr.bf16.mxu1 %v11047_v30  ;;  %4811 = vmatpush1.bf16.msra.mxu0 %v11044_v60  ;;  %v886_v30 = vld [vmem:[%s19926_s3 + $0x390] sm:$0xff] }
 0x18b   :  { %4317 = vmatprep.mubr.bf16.mxu0 %v16599_v36  ;;  %4812 = vmatprep.subr.bf16.mxu0 %v11053_v20  ;;  %v890_v60 = vld [vmem:[%s19926_s3 + $0x3b0] sm:$0xff] }
 0x18c   :  { %4760 = vmatmul.mubr.bf16.gmra.mrb[20].mxu1 %v16595_v47  ;;  %v11077_v20 = vcombine.high %v886_v30, %v890_v60 }
 0x18d   :  { %4769 = vmatprep.mubr.bf16.mxu1 %v16599_v36  ;;  %5263 = vmatpush1.bf16.msra.mxu1 %v11046_v57  ;;  %v11070_v57 = vcombine.low %v879_v18, %v883_v26  ;;  %v20351_v18 = vld [vmem:[#allocation9_spill] sm:$0xff] }
 0x18e   :  { %5264 = vmatprep.subr.bf16.mxu1 %v11055_v59  ;;  %4813 = vmatpush1.bf16.msra.mxu0 %v11052_v1  ;;  %v11079_v59 = vcombine.high %v887_v15, %v891_v0  ;;  %v11076_v1 = vcombine.low %v886_v30, %v890_v60  ;;  %v907_v26 = vld [vmem:[%s19926_s3 + $0x438] sm:$0xff]  ;;  %v910_v30 = vld [vmem:[%s19926_s3 + $0x450] sm:$0xff] }
 0x18f   :  { %4814 = vmatprep.subr.bf16.mxu0 %v11061_v62  ;;  %v16667_v62 = vmax.bf16 %v20118_v45, %v16082_v58  ;;  %v11084_v45 = vcombine.low %v894_v25, %v898_v54  ;;  %v903_v58 = vld [vmem:[%s19926_s3 + $0x418] sm:$0xff]  ;;  %v914_v60 = vld [vmem:[%s19926_s3 + $0x470] sm:$0xff] }
 0x190   :  { %v911_v15 = vld [vmem:[%s19926_s3 + $0x458] sm:$0xff] }
 0x191   :  { %5265 = vmatpush1.bf16.msra.mxu1 %v11054_v16  ;;  %4318 = vmatmul.mubr.bf16.gmra.mrb[24].mxu0 %v16631_v2  ;;  %v11085_v16 = vcombine.high %v894_v25, %v898_v54  ;;  %v915_v0 = vld [vmem:[%s19926_s3 + $0x478] sm:$0xff]  ;;  %v918_v25 = vld [vmem:[%s19926_s3 + $0x490] sm:$0xff] }
 0x192   :  { %5266 = vmatprep.subr.bf16.mxu1 %v11063_v12  ;;  %4815 = vmatpush1.bf16.msra.mxu0 %v11060_v7  ;;  %v906_v12 = vld [vmem:[%s19926_s3 + $0x430] sm:$0xff]  ;;  %v11087_v7 = vcombine.high %v895_v8, %v899_v56 }
 0x193   :  { %4327 = vmatprep.mubr.bf16.mxu0 %v16635_v43  ;;  %4816 = vmatprep.subr.bf16.mxu0 %v11069_v23  ;;  %v11093_v23 = vcombine.high %v902_v11, %v906_v12  ;;  %v922_v54 = vld [vmem:[%s19926_s3 + $0x4b0] sm:$0xff] }
 0x194   :  { %4770 = vmatmul.mubr.bf16.gmra.mrb[24].mxu1 %v16631_v2 }
 0x195   :  { %4779 = vmatprep.mubr.bf16.mxu1 %v16635_v43  ;;  %5267 = vmatpush1.bf16.msra.mxu1 %v11062_v9  ;;  %v11086_v9 = vcombine.low %v895_v8, %v899_v56  ;;  %v20353_v8 = vld [vmem:[#allocation12_spill] sm:$0xff]  ;;  %v11100_v56 = vcombine.low %v910_v30, %v914_v60 }
 0x196   :  { %5268 = vmatprep.subr.bf16.mxu1 %v11071_v61  ;;  %4817 = vmatpush1.bf16.msra.mxu0 %v11068_v21  ;;  %v11095_v61 = vcombine.high %v903_v58, %v907_v26  ;;  %v11092_v21 = vcombine.low %v902_v11, %v906_v12  ;;  %v11109_v11 = vcombine.high %v918_v25, %v922_v54 }
 0x197   :  { %4818 = vmatprep.subr.bf16.mxu0 %v11077_v20  ;;  %v11101_v20 = vcombine.high %v910_v30, %v914_v60  ;;  %v11102_v12 = vcombine.low %v911_v15, %v915_v0  ;;  %v934_v60 = vld [vmem:[%s19926_s3 + $0x510] sm:$0xff] }
 0x199   :  { %5269 = vmatpush1.bf16.msra.mxu1 %v11070_v57  ;;  %4328 = vmatmul.mubr.bf16.gmra.mrb[28].mxu0 %v16667_v62  ;;  %v11094_v57 = vcombine.low %v903_v58, %v907_v26  ;;  %v11108_v58 = vcombine.low %v918_v25, %v922_v54  ;;  %v927_v26 = vld [vmem:[%s19926_s3 + $0x4d8] sm:$0xff] }
 0x19a   :  { %5270 = vmatprep.subr.bf16.mxu1 %v11079_v59  ;;  %4819 = vmatpush1.bf16.msra.mxu0 %v11076_v1  ;;  %v20352_v59 = vld [vmem:[#allocation10_spill] sm:$0xff]  ;;  %v11103_v1 = vcombine.high %v911_v15, %v915_v0  ;;  %v939_v25 = vld [vmem:[%s19926_s3 + $0x538] sm:$0xff] }
 0x19b   :  { %4822 = vmatprep.mubr.bf16.mxu0 %v20351_v18  ;;  %4820 = vmatprep.subr.bf16.mxu0 %v11085_v16  ;;  %v919_v16 = vld [vmem:[%s19926_s3 + $0x498] sm:$0xff]  ;;  %v20355_v0 = vld [vmem:[#allocation22_spill] sm:$0xff] }
 0x19c   :  { %4780 = vmatmul.mubr.bf16.gmra.mrb[28].mxu1 %v16667_v62 }
 0x19d   :  { %5271 = vmatpush1.bf16.msra.mxu1 %v11078_v52  ;;  %5274 = vmatprep.mubr.bf16.mxu1 %v20351_v18  ;;  %v923_v52 = vld [vmem:[%s19926_s3 + $0x4b8] sm:$0xff]  ;;  %v930_v18 = vld [vmem:[%s19926_s3 + $0x4f0] sm:$0xff] }
 0x19e   :  { %5272 = vmatprep.subr.bf16.mxu1 %v11087_v7  ;;  %4821 = vmatpush1.bf16.msra.mxu0 %v11084_v45  ;;  %v926_v7 = vld [vmem:[%s19926_s3 + $0x4d0] sm:$0xff]  ;;  %v11111_v45 = vcombine.high %v919_v16, %v923_v52  ;;  %v11110_v30 = vcombine.low %v919_v16, %v923_v52  ;;  %v943_v52 = vld [vmem:[%s19926_s3 + $0x558] sm:$0xff] }
 0x19f   :  { %4903 = vmatprep.subr.bf16.mxu0 %v11093_v23  ;;  %v931_v23 = vld [vmem:[%s19926_s3 + $0x4f8] sm:$0xff] }
 0x1a0   :  { %v11119_v15 = vcombine.high %v927_v26, %v931_v23 }
 0x1a1   :  { %5273 = vmatpush1.bf16.msra.mxu1 %v11086_v9  ;;  %4823 = vmatmul.mubr.bf16.vlgmr.msra.gmra.mrb[32].mxu0 %v20352_v59  ;;  %v11117_v9 = vcombine.high %v926_v7, %v930_v18 }
 0x1a2   :  { %5355 = vmatprep.subr.bf16.mxu1 %v11095_v61  ;;  %4904 = vmatpush1.bf16.msra.mxu0 %v11092_v21  ;;  %v938_v61 = vld [vmem:[%s19926_s3 + $0x530] sm:$0xff] }
 0x1a3   :  { %4832 = vmatprep.mubr.bf16.mxu0 %v20353_v8  ;;  %4905 = vmatprep.subr.bf16.mxu0 %v11101_v20  ;;  %v20354_v21 = vld [vmem:[#allocation20_spill] sm:$0xff]  ;;  %v11116_v20 = vcombine.low %v926_v7, %v930_v18  ;;  %v11125_v54 = vcombine.high %v934_v60, %v938_v61  ;;  %v11124_v16 = vcombine.low %v934_v60, %v938_v61  ;;  %v955_v60 = vld [vmem:[%s19926_s3 + $0x5b8] sm:$0xff] }
 0x1a4   :  { %5275 = vmatmul.mubr.bf16.vlgmr.msra.gmra.mrb[32].mxu1 %v20352_v59  ;;  %v11118_v59 = vcombine.low %v927_v26, %v931_v23  ;;  %v950_v18 = vld [vmem:[%s19926_s3 + $0x590] sm:$0xff]  ;;  %v20357_v23 = vld [vmem:[#allocation26_spill] sm:$0xff] }
 0x1a5   :  { %5284 = vmatprep.mubr.bf16.mxu1 %v20353_v8  ;;  %5356 = vmatpush1.bf16.msra.mxu1 %v11094_v57  ;;  %v935_v57 = vld [vmem:[%s19926_s3 + $0x518] sm:$0xff]  ;;  %v946_v8 = vld [vmem:[%s19926_s3 + $0x570] sm:$0xff] }
 0x1a6   :  { %5357 = vmatprep.subr.bf16.mxu1 %v11103_v1  ;;  %4906 = vmatpush1.bf16.msra.mxu0 %v11100_v56  ;;  %v942_v1 = vld [vmem:[%s19926_s3 + $0x550] sm:$0xff]  ;;  %v11127_v56 = vcombine.high %v935_v57, %v939_v25  ;;  %v11126_v7 = vcombine.low %v935_v57, %v939_v25  ;;  %v959_v25 = vld [vmem:[%s19926_s3 + $0x5d8] sm:$0xff] }
 0x1a7   :  { %4907 = vmatprep.subr.bf16.mxu0 %v11109_v11  ;;  %v947_v11 = vld [vmem:[%s19926_s3 + $0x578] sm:$0xff] }
 0x1a8   :  { %v11135_v26 = vcombine.high %v943_v52, %v947_v11 }
 0x1a9   :  { %5358 = vmatpush1.bf16.msra.mxu1 %v11102_v12  ;;  %4833 = vmatmul.mubr.bf16.gmra.mrb[36].mxu0 %v20354_v21  ;;  %v11133_v12 = vcombine.high %v942_v1, %v946_v8 }
 0x1aa   :  { %5359 = vmatprep.subr.bf16.mxu1 %v11111_v45  ;;  %4908 = vmatpush1.bf16.msra.mxu0 %v11108_v58  ;;  %v954_v45 = vld [vmem:[%s19926_s3 + $0x5b0] sm:$0xff]  ;;  %v20356_v58 = vld [vmem:[#allocation25_spill] sm:$0xff] }
 0x1ab   :  { %4842 = vmatprep.mubr.bf16.mxu0 %v20355_v0  ;;  %4909 = vmatprep.subr.bf16.mxu0 %v11117_v9  ;;  %v11132_v9 = vcombine.low %v942_v1, %v946_v8  ;;  %v11141_v61 = vcombine.high %v950_v18, %v954_v45  ;;  %v11140_v57 = vcombine.low %v950_v18, %v954_v45  ;;  %v966_v8 = vld [vmem:[%s19926_s3 + $0x610] sm:$0xff]  ;;  %v971_v18 = vld [vmem:[%s19926_s3 + $0x638] sm:$0xff] }
 0x1ac   :  { %5285 = vmatmul.mubr.bf16.gmra.mrb[36].mxu1 %v20354_v21  ;;  %v11134_v21 = vcombine.low %v943_v52, %v947_v11  ;;  %v20359_v11 = vld [vmem:[#allocation40_spill] sm:$0xff] }
 0x1ad   :  { %5294 = vmatprep.mubr.bf16.mxu1 %v20355_v0  ;;  %5360 = vmatpush1.bf16.msra.mxu1 %v11110_v30  ;;  %v951_v30 = vld [vmem:[%s19926_s3 + $0x598] sm:$0xff]  ;;  %v962_v0 = vld [vmem:[%s19926_s3 + $0x5f0] sm:$0xff] }
 0x1ae   :  { %5361 = vmatprep.subr.bf16.mxu1 %v11119_v15  ;;  %4910 = vmatpush1.bf16.msra.mxu0 %v11116_v20  ;;  %v958_v15 = vld [vmem:[%s19926_s3 + $0x5d0] sm:$0xff]  ;;  %v11143_v20 = vcombine.high %v951_v30, %v955_v60  ;;  %v11142_v1 = vcombine.low %v951_v30, %v955_v60  ;;  %v975_v60 = vld [vmem:[%s19926_s3 + $0x658] sm:$0xff] }
 0x1af   :  { %4911 = vmatprep.subr.bf16.mxu0 %v11125_v54  ;;  %v963_v54 = vld [vmem:[%s19926_s3 + $0x5f8] sm:$0xff] }
 0x1b0   :  { %v11151_v52 = vcombine.high %v959_v25, %v963_v54 }
 0x1b1   :  { %5362 = vmatpush1.bf16.msra.mxu1 %v11118_v59  ;;  %4843 = vmatmul.mubr.bf16.gmra.mrb[40].mxu0 %v20356_v58  ;;  %v11149_v59 = vcombine.high %v958_v15, %v962_v0 }
 0x1b2   :  { %5363 = vmatprep.subr.bf16.mxu1 %v11127_v56  ;;  %4912 = vmatpush1.bf16.msra.mxu0 %v11124_v16  ;;  %v970_v56 = vld [vmem:[%s19926_s3 + $0x630] sm:$0xff]  ;;  %v20358_v16 = vld [vmem:[#allocation37_spill] sm:$0xff] }
 0x1b3   :  { %4852 = vmatprep.mubr.bf16.mxu0 %v20357_v23  ;;  %4913 = vmatprep.subr.bf16.mxu0 %v11133_v12  ;;  %v11148_v12 = vcombine.low %v958_v15, %v962_v0  ;;  %v11157_v45 = vcombine.high %v966_v8, %v970_v56  ;;  %v11156_v30 = vcombine.low %v966_v8, %v970_v56  ;;  %v982_v0 = vld [vmem:[%s19926_s3 + $0x690] sm:$0xff]  ;;  %v987_v8 = vld [vmem:[%s19926_s3 + $0x6b8] sm:$0xff] }
 0x1b4   :  { %5295 = vmatmul.mubr.bf16.gmra.mrb[40].mxu1 %v20356_v58  ;;  %v11150_v58 = vcombine.low %v959_v25, %v963_v54  ;;  %v20361_v54 = vld [vmem:[#allocation46_spill] sm:$0xff] }
 0x1b5   :  { %5304 = vmatprep.mubr.bf16.mxu1 %v20357_v23  ;;  %5364 = vmatpush1.bf16.msra.mxu1 %v11126_v7  ;;  %v967_v7 = vld [vmem:[%s19926_s3 + $0x618] sm:$0xff]  ;;  %v978_v23 = vld [vmem:[%s19926_s3 + $0x670] sm:$0xff] }
 0x1b6   :  { %5365 = vmatprep.subr.bf16.mxu1 %v11135_v26  ;;  %4914 = vmatpush1.bf16.msra.mxu0 %v11132_v9  ;;  %v974_v26 = vld [vmem:[%s19926_s3 + $0x650] sm:$0xff]  ;;  %v11159_v9 = vcombine.high %v967_v7, %v971_v18  ;;  %v11158_v15 = vcombine.low %v967_v7, %v971_v18  ;;  %v991_v18 = vld [vmem:[%s19926_s3 + $0x6d8] sm:$0xff] }
 0x1b7   :  { %4915 = vmatprep.subr.bf16.mxu0 %v11141_v61  ;;  %v979_v61 = vld [vmem:[%s19926_s3 + $0x678] sm:$0xff] }
 0x1b8   :  { %v11167_v25 = vcombine.high %v975_v60, %v979_v61 }
 0x1b9   :  { %5366 = vmatpush1.bf16.msra.mxu1 %v11134_v21  ;;  %4853 = vmatmul.mubr.bf16.gmra.mrb[44].mxu0 %v20358_v16  ;;  %v11165_v21 = vcombine.high %v974_v26, %v978_v23 }
 0x1ba   :  { %5367 = vmatprep.subr.bf16.mxu1 %v11143_v20  ;;  %4916 = vmatpush1.bf16.msra.mxu0 %v11140_v57  ;;  %v986_v20 = vld [vmem:[%s19926_s3 + $0x6b0] sm:$0xff]  ;;  %v20360_v57 = vld [vmem:[#allocation45_spill] sm:$0xff] }
 0x1bb   :  { %4862 = vmatprep.mubr.bf16.mxu0 %v20359_v11  ;;  %4917 = vmatprep.subr.bf16.mxu0 %v11149_v59  ;;  %v11164_v59 = vcombine.low %v974_v26, %v978_v23  ;;  %v11173_v56 = vcombine.high %v982_v0, %v986_v20  ;;  %v11172_v7 = vcombine.low %v982_v0, %v986_v20  ;;  %v998_v23 = vld [vmem:[%s19926_s3 + $0x710] sm:$0xff]  ;;  %v1003_v0 = vld [vmem:[%s19926_s3 + $0x738] sm:$0xff] }
 0x1bc   :  { %5305 = vmatmul.mubr.bf16.gmra.mrb[44].mxu1 %v20358_v16  ;;  %v11166_v16 = vcombine.low %v975_v60, %v979_v61  ;;  %v20363_v61 = vld [vmem:[#allocation49_spill] sm:$0xff] }
 0x1bd   :  { %5314 = vmatprep.mubr.bf16.mxu1 %v20359_v11  ;;  %5368 = vmatpush1.bf16.msra.mxu1 %v11142_v1  ;;  %v983_v1 = vld [vmem:[%s19926_s3 + $0x698] sm:$0xff]  ;;  %v994_v11 = vld [vmem:[%s19926_s3 + $0x6f0] sm:$0xff] }
 0x1be   :  { %5369 = vmatprep.subr.bf16.mxu1 %v11151_v52  ;;  %4918 = vmatpush1.bf16.msra.mxu0 %v11148_v12  ;;  %v990_v52 = vld [vmem:[%s19926_s3 + $0x6d0] sm:$0xff]  ;;  %v11175_v12 = vcombine.high %v983_v1, %v987_v8  ;;  %v11174_v26 = vcombine.low %v983_v1, %v987_v8  ;;  %v1007_v8 = vld [vmem:[%s19926_s3 + $0x758] sm:$0xff] }
 0x1bf   :  { %4919 = vmatprep.subr.bf16.mxu0 %v11157_v45  ;;  %v995_v45 = vld [vmem:[%s19926_s3 + $0x6f8] sm:$0xff] }
 0x1c0   :  { %v11183_v60 = vcombine.high %v991_v18, %v995_v45 }
 0x1c1   :  { %5370 = vmatpush1.bf16.msra.mxu1 %v11150_v58  ;;  %4863 = vmatmul.mubr.bf16.gmra.mrb[48].mxu0 %v20360_v57  ;;  %v11181_v58 = vcombine.high %v990_v52, %v994_v11 }
 0x1c2   :  { %5371 = vmatprep.subr.bf16.mxu1 %v11159_v9  ;;  %4920 = vmatpush1.bf16.msra.mxu0 %v11156_v30  ;;  %v1002_v9 = vld [vmem:[%s19926_s3 + $0x730] sm:$0xff]  ;;  %v20362_v30 = vld [vmem:[#allocation5_spill] sm:$0xff] }
 0x1c3   :  { %4872 = vmatprep.mubr.bf16.mxu0 %v20361_v54  ;;  %4921 = vmatprep.subr.bf16.mxu0 %v11165_v21  ;;  %v11180_v21 = vcombine.low %v990_v52, %v994_v11  ;;  %v11189_v20 = vcombine.high %v998_v23, %v1002_v9  ;;  %v11188_v1 = vcombine.low %v998_v23, %v1002_v9  ;;  %v1014_v11 = vld [vmem:[%s19926_s3 + $0x790] sm:$0xff]  ;;  %v1019_v23 = vld [vmem:[%s19926_s3 + $0x7b8] sm:$0xff] }
 0x1c4   :  { %5315 = vmatmul.mubr.bf16.gmra.mrb[48].mxu1 %v20360_v57  ;;  %v11182_v57 = vcombine.low %v991_v18, %v995_v45  ;;  %v20365_v45 = vld [vmem:[#allocation11_spill] sm:$0xff] }
 0x1c5   :  { %5324 = vmatprep.mubr.bf16.mxu1 %v20361_v54  ;;  %5372 = vmatpush1.bf16.msra.mxu1 %v11158_v15  ;;  %v999_v15 = vld [vmem:[%s19926_s3 + $0x718] sm:$0xff]  ;;  %v1010_v54 = vld [vmem:[%s19926_s3 + $0x770] sm:$0xff] }
 0x1c6   :  { %5373 = vmatprep.subr.bf16.mxu1 %v11167_v25  ;;  %4922 = vmatpush1.bf16.msra.mxu0 %v11164_v59  ;;  %v1006_v25 = vld [vmem:[%s19926_s3 + $0x750] sm:$0xff]  ;;  %v11191_v59 = vcombine.high %v999_v15, %v1003_v0  ;;  %v11190_v52 = vcombine.low %v999_v15, %v1003_v0  ;;  %v1023_v0 = vld [vmem:[%s19926_s3 + $0x7d8] sm:$0xff] }
 0x1c7   :  { %4923 = vmatprep.subr.bf16.mxu0 %v11173_v56  ;;  %v1011_v56 = vld [vmem:[%s19926_s3 + $0x778] sm:$0xff] }
 0x1c8   :  { %v11199_v18 = vcombine.high %v1007_v8, %v1011_v56 }
 0x1c9   :  { %5374 = vmatpush1.bf16.msra.mxu1 %v11166_v16  ;;  %4873 = vmatmul.mubr.bf16.gmra.mrb[52].mxu0 %v20362_v30  ;;  %v11197_v16 = vcombine.high %v1006_v25, %v1010_v54 }
 0x1ca   :  { %5375 = vmatprep.subr.bf16.mxu1 %v11175_v12  ;;  %4924 = vmatpush1.bf16.msra.mxu0 %v11172_v7  ;;  %v1018_v12 = vld [vmem:[%s19926_s3 + $0x7b0] sm:$0xff]  ;;  %v20364_v7 = vld [vmem:[#allocation17_spill] sm:$0xff] }
 0x1cb   :  { %4882 = vmatprep.mubr.bf16.mxu0 %v20363_v61  ;;  %4925 = vmatprep.subr.bf16.mxu0 %v11181_v58  ;;  %v11196_v58 = vcombine.low %v1006_v25, %v1010_v54  ;;  %v11205_v9 = vcombine.high %v1014_v11, %v1018_v12  ;;  %v11204_v15 = vcombine.low %v1014_v11, %v1018_v12  ;;  %v1030_v54 = vld [vmem:[%s19926_s3 + $0x810] sm:$0xff]  ;;  %v1035_v11 = vld [vmem:[%s19926_s3 + $0x838] sm:$0xff] }
 0x1cc   :  { %5325 = vmatmul.mubr.bf16.gmra.mrb[52].mxu1 %v20362_v30  ;;  %v11198_v30 = vcombine.low %v1007_v8, %v1011_v56  ;;  %v20367_v56 = vld [vmem:[#allocation33_spill] sm:$0xff] }
 0x1cd   :  { %5334 = vmatprep.mubr.bf16.mxu1 %v20363_v61  ;;  %5376 = vmatpush1.bf16.msra.mxu1 %v11174_v26  ;;  %v1015_v26 = vld [vmem:[%s19926_s3 + $0x798] sm:$0xff]  ;;  %v1026_v61 = vld [vmem:[%s19926_s3 + $0x7f0] sm:$0xff] }
 0x1ce   :  { %5377 = vmatprep.subr.bf16.mxu1 %v11183_v60  ;;  %4926 = vmatpush1.bf16.msra.mxu0 %v11180_v21  ;;  %v1022_v60 = vld [vmem:[%s19926_s3 + $0x7d0] sm:$0xff]  ;;  %v11207_v21 = vcombine.high %v1015_v26, %v1019_v23  ;;  %v11206_v25 = vcombine.low %v1015_v26, %v1019_v23  ;;  %v1039_v23 = vld [vmem:[%s19926_s3 + $0x858] sm:$0xff] }
 0x1cf   :  { %4927 = vmatprep.subr.bf16.mxu0 %v11189_v20  ;;  %v1027_v20 = vld [vmem:[%s19926_s3 + $0x7f8] sm:$0xff] }
 0x1d0   :  { %v11215_v8 = vcombine.high %v1023_v0, %v1027_v20 }
 0x1d1   :  { %5378 = vmatpush1.bf16.msra.mxu1 %v11182_v57  ;;  %4883 = vmatmul.mubr.bf16.gmra.mrb[56].mxu0 %v20364_v7  ;;  %v11213_v57 = vcombine.high %v1022_v60, %v1026_v61 }
 0x1d2   :  { %5379 = vmatprep.subr.bf16.mxu1 %v11191_v59  ;;  %4928 = vmatpush1.bf16.msra.mxu0 %v11188_v1  ;;  %v1034_v59 = vld [vmem:[%s19926_s3 + $0x830] sm:$0xff]  ;;  %v20366_v1 = vld [vmem:[#allocation30_spill] sm:$0xff] }
 0x1d3   :  { %4892 = vmatprep.mubr.bf16.mxu0 %v20365_v45  ;;  %4929 = vmatprep.subr.bf16.mxu0 %v11197_v16  ;;  %v11212_v16 = vcombine.low %v1022_v60, %v1026_v61  ;;  %v11221_v12 = vcombine.high %v1030_v54, %v1034_v59  ;;  %v11220_v26 = vcombine.low %v1030_v54, %v1034_v59  ;;  %v1046_v61 = vld [vmem:[%s19926_s3 + $0x890] sm:$0xff]  ;;  %v1051_v54 = vld [vmem:[%s19926_s3 + $0x8b8] sm:$0xff] }
 0x1d4   :  { %5335 = vmatmul.mubr.bf16.gmra.mrb[56].mxu1 %v20364_v7  ;;  %v11214_v7 = vcombine.low %v1023_v0, %v1027_v20  ;;  %v20369_v20 = vld [vmem:[#allocation23_spill] sm:$0xff] }
 0x1d5   :  { %5344 = vmatprep.mubr.bf16.mxu1 %v20365_v45  ;;  %5380 = vmatpush1.bf16.msra.mxu1 %v11190_v52  ;;  %v1031_v52 = vld [vmem:[%s19926_s3 + $0x818] sm:$0xff]  ;;  %v1042_v45 = vld [vmem:[%s19926_s3 + $0x870] sm:$0xff] }
 0x1d6   :  { %5381 = vmatprep.subr.bf16.mxu1 %v11199_v18  ;;  %4930 = vmatpush1.bf16.msra.mxu0 %v11196_v58  ;;  %v1038_v18 = vld [vmem:[%s19926_s3 + $0x850] sm:$0xff]  ;;  %v11223_v58 = vcombine.high %v1031_v52, %v1035_v11  ;;  %v11222_v60 = vcombine.low %v1031_v52, %v1035_v11  ;;  %v1055_v11 = vld [vmem:[%s19926_s3 + $0x8d8] sm:$0xff] }
 0x1d7   :  { %4931 = vmatprep.subr.bf16.mxu0 %v11205_v9  ;;  %v1043_v9 = vld [vmem:[%s19926_s3 + $0x878] sm:$0xff] }
 0x1d8   :  { %v11231_v0 = vcombine.high %v1039_v23, %v1043_v9 }
 0x1d9   :  { %5382 = vmatpush1.bf16.msra.mxu1 %v11198_v30  ;;  %4893 = vmatmul.mubr.bf16.gmra.mrb[60].mxu0 %v20366_v1  ;;  %v11229_v30 = vcombine.high %v1038_v18, %v1042_v45 }
 0x1da   :  { %5383 = vmatprep.subr.bf16.mxu1 %v11207_v21  ;;  %4932 = vmatpush1.bf16.msra.mxu0 %v11204_v15  ;;  %v1050_v21 = vld [vmem:[%s19926_s3 + $0x8b0] sm:$0xff]  ;;  %v20368_v15 = vld [vmem:[#allocation39_spill] sm:$0xff] }
 0x1db   :  { %4935 = vmatprep.mubr.bf16.mxu0 %v20367_v56  ;;  %4933 = vmatprep.subr.bf16.mxu0 %v11213_v57  ;;  %v11228_v57 = vcombine.low %v1038_v18, %v1042_v45  ;;  %v11237_v59 = vcombine.high %v1046_v61, %v1050_v21  ;;  %v11236_v52 = vcombine.low %v1046_v61, %v1050_v21  ;;  %v1062_v18 = vld [vmem:[%s19926_s3 + $0x910] sm:$0xff]  ;;  %v1067_v61 = vld [vmem:[%s19926_s3 + $0x938] sm:$0xff] }
 0x1dc   :  { %5345 = vmatmul.mubr.bf16.gmra.mrb[60].mxu1 %v20366_v1  ;;  %v11230_v1 = vcombine.low %v1039_v23, %v1043_v9  ;;  %v20371_v9 = vld [vmem:[#allocation27_spill] sm:$0xff] }
 0x1dd   :  { %5384 = vmatpush1.bf16.msra.mxu1 %v11206_v25  ;;  %5387 = vmatprep.mubr.bf16.mxu1 %v20367_v56  ;;  %v1047_v25 = vld [vmem:[%s19926_s3 + $0x898] sm:$0xff]  ;;  %v1058_v56 = vld [vmem:[%s19926_s3 + $0x8f0] sm:$0xff] }
 0x1de   :  { %5385 = vmatprep.subr.bf16.mxu1 %v11215_v8  ;;  %4934 = vmatpush1.bf16.msra.mxu0 %v11212_v16  ;;  %v1054_v8 = vld [vmem:[%s19926_s3 + $0x8d0] sm:$0xff]  ;;  %v11239_v16 = vcombine.high %v1047_v25, %v1051_v54  ;;  %v11238_v45 = vcombine.low %v1047_v25, %v1051_v54  ;;  %v1071_v54 = vld [vmem:[%s19926_s3 + $0x958] sm:$0xff] }
 0x1df   :  { %5016 = vmatprep.subr.bf16.mxu0 %v11221_v12  ;;  %v1059_v12 = vld [vmem:[%s19926_s3 + $0x8f8] sm:$0xff] }
 0x1e0   :  { %v11247_v23 = vcombine.high %v1055_v11, %v1059_v12 }
 0x1e1   :  { %5386 = vmatpush1.bf16.msra.mxu1 %v11214_v7  ;;  %4936 = vmatmul.mubr.bf16.vlgmr.msra.gmra.mrb[32].mxu0 %v20368_v15  ;;  %v11245_v7 = vcombine.high %v1054_v8, %v1058_v56 }
 0x1e2   :  { %5468 = vmatprep.subr.bf16.mxu1 %v11223_v58  ;;  %5017 = vmatpush1.bf16.msra.mxu0 %v11220_v26  ;;  %v1066_v58 = vld [vmem:[%s19926_s3 + $0x930] sm:$0xff] }
 0x1e3   :  { %4945 = vmatprep.mubr.bf16.mxu0 %v20369_v20  ;;  %5018 = vmatprep.subr.bf16.mxu0 %v11229_v30  ;;  %v20370_v26 = vld [vmem:[#allocation24_spill] sm:$0xff]  ;;  %v11244_v30 = vcombine.low %v1054_v8, %v1058_v56  ;;  %v11253_v21 = vcombine.high %v1062_v18, %v1066_v58  ;;  %v11252_v25 = vcombine.low %v1062_v18, %v1066_v58  ;;  %v1079_v18 = vld [vmem:[%s19926_s3 + $0x998] sm:$0xff] }
 0x1e4   :  { %5388 = vmatmul.mubr.bf16.vlgmr.msra.gmra.mrb[32].mxu1 %v20368_v15  ;;  %v1070_v15 = vld [vmem:[%s19926_s3 + $0x950] sm:$0xff] }
 0x1e5   :  { %5397 = vmatprep.mubr.bf16.mxu1 %v20369_v20  ;;  %5469 = vmatpush1.bf16.msra.mxu1 %v11222_v60  ;;  %v1063_v60 = vld [vmem:[%s19926_s3 + $0x918] sm:$0xff]  ;;  %v1074_v20 = vld [vmem:[%s19926_s3 + $0x970] sm:$0xff] }
 0x1e6   :  { %5470 = vmatprep.subr.bf16.mxu1 %v11231_v0  ;;  %5019 = vmatpush1.bf16.msra.mxu0 %v11228_v57  ;;  %v11246_v0 = vcombine.low %v1055_v11, %v1059_v12  ;;  %v11255_v57 = vcombine.high %v1063_v60, %v1067_v61  ;;  %v11261_v8 = vcombine.high %v1070_v15, %v1074_v20  ;;  %v1082_v56 = vld [vmem:[%s19926_s3 + $0x9b0] sm:$0xff]  ;;  %v20373_v12 = vld [vmem:[#allocation43_spill] sm:$0xff] }
 0x1e7   :  { %5020 = vmatprep.subr.bf16.mxu0 %v11237_v59  ;;  %v1075_v59 = vld [vmem:[%s19926_s3 + $0x978] sm:$0xff]  ;;  %v1086_v58 = vld [vmem:[%s19926_s3 + $0x9d0] sm:$0xff] }
 0x1e8   :  { %v11263_v11 = vcombine.high %v1071_v54, %v1075_v59 }
 0x1e9   :  { %5471 = vmatpush1.bf16.msra.mxu1 %v11230_v1  ;;  %4946 = vmatmul.mubr.bf16.gmra.mrb[36].mxu0 %v20370_v26  ;;  %v1078_v1 = vld [vmem:[%s19926_s3 + $0x990] sm:$0xff] }
 0x1ea   :  { %5472 = vmatprep.subr.bf16.mxu1 %v11239_v16  ;;  %5021 = vmatpush1.bf16.msra.mxu0 %v11236_v52  ;;  %v11254_v16 = vcombine.low %v1063_v60, %v1067_v61  ;;  %v20372_v52 = vld [vmem:[#allocation42_spill] sm:$0xff]  ;;  %v11268_v60 = vcombine.low %v1078_v1, %v1082_v56  ;;  %v1087_v61 = vld [vmem:[%s19926_s3 + $0x9d8] sm:$0xff] }
 0x1eb   :  { %4955 = vmatprep.mubr.bf16.mxu0 %v20371_v9  ;;  %5022 = vmatprep.subr.bf16.mxu0 %v11245_v7  ;;  %v11260_v7 = vcombine.low %v1070_v15, %v1074_v20  ;;  %v1098_v20 = vld [vmem:[%s19926_s3 + $0xa30] sm:$0xff] }
 0x1ec   :  { %5398 = vmatmul.mubr.bf16.gmra.mrb[36].mxu1 %v20370_v26  ;;  %v11269_v26 = vcombine.high %v1078_v1, %v1082_v56 }
 0x1ed   :  { %5407 = vmatprep.mubr.bf16.mxu1 %v20371_v9  ;;  %5473 = vmatpush1.bf16.msra.mxu1 %v11238_v45  ;;  %v1083_v45 = vld [vmem:[%s19926_s3 + $0x9b8] sm:$0xff]  ;;  %v11262_v9 = vcombine.low %v1071_v54, %v1075_v59  ;;  %v20374_v59 = vld [vmem:[#allocation48_spill] sm:$0xff] }
 0x1ee   :  { %5474 = vmatprep.subr.bf16.mxu1 %v11247_v23  ;;  %5023 = vmatpush1.bf16.msra.mxu0 %v11244_v30  ;;  %v1090_v23 = vld [vmem:[%s19926_s3 + $0x9f0] sm:$0xff]  ;;  %v11271_v30 = vcombine.high %v1079_v18, %v1083_v45  ;;  %v1099_v54 = vld [vmem:[%s19926_s3 + $0xa38] sm:$0xff] }
 0x1ef   :  { %5024 = vmatprep.subr.bf16.mxu0 %v11253_v21  ;;  %v1091_v21 = vld [vmem:[%s19926_s3 + $0x9f8] sm:$0xff]  ;;  %v11277_v15 = vcombine.high %v1086_v58, %v1090_v23  ;;  %v11276_v56 = vcombine.low %v1086_v58, %v1090_v23  ;;  %v1114_v23 = vld [vmem:[%s19926_s3 + $0xab0] sm:$0xff] }
 0x1f0   :  { %v11279_v1 = vcombine.high %v1087_v61, %v1091_v21 }
 0x1f1   :  { %5475 = vmatpush1.bf16.msra.mxu1 %v11246_v0  ;;  %4956 = vmatmul.mubr.bf16.gmra.mrb[40].mxu0 %v20372_v52  ;;  %v1094_v0 = vld [vmem:[%s19926_s3 + $0xa10] sm:$0xff] }
 0x1f2   :  { %5476 = vmatprep.subr.bf16.mxu1 %v11255_v57  ;;  %5025 = vmatpush1.bf16.msra.mxu0 %v11252_v25  ;;  %v11270_v57 = vcombine.low %v1079_v18, %v1083_v45  ;;  %v1095_v25 = vld [vmem:[%s19926_s3 + $0xa18] sm:$0xff]  ;;  %v11284_v58 = vcombine.low %v1094_v0, %v1098_v20 }
 0x1f3   :  { %4965 = vmatprep.mubr.bf16.mxu0 %v20373_v12  ;;  %5026 = vmatprep.subr.bf16.mxu0 %v11261_v8  ;;  %v20375_v8 = vld [vmem:[#allocation35_spill] sm:$0xff]  ;;  %v1103_v18 = vld [vmem:[%s19926_s3 + $0xa58] sm:$0xff] }
 0x1f4   :  { %5408 = vmatmul.mubr.bf16.gmra.mrb[40].mxu1 %v20372_v52  ;;  %v11278_v52 = vcombine.low %v1087_v61, %v1091_v21  ;;  %v1107_v45 = vld [vmem:[%s19926_s3 + $0xa78] sm:$0xff] }
 0x1f5   :  { %5417 = vmatprep.mubr.bf16.mxu1 %v20373_v12  ;;  %5477 = vmatpush1.bf16.msra.mxu1 %v11254_v16  ;;  %v11285_v16 = vcombine.high %v1094_v0, %v1098_v20  ;;  %v1106_v12 = vld [vmem:[%s19926_s3 + $0xa70] sm:$0xff]  ;;  %v1115_v61 = vld [vmem:[%s19926_s3 + $0xab8] sm:$0xff]  ;;  %v11295_v21 = vcombine.high %v1103_v18, %v1107_v45  ;;  %v11294_v20 = vcombine.low %v1103_v18, %v1107_v45 }
 0x1f6   :  { %5478 = vmatprep.subr.bf16.mxu1 %v11263_v11  ;;  %5027 = vmatpush1.bf16.msra.mxu0 %v11260_v7  ;;  %v1102_v11 = vld [vmem:[%s19926_s3 + $0xa50] sm:$0xff]  ;;  %v11287_v7 = vcombine.high %v1095_v25, %v1099_v54 }
 0x1f7   :  { %5028 = vmatprep.subr.bf16.mxu0 %v11269_v26  ;;  %v1110_v26 = vld [vmem:[%s19926_s3 + $0xa90] sm:$0xff] }
 0x1f8   :  { %v11301_v0 = vcombine.high %v1110_v26, %v1114_v23 }
 0x1f9   :  { %5479 = vmatpush1.bf16.msra.mxu1 %v11262_v9  ;;  %4966 = vmatmul.mubr.bf16.gmra.mrb[44].mxu0 %v20374_v59  ;;  %v11293_v9 = vcombine.high %v1102_v11, %v1106_v12 }
 0x1fa   :  { %5480 = vmatprep.subr.bf16.mxu1 %v11271_v30  ;;  %5029 = vmatpush1.bf16.msra.mxu0 %v11268_v60  ;;  %v11286_v30 = vcombine.low %v1095_v25, %v1099_v54  ;;  %v1111_v60 = vld [vmem:[%s19926_s3 + $0xa98] sm:$0xff]  ;;  %v1122_v25 = vld [vmem:[%s19926_s3 + $0xaf0] sm:$0xff] }
 0x1fb   :  { %4975 = vmatprep.mubr.bf16.mxu0 %v20375_v8  ;;  %5030 = vmatprep.subr.bf16.mxu0 %v11277_v15  ;;  %v11292_v15 = vcombine.low %v1102_v11, %v1106_v12  ;;  %v11303_v54 = vcombine.high %v1111_v60, %v1115_v61  ;;  %v1131_v11 = vld [vmem:[%s19926_s3 + $0xb38] sm:$0xff] }
 0x1fc   :  { %5418 = vmatmul.mubr.bf16.gmra.mrb[44].mxu1 %v20374_v59  ;;  %v11300_v59 = vcombine.low %v1110_v26, %v1114_v23  ;;  %v1138_v26 = vld [vmem:[%s19926_s3 + $0xb70] sm:$0xff] }
 0x1fd   :  { %5427 = vmatprep.mubr.bf16.mxu1 %v20375_v8  ;;  %5481 = vmatpush1.bf16.msra.mxu1 %v11270_v57  ;;  %v1118_v57 = vld [vmem:[%s19926_s3 + $0xad0] sm:$0xff] }
 0x1fe   :  { %5482 = vmatprep.subr.bf16.mxu1 %v11279_v1  ;;  %5031 = vmatpush1.bf16.msra.mxu0 %v11276_v56  ;;  %v1126_v1 = vld [vmem:[%s19926_s3 + $0xb10] sm:$0xff]  ;;  %v11309_v56 = vcombine.high %v1118_v57, %v1122_v25 }
 0x1ff   :  { %5032 = vmatprep.subr.bf16.mxu0 %v11285_v16  ;;  %v1130_v8 = vld [vmem:[%s19926_s3 + $0xb30] sm:$0xff]  ;;  %v11302_v16 = vcombine.low %v1111_v60, %v1115_v61 }
 0x200   :  { %v11317_v18 = vcombine.high %v1126_v1, %v1130_v8  ;;  %v1146_v60 = vld [vmem:[%s19926_s3 + $0xbb0] sm:$0xff] }
 0x201   :  { %5483 = vmatpush1.bf16.msra.mxu1 %v11278_v52  ;;  %4976 = vmatmul.mubr.bf16.gmra.mrb[48].mxu0 %v15844_v31  ;;  %v1127_v52 = vld [vmem:[%s19926_s3 + $0xb18] sm:$0xff] }
 0x202   :  { %5484 = vmatprep.subr.bf16.mxu1 %v11287_v7  ;;  %5033 = vmatpush1.bf16.msra.mxu0 %v11284_v58  ;;  %v11308_v7 = vcombine.low %v1118_v57, %v1122_v25  ;;  %v1134_v58 = vld [vmem:[%s19926_s3 + $0xb50] sm:$0xff]  ;;  %v11319_v23 = vcombine.high %v1127_v52, %v1131_v11 }
 0x203   :  { %4985 = vmatprep.mubr.bf16.mxu0 %v15855_v24  ;;  %5034 = vmatprep.subr.bf16.mxu0 %v11293_v9  ;;  %v11316_v9 = vcombine.low %v1126_v1, %v1130_v8  ;;  %v11325_v61 = vcombine.high %v1134_v58, %v1138_v26  ;;  %v11324_v57 = vcombine.low %v1134_v58, %v1138_v26  ;;  %v1158_v8 = vld [vmem:[%s19926_s3 + $0xc10] sm:$0xff] }
 0x204   :  { %5428 = vmatmul.mubr.bf16.gmra.mrb[48].mxu1 %v15844_v31  ;;  %v1119_v31 = vld [vmem:[%s19926_s3 + $0xad8] sm:$0xff]  ;;  %v1166_v26 = vld [vmem:[%s19926_s3 + $0xc50] sm:$0xff] }
 0x205   :  { %5437 = vmatprep.mubr.bf16.mxu1 %v15855_v24  ;;  %5485 = vmatpush1.bf16.msra.mxu1 %v11286_v30  ;;  %v1123_v24 = vld [vmem:[%s19926_s3 + $0xaf8] sm:$0xff]  ;;  %v1142_v30 = vld [vmem:[%s19926_s3 + $0xb90] sm:$0xff] }
 0x206   :  { %5486 = vmatprep.subr.bf16.mxu1 %v11295_v21  ;;  %5035 = vmatpush1.bf16.msra.mxu0 %v11292_v15  ;;  %v11311_v12 = vcombine.high %v1119_v31, %v1123_v24  ;;  %v11310_v45 = vcombine.low %v1119_v31, %v1123_v24  ;;  %v11318_v21 = vcombine.low %v1127_v52, %v1131_v11  ;;  %v1143_v15 = vld [vmem:[%s19926_s3 + $0xb98] sm:$0xff]  ;;  %v1150_v31 = vld [vmem:[%s19926_s3 + $0xbd0] sm:$0xff] }
 0x207   :  { %5036 = vmatprep.subr.bf16.mxu0 %v11301_v0  ;;  %v1147_v0 = vld [vmem:[%s19926_s3 + $0xbb8] sm:$0xff]  ;;  %v11333_v25 = vcombine.high %v1142_v30, %v1146_v60  ;;  %v1154_v24 = vld [vmem:[%s19926_s3 + $0xbf0] sm:$0xff]  ;;  %v11332_v1 = vcombine.low %v1142_v30, %v1146_v60 }
 0x208   :  { %v11334_v52 = vcombine.low %v1143_v15, %v1147_v0  ;;  %v1159_v11 = vld [vmem:[%s19926_s3 + $0xc18] sm:$0xff]  ;;  %v1178_v30 = vld [vmem:[%s19926_s3 + $0xcb0] sm:$0xff] }
 0x209   :  { %5487 = vmatpush1.bf16.msra.mxu1 %v11294_v20  ;;  %4986 = vmatmul.mubr.bf16.gmra.mrb[52].mxu0 %v15956_v33 }
 0x20a   :  { %5488 = vmatprep.subr.bf16.mxu1 %v11303_v54  ;;  %5037 = vmatpush1.bf16.msra.mxu0 %v11300_v59  ;;  %v11335_v59 = vcombine.high %v1143_v15, %v1147_v0  ;;  %v1175_v15 = vld [vmem:[%s19926_s3 + $0xc98] sm:$0xff] }
 0x20b   :  { %4995 = vmatprep.mubr.bf16.mxu0 %v15974_v51  ;;  %5038 = vmatprep.subr.bf16.mxu0 %v11309_v56  ;;  %v1162_v56 = vld [vmem:[%s19926_s3 + $0xc30] sm:$0xff]  ;;  %v1179_v0 = vld [vmem:[%s19926_s3 + $0xcb8] sm:$0xff] }
 0x20c   :  { %5438 = vmatmul.mubr.bf16.gmra.mrb[52].mxu1 %v15956_v33  ;;  %v1135_v33 = vld [vmem:[%s19926_s3 + $0xb58] sm:$0xff] }
 0x20d   :  { %5447 = vmatprep.mubr.bf16.mxu1 %v15974_v51  ;;  %5489 = vmatpush1.bf16.msra.mxu1 %v11302_v16  ;;  %v1139_v51 = vld [vmem:[%s19926_s3 + $0xb78] sm:$0xff]  ;;  %v11341_v16 = vcombine.high %v1150_v31, %v1154_v24 }
 0x20e   :  { %5490 = vmatprep.subr.bf16.mxu1 %v11311_v12  ;;  %5039 = vmatpush1.bf16.msra.mxu0 %v11308_v7  ;;  %v11327_v20 = vcombine.high %v1135_v33, %v1139_v51  ;;  %v11326_v54 = vcombine.low %v1135_v33, %v1139_v51  ;;  %v1163_v12 = vld [vmem:[%s19926_s3 + $0xc38] sm:$0xff] }
 0x20f   :  { %5040 = vmatprep.subr.bf16.mxu0 %v11317_v18  ;;  %v11340_v18 = vcombine.low %v1150_v31, %v1154_v24  ;;  %v11351_v33 = vcombine.high %v1159_v11, %v1163_v12  ;;  %v1171_v51 = vld [vmem:[%s19926_s3 + $0xc78] sm:$0xff]  ;;  %v1186_v31 = vld [vmem:[%s19926_s3 + $0xcf0] sm:$0xff] }
 0x210   :  { %v1183_v24 = vld [vmem:[%s19926_s3 + $0xcd8] sm:$0xff] }
 0x211   :  { %5491 = vmatpush1.bf16.msra.mxu1 %v11310_v45  ;;  %4996 = vmatmul.mubr.bf16.gmra.mrb[56].mxu0 %v16029_v39  ;;  %v11349_v45 = vcombine.high %v1158_v8, %v1162_v56 }
 0x212   :  { %5492 = vmatprep.subr.bf16.mxu1 %v11319_v23  ;;  %5041 = vmatpush1.bf16.msra.mxu0 %v11316_v9  ;;  %v1170_v23 = vld [vmem:[%s19926_s3 + $0xc70] sm:$0xff] }
 0x213   :  { %5005 = vmatprep.mubr.bf16.mxu0 %v16050_v49  ;;  %5042 = vmatprep.subr.bf16.mxu0 %v11325_v61  ;;  %v1174_v9 = vld [vmem:[%s19926_s3 + $0xc90] sm:$0xff]  ;;  %v11357_v60 = vcombine.high %v1166_v26, %v1170_v23  ;;  %v11350_v61 = vcombine.low %v1159_v11, %v1163_v12 }
 0x214   :  { %5448 = vmatmul.mubr.bf16.gmra.mrb[56].mxu1 %v16029_v39  ;;  %v1151_v39 = vld [vmem:[%s19926_s3 + $0xbd8] sm:$0xff] }
 0x215   :  { %5457 = vmatprep.mubr.bf16.mxu1 %v16050_v49  ;;  %5493 = vmatpush1.bf16.msra.mxu1 %v11318_v21  ;;  %v1155_v49 = vld [vmem:[%s19926_s3 + $0xbf8] sm:$0xff] }
 0x216   :  { %5494 = vmatprep.subr.bf16.mxu1 %v11327_v20  ;;  %5043 = vmatpush1.bf16.msra.mxu0 %v11324_v57  ;;  %v11343_v7 = vcombine.high %v1151_v39, %v1155_v49  ;;  %v11342_v58 = vcombine.low %v1151_v39, %v1155_v49  ;;  %v11356_v20 = vcombine.low %v1166_v26, %v1170_v23  ;;  %v1190_v39 = vld [vmem:[%s19926_s3 + $0xd10] sm:$0xff]  ;;  %v1203_v26 = vld [vmem:[%s19926_s3 + $0xd78] sm:$0xff] }
 0x217   :  { %5044 = vmatprep.subr.bf16.mxu0 %v11333_v25  ;;  %v11365_v57 = vcombine.high %v1174_v9, %v1178_v30  ;;  %v1194_v49 = vld [vmem:[%s19926_s3 + $0xd30] sm:$0xff] }
 0x218   :  { %v11381_v12 = vcombine.high %v1190_v39, %v1194_v49  ;;  %v11380_v23 = vcombine.low %v1190_v39, %v1194_v49  ;;  %v17256_v39 = vld [vmem:[%s19926_s3 + $0xdf0] sm:$0xff] }
 0x219   :  { %5495 = vmatpush1.bf16.msra.mxu1 %v11326_v54  ;;  %5006 = vmatmul.mubr.bf16.gmra.mrb[60].mxu0 %v16091_v63  ;;  %v1182_v54 = vld [vmem:[%s19926_s3 + $0xcd0] sm:$0xff] }
 0x21a   :  { %5496 = vmatprep.subr.bf16.mxu1 %v11335_v59  ;;  %5045 = vmatpush1.bf16.msra.mxu0 %v11332_v1  ;;  %v11364_v59 = vcombine.low %v1174_v9, %v1178_v30  ;;  %v11373_v1 = vcombine.high %v1182_v54, %v1186_v31  ;;  %v11372_v11 = vcombine.low %v1182_v54, %v1186_v31 }
 0x21b   :  { %5048 = vmatprep.mubr.bf16.mxu0 %v16102_v28  ;;  %5046 = vmatprep.subr.bf16.mxu0 %v11341_v16  ;;  %v1191_v16 = vld [vmem:[%s19926_s3 + $0xd18] sm:$0xff] }
 0x21c   :  { %5458 = vmatmul.mubr.bf16.gmra.mrb[60].mxu1 %v16091_v63  ;;  %v1167_v63 = vld [vmem:[%s19926_s3 + $0xc58] sm:$0xff] }
 0x21d   :  { %5497 = vmatpush1.bf16.msra.mxu1 %v11334_v52  ;;  %5500 = vmatprep.mubr.bf16.mxu1 %v16102_v28  ;;  %v11348_v28 = vcombine.low %v1158_v8, %v1162_v56  ;;  %v11359_v21 = vcombine.high %v1167_v63, %v1171_v51  ;;  %v11358_v25 = vcombine.low %v1167_v63, %v1171_v51  ;;  %v1195_v52 = vld [vmem:[%s19926_s3 + $0xd38] sm:$0xff]  ;;  %v17208_v51 = vld [vmem:[%s19926_s3 + $0xd90] sm:$0xff] }
 0x21e   :  { %5498 = vmatprep.subr.bf16.mxu1 %v11343_v7  ;;  %5047 = vmatpush1.bf16.msra.mxu0 %v11340_v18  ;;  %v11366_v8 = vcombine.low %v1175_v15, %v1179_v0  ;;  %v1284_v18 = vld [vmem:[%s19930_s4] sm:$0xff] }
 0x21f   :  { %5129 = vmatprep.subr.bf16.mxu0 %v11349_v45  ;;  %v1198_v45 = vld [vmem:[%s19926_s3 + $0xd50] sm:$0xff] }
 0x221   :  { %5499 = vmatpush1.bf16.msra.mxu1 %v11342_v58  ;;  %5049 = vmatmul.mubr.bf16.vlgmr.msra.gmra.mrb[32].mxu0 %v16127_v42  ;;  %v1202_v58 = vld [vmem:[%s19926_s3 + $0xd70] sm:$0xff] }
 0x222   :  { %5581 = vmatprep.subr.bf16.mxu1 %v11351_v33  ;;  %5130 = vmatpush1.bf16.msra.mxu0 %v11348_v28  ;;  %v20376_v33 = vld [vmem:[#allocation2_spill] sm:$0xff]  ;;  %v17213_v28 = vld [vmem:[%s19926_s3 + $0xdb0] sm:$0xff]  ;;  %v11389_v30 = vcombine.high %v1198_v45, %v1202_v58 }
 0x223   :  { %5058 = vmatprep.mubr.bf16.mxu0 %v16131_v46  ;;  %5131 = vmatprep.subr.bf16.mxu0 %v11357_v60  ;;  %v20060_v63 = vsub.s32 1, %v20376_v33  ;;  %v20061_v9 = vsub.s32 2, %v20376_v33  ;;  %v11382_v60 = vcombine.low %v1191_v16, %v1195_v52 }
 0x224   :  { %5501 = vmatmul.mubr.bf16.vlgmr.msra.gmra.mrb[32].mxu1 %v16127_v42  ;;  %v11367_v42 = vcombine.high %v1175_v15, %v1179_v0 }
 0x225   :  { %5510 = vmatprep.mubr.bf16.mxu1 %v16131_v46  ;;  %5582 = vmatpush1.bf16.msra.mxu1 %v11350_v61  ;;  %v1187_v46 = vld [vmem:[%s19926_s3 + $0xcf8] sm:$0xff]  ;;  %v20059_v61 = vsub.s32 3, %v20376_v33  ;;  %v17234_v54 = vrot.slane %v1284_v18, %v20060_v63  ;;  %v17239_v31 = vrot.slane %v1284_v18, %v20061_v9 }
 0x226   :  { %5583 = vmatprep.subr.bf16.mxu1 %v11359_v21  ;;  %5132 = vmatpush1.bf16.msra.mxu0 %v11356_v20  ;;  %v11375_v56 = vcombine.high %v1183_v24, %v1187_v46  ;;  %v11374_v7 = vcombine.low %v1183_v24, %v1187_v46  ;;  %v20377_v21 = vld [vmem:[#allocation3_spill] sm:$0xff]  ;;  %v17224_v20 = vld [vmem:[%s19926_s3 + $0xd98] sm:$0xff]  ;;  %v11397_v24 = vcombine.high %v17208_v51, %v17213_v28 }
 0x227   :  { %5133 = vmatprep.subr.bf16.mxu0 %v11365_v57  ;;  %v17219_v15 = vrot.slane %v1284_v18, %v20377_v21  ;;  %v17229_v57 = vld [vmem:[%s19926_s3 + $0xdb8] sm:$0xff]  ;;  %v17246_v46 = vrot.slane %v1284_v18, %v20059_v61  ;;  %v17282_v18 = vld [vmem:[%s19926_s3 + $0xe30] sm:$0xff] }
 0x229   :  { %5584 = vmatpush1.bf16.msra.mxu1 %v11358_v25  ;;  %5059 = vmatmul.mubr.bf16.gmra.mrb[36].mxu0 %v16163_v13  ;;  %v11388_v25 = vcombine.low %v1198_v45, %v1202_v58 }
 0x22a   :  { %5585 = vmatprep.subr.bf16.mxu1 %v11367_v42  ;;  %5134 = vmatpush1.bf16.msra.mxu0 %v11364_v59 }
 0x22b   :  { %5068 = vmatprep.mubr.bf16.mxu0 %v16167_v44  ;;  %5135 = vmatprep.subr.bf16.mxu0 %v11373_v1  ;;  %v11399_v1 = vcombine.high %v17224_v20, %v17229_v57 }
 0x22c   :  { %5511 = vmatmul.mubr.bf16.gmra.mrb[36].mxu1 %v16163_v13  ;;  %v1199_v13 = vld [vmem:[%s19926_s3 + $0xd58] sm:$0xff] }
 0x22d   :  { %5520 = vmatprep.mubr.bf16.mxu1 %v16167_v44  ;;  %5586 = vmatpush1.bf16.msra.mxu1 %v11366_v8  ;;  %v11383_v44 = vcombine.high %v1191_v16, %v1195_v52  ;;  %v11391_v0 = vcombine.high %v1199_v13, %v1203_v26  ;;  %v11390_v59 = vcombine.low %v1199_v13, %v1203_v26  ;;  %v17264_v8 = vld [vmem:[%s19926_s3 + $0xdd8] sm:$0xff] }
 0x22e   :  { %5587 = vmatprep.subr.bf16.mxu1 %v11375_v56  ;;  %5136 = vmatpush1.bf16.msra.mxu0 %v11372_v11  ;;  %v17269_v56 = vld [vmem:[%s19926_s3 + $0xdf8] sm:$0xff] }
 0x22f   :  { %5137 = vmatprep.subr.bf16.mxu0 %v11381_v12  ;;  %v11396_v12 = vcombine.low %v17208_v51, %v17213_v28 }
 0x231   :  { %5588 = vmatpush1.bf16.msra.mxu1 %v11374_v7  ;;  %5069 = vmatmul.mubr.bf16.gmra.mrb[40].mxu0 %v16199_v5  ;;  %v17277_v7 = vld [vmem:[%s19926_s3 + $0xe10] sm:$0xff] }
 0x232   :  { %5589 = vmatprep.subr.bf16.mxu1 %v11383_v44  ;;  %5138 = vmatpush1.bf16.msra.mxu0 %v11380_v23 }
 0x233   :  { %5078 = vmatprep.mubr.bf16.mxu0 %v16203_v3  ;;  %5139 = vmatprep.subr.bf16.mxu0 %v11389_v30  ;;  %v11398_v30 = vcombine.low %v17224_v20, %v17229_v57 }
 0x234   :  { %5521 = vmatmul.mubr.bf16.gmra.mrb[40].mxu1 %v16199_v5  ;;  %v4259_v42 = vpop.f32.mrb[0].mxu0  ;;  %v17251_v5 = vld [vmem:[%s19926_s3 + $0xdd0] sm:$0xff] }
 0x235   :  { %5530 = vmatprep.mubr.bf16.mxu1 %v16203_v3  ;;  %5590 = vmatpush1.bf16.msra.mxu1 %v11382_v60  ;;  %v12240_v49 = vadd.f32 %v4259_v42, %v17219_v15  ;;  %v4261_v3 = vpop.f32.mrb[1].mxu0  ;;  %v11405_v26 = vcombine.high %v17251_v5, %v17256_v39  ;;  %v11404_v57 = vcombine.low %v17251_v5, %v17256_v39 }
 0x236   :  { %5591 = vmatprep.subr.bf16.mxu1 %v11391_v0  ;;  %v12241_v52 = vadd.f32 %v4261_v3, %v17234_v54  ;;  %5140 = vmatpush1.bf16.msra.mxu0 %v11388_v25  ;;  %v4263_v11 = vpop.f32.mrb[2].mxu0  ;;  %v11406_v39 = vcombine.low %v17264_v8, %v17269_v56 }
 0x237   :  { %v4711_v16 = vpop.f32.mrb[0].mxu1  ;;  %v12242_v13 = vadd.f32 %v4263_v11, %v17219_v15  ;;  %v4265_v44 = vpop.f32.mrb[3].mxu0  ;;  %5141 = vmatprep.subr.bf16.mxu0 %v11397_v24  ;;  %v5694_v60 = vmax.f32 %v12240_v49, 0.0  ;;  %v11407_v24 = vcombine.high %v17264_v8, %v17269_v56  ;;  %v17308_v49 = vld [vmem:[%s19926_s3 + $0xe38] sm:$0xff] }
 0x238   :  { %v12272_v45 = vadd.f32 %v4711_v16, %v17239_v31  ;;  %v4713_v58 = vpop.f32.mrb[1].mxu1  ;;  %v12243_v28 = vadd.f32 %v4265_v44, %v17234_v54  ;;  %v5695_v3 = vmax.f32 %v12241_v52, 0.0  ;;  %v11413_v52 = vcombine.high %v17277_v7, %v17282_v18  ;;  %v17338_v8 = vld [vmem:[%s19926_s3 + $0xe58] sm:$0xff] }
 0x239   :  { %v12273_v23 = vadd.f32 %v4713_v58, %v17246_v46  ;;  %v4715_v51 = vpop.f32.mrb[2].mxu1  ;;  %5592 = vmatpush1.bf16.msra.mxu1 %v11390_v59  ;;  %v5702_v0 = vmax.f32 %v12242_v13, 0.0  ;;  %5079 = vmatmul.mubr.bf16.gmra.mrb[44].mxu0 %v16235_v40  ;;  %v17299_v59 = vld [vmem:[%s19926_s3 + $0xe18] sm:$0xff] }
 0x23a   :  { %v12274_v25 = vadd.f32 %v4715_v51, %v17239_v31  ;;  %v4717_v42 = vpop.f32.mrb[3].mxu1  ;;  %5593 = vmatprep.subr.bf16.mxu1 %v11399_v1  ;;  %v5703_v16 = vmax.f32 %v12243_v28, 0.0  ;;  %5142 = vmatpush1.bf16.msra.mxu0 %v11396_v12  ;;  %v5696_v1 = vmax.f32 %v12272_v45, 0.0  ;;  %v17323_v45 = vld [vmem:[%s19926_s3 + $0xe50] sm:$0xff]  ;;  %v11415_v51 = vcombine.high %v17299_v59, %v17308_v49  ;;  %v17343_v56 = vld [vmem:[%s19926_s3 + $0xe78] sm:$0xff] }
 0x23b   :  { %v12275_v20 = vadd.f32 %v4717_v42, %v17246_v46  ;;  %5088 = vmatprep.mubr.bf16.mxu0 %v16239_v32  ;;  %v17310_v11 = vpack.c.bf16 %v5702_v0, %v5694_v60  ;;  %5143 = vmatprep.subr.bf16.mxu0 %v11405_v26  ;;  %v5697_v12 = vmax.f32 %v12273_v23, 0.0  ;;  %v17353_v42 = vld [vmem:[%s19926_s3 + $0xe90] sm:$0xff] }
 0x23c   :  { %v5704_v58 = vmax.f32 %v12274_v25, 0.0  ;;  %5531 = vmatmul.mubr.bf16.gmra.mrb[44].mxu1 %v16235_v40  ;;  %v17315_v13 = vpack.c.bf16 %v5703_v16, %v5695_v3  ;;  %v4269_v5 = vpop.f32.mrb[4].mxu0  ;;  %v17328_v40 = vld [vmem:[%s19926_s3 + $0xe70] sm:$0xff]  ;;  %v11412_v25 = vcombine.low %v17277_v7, %v17282_v18 }
 0x23d   :  { %v5705_v44 = vmax.f32 %v12275_v20, 0.0  ;;  %5540 = vmatprep.mubr.bf16.mxu1 %v16239_v32  ;;  %5594 = vmatpush1.bf16.msra.mxu1 %v11398_v30  ;;  %v12244_v23 = vadd.f32 %v4269_v5, %v17219_v15  ;;  %v4271_v32 = vpop.f32.mrb[5].mxu0  ;;  %v11421_v7 = vcombine.high %v17323_v45, %v17328_v40 }
 0x23e   :  { %v17330_v26 = vpack.c.bf16 %v5704_v58, %v5696_v1  ;;  %5595 = vmatprep.subr.bf16.mxu1 %v11407_v24  ;;  %v12245_v60 = vadd.f32 %v4271_v32, %v17234_v54  ;;  %5144 = vmatpush1.bf16.msra.mxu0 %v11404_v57  ;;  %v4273_v0 = vpop.f32.mrb[6].mxu0  ;;  %v17358_v24 = vld [vmem:[%s19926_s3 + $0xeb0] sm:$0xff] }
 0x23f   :  { %v17345_v28 = vpack.c.bf16 %v5705_v44, %v5697_v12  ;;  %v4721_v30 = vpop.f32.mrb[4].mxu1  ;;  %v12246_v20 = vadd.f32 %v4273_v0, %v17219_v15  ;;  %v4275_v57 = vpop.f32.mrb[7].mxu0  ;;  %5145 = vmatprep.subr.bf16.mxu0 %v11413_v52  ;;  %v11414_v12 = vcombine.low %v17299_v59, %v17308_v49  ;;  %v5710_v44 = vmax.f32 %v12244_v23, 0.0  ;;  %v17384_v23 = vld [vmem:[%s19926_s3 + $0xeb8] sm:$0xff] }
 0x240   :  { %v12276_v3 = vadd.f32 %v4721_v30, %v17239_v31  ;;  %v4723_v16 = vpop.f32.mrb[5].mxu1  ;;  %v12247_v58 = vadd.f32 %v4275_v57, %v17234_v54  ;;  %v11423_v52 = vcombine.high %v17338_v8, %v17343_v56  ;;  %v5711_v0 = vmax.f32 %v12245_v60, 0.0 }
 0x241   :  { %v12277_v18 = vadd.f32 %v4723_v16, %v17246_v46  ;;  %v4725_v1 = vpop.f32.mrb[6].mxu1  ;;  %5596 = vmatpush1.bf16.msra.mxu1 %v11406_v39  ;;  %v5718_v5 = vmax.f32 %v12246_v20, 0.0  ;;  %5089 = vmatmul.mubr.bf16.gmra.mrb[48].mxu0 %v16271_v37  ;;  %v17375_v39 = vld [vmem:[%s19926_s3 + $0xe98] sm:$0xff]  ;;  %v11420_v49 = vcombine.low %v17323_v45, %v17328_v40  ;;  %v11429_v60 = vcombine.high %v17353_v42, %v17358_v24 }
 0x242   :  { %v12278_v32 = vadd.f32 %v4725_v1, %v17239_v31  ;;  %v4727_v30 = vpop.f32.mrb[7].mxu1  ;;  %5597 = vmatprep.subr.bf16.mxu1 %v11415_v51  ;;  %v5719_v16 = vmax.f32 %v12247_v58, 0.0  ;;  %5146 = vmatpush1.bf16.msra.mxu0 %v11412_v25  ;;  %v5712_v51 = vmax.f32 %v12276_v3, 0.0  ;;  %v11422_v40 = vcombine.low %v17338_v8, %v17343_v56  ;;  %v17399_v3 = vld [vmem:[%s19926_s3 + $0xed0] sm:$0xff]  ;;  %v17414_v8 = vld [vmem:[%s19926_s3 + $0xed8] sm:$0xff] }
 0x243   :  { %v12279_v59 = vadd.f32 %v4727_v30, %v17246_v46  ;;  %5098 = vmatprep.mubr.bf16.mxu0 %v16275_v22  ;;  %v17386_v20 = vpack.c.bf16 %v5718_v5, %v5710_v44  ;;  %5147 = vmatprep.subr.bf16.mxu0 %v11421_v7  ;;  %v5713_v25 = vmax.f32 %v12277_v18, 0.0  ;;  %v17419_v56 = vld [vmem:[%s19926_s3 + $0xef8] sm:$0xff] }
 0x244   :  { %v5720_v57 = vmax.f32 %v12278_v32, 0.0  ;;  %5541 = vmatmul.mubr.bf16.gmra.mrb[48].mxu1 %v16271_v37  ;;  %v17391_v1 = vpack.c.bf16 %v5719_v16, %v5711_v0  ;;  %v4279_v45 = vpop.f32.mrb[8].mxu0  ;;  %v17404_v37 = vld [vmem:[%s19926_s3 + $0xef0] sm:$0xff] }
 0x245   :  { %v5721_v58 = vmax.f32 %v12279_v59, 0.0  ;;  %5550 = vmatprep.mubr.bf16.mxu1 %v16275_v22  ;;  %5598 = vmatpush1.bf16.msra.mxu1 %v11414_v12  ;;  %v12248_v18 = vadd.f32 %v4279_v45, %v17219_v15  ;;  %v4281_v22 = vpop.f32.mrb[9].mxu0  ;;  %v11431_v12 = vcombine.high %v17375_v39, %v17384_v23  ;;  %v17429_v0 = vld [vmem:[%s19926_s3 + $0xf10] sm:$0xff]  ;;  %v11430_v45 = vcombine.low %v17375_v39, %v17384_v23 }
 0x246   :  { %v17406_v7 = vpack.c.bf16 %v5720_v57, %v5712_v51  ;;  %5599 = vmatprep.subr.bf16.mxu1 %v11423_v52  ;;  %v12249_v32 = vadd.f32 %v4281_v22, %v17234_v54  ;;  %5148 = vmatpush1.bf16.msra.mxu0 %v11420_v49  ;;  %v4283_v30 = vpop.f32.mrb[10].mxu0  ;;  %v11428_v52 = vcombine.low %v17353_v42, %v17358_v24  ;;  %v17434_v16 = vld [vmem:[%s19926_s3 + $0xf30] sm:$0xff] }
 0x247   :  { %v17421_v44 = vpack.c.bf16 %v5721_v58, %v5713_v25  ;;  %v4731_v5 = vpop.f32.mrb[8].mxu1  ;;  %v12250_v57 = vadd.f32 %v4283_v30, %v17219_v15  ;;  %v4285_v49 = vpop.f32.mrb[11].mxu0  ;;  %5149 = vmatprep.subr.bf16.mxu0 %v11429_v60  ;;  %v11437_v42 = vcombine.high %v17399_v3, %v17404_v37  ;;  %v5726_v22 = vmax.f32 %v12248_v18, 0.0  ;;  %v17460_v18 = vld [vmem:[%s19926_s3 + $0xf38] sm:$0xff] }
 0x248   :  { %v12280_v59 = vadd.f32 %v4731_v5, %v17239_v31  ;;  %v4733_v51 = vpop.f32.mrb[9].mxu1  ;;  %v12251_v58 = vadd.f32 %v4285_v49, %v17234_v54  ;;  %v11439_v60 = vcombine.high %v17414_v8, %v17419_v56  ;;  %v5727_v30 = vmax.f32 %v12249_v32, 0.0 }
 0x249   :  { %v12281_v24 = vadd.f32 %v4733_v51, %v17246_v46  ;;  %v4735_v25 = vpop.f32.mrb[10].mxu1  ;;  %5600 = vmatpush1.bf16.msra.mxu1 %v11422_v40  ;;  %v5734_v61 = vmax.f32 %v12250_v57, 0.0  ;;  %5099 = vmatmul.mubr.bf16.gmra.mrb[52].mxu0 %v16307_v53  ;;  %v17451_v40 = vld [vmem:[%s19926_s3 + $0xf18] sm:$0xff]  ;;  %v11436_v23 = vcombine.low %v17399_v3, %v17404_v37  ;;  %v11438_v37 = vcombine.low %v17414_v8, %v17419_v56 }
 0x24a   :  { %v12282_v5 = vadd.f32 %v4735_v25, %v17239_v31  ;;  %v4737_v63 = vpop.f32.mrb[11].mxu1  ;;  %5601 = vmatprep.subr.bf16.mxu1 %v11431_v12  ;;  %v5735_v51 = vmax.f32 %v12251_v58, 0.0  ;;  %5150 = vmatpush1.bf16.msra.mxu0 %v11428_v52  ;;  %v5728_v12 = vmax.f32 %v12280_v59, 0.0  ;;  %v17490_v8 = vld [vmem:[%s19926_s3 + $0xf58] sm:$0xff] }
 0x24b   :  { %v12283_v39 = vadd.f32 %v4737_v63, %v17246_v46  ;;  %5108 = vmatprep.mubr.bf16.mxu0 %v16311_v17  ;;  %v17462_v57 = vpack.c.bf16 %v5734_v61, %v5726_v22  ;;  %5151 = vmatprep.subr.bf16.mxu0 %v11437_v42  ;;  %v11445_v63 = vcombine.high %v17429_v0, %v17434_v16  ;;  %v5729_v32 = vmax.f32 %v12281_v24, 0.0  ;;  %v17475_v61 = vld [vmem:[%s19926_s3 + $0xf50] sm:$0xff]  ;;  %v17495_v56 = vld [vmem:[%s19926_s3 + $0xf78] sm:$0xff] }
 0x24c   :  { %v5736_v49 = vmax.f32 %v12282_v5, 0.0  ;;  %5551 = vmatmul.mubr.bf16.gmra.mrb[52].mxu1 %v16307_v53  ;;  %v17467_v52 = vpack.c.bf16 %v5735_v51, %v5727_v30  ;;  %v4289_v3 = vpop.f32.mrb[12].mxu0  ;;  %v17480_v53 = vld [vmem:[%s19926_s3 + $0xf70] sm:$0xff]  ;;  %v11447_v24 = vcombine.high %v17451_v40, %v17460_v18 }
 0x24d   :  { %v5737_v25 = vmax.f32 %v12283_v39, 0.0  ;;  %5560 = vmatprep.mubr.bf16.mxu1 %v16311_v17  ;;  %5602 = vmatpush1.bf16.msra.mxu1 %v11430_v45  ;;  %v12252_v42 = vadd.f32 %v4289_v3, %v17219_v15  ;;  %v4291_v17 = vpop.f32.mrb[13].mxu0  ;;  %v17505_v30 = vld [vmem:[%s19926_s3 + $0xf90] sm:$0xff]  ;;  %v11446_v3 = vcombine.low %v17451_v40, %v17460_v18  ;;  %v11452_v18 = vcombine.low %v17475_v61, %v17480_v53 }
 0x24e   :  { %v17482_v59 = vpack.c.bf16 %v5736_v49, %v5728_v12  ;;  %5603 = vmatprep.subr.bf16.mxu1 %v11439_v60  ;;  %v12253_v22 = vadd.f32 %v4291_v17, %v17234_v54  ;;  %5152 = vmatpush1.bf16.msra.mxu0 %v11436_v23  ;;  %v4293_v5 = vpop.f32.mrb[14].mxu0  ;;  %v11444_v60 = vcombine.low %v17429_v0, %v17434_v16  ;;  %v17510_v51 = vld [vmem:[%s19926_s3 + $0xfb0] sm:$0xff] }
 0x24f   :  { %v17497_v58 = vpack.c.bf16 %v5737_v25, %v5729_v32  ;;  %v4741_v45 = vpop.f32.mrb[12].mxu1  ;;  %v12254_v49 = vadd.f32 %v4293_v5, %v17219_v15  ;;  %v4295_v23 = vpop.f32.mrb[15].mxu0  ;;  %5153 = vmatprep.subr.bf16.mxu0 %v11445_v63  ;;  %v11453_v0 = vcombine.high %v17475_v61, %v17480_v53  ;;  %v5742_v17 = vmax.f32 %v12252_v42, 0.0  ;;  %v1275_v42 = vld [vmem:[%s19926_s3 + $0xfb8] sm:$0xff] }
 0x250   :  { %v12284_v39 = vadd.f32 %v4741_v45, %v17239_v31  ;;  %v4743_v12 = vpop.f32.mrb[13].mxu1  ;;  %v12255_v25 = vadd.f32 %v4295_v23, %v17234_v54  ;;  %v11455_v63 = vcombine.high %v17490_v8, %v17495_v56  ;;  %v5743_v5 = vmax.f32 %v12253_v22, 0.0 }
 0x251   :  { %v12285_v16 = vadd.f32 %v4743_v12, %v17246_v46  ;;  %v4745_v32 = vpop.f32.mrb[14].mxu1  ;;  %5604 = vmatpush1.bf16.msra.mxu1 %v11438_v37  ;;  %v5750_v9 = vmax.f32 %v12254_v49, 0.0  ;;  %5109 = vmatmul.mubr.bf16.gmra.mrb[56].mxu0 %v16343_v55  ;;  %v17527_v37 = vld [vmem:[%s19926_s3 + $0xf98] sm:$0xff]  ;;  %v11454_v53 = vcombine.low %v17490_v8, %v17495_v56 }
 0x252   :  { %v12286_v45 = vadd.f32 %v4745_v32, %v17239_v31  ;;  %v4747_v21 = vpop.f32.mrb[15].mxu1  ;;  %5605 = vmatprep.subr.bf16.mxu1 %v11447_v24  ;;  %v5751_v12 = vmax.f32 %v12255_v25, 0.0  ;;  %5154 = vmatpush1.bf16.msra.mxu0 %v11444_v60  ;;  %v5744_v24 = vmax.f32 %v12284_v39, 0.0  ;;  %v17559_v8 = vld [vmem:[%s19926_s3 + $0xfd8] sm:$0xff] }
 0x253   :  { %v12287_v40 = vadd.f32 %v4747_v21, %v17246_v46  ;;  %5118 = vmatprep.mubr.bf16.mxu0 %v16347_v48  ;;  %v17536_v49 = vpack.c.bf16 %v5750_v9, %v5742_v17  ;;  %5155 = vmatprep.subr.bf16.mxu0 %v11453_v0  ;;  %v11461_v21 = vcombine.high %v17505_v30, %v17510_v51  ;;  %v5745_v22 = vmax.f32 %v12285_v16, 0.0  ;;  %v1278_v9 = vld [vmem:[%s19926_s3 + $0xfd0] sm:$0xff]  ;;  %v17564_v56 = vld [vmem:[%s19926_s3 + $0xff8] sm:$0xff] }
 0x254   :  { %v5752_v23 = vmax.f32 %v12286_v45, 0.0  ;;  %5561 = vmatmul.mubr.bf16.gmra.mrb[56].mxu1 %v16343_v55  ;;  %v17541_v60 = vpack.c.bf16 %v5751_v12, %v5743_v5  ;;  %v4299_v61 = vpop.f32.mrb[16].mxu0  ;;  %v1282_v55 = vld [vmem:[%s19926_s3 + $0xff0] sm:$0xff] }
 0x255   :  { %v5753_v32 = vmax.f32 %v12287_v40, 0.0  ;;  %5570 = vmatprep.mubr.bf16.mxu1 %v16347_v48  ;;  %5606 = vmatpush1.bf16.msra.mxu1 %v11446_v3  ;;  %v12256_v0 = vadd.f32 %v4299_v61, %v17219_v15  ;;  %v4301_v16 = vpop.f32.mrb[17].mxu0  ;;  %v11463_v48 = vcombine.high %v17527_v37, %v1275_v42 }
 0x256   :  { %v17552_v39 = vpack.c.bf16 %v5752_v23, %v5744_v24  ;;  %5607 = vmatprep.subr.bf16.mxu1 %v11455_v63  ;;  %v12257_v17 = vadd.f32 %v4301_v16, %v17234_v54  ;;  %5156 = vmatpush1.bf16.msra.mxu0 %v11452_v18  ;;  %v4303_v45 = vpop.f32.mrb[18].mxu0  ;;  %v11460_v63 = vcombine.low %v17505_v30, %v17510_v51 }
 0x257   :  { %v17566_v25 = vpack.c.bf16 %v5753_v32, %v5745_v22  ;;  %v4751_v3 = vpop.f32.mrb[16].mxu1  ;;  %v12258_v40 = vadd.f32 %v4303_v45, %v17219_v15  ;;  %v4305_v24 = vpop.f32.mrb[19].mxu0  ;;  %5157 = vmatprep.subr.bf16.mxu0 %v11461_v21  ;;  %v11469_v23 = vcombine.high %v1278_v9, %v1282_v55  ;;  %v11462_v18 = vcombine.low %v17527_v37, %v1275_v42 }
 0x258   :  { %v12288_v5 = vadd.f32 %v4751_v3, %v17239_v31  ;;  %v4753_v12 = vpop.f32.mrb[17].mxu1  ;;  %v12259_v32 = vadd.f32 %v4305_v24, %v17234_v54  ;;  %v5758_v16 = vmax.f32 %v12256_v0, 0.0  ;;  %v11471_v21 = vcombine.high %v17559_v8, %v17564_v56 }
 0x259   :  { %v12289_v61 = vadd.f32 %v4753_v12, %v17246_v46  ;;  %v4755_v22 = vpop.f32.mrb[18].mxu1  ;;  %5608 = vmatpush1.bf16.msra.mxu1 %v11454_v53  ;;  %v5766_v33 = vmax.f32 %v12258_v40, 0.0  ;;  %5119 = vmatmul.mubr.bf16.gmra.mrb[60].mxu0 %v16379_v27  ;;  %v5759_v3 = vmax.f32 %v12257_v17, 0.0  ;;  %v11468_v53 = vcombine.low %v1278_v9, %v1282_v55 }
 0x25a   :  { %v12290_v30 = vadd.f32 %v4755_v22, %v17239_v31  ;;  %v4757_v51 = vpop.f32.mrb[19].mxu1  ;;  %5609 = vmatprep.subr.bf16.mxu1 %v11463_v48  ;;  %v5767_v45 = vmax.f32 %v12259_v32, 0.0  ;;  %5158 = vmatpush1.bf16.msra.mxu0 %v11460_v63  ;;  %v5760_v37 = vmax.f32 %v12288_v5, 0.0  ;;  %v13148_v48 = vld [vmem:[%s19929_s5 + $0x4] ss:$28 sps:$4 sm:$0xff]  }
 0x25b   :  { %v12291_v12 = vadd.f32 %v4757_v51, %v17246_v46  ;;  %5161 = vmatprep.mubr.bf16.mxu0 %v16383_v10  ;;  %v17582_v42 = vpack.c.bf16 %v5766_v33, %v5758_v16  ;;  %5159 = vmatprep.subr.bf16.mxu0 %v11469_v23  ;;  %v5761_v40 = vmax.f32 %v12289_v61, 0.0  ;;  %v11470_v33 = vcombine.low %v17559_v8, %v17564_v56  ;;  %v13151_v23 = vld [vmem:[%s19929_s5 + $0xc] ss:$28 sps:$4 sm:$0xff]  }
 0x25c   :  { %v5768_v0 = vmax.f32 %v12290_v30, 0.0  ;;  %5571 = vmatmul.mubr.bf16.gmra.mrb[60].mxu1 %v16379_v27  ;;  %v17588_v17 = vpack.c.bf16 %v5767_v45, %v5759_v3  ;;  %v4309_v63 = vpop.f32.mrb[20].mxu0  ;;  %v13146_v27 = vld [vmem:[%s19929_s5] ss:$28 sps:$4 sm:$0xff]   ;;  %v13149_v32 = vld [vmem:[%s19929_s5 + $0x8] ss:$28 sps:$4 sm:$0xff]  }
 0x25d   :  { %v5769_v24 = vmax.f32 %v12291_v12, 0.0  ;;  %5610 = vmatpush1.bf16.msra.mxu1 %v11462_v18  ;;  %5613 = vmatprep.mubr.bf16.mxu1 %v16383_v10  ;;  %v12260_v55 = vadd.f32 %v4309_v63, %v17219_v15  ;;  %v4311_v5 = vpop.f32.mrb[21].mxu0  ;;  %v13154_v10 = vld [vmem:[%s19929_s5 + $0x3c] ss:$28 sps:$4 sm:$0xff]  }
 0x25e   :  { %v17596_v9 = vpack.c.bf16 %v5768_v0, %v5760_v37  ;;  %5611 = vmatprep.subr.bf16.mxu1 %v11471_v21  ;;  %v12261_v56 = vadd.f32 %v4311_v5, %v17234_v54  ;;  %5160 = vmatpush1.bf16.msra.mxu0 %v11468_v53  ;;  %v4313_v22 = vpop.f32.mrb[22].mxu0  ;;  %v13157_v21 = vld [vmem:[%s19929_s5 + $0x44] ss:$28 sps:$4 sm:$0xff]   ;;  %v13152_v53 = vld [vmem:[%s19929_s5 + $0x38] ss:$28 sps:$4 sm:$0xff]  }
 0x25f   :  { %v17605_v61 = vpack.c.bf16 %v5769_v24, %v5761_v40  ;;  %v4761_v8 = vpop.f32.mrb[20].mxu1  ;;  %v12262_v30 = vadd.f32 %v4313_v22, %v17219_v15  ;;  %v4315_v51 = vpop.f32.mrb[23].mxu0  ;;  %8739 = vmatprep.subr.bf16.mxu0 %v13148_v48  ;;  %v5774_v37 = vmax.f32 %v12260_v55, 0.0  ;;  %v13160_v48 = vld [vmem:[%s19929_s5 + $0x74] ss:$28 sps:$4 sm:$0xff]  }
 0x260   :  { %20378 = vst [vmem:[#allocation7_spill] sm:$0xff] %v17596_v9  ;;  %v12292_v18 = vadd.f32 %v4761_v8, %v17239_v31  ;;  %v4763_v16 = vpop.f32.mrb[21].mxu1  ;;  %v12263_v12 = vadd.f32 %v4315_v51, %v17234_v54  ;;  %v5775_v63 = vmax.f32 %v12261_v56, 0.0  ;;  %v13155_v55 = vld [vmem:[%s19929_s5 + $0x40] ss:$28 sps:$4 sm:$0xff]  }
 0x261   :  { %20379 = vst [vmem:[#allocation16_spill] sm:$0xff] %v17605_v61  ;;  %v12293_v3 = vadd.f32 %v4763_v16, %v17246_v46  ;;  %v4765_v45 = vpop.f32.mrb[22].mxu1  ;;  %5612 = vmatpush1.bf16.msra.mxu1 %v11470_v33  ;;  %v5782_v0 = vmax.f32 %v12262_v30, 0.0  ;;  %5162 = vmatmul.mubr.bf16.vlgmr.msra.gmra.mrb[32].mxu0 %v16415_v6 }
 0x262   :  { %v12294_v40 = vadd.f32 %v4765_v45, %v17239_v31  ;;  %v4767_v24 = vpop.f32.mrb[23].mxu1  ;;  %9191 = vmatprep.subr.bf16.mxu1 %v13151_v23  ;;  %v5783_v33 = vmax.f32 %v12263_v12, 0.0  ;;  %5171 = vmatprep.mubr.bf16.mxu0 %v16419_v4  ;;  %v5776_v8 = vmax.f32 %v12292_v18, 0.0  ;;  %v13163_v23 = vld [vmem:[%s19929_s5 + $0x7c] ss:$28 sps:$4 sm:$0xff]  }
 0x263   :  { %v12295_v5 = vadd.f32 %v4767_v24, %v17246_v46  ;;  %8740 = vmatpush1.bf16.msra.mxu0 %v13146_v27  ;;  %v17631_v22 = vpack.c.bf16 %v5782_v0, %v5774_v37  ;;  %v5777_v56 = vmax.f32 %v12293_v3, 0.0  ;;  %v13158_v18 = vld [vmem:[%s19929_s5 + $0x70] ss:$28 sps:$4 sm:$0xff]   ;;  %v13161_v0 = vld [vmem:[%s19929_s5 + $0x78] ss:$28 sps:$4 sm:$0xff]  }
 0x264   :  { %v5784_v16 = vmax.f32 %v12294_v40, 0.0  ;;  %5614 = vmatmul.mubr.bf16.vlgmr.msra.gmra.mrb[32].mxu1 %v16415_v6  ;;  %8741 = vmatprep.subr.bf16.mxu0 %v13154_v10  ;;  %v17637_v30 = vpack.c.bf16 %v5783_v33, %v5775_v63  ;;  %v4319_v27 = vpop.f32.mrb[24].mxu0  ;;  %v13166_v3 = vld [vmem:[%s19929_s5 + $0xac] ss:$28 sps:$4 sm:$0xff]   ;;  %v13169_v33 = vld [vmem:[%s19929_s5 + $0xb4] ss:$28 sps:$4 sm:$0xff]  }
 0x265   :  { %v5785_v51 = vmax.f32 %v12295_v5, 0.0  ;;  %5623 = vmatprep.mubr.bf16.mxu1 %v16419_v4  ;;  %9192 = vmatpush1.bf16.msra.mxu1 %v13149_v32  ;;  %v12264_v6 = vadd.f32 %v4319_v27, %v17219_v15  ;;  %v4321_v10 = vpop.f32.mrb[25].mxu0 }
 0x266   :  { %v17643_v45 = vpack.c.bf16 %v5784_v16, %v5776_v8  ;;  %9193 = vmatprep.subr.bf16.mxu1 %v13157_v21  ;;  %v12265_v4 = vadd.f32 %v4321_v10, %v17234_v54  ;;  %v4323_v32 = vpop.f32.mrb[26].mxu0 }
 0x267   :  { %v17649_v12 = vpack.c.bf16 %v5785_v51, %v5777_v56  ;;  %v4771_v37 = vpop.f32.mrb[24].mxu1  ;;  %8742 = vmatpush1.bf16.msra.mxu0 %v13152_v53  ;;  %v12266_v21 = vadd.f32 %v4323_v32, %v17219_v15  ;;  %v4325_v63 = vpop.f32.mrb[27].mxu0  ;;  %v5790_v5 = vmax.f32 %v12264_v6, 0.0  ;;  %v13164_v51 = vld [vmem:[%s19929_s5 + $0xa8] ss:$28 sps:$4 sm:$0xff]  }
 0x268   :  { %20380 = vst [vmem:[#allocation32_spill] sm:$0xff] %v17643_v45  ;;  %v12296_v40 = vadd.f32 %v4771_v37, %v17239_v31  ;;  %v4773_v24 = vpop.f32.mrb[25].mxu1  ;;  %8743 = vmatprep.subr.bf16.mxu0 %v13160_v48  ;;  %v5791_v8 = vmax.f32 %v12265_v4, 0.0  ;;  %v12267_v56 = vadd.f32 %v4325_v63, %v17234_v54  ;;  %v13172_v6 = vld [vmem:[%s19929_s5 + $0xe4] ss:$28 sps:$4 sm:$0xff]  }
 0x269   :  { %20381 = vst [vmem:[#allocation51_spill] sm:$0xff] %v17649_v12  ;;  %v12297_v16 = vadd.f32 %v4773_v24, %v17246_v46  ;;  %v4775_v53 = vpop.f32.mrb[26].mxu1  ;;  %9194 = vmatpush1.bf16.msra.mxu1 %v13155_v55  ;;  %v5798_v10 = vmax.f32 %v12266_v21, 0.0  ;;  %5172 = vmatmul.mubr.bf16.gmra.mrb[36].mxu0 %v16451_v50 }
 0x26a   :  { %v5792_v27 = vmax.f32 %v12296_v40, 0.0  ;;  %v12298_v48 = vadd.f32 %v4775_v53, %v17239_v31  ;;  %v4777_v37 = vpop.f32.mrb[27].mxu1  ;;  %9195 = vmatprep.subr.bf16.mxu1 %v13163_v23  ;;  %v5799_v55 = vmax.f32 %v12267_v56, 0.0  ;;  %5181 = vmatprep.mubr.bf16.mxu0 %v16455_v41  ;;  %v13167_v40 = vld [vmem:[%s19929_s5 + $0xb0] ss:$28 sps:$4 sm:$0xff]  }
 0x26b   :  { %v5793_v4 = vmax.f32 %v12297_v16, 0.0  ;;  %v12299_v32 = vadd.f32 %v4777_v37, %v17246_v46  ;;  %8744 = vmatpush1.bf16.msra.mxu0 %v13158_v18  ;;  %v17675_v24 = vpack.c.bf16 %v5798_v10, %v5790_v5  ;;  %v13175_v23 = vld [vmem:[%s19929_s5 + $0xec] ss:$28 sps:$4 sm:$0xff]   ;;  %v13170_v5 = vld [vmem:[%s19929_s5 + $0xe0] ss:$28 sps:$4 sm:$0xff]  }
 0x26c   :  { %v5800_v21 = vmax.f32 %v12298_v48, 0.0  ;;  %5624 = vmatmul.mubr.bf16.gmra.mrb[36].mxu1 %v16451_v50  ;;  %8745 = vmatprep.subr.bf16.mxu0 %v13166_v3  ;;  %v17681_v63 = vpack.c.bf16 %v5799_v55, %v5791_v8  ;;  %v4329_v18 = vpop.f32.mrb[28].mxu0  ;;  %v13178_v8 = vld [vmem:[%s19929_s5 + $0x11c] ss:$28 sps:$4 sm:$0xff]  }
 0x26d   :  { %v5801_v16 = vmax.f32 %v12299_v32, 0.0  ;;  %5633 = vmatprep.mubr.bf16.mxu1 %v16455_v41  ;;  %9196 = vmatpush1.bf16.msra.mxu1 %v13161_v0  ;;  %v12268_v50 = vadd.f32 %v4329_v18, %v17219_v15  ;;  %v4331_v3 = vpop.f32.mrb[29].mxu0  ;;  %v13176_v18 = vld [vmem:[%s19929_s5 + $0x118] ss:$28 sps:$4 sm:$0xff]  }
 0x26e   :  { %v17687_v53 = vpack.c.bf16 %v5800_v21, %v5792_v27  ;;  %9197 = vmatprep.subr.bf16.mxu1 %v13169_v33  ;;  %v12269_v41 = vadd.f32 %v4331_v3, %v17234_v54  ;;  %v4333_v0 = vpop.f32.mrb[30].mxu0  ;;  %v13173_v27 = vld [vmem:[%s19929_s5 + $0xe8] ss:$28 sps:$4 sm:$0xff]  }
 0x26f   :  { %v17693_v56 = vpack.c.bf16 %v5801_v16, %v5793_v4  ;;  %v4781_v10 = vpop.f32.mrb[28].mxu1  ;;  %8746 = vmatpush1.bf16.msra.mxu0 %v13164_v51  ;;  %v12270_v33 = vadd.f32 %v4333_v0, %v17219_v15  ;;  %v4335_v55 = vpop.f32.mrb[31].mxu0  ;;  %v13181_v4 = vld [vmem:[%s19929_s5 + $0x124] ss:$28 sps:$4 sm:$0xff]   ;;  %v5806_v32 = vmax.f32 %v12268_v50, 0.0 }
 0x270   :  { %20382 = vst [vmem:[#allocation52_spill] sm:$0xff] %v17687_v53  ;;  %v12300_v48 = vadd.f32 %v4781_v10, %v17239_v31  ;;  %v4783_v37 = vpop.f32.mrb[29].mxu1  ;;  %8747 = vmatprep.subr.bf16.mxu0 %v13172_v6  ;;  %v12271_v51 = vadd.f32 %v4335_v55, %v17234_v54  ;;  %v5807_v3 = vmax.f32 %v12269_v41, 0.0  ;;  %v13184_v50 = vld [vmem:[%s19929_s5 + $0x154] ss:$28 sps:$4 sm:$0xff]  }
 0x271   :  { %20383 = vst [vmem:[#allocation4_spill] sm:$0xff] %v17693_v56  ;;  %v12301_v21 = vadd.f32 %v4783_v37, %v17246_v46  ;;  %v4785_v16 = vpop.f32.mrb[30].mxu1  ;;  %9198 = vmatpush1.bf16.msra.mxu1 %v13167_v40  ;;  %v5814_v10 = vmax.f32 %v12270_v33, 0.0  ;;  %5182 = vmatmul.mubr.bf16.gmra.mrb[40].mxu0 %v16487_v29  ;;  %v13179_v41 = vld [vmem:[%s19929_s5 + $0x120] ss:$28 sps:$4 sm:$0xff]  }
 0x272   :  { %v12302_v15 = vadd.f32 %v4785_v16, %v17239_v31  ;;  %v4787_v6 = vpop.f32.mrb[31].mxu1  ;;  %9199 = vmatprep.subr.bf16.mxu1 %v13175_v23  ;;  %v5808_v0 = vmax.f32 %v12300_v48, 0.0  ;;  %v5815_v40 = vmax.f32 %v12271_v51, 0.0  ;;  %5191 = vmatprep.mubr.bf16.mxu0 %v16491_v35  ;;  %v13187_v23 = vld [vmem:[%s19929_s5 + $0x15c] ss:$28 sps:$4 sm:$0xff]  }
 0x273   :  { %v12303_v54 = vadd.f32 %v4787_v6, %v17246_v46  ;;  %8748 = vmatpush1.bf16.msra.mxu0 %v13170_v5  ;;  %v17719_v31 = vpack.c.bf16 %v5814_v10, %v5806_v32  ;;  %v5809_v48 = vmax.f32 %v12301_v21, 0.0  ;;  %v13182_v5 = vld [vmem:[%s19929_s5 + $0x150] ss:$28 sps:$4 sm:$0xff]   ;;  %v13185_v32 = vld [vmem:[%s19929_s5 + $0x158] ss:$28 sps:$4 sm:$0xff]  }
 0x274   :  { %v5816_v37 = vmax.f32 %v12302_v15, 0.0  ;;  %5634 = vmatmul.mubr.bf16.gmra.mrb[40].mxu1 %v16487_v29  ;;  %8749 = vmatprep.subr.bf16.mxu0 %v13178_v8  ;;  %v17725_v33 = vpack.c.bf16 %v5815_v40, %v5807_v3  ;;  %v13190_v29 = vld [vmem:[%s19929_s5 + $0x18c] ss:$28 sps:$4 sm:$0xff]   ;;  %v13194_v16 = vld [vmem:[%s19929_s5 + $0x1c0] ss:$28 sps:$4 sm:$0xff]  }
 0x275   :  { %v5817_v46 = vmax.f32 %v12303_v54, 0.0  ;;  %5643 = vmatprep.mubr.bf16.mxu1 %v16491_v35  ;;  %9200 = vmatpush1.bf16.msra.mxu1 %v13173_v27  ;;  %v13193_v35 = vld [vmem:[%s19929_s5 + $0x194] ss:$28 sps:$4 sm:$0xff]   ;;  %v13188_v27 = vld [vmem:[%s19929_s5 + $0x188] ss:$28 sps:$4 sm:$0xff]  }
 0x276   :  { %v17731_v55 = vpack.c.bf16 %v5816_v37, %v5808_v0  ;;  %9201 = vmatprep.subr.bf16.mxu1 %v13181_v4  ;;  %v13196_v4 = vld [vmem:[%s19929_s5 + $0x1c4] ss:$28 sps:$4 sm:$0xff]   ;;  %v13191_v21 = vld [vmem:[%s19929_s5 + $0x190] ss:$28 sps:$4 sm:$0xff]   ;;  %v13200_v3 = vld [vmem:[%s19929_s5 + $0x1f8] ss:$28 sps:$4 sm:$0xff]  }
 0x277   :  { %v17736_v8 = vpack.c.bf16 %v5817_v46, %v5809_v48  ;;  %8750 = vmatpush1.bf16.msra.mxu0 %v13176_v18  ;;  %v13199_v51 = vld [vmem:[%s19929_s5 + $0x1cc] ss:$28 sps:$4 sm:$0xff]   ;;  %v13205_v18 = vld [vmem:[%s19929_s5 + $0x204] ss:$28 sps:$4 sm:$0xff]   ;;  %v13208_v10 = vld [vmem:[%s19929_s5 + $0x234] ss:$28 sps:$4 sm:$0xff]  }
 0x278   :  { %20384 = vst [vmem:[#allocation19_spill] sm:$0xff] %v17731_v55  ;;  %8751 = vmatprep.subr.bf16.mxu0 %v13184_v50  ;;  %v13203_v15 = vld [vmem:[%s19929_s5 + $0x200] ss:$28 sps:$4 sm:$0xff]   ;;  %v13206_v6 = vld [vmem:[%s19929_s5 + $0x230] ss:$28 sps:$4 sm:$0xff]  }
 0x279   :  { %20385 = vst [vmem:[#allocation38_spill] sm:$0xff] %v17736_v8  ;;  %9202 = vmatpush1.bf16.msra.mxu1 %v13179_v41  ;;  %5192 = vmatmul.mubr.bf16.gmra.mrb[44].mxu0 %v16523_v14  ;;  %v13211_v50 = vld [vmem:[%s19929_s5 + $0x23c] ss:$28 sps:$4 sm:$0xff]   ;;  %v13217_v0 = vld [vmem:[%s19929_s5 + $0x274] ss:$28 sps:$4 sm:$0xff]  }
 0x27a   :  { %9203 = vmatprep.subr.bf16.mxu1 %v13187_v23  ;;  %5201 = vmatprep.mubr.bf16.mxu0 %v16527_v38  ;;  %v13212_v40 = vld [vmem:[%s19929_s5 + $0x268] ss:$28 sps:$4 sm:$0xff]   ;;  %v13215_v41 = vld [vmem:[%s19929_s5 + $0x270] ss:$28 sps:$4 sm:$0xff]   ;;  %v13218_v37 = vld [vmem:[%s19929_s5 + $0x2a0] ss:$28 sps:$4 sm:$0xff]  }
 0x27b   :  { %8752 = vmatpush1.bf16.msra.mxu0 %v13182_v5  ;;  %v13220_v54 = vld [vmem:[%s19929_s5 + $0x2a4] ss:$28 sps:$4 sm:$0xff]   ;;  %v13223_v23 = vld [vmem:[%s19929_s5 + $0x2ac] ss:$28 sps:$4 sm:$0xff]   ;;  %v13224_v46 = vld [vmem:[%s19929_s5 + $0x2d8] ss:$28 sps:$4 sm:$0xff]  }
 0x27c   :  { %5644 = vmatmul.mubr.bf16.gmra.mrb[44].mxu1 %v16523_v14  ;;  %8753 = vmatprep.subr.bf16.mxu0 %v13190_v29  ;;  %v13202_v14 = vld [vmem:[%s19929_s5 + $0x1fc] ss:$28 sps:$4 sm:$0xff]   ;;  %v13229_v48 = vld [vmem:[%s19929_s5 + $0x2e4] ss:$28 sps:$4 sm:$0xff]   ;;  %v13232_v5 = vld [vmem:[%s19929_s5 + $0x314] ss:$28 sps:$4 sm:$0xff]  }
 0x27d   :  { %5653 = vmatprep.mubr.bf16.mxu1 %v16527_v38  ;;  %9204 = vmatpush1.bf16.msra.mxu1 %v13185_v32  ;;  %v13197_v38 = vld [vmem:[%s19929_s5 + $0x1c8] ss:$28 sps:$4 sm:$0xff]   ;;  %v13227_v29 = vld [vmem:[%s19929_s5 + $0x2e0] ss:$28 sps:$4 sm:$0xff]   ;;  %v13230_v32 = vld [vmem:[%s19929_s5 + $0x310] ss:$28 sps:$4 sm:$0xff]  }
 0x27e   :  { %9205 = vmatprep.subr.bf16.mxu1 %v13193_v35  ;;  %v13235_v35 = vld [vmem:[%s19929_s5 + $0x31c] ss:$28 sps:$4 sm:$0xff]  }
 0x27f   :  { %8754 = vmatpush1.bf16.msra.mxu0 %v13188_v27  ;;  %v13241_v27 = vld [vmem:[%s19929_s5 + $0x354] ss:$28 sps:$4 sm:$0xff]  }
 0x280   :  { %8755 = vmatprep.subr.bf16.mxu0 %v13196_v4  ;;  %v13236_v4 = vld [vmem:[%s19929_s5 + $0x348] ss:$28 sps:$4 sm:$0xff]  }
 0x281   :  { %9206 = vmatpush1.bf16.msra.mxu1 %v13191_v21  ;;  %5202 = vmatmul.mubr.bf16.gmra.mrb[48].mxu0 %v16559_v19  ;;  %v13244_v21 = vld [vmem:[%s19929_s5 + $0x384] ss:$28 sps:$4 sm:$0xff]  }
 0x282   :  { %9207 = vmatprep.subr.bf16.mxu1 %v13199_v51  ;;  %5211 = vmatprep.mubr.bf16.mxu0 %v16563_v34  ;;  %v13247_v51 = vld [vmem:[%s19929_s5 + $0x38c] ss:$28 sps:$4 sm:$0xff]  }
 0x283   :  { %8756 = vmatpush1.bf16.msra.mxu0 %v13194_v16  ;;  %v13239_v16 = vld [vmem:[%s19929_s5 + $0x350] ss:$28 sps:$4 sm:$0xff]  }
 0x284   :  { %5654 = vmatmul.mubr.bf16.gmra.mrb[48].mxu1 %v16559_v19  ;;  %8757 = vmatprep.subr.bf16.mxu0 %v13202_v14  ;;  %v13209_v19 = vld [vmem:[%s19929_s5 + $0x238] ss:$28 sps:$4 sm:$0xff]  }
 0x285   :  { %5663 = vmatprep.mubr.bf16.mxu1 %v16563_v34  ;;  %9208 = vmatpush1.bf16.msra.mxu1 %v13197_v38  ;;  %v13214_v34 = vld [vmem:[%s19929_s5 + $0x26c] ss:$28 sps:$4 sm:$0xff]   ;;  %v13250_v14 = vld [vmem:[%s19929_s5 + $0x3bc] ss:$28 sps:$4 sm:$0xff]  }
 0x286   :  { %9209 = vmatprep.subr.bf16.mxu1 %v13205_v18  ;;  %v13245_v38 = vld [vmem:[%s19929_s5 + $0x388] ss:$28 sps:$4 sm:$0xff]  }
 0x287   :  { %8758 = vmatpush1.bf16.msra.mxu0 %v13200_v3  ;;  %v13253_v18 = vld [vmem:[%s19929_s5 + $0x3c4] ss:$28 sps:$4 sm:$0xff]   ;;  %v13248_v3 = vld [vmem:[%s19929_s5 + $0x3b8] ss:$28 sps:$4 sm:$0xff]  }
 0x288   :  { %8759 = vmatprep.subr.bf16.mxu0 %v13208_v10  ;;  %v13251_v10 = vld [vmem:[%s19929_s5 + $0x3c0] ss:$28 sps:$4 sm:$0xff]  }
 0x289   :  { %9210 = vmatpush1.bf16.msra.mxu1 %v13203_v15  ;;  %5212 = vmatmul.mubr.bf16.gmra.mrb[52].mxu0 %v16595_v47  ;;  %v13256_v15 = vld [vmem:[%s19929_s5 + $0x3f4] ss:$28 sps:$4 sm:$0xff]  }
 0x28a   :  { %9211 = vmatprep.subr.bf16.mxu1 %v13211_v50  ;;  %5221 = vmatprep.mubr.bf16.mxu0 %v16599_v36  ;;  %v13259_v50 = vld [vmem:[%s19929_s5 + $0x3fc] ss:$28 sps:$4 sm:$0xff]  }
 0x28b   :  { %8760 = vmatpush1.bf16.msra.mxu0 %v13206_v6  ;;  %v13254_v6 = vld [vmem:[%s19929_s5 + $0x3f0] ss:$28 sps:$4 sm:$0xff]  }
 0x28c   :  { %5664 = vmatmul.mubr.bf16.gmra.mrb[52].mxu1 %v16595_v47  ;;  %8761 = vmatprep.subr.bf16.mxu0 %v13214_v34  ;;  %v13221_v47 = vld [vmem:[%s19929_s5 + $0x2a8] ss:$28 sps:$4 sm:$0xff]   ;;  %v13257_v34 = vld [vmem:[%s19929_s5 + $0x3f8] ss:$28 sps:$4 sm:$0xff]  }
 0x28d   :  { %5673 = vmatprep.mubr.bf16.mxu1 %v16599_v36  ;;  %9212 = vmatpush1.bf16.msra.mxu1 %v13209_v19  ;;  %v13226_v36 = vld [vmem:[%s19929_s5 + $0x2dc] ss:$28 sps:$4 sm:$0xff]   ;;  %v13262_v19 = vld [vmem:[%s19929_s5 + $0x42c] ss:$28 sps:$4 sm:$0xff]  }
 0x28e   :  { %9213 = vmatprep.subr.bf16.mxu1 %v13217_v0  ;;  %v13265_v0 = vld [vmem:[%s19929_s5 + $0x434] ss:$28 sps:$4 sm:$0xff]  }
 0x28f   :  { %8762 = vmatpush1.bf16.msra.mxu0 %v13212_v40  ;;  %v13260_v40 = vld [vmem:[%s19929_s5 + $0x428] ss:$28 sps:$4 sm:$0xff]  }
 0x290   :  { %8763 = vmatprep.subr.bf16.mxu0 %v13220_v54  ;;  %v13268_v54 = vld [vmem:[%s19929_s5 + $0x464] ss:$28 sps:$4 sm:$0xff]  }
 0x291   :  { %9214 = vmatpush1.bf16.msra.mxu1 %v13215_v41  ;;  %5222 = vmatmul.mubr.bf16.gmra.mrb[56].mxu0 %v16631_v2  ;;  %v13263_v41 = vld [vmem:[%s19929_s5 + $0x430] ss:$28 sps:$4 sm:$0xff]  }
 0x292   :  { %9215 = vmatprep.subr.bf16.mxu1 %v13223_v23  ;;  %5231 = vmatprep.mubr.bf16.mxu0 %v16635_v43  ;;  %v13266_v23 = vld [vmem:[%s19929_s5 + $0x460] ss:$28 sps:$4 sm:$0xff]  }
 0x293   :  { %8764 = vmatpush1.bf16.msra.mxu0 %v13218_v37  ;;  %v13271_v37 = vld [vmem:[%s19929_s5 + $0x46c] ss:$28 sps:$4 sm:$0xff]  }
 0x294   :  { %5674 = vmatmul.mubr.bf16.gmra.mrb[56].mxu1 %v16631_v2  ;;  %8765 = vmatprep.subr.bf16.mxu0 %v13226_v36  ;;  %v13233_v2 = vld [vmem:[%s19929_s5 + $0x318] ss:$28 sps:$4 sm:$0xff]   ;;  %v13269_v36 = vld [vmem:[%s19929_s5 + $0x468] ss:$28 sps:$4 sm:$0xff]  }
 0x295   :  { %5683 = vmatprep.mubr.bf16.mxu1 %v16635_v43  ;;  %9216 = vmatpush1.bf16.msra.mxu1 %v13221_v47  ;;  %v13238_v43 = vld [vmem:[%s19929_s5 + $0x34c] ss:$28 sps:$4 sm:$0xff]   ;;  %v13274_v47 = vld [vmem:[%s19929_s5 + $0x49c] ss:$28 sps:$4 sm:$0xff]  }
 0x296   :  { %9217 = vmatprep.subr.bf16.mxu1 %v13229_v48  ;;  %v13277_v48 = vld [vmem:[%s19929_s5 + $0x4a4] ss:$28 sps:$4 sm:$0xff]  }
 0x297   :  { %8766 = vmatpush1.bf16.msra.mxu0 %v13224_v46  ;;  %v13272_v46 = vld [vmem:[%s19929_s5 + $0x498] ss:$28 sps:$4 sm:$0xff]  }
 0x298   :  { %8767 = vmatprep.subr.bf16.mxu0 %v13232_v5  ;;  %v13280_v5 = vld [vmem:[%s19929_s5 + $0x4d4] ss:$28 sps:$4 sm:$0xff]  }
 0x299   :  { %9218 = vmatpush1.bf16.msra.mxu1 %v13227_v29  ;;  %5232 = vmatmul.mubr.bf16.gmra.mrb[60].mxu0 %v16667_v62  ;;  %v13275_v29 = vld [vmem:[%s19929_s5 + $0x4a0] ss:$28 sps:$4 sm:$0xff]  }
 0x29a   :  { %9219 = vmatprep.subr.bf16.mxu1 %v13235_v35  ;;  %8771 = vmatprep.mubr.bf16.mxu0 %v17315_v13  ;;  %v13278_v35 = vld [vmem:[%s19929_s5 + $0x4d0] ss:$28 sps:$4 sm:$0xff]  }
 0x29b   :  { %8768 = vmatpush1.bf16.msra.mxu0 %v13230_v32  ;;  %v13283_v32 = vld [vmem:[%s19929_s5 + $0x4dc] ss:$28 sps:$4 sm:$0xff]  }
 0x29c   :  { %5684 = vmatmul.mubr.bf16.gmra.mrb[60].mxu1 %v16667_v62  ;;  %8769 = vmatprep.subr.bf16.mxu0 %v13238_v43  ;;  %v13242_v62 = vld [vmem:[%s19929_s5 + $0x380] ss:$28 sps:$4 sm:$0xff]   ;;  %v13281_v43 = vld [vmem:[%s19929_s5 + $0x4d8] ss:$28 sps:$4 sm:$0xff]  }
 0x29d   :  { %9220 = vmatpush1.bf16.msra.mxu1 %v13233_v2  ;;  %9223 = vmatprep.mubr.bf16.mxu1 %v17315_v13  ;;  %v13286_v2 = vld [vmem:[%s19929_s5 + $0x50c] ss:$28 sps:$4 sm:$0xff]  }
 0x29e   :  { %9221 = vmatprep.subr.bf16.mxu1 %v13241_v27  ;;  %v13289_v27 = vld [vmem:[%s19929_s5 + $0x514] ss:$28 sps:$4 sm:$0xff]  }
 0x29f   :  { %8770 = vmatpush1.bf16.msra.mxu0 %v13236_v4  ;;  %v13284_v4 = vld [vmem:[%s19929_s5 + $0x508] ss:$28 sps:$4 sm:$0xff]  }
 0x2a0   :  { %8852 = vmatprep.subr.bf16.mxu0 %v13244_v21  ;;  %v13292_v21 = vld [vmem:[%s19929_s5 + $0x544] ss:$28 sps:$4 sm:$0xff]  }
 0x2a1   :  { %9222 = vmatpush1.bf16.msra.mxu1 %v13239_v16  ;;  %v13287_v16 = vld [vmem:[%s19929_s5 + $0x510] ss:$28 sps:$4 sm:$0xff]  }
 0x2a2   :  { %8772 = vmatmul.mubr.bf16.vlgmr.msra.gmra.mrb[64].mxu0 %v17310_v11  ;;  %9304 = vmatprep.subr.bf16.mxu1 %v13247_v51  ;;  %v13295_v51 = vld [vmem:[%s19929_s5 + $0x54c] ss:$28 sps:$4 sm:$0xff]  }
 0x2a3   :  { %8781 = vmatprep.mubr.bf16.mxu0 %v17391_v1  ;;  %8853 = vmatpush1.bf16.msra.mxu0 %v13242_v62  ;;  %v13290_v62 = vld [vmem:[%s19929_s5 + $0x540] ss:$28 sps:$4 sm:$0xff]  }
 0x2a4   :  { %9224 = vmatmul.mubr.bf16.vlgmr.msra.gmra.mrb[64].mxu1 %v17310_v11  ;;  %8854 = vmatprep.subr.bf16.mxu0 %v13250_v14  ;;  %v13293_v14 = vld [vmem:[%s19929_s5 + $0x548] ss:$28 sps:$4 sm:$0xff]  }
 0x2a5   :  { %9233 = vmatprep.mubr.bf16.mxu1 %v17391_v1  ;;  %9305 = vmatpush1.bf16.msra.mxu1 %v13245_v38  ;;  %v13298_v38 = vld [vmem:[%s19929_s5 + $0x57c] ss:$28 sps:$4 sm:$0xff]  }
 0x2a6   :  { %9306 = vmatprep.subr.bf16.mxu1 %v13253_v18  ;;  %v13301_v18 = vld [vmem:[%s19929_s5 + $0x584] ss:$28 sps:$4 sm:$0xff]  }
 0x2a7   :  { %8855 = vmatpush1.bf16.msra.mxu0 %v13248_v3  ;;  %v13296_v3 = vld [vmem:[%s19929_s5 + $0x578] ss:$28 sps:$4 sm:$0xff]  }
 0x2a8   :  { %8856 = vmatprep.subr.bf16.mxu0 %v13256_v15  ;;  %v13299_v15 = vld [vmem:[%s19929_s5 + $0x580] ss:$28 sps:$4 sm:$0xff]  }
 0x2a9   :  { %9307 = vmatpush1.bf16.msra.mxu1 %v13251_v10  ;;  %v13304_v10 = vld [vmem:[%s19929_s5 + $0x5b4] ss:$28 sps:$4 sm:$0xff]  }
 0x2aa   :  { %8782 = vmatmul.mubr.bf16.gmra.mrb[68].mxu0 %v17386_v20  ;;  %9308 = vmatprep.subr.bf16.mxu1 %v13259_v50  ;;  %v13302_v50 = vld [vmem:[%s19929_s5 + $0x5b0] ss:$28 sps:$4 sm:$0xff]  }
 0x2ab   :  { %8791 = vmatprep.mubr.bf16.mxu0 %v17467_v52  ;;  %8857 = vmatpush1.bf16.msra.mxu0 %v13254_v6  ;;  %v13307_v6 = vld [vmem:[%s19929_s5 + $0x5bc] ss:$28 sps:$4 sm:$0xff]  }
 0x2ac   :  { %9234 = vmatmul.mubr.bf16.gmra.mrb[68].mxu1 %v17386_v20  ;;  %8858 = vmatprep.subr.bf16.mxu0 %v13262_v19  ;;  %v13305_v19 = vld [vmem:[%s19929_s5 + $0x5b8] ss:$28 sps:$4 sm:$0xff]  }
 0x2ad   :  { %9243 = vmatprep.mubr.bf16.mxu1 %v17467_v52  ;;  %9309 = vmatpush1.bf16.msra.mxu1 %v13257_v34  ;;  %v13310_v34 = vld [vmem:[%s19929_s5 + $0x5ec] ss:$28 sps:$4 sm:$0xff]  }
 0x2ae   :  { %9310 = vmatprep.subr.bf16.mxu1 %v13265_v0  ;;  %v13313_v0 = vld [vmem:[%s19929_s5 + $0x5f4] ss:$28 sps:$4 sm:$0xff]  }
 0x2af   :  { %8859 = vmatpush1.bf16.msra.mxu0 %v13260_v40  ;;  %v13308_v40 = vld [vmem:[%s19929_s5 + $0x5e8] ss:$28 sps:$4 sm:$0xff]  }
 0x2b0   :  { %8860 = vmatprep.subr.bf16.mxu0 %v13268_v54  ;;  %v13316_v54 = vld [vmem:[%s19929_s5 + $0x624] ss:$28 sps:$4 sm:$0xff]  }
 0x2b1   :  { %9311 = vmatpush1.bf16.msra.mxu1 %v13263_v41  ;;  %v13311_v41 = vld [vmem:[%s19929_s5 + $0x5f0] ss:$28 sps:$4 sm:$0xff]  }
 0x2b2   :  { %8792 = vmatmul.mubr.bf16.gmra.mrb[72].mxu0 %v17462_v57  ;;  %9312 = vmatprep.subr.bf16.mxu1 %v13271_v37  ;;  %v13319_v37 = vld [vmem:[%s19929_s5 + $0x62c] ss:$28 sps:$4 sm:$0xff]  }
 0x2b3   :  { %8801 = vmatprep.mubr.bf16.mxu0 %v17541_v60  ;;  %8861 = vmatpush1.bf16.msra.mxu0 %v13266_v23  ;;  %v13314_v23 = vld [vmem:[%s19929_s5 + $0x620] ss:$28 sps:$4 sm:$0xff]  }
 0x2b4   :  { %9244 = vmatmul.mubr.bf16.gmra.mrb[72].mxu1 %v17462_v57  ;;  %8862 = vmatprep.subr.bf16.mxu0 %v13274_v47  ;;  %v13317_v47 = vld [vmem:[%s19929_s5 + $0x628] ss:$28 sps:$4 sm:$0xff]  }
 0x2b5   :  { %9253 = vmatprep.mubr.bf16.mxu1 %v17541_v60  ;;  %9313 = vmatpush1.bf16.msra.mxu1 %v13269_v36  ;;  %v13322_v36 = vld [vmem:[%s19929_s5 + $0x65c] ss:$28 sps:$4 sm:$0xff]  }
 0x2b6   :  { %9314 = vmatprep.subr.bf16.mxu1 %v13277_v48  ;;  %v13325_v48 = vld [vmem:[%s19929_s5 + $0x664] ss:$28 sps:$4 sm:$0xff]  }
 0x2b7   :  { %8863 = vmatpush1.bf16.msra.mxu0 %v13272_v46  ;;  %v13320_v46 = vld [vmem:[%s19929_s5 + $0x658] ss:$28 sps:$4 sm:$0xff]  }
 0x2b8   :  { %8864 = vmatprep.subr.bf16.mxu0 %v13280_v5  ;;  %v13328_v5 = vld [vmem:[%s19929_s5 + $0x694] ss:$28 sps:$4 sm:$0xff]  }
 0x2b9   :  { %9315 = vmatpush1.bf16.msra.mxu1 %v13275_v29  ;;  %v13323_v29 = vld [vmem:[%s19929_s5 + $0x660] ss:$28 sps:$4 sm:$0xff]  }
 0x2ba   :  { %8802 = vmatmul.mubr.bf16.gmra.mrb[76].mxu0 %v17536_v49  ;;  %9316 = vmatprep.subr.bf16.mxu1 %v13283_v32  ;;  %v13331_v32 = vld [vmem:[%s19929_s5 + $0x69c] ss:$28 sps:$4 sm:$0xff]  }
 0x2bb   :  { %8811 = vmatprep.mubr.bf16.mxu0 %v17588_v17  ;;  %8865 = vmatpush1.bf16.msra.mxu0 %v13278_v35  ;;  %v13326_v35 = vld [vmem:[%s19929_s5 + $0x690] ss:$28 sps:$4 sm:$0xff]  }
 0x2bc   :  { %9254 = vmatmul.mubr.bf16.gmra.mrb[76].mxu1 %v17536_v49  ;;  %8866 = vmatprep.subr.bf16.mxu0 %v13286_v2  ;;  %v13329_v2 = vld [vmem:[%s19929_s5 + $0x698] ss:$28 sps:$4 sm:$0xff]  }
 0x2bd   :  { %9263 = vmatprep.mubr.bf16.mxu1 %v17588_v17  ;;  %9317 = vmatpush1.bf16.msra.mxu1 %v13281_v43  ;;  %v13334_v43 = vld [vmem:[%s19929_s5 + $0x6cc] ss:$28 sps:$4 sm:$0xff]  }
 0x2be   :  { %9318 = vmatprep.subr.bf16.mxu1 %v13289_v27  ;;  %v13337_v27 = vld [vmem:[%s19929_s5 + $0x6d4] ss:$28 sps:$4 sm:$0xff]  }
 0x2bf   :  { %8867 = vmatpush1.bf16.msra.mxu0 %v13284_v4  ;;  %v13332_v4 = vld [vmem:[%s19929_s5 + $0x6c8] ss:$28 sps:$4 sm:$0xff]  }
 0x2c0   :  { %8868 = vmatprep.subr.bf16.mxu0 %v13292_v21  ;;  %v13343_v21 = vld [vmem:[%s19929_s5 + $0x704] ss:$28 sps:$4 sm:$0xff]  }
 0x2c1   :  { %9319 = vmatpush1.bf16.msra.mxu1 %v13287_v16  ;;  %v13335_v16 = vld [vmem:[%s19929_s5 + $0x6d0] ss:$28 sps:$4 sm:$0xff]  }
 0x2c2   :  { %8812 = vmatmul.mubr.bf16.gmra.mrb[80].mxu0 %v17582_v42  ;;  %9320 = vmatprep.subr.bf16.mxu1 %v13295_v51  ;;  %v13340_v51 = vld [vmem:[%s19929_s5 + $0x70c] ss:$28 sps:$4 sm:$0xff]  }
 0x2c3   :  { %8821 = vmatprep.mubr.bf16.mxu0 %v17637_v30  ;;  %8869 = vmatpush1.bf16.msra.mxu0 %v13290_v62  ;;  %v13341_v62 = vld [vmem:[%s19929_s5 + $0x700] ss:$28 sps:$4 sm:$0xff]  }
 0x2c4   :  { %9264 = vmatmul.mubr.bf16.gmra.mrb[80].mxu1 %v17582_v42  ;;  %8870 = vmatprep.subr.bf16.mxu0 %v13298_v38  ;;  %v13338_v38 = vld [vmem:[%s19929_s5 + $0x708] ss:$28 sps:$4 sm:$0xff]  }
 0x2c5   :  { %9273 = vmatprep.mubr.bf16.mxu1 %v17637_v30  ;;  %9321 = vmatpush1.bf16.msra.mxu1 %v13293_v14  ;;  %v13349_v14 = vld [vmem:[%s19929_s5 + $0x73c] ss:$28 sps:$4 sm:$0xff]  }
 0x2c6   :  { %9322 = vmatprep.subr.bf16.mxu1 %v13301_v18  ;;  %v13346_v18 = vld [vmem:[%s19929_s5 + $0x744] ss:$28 sps:$4 sm:$0xff]  }
 0x2c7   :  { %8871 = vmatpush1.bf16.msra.mxu0 %v13296_v3  ;;  %v13347_v3 = vld [vmem:[%s19929_s5 + $0x738] ss:$28 sps:$4 sm:$0xff]  }
 0x2c8   :  { %8872 = vmatprep.subr.bf16.mxu0 %v13304_v10  ;;  %v13355_v10 = vld [vmem:[%s19929_s5 + $0x774] ss:$28 sps:$4 sm:$0xff]  }
 0x2c9   :  { %9323 = vmatpush1.bf16.msra.mxu1 %v13299_v15  ;;  %v13344_v15 = vld [vmem:[%s19929_s5 + $0x740] ss:$28 sps:$4 sm:$0xff]  }
 0x2ca   :  { %8822 = vmatmul.mubr.bf16.gmra.mrb[84].mxu0 %v17631_v22  ;;  %9324 = vmatprep.subr.bf16.mxu1 %v13307_v6  ;;  %v13352_v6 = vld [vmem:[%s19929_s5 + $0x77c] ss:$28 sps:$4 sm:$0xff]  }
 0x2cb   :  { %8831 = vmatprep.mubr.bf16.mxu0 %v17681_v63  ;;  %8873 = vmatpush1.bf16.msra.mxu0 %v13302_v50  ;;  %v13353_v50 = vld [vmem:[%s19929_s5 + $0x770] ss:$28 sps:$4 sm:$0xff]  }
 0x2cc   :  { %9274 = vmatmul.mubr.bf16.gmra.mrb[84].mxu1 %v17631_v22  ;;  %8874 = vmatprep.subr.bf16.mxu0 %v13310_v34  ;;  %v13350_v34 = vld [vmem:[%s19929_s5 + $0x778] ss:$28 sps:$4 sm:$0xff]  }
 0x2cd   :  { %9283 = vmatprep.mubr.bf16.mxu1 %v17681_v63  ;;  %9325 = vmatpush1.bf16.msra.mxu1 %v13305_v19  ;;  %v13361_v19 = vld [vmem:[%s19929_s5 + $0x7ac] ss:$28 sps:$4 sm:$0xff]  }
 0x2ce   :  { %9326 = vmatprep.subr.bf16.mxu1 %v13313_v0  ;;  %v13358_v0 = vld [vmem:[%s19929_s5 + $0x7b4] ss:$28 sps:$4 sm:$0xff]  }
 0x2cf   :  { %8875 = vmatpush1.bf16.msra.mxu0 %v13308_v40  ;;  %v13359_v40 = vld [vmem:[%s19929_s5 + $0x7a8] ss:$28 sps:$4 sm:$0xff]  }
 0x2d0   :  { %8876 = vmatprep.subr.bf16.mxu0 %v13316_v54  ;;  %v13367_v54 = vld [vmem:[%s19929_s5 + $0x7e4] ss:$28 sps:$4 sm:$0xff]  }
 0x2d1   :  { %9327 = vmatpush1.bf16.msra.mxu1 %v13311_v41  ;;  %v13356_v41 = vld [vmem:[%s19929_s5 + $0x7b0] ss:$28 sps:$4 sm:$0xff]  }
 0x2d2   :  { %8832 = vmatmul.mubr.bf16.gmra.mrb[88].mxu0 %v17675_v24  ;;  %9328 = vmatprep.subr.bf16.mxu1 %v13319_v37  ;;  %v13364_v37 = vld [vmem:[%s19929_s5 + $0x7ec] ss:$28 sps:$4 sm:$0xff]  }
 0x2d3   :  { %8841 = vmatprep.mubr.bf16.mxu0 %v17725_v33  ;;  %8877 = vmatpush1.bf16.msra.mxu0 %v13314_v23  ;;  %v13365_v23 = vld [vmem:[%s19929_s5 + $0x7e0] ss:$28 sps:$4 sm:$0xff]  }
 0x2d4   :  { %9284 = vmatmul.mubr.bf16.gmra.mrb[88].mxu1 %v17675_v24  ;;  %8878 = vmatprep.subr.bf16.mxu0 %v13322_v36  ;;  %v13362_v36 = vld [vmem:[%s19929_s5 + $0x7e8] ss:$28 sps:$4 sm:$0xff]  }
 0x2d5   :  { %9293 = vmatprep.mubr.bf16.mxu1 %v17725_v33  ;;  %9329 = vmatpush1.bf16.msra.mxu1 %v13317_v47  ;;  %v13373_v47 = vld [vmem:[%s19929_s5 + $0x81c] ss:$28 sps:$4 sm:$0xff]  }
 0x2d6   :  { %9330 = vmatprep.subr.bf16.mxu1 %v13325_v48  ;;  %v13370_v48 = vld [vmem:[%s19929_s5 + $0x824] ss:$28 sps:$4 sm:$0xff]  }
 0x2d7   :  { %8879 = vmatpush1.bf16.msra.mxu0 %v13320_v46  ;;  %v13371_v46 = vld [vmem:[%s19929_s5 + $0x818] ss:$28 sps:$4 sm:$0xff]  }
 0x2d8   :  { %8880 = vmatprep.subr.bf16.mxu0 %v13328_v5  ;;  %v13379_v5 = vld [vmem:[%s19929_s5 + $0x854] ss:$28 sps:$4 sm:$0xff]  }
 0x2d9   :  { %9331 = vmatpush1.bf16.msra.mxu1 %v13323_v29  ;;  %v13368_v29 = vld [vmem:[%s19929_s5 + $0x820] ss:$28 sps:$4 sm:$0xff]  }
 0x2da   :  { %8842 = vmatmul.mubr.bf16.gmra.mrb[92].mxu0 %v17719_v31  ;;  %9332 = vmatprep.subr.bf16.mxu1 %v13331_v32  ;;  %v13376_v32 = vld [vmem:[%s19929_s5 + $0x85c] ss:$28 sps:$4 sm:$0xff]  }
 0x2db   :  { %8881 = vmatpush1.bf16.msra.mxu0 %v13326_v35  ;;  %8884 = vmatprep.mubr.bf16.mxu0 %v17345_v28  ;;  %v13377_v35 = vld [vmem:[%s19929_s5 + $0x850] ss:$28 sps:$4 sm:$0xff]  }
 0x2dc   :  { %9294 = vmatmul.mubr.bf16.gmra.mrb[92].mxu1 %v17719_v31  ;;  %8882 = vmatprep.subr.bf16.mxu0 %v13334_v43  ;;  %v13374_v43 = vld [vmem:[%s19929_s5 + $0x858] ss:$28 sps:$4 sm:$0xff]  }
 0x2dd   :  { %9333 = vmatpush1.bf16.msra.mxu1 %v13329_v2  ;;  %9336 = vmatprep.mubr.bf16.mxu1 %v17345_v28  ;;  %v13385_v2 = vld [vmem:[%s19929_s5 + $0x88c] ss:$28 sps:$4 sm:$0xff]  }
 0x2de   :  { %9334 = vmatprep.subr.bf16.mxu1 %v13337_v27  ;;  %v13382_v27 = vld [vmem:[%s19929_s5 + $0x894] ss:$28 sps:$4 sm:$0xff]  }
 0x2df   :  { %8883 = vmatpush1.bf16.msra.mxu0 %v13332_v4  ;;  %v13383_v4 = vld [vmem:[%s19929_s5 + $0x888] ss:$28 sps:$4 sm:$0xff]  }
 0x2e0   :  { %8965 = vmatprep.subr.bf16.mxu0 %v13343_v21  ;;  %v13391_v21 = vld [vmem:[%s19929_s5 + $0x8c4] ss:$28 sps:$4 sm:$0xff]  }
 0x2e1   :  { %9335 = vmatpush1.bf16.msra.mxu1 %v13335_v16  ;;  %v13380_v16 = vld [vmem:[%s19929_s5 + $0x890] ss:$28 sps:$4 sm:$0xff]  }
 0x2e2   :  { %8885 = vmatmul.mubr.bf16.vlgmr.msra.gmra.mrb[64].mxu0 %v17330_v26  ;;  %9417 = vmatprep.subr.bf16.mxu1 %v13340_v51  ;;  %v13388_v51 = vld [vmem:[%s19929_s5 + $0x8cc] ss:$28 sps:$4 sm:$0xff]  }
 0x2e3   :  { %8894 = vmatprep.mubr.bf16.mxu0 %v17421_v44  ;;  %8966 = vmatpush1.bf16.msra.mxu0 %v13341_v62  ;;  %v13389_v62 = vld [vmem:[%s19929_s5 + $0x8c0] ss:$28 sps:$4 sm:$0xff]  }
 0x2e4   :  { %9337 = vmatmul.mubr.bf16.vlgmr.msra.gmra.mrb[64].mxu1 %v17330_v26  ;;  %8967 = vmatprep.subr.bf16.mxu0 %v13349_v14  ;;  %v13397_v14 = vld [vmem:[%s19929_s5 + $0x8fc] ss:$28 sps:$4 sm:$0xff]  }
 0x2e5   :  { %9346 = vmatprep.mubr.bf16.mxu1 %v17421_v44  ;;  %9418 = vmatpush1.bf16.msra.mxu1 %v13338_v38  ;;  %v13386_v38 = vld [vmem:[%s19929_s5 + $0x8c8] ss:$28 sps:$4 sm:$0xff]  }
 0x2e6   :  { %9419 = vmatprep.subr.bf16.mxu1 %v13346_v18  ;;  %v13394_v18 = vld [vmem:[%s19929_s5 + $0x904] ss:$28 sps:$4 sm:$0xff]  }
 0x2e7   :  { %8968 = vmatpush1.bf16.msra.mxu0 %v13347_v3  ;;  %v13395_v3 = vld [vmem:[%s19929_s5 + $0x8f8] ss:$28 sps:$4 sm:$0xff]  }
 0x2e8   :  { %8969 = vmatprep.subr.bf16.mxu0 %v13355_v10  ;;  %v13403_v10 = vld [vmem:[%s19929_s5 + $0x934] ss:$28 sps:$4 sm:$0xff]  }
 0x2e9   :  { %9420 = vmatpush1.bf16.msra.mxu1 %v13344_v15  ;;  %v13392_v15 = vld [vmem:[%s19929_s5 + $0x900] ss:$28 sps:$4 sm:$0xff]  }
 0x2ea   :  { %8895 = vmatmul.mubr.bf16.gmra.mrb[68].mxu0 %v17406_v7  ;;  %9421 = vmatprep.subr.bf16.mxu1 %v13352_v6  ;;  %v13400_v6 = vld [vmem:[%s19929_s5 + $0x93c] ss:$28 sps:$4 sm:$0xff]  }
 0x2eb   :  { %8904 = vmatprep.mubr.bf16.mxu0 %v17497_v58  ;;  %8970 = vmatpush1.bf16.msra.mxu0 %v13353_v50  ;;  %v13401_v50 = vld [vmem:[%s19929_s5 + $0x930] ss:$28 sps:$4 sm:$0xff]  }
 0x2ec   :  { %9347 = vmatmul.mubr.bf16.gmra.mrb[68].mxu1 %v17406_v7  ;;  %8971 = vmatprep.subr.bf16.mxu0 %v13361_v19  ;;  %v13409_v19 = vld [vmem:[%s19929_s5 + $0x96c] ss:$28 sps:$4 sm:$0xff]  }
 0x2ed   :  { %9356 = vmatprep.mubr.bf16.mxu1 %v17497_v58  ;;  %9422 = vmatpush1.bf16.msra.mxu1 %v13350_v34  ;;  %v13398_v34 = vld [vmem:[%s19929_s5 + $0x938] ss:$28 sps:$4 sm:$0xff]  }
 0x2ee   :  { %9423 = vmatprep.subr.bf16.mxu1 %v13358_v0  ;;  %v13406_v0 = vld [vmem:[%s19929_s5 + $0x974] ss:$28 sps:$4 sm:$0xff]  }
 0x2ef   :  { %8972 = vmatpush1.bf16.msra.mxu0 %v13359_v40  ;;  %v13407_v40 = vld [vmem:[%s19929_s5 + $0x968] ss:$28 sps:$4 sm:$0xff]  }
 0x2f0   :  { %8973 = vmatprep.subr.bf16.mxu0 %v13367_v54  ;;  %v13415_v54 = vld [vmem:[%s19929_s5 + $0x9a4] ss:$28 sps:$4 sm:$0xff]  }
 0x2f1   :  { %9424 = vmatpush1.bf16.msra.mxu1 %v13356_v41  ;;  %v13404_v41 = vld [vmem:[%s19929_s5 + $0x970] ss:$28 sps:$4 sm:$0xff]  }
 0x2f2   :  { %8905 = vmatmul.mubr.bf16.gmra.mrb[72].mxu0 %v17482_v59  ;;  %9425 = vmatprep.subr.bf16.mxu1 %v13364_v37  ;;  %v13412_v37 = vld [vmem:[%s19929_s5 + $0x9ac] ss:$28 sps:$4 sm:$0xff]  }
 0x2f3   :  { %8914 = vmatprep.mubr.bf16.mxu0 %v17566_v25  ;;  %8974 = vmatpush1.bf16.msra.mxu0 %v13365_v23  ;;  %v13413_v23 = vld [vmem:[%s19929_s5 + $0x9a0] ss:$28 sps:$4 sm:$0xff]  }
 0x2f4   :  { %9357 = vmatmul.mubr.bf16.gmra.mrb[72].mxu1 %v17482_v59  ;;  %8975 = vmatprep.subr.bf16.mxu0 %v13373_v47  ;;  %v13421_v47 = vld [vmem:[%s19929_s5 + $0x9dc] ss:$28 sps:$4 sm:$0xff]  }
 0x2f5   :  { %9366 = vmatprep.mubr.bf16.mxu1 %v17566_v25  ;;  %9426 = vmatpush1.bf16.msra.mxu1 %v13362_v36  ;;  %v13410_v36 = vld [vmem:[%s19929_s5 + $0x9a8] ss:$28 sps:$4 sm:$0xff]  }
 0x2f6   :  { %9427 = vmatprep.subr.bf16.mxu1 %v13370_v48  ;;  %v13418_v48 = vld [vmem:[%s19929_s5 + $0x9e4] ss:$28 sps:$4 sm:$0xff]  }
 0x2f7   :  { %8976 = vmatpush1.bf16.msra.mxu0 %v13371_v46  ;;  %v13419_v46 = vld [vmem:[%s19929_s5 + $0x9d8] ss:$28 sps:$4 sm:$0xff]  }
 0x2f8   :  { %8977 = vmatprep.subr.bf16.mxu0 %v13379_v5  ;;  %v13427_v5 = vld [vmem:[%s19929_s5 + $0xa14] ss:$28 sps:$4 sm:$0xff]  }
 0x2f9   :  { %9428 = vmatpush1.bf16.msra.mxu1 %v13368_v29  ;;  %v13416_v29 = vld [vmem:[%s19929_s5 + $0x9e0] ss:$28 sps:$4 sm:$0xff]  }
 0x2fa   :  { %8915 = vmatmul.mubr.bf16.gmra.mrb[76].mxu0 %v17552_v39  ;;  %9429 = vmatprep.subr.bf16.mxu1 %v13376_v32  ;;  %v13424_v32 = vld [vmem:[%s19929_s5 + $0xa1c] ss:$28 sps:$4 sm:$0xff]  }
 0x2fb   :  { %8924 = vmatprep.mubr.bf16.mxu0 %v17605_v61  ;;  %8978 = vmatpush1.bf16.msra.mxu0 %v13377_v35  ;;  %v13425_v35 = vld [vmem:[%s19929_s5 + $0xa10] ss:$28 sps:$4 sm:$0xff]  }
 0x2fc   :  { %9367 = vmatmul.mubr.bf16.gmra.mrb[76].mxu1 %v17552_v39  ;;  %8979 = vmatprep.subr.bf16.mxu0 %v13385_v2  ;;  %v13433_v2 = vld [vmem:[%s19929_s5 + $0xa4c] ss:$28 sps:$4 sm:$0xff]  }
 0x2fd   :  { %9376 = vmatprep.mubr.bf16.mxu1 %v17605_v61  ;;  %9430 = vmatpush1.bf16.msra.mxu1 %v13374_v43  ;;  %v13422_v43 = vld [vmem:[%s19929_s5 + $0xa18] ss:$28 sps:$4 sm:$0xff]  }
 0x2fe   :  { %9431 = vmatprep.subr.bf16.mxu1 %v13382_v27  ;;  %v13430_v27 = vld [vmem:[%s19929_s5 + $0xa54] ss:$28 sps:$4 sm:$0xff]  }
 0x2ff   :  { %8980 = vmatpush1.bf16.msra.mxu0 %v13383_v4  ;;  %v13431_v4 = vld [vmem:[%s19929_s5 + $0xa48] ss:$28 sps:$4 sm:$0xff]  }
 0x300   :  { %8981 = vmatprep.subr.bf16.mxu0 %v13391_v21  ;;  %v13439_v21 = vld [vmem:[%s19929_s5 + $0xa84] ss:$28 sps:$4 sm:$0xff]  }
 0x301   :  { %9432 = vmatpush1.bf16.msra.mxu1 %v13380_v16  ;;  %v13428_v16 = vld [vmem:[%s19929_s5 + $0xa50] ss:$28 sps:$4 sm:$0xff]  }
 0x302   :  { %8925 = vmatmul.mubr.bf16.gmra.mrb[80].mxu0 %v17596_v9  ;;  %9433 = vmatprep.subr.bf16.mxu1 %v13388_v51  ;;  %v13436_v51 = vld [vmem:[%s19929_s5 + $0xa8c] ss:$28 sps:$4 sm:$0xff]  }
 0x303   :  { %8934 = vmatprep.mubr.bf16.mxu0 %v17649_v12  ;;  %8982 = vmatpush1.bf16.msra.mxu0 %v13389_v62  ;;  %v20386_v62 = vld [vmem:[#allocation2_spill] sm:$0xff] }
 0x304   :  { %9377 = vmatmul.mubr.bf16.gmra.mrb[80].mxu1 %v17596_v9  ;;  %8983 = vmatprep.subr.bf16.mxu0 %v13397_v14  ;;  %v20064_v14 = vsub.s32 4, %v20386_v62 }
 0x305   :  { %9386 = vmatprep.mubr.bf16.mxu1 %v17649_v12  ;;  %9434 = vmatpush1.bf16.msra.mxu1 %v13386_v38  ;;  %v20063_v38 = vsub.s32 5, %v20386_v62 }
 0x306   :  { %9435 = vmatprep.subr.bf16.mxu1 %v13394_v18  ;;  %v20065_v18 = vsub.s32 6, %v20386_v62 }
 0x307   :  { %8984 = vmatpush1.bf16.msra.mxu0 %v13395_v3  ;;  %v1316_v3 = vsub.s32 7, %v20386_v62 }
 0x308   :  { %8985 = vmatprep.subr.bf16.mxu0 %v13403_v10  ;;  %v13898_v10 = vld [vmem:[%s19930_s4] sm:$0xff] }
 0x309   :  { %9436 = vmatpush1.bf16.msra.mxu1 %v13392_v15  ;;  %v18327_v15 = vrot.slane %v13898_v10, %v20064_v14 }
 0x30a   :  { %8935 = vmatmul.mubr.bf16.gmra.mrb[84].mxu0 %v17643_v45  ;;  %9437 = vmatprep.subr.bf16.mxu1 %v13400_v6  ;;  %v18331_v6 = vrot.slane %v13898_v10, %v20063_v38 }
 0x30b   :  { %8944 = vmatprep.mubr.bf16.mxu0 %v17693_v56  ;;  %8986 = vmatpush1.bf16.msra.mxu0 %v13401_v50  ;;  %v18335_v50 = vrot.slane %v13898_v10, %v20065_v18 }
 0x30c   :  { %9387 = vmatmul.mubr.bf16.gmra.mrb[84].mxu1 %v17643_v45  ;;  %8987 = vmatprep.subr.bf16.mxu0 %v13409_v19 }
 0x30d   :  { %9396 = vmatprep.mubr.bf16.mxu1 %v17693_v56  ;;  %9438 = vmatpush1.bf16.msra.mxu1 %v13398_v34  ;;  %v18337_v34 = vrot.slane %v13898_v10, %v1316_v3  ;;  %v13434_v10 = vld [vmem:[%s19929_s5 + $0xa88] ss:$28 sps:$4 sm:$0xff]  }
 0x30e   :  { %9439 = vmatprep.subr.bf16.mxu1 %v13406_v0 }
 0x30f   :  { %8988 = vmatpush1.bf16.msra.mxu0 %v13407_v40 }
 0x310   :  { %8989 = vmatprep.subr.bf16.mxu0 %v13415_v54 }
 0x311   :  { %9440 = vmatpush1.bf16.msra.mxu1 %v13404_v41 }
 0x312   :  { %8945 = vmatmul.mubr.bf16.gmra.mrb[88].mxu0 %v17687_v53  ;;  %9441 = vmatprep.subr.bf16.mxu1 %v13412_v37 }
 0x313   :  { %8954 = vmatprep.mubr.bf16.mxu0 %v17736_v8  ;;  %8990 = vmatpush1.bf16.msra.mxu0 %v13413_v23 }
 0x314   :  { %9397 = vmatmul.mubr.bf16.gmra.mrb[88].mxu1 %v17687_v53  ;;  %8991 = vmatprep.subr.bf16.mxu0 %v13421_v47 }
 0x315   :  { %9406 = vmatprep.mubr.bf16.mxu1 %v17736_v8  ;;  %9442 = vmatpush1.bf16.msra.mxu1 %v13410_v36 }
 0x316   :  { %9443 = vmatprep.subr.bf16.mxu1 %v13418_v48 }
 0x317   :  { %8992 = vmatpush1.bf16.msra.mxu0 %v13419_v46 }
 0x318   :  { %8993 = vmatprep.subr.bf16.mxu0 %v13427_v5 }
 0x319   :  { %9444 = vmatpush1.bf16.msra.mxu1 %v13416_v29 }
 0x31a   :  { %8955 = vmatmul.mubr.bf16.gmra.mrb[92].mxu0 %v17731_v55  ;;  %9445 = vmatprep.subr.bf16.mxu1 %v13424_v32 }
 0x31b   :  { %8994 = vmatpush1.bf16.msra.mxu0 %v13425_v35 }
 0x31c   :  { %9407 = vmatmul.mubr.bf16.gmra.mrb[92].mxu1 %v17731_v55  ;;  %8995 = vmatprep.subr.bf16.mxu0 %v13433_v2 }
 0x31d   :  { %9446 = vmatpush1.bf16.msra.mxu1 %v13422_v43 }
 0x31e   :  { %9447 = vmatprep.subr.bf16.mxu1 %v13430_v27 }
 0x31f   :  { %8996 = vmatpush1.bf16.msra.mxu0 %v13431_v4 }
 0x320   :  { %9078 = vmatprep.subr.bf16.mxu0 %v13439_v21 }
 0x321   :  { %9448 = vmatpush1.bf16.msra.mxu1 %v13428_v16 }
 0x322   :  { %9530 = vmatprep.subr.bf16.mxu1 %v13436_v51 }
 0x334   :  { %v5163_v19 = vpop.f32.mrb[32].mxu0 }
 0x335   :  { %v12304_v0 = vadd.f32 %v5163_v19, %v18327_v15  ;;  %v5165_v40 = vpop.f32.mrb[33].mxu0 }
 0x336   :  { %v12305_v41 = vadd.f32 %v5165_v40, %v18331_v6  ;;  %v5167_v37 = vpop.f32.mrb[34].mxu0 }
 0x337   :  { %v5615_v54 = vpop.f32.mrb[32].mxu1  ;;  %v12306_v36 = vadd.f32 %v5167_v37, %v18327_v15  ;;  %v5169_v48 = vpop.f32.mrb[35].mxu0  ;;  %v5698_v32 = vmax.f32 %v12304_v0, 0.0 }
 0x338   :  { %v12336_v23 = vadd.f32 %v5615_v54, %v18335_v50  ;;  %v5617_v47 = vpop.f32.mrb[33].mxu1  ;;  %v12307_v29 = vadd.f32 %v5169_v48, %v18331_v6  ;;  %v5699_v27 = vmax.f32 %v12305_v41, 0.0  ;;  %v13437_v41 = vld [vmem:[%s19929_s5 + $0xa80] ss:$28 sps:$4 sm:$0xff]  }
 0x339   :  { %v12337_v46 = vadd.f32 %v5617_v47, %v18337_v34  ;;  %v5619_v5 = vpop.f32.mrb[34].mxu1  ;;  %v5706_v35 = vmax.f32 %v12306_v36, 0.0  ;;  %v13442_v36 = vld [vmem:[%s19929_s5 + $0xac4] ss:$28 sps:$4 sm:$0xff]   ;;  %v13445_v48 = vld [vmem:[%s19929_s5 + $0xabc] ss:$28 sps:$4 sm:$0xff]  }
 0x33a   :  { %v12338_v2 = vadd.f32 %v5619_v5, %v18335_v50  ;;  %v5621_v43 = vpop.f32.mrb[35].mxu1  ;;  %v5707_v4 = vmax.f32 %v12307_v29, 0.0  ;;  %v5700_v16 = vmax.f32 %v12336_v23, 0.0 }
 0x33b   :  { %v12339_v21 = vadd.f32 %v5621_v43, %v18337_v34  ;;  %v18347_v51 = vpack.c.bf16 %v5706_v35, %v5698_v32  ;;  %v5701_v19 = vmax.f32 %v12337_v46, 0.0 }
 0x33c   :  { %v5708_v3 = vmax.f32 %v12338_v2, 0.0  ;;  %v18352_v40 = vpack.c.bf16 %v5707_v4, %v5699_v27  ;;  %v5173_v54 = vpop.f32.mrb[36].mxu0  ;;  %v13440_v4 = vld [vmem:[%s19929_s5 + $0xac0] ss:$28 sps:$4 sm:$0xff]  }
 0x33d   :  { %20387 = vst [vmem:[#allocation8_spill] sm:$0xff] %v18347_v51  ;;  %v5709_v0 = vmax.f32 %v12339_v21, 0.0  ;;  %v12308_v23 = vadd.f32 %v5173_v54, %v18327_v15  ;;  %v5175_v47 = vpop.f32.mrb[37].mxu0 }
 0x33e   :  { %20388 = vst [vmem:[#allocation36_spill] sm:$0xff] %v18352_v40  ;;  %v18357_v37 = vpack.c.bf16 %v5708_v3, %v5700_v16  ;;  %v12309_v29 = vadd.f32 %v5175_v47, %v18331_v6  ;;  %v5177_v32 = vpop.f32.mrb[38].mxu0  ;;  %8997 = vmatprep.mubr.bf16.mxu0 %v18352_v40  ;;  %9449 = vmatprep.mubr.bf16.mxu1 %v18352_v40 }
 0x33f   :  { %v18366_v46 = vpack.c.bf16 %v5709_v0, %v5701_v19  ;;  %v5625_v5 = vpop.f32.mrb[36].mxu1  ;;  %v12310_v43 = vadd.f32 %v5177_v32, %v18327_v15  ;;  %v5179_v27 = vpop.f32.mrb[39].mxu0  ;;  %8998 = vmatmul.mubr.bf16.vlgmr.msra.gmra.mrb[64].mxu0 %v18347_v51  ;;  %9450 = vmatmul.mubr.bf16.vlgmr.msra.gmra.mrb[64].mxu1 %v18347_v51  ;;  %v13443_v19 = vld [vmem:[%s19929_s5 + $0xab8] ss:$28 sps:$4 sm:$0xff]   ;;  %v5714_v54 = vmax.f32 %v12308_v23, 0.0 }
 0x340   :  { %v12340_v35 = vadd.f32 %v5625_v5, %v18335_v50  ;;  %v5627_v2 = vpop.f32.mrb[37].mxu1  ;;  %v12311_v3 = vadd.f32 %v5179_v27, %v18331_v6  ;;  %9531 = vmatpush1.bf16.msra.mxu1 %v13434_v10  ;;  %9079 = vmatpush1.bf16.msra.mxu0 %v13437_v41  ;;  %v13448_v0 = vld [vmem:[%s19929_s5 + $0xafc] ss:$28 sps:$4 sm:$0xff]   ;;  %v13451_v10 = vld [vmem:[%s19929_s5 + $0xaf4] ss:$28 sps:$4 sm:$0xff]   ;;  %v5715_v41 = vmax.f32 %v12309_v29, 0.0 }
 0x341   :  { %v12341_v21 = vadd.f32 %v5627_v2, %v18337_v34  ;;  %v5629_v16 = vpop.f32.mrb[38].mxu1  ;;  %v5722_v47 = vmax.f32 %v12310_v43, 0.0  ;;  %9532 = vmatprep.subr.bf16.mxu1 %v13442_v36  ;;  %9080 = vmatprep.subr.bf16.mxu0 %v13445_v48  ;;  %v13446_v23 = vld [vmem:[%s19929_s5 + $0xaf8] ss:$28 sps:$4 sm:$0xff]   ;;  %v13449_v29 = vld [vmem:[%s19929_s5 + $0xaf0] ss:$28 sps:$4 sm:$0xff]  }
 0x342   :  { %v12342_v5 = vadd.f32 %v5629_v16, %v18335_v50  ;;  %v5631_v32 = vpop.f32.mrb[39].mxu1  ;;  %v5723_v2 = vmax.f32 %v12311_v3, 0.0  ;;  %v5716_v38 = vmax.f32 %v12340_v35, 0.0 }
 0x343   :  { %v12343_v27 = vadd.f32 %v5631_v32, %v18337_v34  ;;  %v18391_v14 = vpack.c.bf16 %v5722_v47, %v5714_v54  ;;  %v5717_v43 = vmax.f32 %v12341_v21, 0.0  ;;  %v13454_v21 = vld [vmem:[%s19929_s5 + $0xb34] ss:$28 sps:$4 sm:$0xff]  }
 0x344   :  { %v5724_v18 = vmax.f32 %v12342_v5, 0.0  ;;  %v18396_v16 = vpack.c.bf16 %v5723_v2, %v5715_v41  ;;  %9533 = vmatpush1.bf16.msra.mxu1 %v13440_v4  ;;  %v5183_v48 = vpop.f32.mrb[40].mxu0  ;;  %9081 = vmatpush1.bf16.msra.mxu0 %v13443_v19  ;;  %v13457_v4 = vld [vmem:[%s19929_s5 + $0xb2c] ss:$28 sps:$4 sm:$0xff]  }
 0x345   :  { %20389 = vst [vmem:[#allocation50_spill] sm:$0xff] %v18391_v14  ;;  %v5725_v36 = vmax.f32 %v12343_v27, 0.0  ;;  %v12312_v35 = vadd.f32 %v5183_v48, %v18327_v15  ;;  %v5185_v54 = vpop.f32.mrb[41].mxu0  ;;  %9534 = vmatprep.subr.bf16.mxu1 %v13448_v0  ;;  %9082 = vmatprep.subr.bf16.mxu0 %v13451_v10  ;;  %v13452_v41 = vld [vmem:[%s19929_s5 + $0xb30] ss:$28 sps:$4 sm:$0xff]  }
 0x346   :  { %20390 = vst [vmem:[#allocation6_spill] sm:$0xff] %v18396_v16  ;;  %v18401_v3 = vpack.c.bf16 %v5724_v18, %v5716_v38  ;;  %v12313_v5 = vadd.f32 %v5185_v54, %v18331_v6  ;;  %v5187_v38 = vpop.f32.mrb[42].mxu0  ;;  %9007 = vmatprep.mubr.bf16.mxu0 %v18396_v16  ;;  %9459 = vmatprep.mubr.bf16.mxu1 %v18396_v16  ;;  %v13460_v48 = vld [vmem:[%s19929_s5 + $0xb6c] ss:$28 sps:$4 sm:$0xff]  }
 0x347   :  { %v18410_v19 = vpack.c.bf16 %v5725_v36, %v5717_v43  ;;  %v5635_v47 = vpop.f32.mrb[40].mxu1  ;;  %v12314_v32 = vadd.f32 %v5187_v38, %v18327_v15  ;;  %v5189_v10 = vpop.f32.mrb[43].mxu0  ;;  %9008 = vmatmul.mubr.bf16.gmra.mrb[68].mxu0 %v18391_v14  ;;  %9460 = vmatmul.mubr.bf16.gmra.mrb[68].mxu1 %v18391_v14  ;;  %v13455_v36 = vld [vmem:[%s19929_s5 + $0xb28] ss:$28 sps:$4 sm:$0xff]   ;;  %v5730_v54 = vmax.f32 %v12312_v35, 0.0 }
 0x348   :  { %v12344_v18 = vadd.f32 %v5635_v47, %v18335_v50  ;;  %v5637_v0 = vpop.f32.mrb[41].mxu1  ;;  %v12315_v43 = vadd.f32 %v5189_v10, %v18331_v6  ;;  %9535 = vmatpush1.bf16.msra.mxu1 %v13446_v23  ;;  %9083 = vmatpush1.bf16.msra.mxu0 %v13449_v29  ;;  %v13463_v23 = vld [vmem:[%s19929_s5 + $0xb64] ss:$28 sps:$4 sm:$0xff]   ;;  %v5731_v29 = vmax.f32 %v12313_v5, 0.0 }
 0x349   :  { %v12345_v2 = vadd.f32 %v5637_v0, %v18337_v34  ;;  %v5639_v27 = vpop.f32.mrb[42].mxu1  ;;  %v5738_v47 = vmax.f32 %v12314_v32, 0.0  ;;  %9536 = vmatprep.subr.bf16.mxu1 %v13454_v21  ;;  %9084 = vmatprep.subr.bf16.mxu0 %v13457_v4  ;;  %v13458_v35 = vld [vmem:[%s19929_s5 + $0xb68] ss:$28 sps:$4 sm:$0xff]   ;;  %v13461_v5 = vld [vmem:[%s19929_s5 + $0xb60] ss:$28 sps:$4 sm:$0xff]  }
 0x34a   :  { %v12346_v38 = vadd.f32 %v5639_v27, %v18335_v50  ;;  %v5641_v62 = vpop.f32.mrb[43].mxu1  ;;  %v5739_v0 = vmax.f32 %v12315_v43, 0.0  ;;  %v5732_v14 = vmax.f32 %v12344_v18, 0.0 }
 0x34b   :  { %v12347_v10 = vadd.f32 %v5641_v62, %v18337_v34  ;;  %v18435_v16 = vpack.c.bf16 %v5738_v47, %v5730_v54  ;;  %v5733_v32 = vmax.f32 %v12345_v2, 0.0  ;;  %v13466_v2 = vld [vmem:[%s19929_s5 + $0xba4] ss:$28 sps:$4 sm:$0xff]  }
 0x34c   :  { %v5740_v51 = vmax.f32 %v12346_v38, 0.0  ;;  %v18440_v27 = vpack.c.bf16 %v5739_v0, %v5731_v29  ;;  %9537 = vmatpush1.bf16.msra.mxu1 %v13452_v41  ;;  %v5193_v4 = vpop.f32.mrb[44].mxu0  ;;  %9085 = vmatpush1.bf16.msra.mxu0 %v13455_v36  ;;  %v13469_v41 = vld [vmem:[%s19929_s5 + $0xb9c] ss:$28 sps:$4 sm:$0xff]  }
 0x34d   :  { %20391 = vst [vmem:[#allocation28_spill] sm:$0xff] %v18435_v16  ;;  %v5741_v21 = vmax.f32 %v12347_v10, 0.0  ;;  %v12316_v18 = vadd.f32 %v5193_v4, %v18327_v15  ;;  %v5195_v43 = vpop.f32.mrb[45].mxu0  ;;  %9538 = vmatprep.subr.bf16.mxu1 %v13460_v48  ;;  %9086 = vmatprep.subr.bf16.mxu0 %v13463_v23  ;;  %v13464_v29 = vld [vmem:[%s19929_s5 + $0xba0] ss:$28 sps:$4 sm:$0xff]  }
 0x34e   :  { %20392 = vst [vmem:[#allocation29_spill] sm:$0xff] %v18440_v27  ;;  %v18445_v62 = vpack.c.bf16 %v5740_v51, %v5732_v14  ;;  %v12317_v47 = vadd.f32 %v5195_v43, %v18331_v6  ;;  %v5197_v14 = vpop.f32.mrb[46].mxu0  ;;  %9017 = vmatprep.mubr.bf16.mxu0 %v18440_v27  ;;  %9469 = vmatprep.mubr.bf16.mxu1 %v18440_v27  ;;  %v13472_v4 = vld [vmem:[%s19929_s5 + $0xbdc] ss:$28 sps:$4 sm:$0xff]  }
 0x34f   :  { %v18454_v36 = vpack.c.bf16 %v5741_v21, %v5733_v32  ;;  %v5645_v54 = vpop.f32.mrb[44].mxu1  ;;  %v12318_v38 = vadd.f32 %v5197_v14, %v18327_v15  ;;  %v5199_v23 = vpop.f32.mrb[47].mxu0  ;;  %9018 = vmatmul.mubr.bf16.gmra.mrb[72].mxu0 %v18435_v16  ;;  %9470 = vmatmul.mubr.bf16.gmra.mrb[72].mxu1 %v18435_v16  ;;  %v13467_v21 = vld [vmem:[%s19929_s5 + $0xb98] ss:$28 sps:$4 sm:$0xff]   ;;  %v5746_v43 = vmax.f32 %v12316_v18, 0.0 }
 0x350   :  { %v12348_v51 = vadd.f32 %v5645_v54, %v18335_v50  ;;  %v5647_v48 = vpop.f32.mrb[45].mxu1  ;;  %v12319_v32 = vadd.f32 %v5199_v23, %v18331_v6  ;;  %9539 = vmatpush1.bf16.msra.mxu1 %v13458_v35  ;;  %9087 = vmatpush1.bf16.msra.mxu0 %v13461_v5  ;;  %v13475_v35 = vld [vmem:[%s19929_s5 + $0xbd4] ss:$28 sps:$4 sm:$0xff]   ;;  %v5747_v5 = vmax.f32 %v12317_v47, 0.0 }
 0x351   :  { %v12349_v0 = vadd.f32 %v5647_v48, %v18337_v34  ;;  %v5649_v10 = vpop.f32.mrb[46].mxu1  ;;  %v5754_v54 = vmax.f32 %v12318_v38, 0.0  ;;  %9540 = vmatprep.subr.bf16.mxu1 %v13466_v2  ;;  %9088 = vmatprep.subr.bf16.mxu0 %v13469_v41  ;;  %v13470_v18 = vld [vmem:[%s19929_s5 + $0xbd8] ss:$28 sps:$4 sm:$0xff]   ;;  %v13473_v47 = vld [vmem:[%s19929_s5 + $0xbd0] ss:$28 sps:$4 sm:$0xff]  }
 0x352   :  { %v12350_v14 = vadd.f32 %v5649_v10, %v18335_v50  ;;  %v5651_v16 = vpop.f32.mrb[47].mxu1  ;;  %v5755_v48 = vmax.f32 %v12319_v32, 0.0  ;;  %v5748_v27 = vmax.f32 %v12348_v51, 0.0 }
 0x353   :  { %v12351_v23 = vadd.f32 %v5651_v16, %v18337_v34  ;;  %v18479_v40 = vpack.c.bf16 %v5754_v54, %v5746_v43  ;;  %v5749_v38 = vmax.f32 %v12349_v0, 0.0  ;;  %v13478_v0 = vld [vmem:[%s19929_s5 + $0xc14] ss:$28 sps:$4 sm:$0xff]  }
 0x354   :  { %v5756_v55 = vmax.f32 %v12350_v14, 0.0  ;;  %v18484_v10 = vpack.c.bf16 %v5755_v48, %v5747_v5  ;;  %9541 = vmatpush1.bf16.msra.mxu1 %v13464_v29  ;;  %v5203_v41 = vpop.f32.mrb[48].mxu0  ;;  %9089 = vmatpush1.bf16.msra.mxu0 %v13467_v21  ;;  %v13481_v29 = vld [vmem:[%s19929_s5 + $0xc0c] ss:$28 sps:$4 sm:$0xff]  }
 0x355   :  { %20393 = vst [vmem:[#allocation21_spill] sm:$0xff] %v18479_v40  ;;  %v5757_v2 = vmax.f32 %v12351_v23, 0.0  ;;  %v12320_v51 = vadd.f32 %v5203_v41, %v18327_v15  ;;  %v5205_v32 = vpop.f32.mrb[49].mxu0  ;;  %9542 = vmatprep.subr.bf16.mxu1 %v13472_v4  ;;  %9090 = vmatprep.subr.bf16.mxu0 %v13475_v35  ;;  %v13476_v5 = vld [vmem:[%s19929_s5 + $0xc10] ss:$28 sps:$4 sm:$0xff]  }
 0x356   :  { %20394 = vst [vmem:[#allocation13_spill] sm:$0xff] %v18484_v10  ;;  %v18489_v16 = vpack.c.bf16 %v5756_v55, %v5748_v27  ;;  %v12321_v54 = vadd.f32 %v5205_v32, %v18331_v6  ;;  %v5207_v55 = vpop.f32.mrb[50].mxu0  ;;  %9027 = vmatprep.mubr.bf16.mxu0 %v18484_v10  ;;  %9479 = vmatprep.mubr.bf16.mxu1 %v18484_v10  ;;  %v13484_v41 = vld [vmem:[%s19929_s5 + $0xc4c] ss:$28 sps:$4 sm:$0xff]  }
 0x357   :  { %v18498_v21 = vpack.c.bf16 %v5757_v2, %v5749_v38  ;;  %v5655_v43 = vpop.f32.mrb[48].mxu1  ;;  %v12322_v14 = vadd.f32 %v5207_v55, %v18327_v15  ;;  %v5209_v35 = vpop.f32.mrb[51].mxu0  ;;  %9028 = vmatmul.mubr.bf16.gmra.mrb[76].mxu0 %v18479_v40  ;;  %9480 = vmatmul.mubr.bf16.gmra.mrb[76].mxu1 %v18479_v40  ;;  %v13479_v2 = vld [vmem:[%s19929_s5 + $0xc08] ss:$28 sps:$4 sm:$0xff]   ;;  %v5762_v32 = vmax.f32 %v12320_v51, 0.0 }
 0x358   :  { %v12352_v27 = vadd.f32 %v5655_v43, %v18335_v50  ;;  %v5657_v4 = vpop.f32.mrb[49].mxu1  ;;  %v12323_v38 = vadd.f32 %v5209_v35, %v18331_v6  ;;  %9543 = vmatpush1.bf16.msra.mxu1 %v13470_v18  ;;  %9091 = vmatpush1.bf16.msra.mxu0 %v13473_v47  ;;  %v13487_v18 = vld [vmem:[%s19929_s5 + $0xc44] ss:$28 sps:$4 sm:$0xff]   ;;  %v5763_v47 = vmax.f32 %v12321_v54, 0.0 }
 0x359   :  { %v12353_v48 = vadd.f32 %v5657_v4, %v18337_v34  ;;  %v5659_v23 = vpop.f32.mrb[50].mxu1  ;;  %v5770_v43 = vmax.f32 %v12322_v14, 0.0  ;;  %9544 = vmatprep.subr.bf16.mxu1 %v13478_v0  ;;  %9092 = vmatprep.subr.bf16.mxu0 %v13481_v29  ;;  %v13482_v51 = vld [vmem:[%s19929_s5 + $0xc48] ss:$28 sps:$4 sm:$0xff]   ;;  %v13485_v54 = vld [vmem:[%s19929_s5 + $0xc40] ss:$28 sps:$4 sm:$0xff]  }
 0x35a   :  { %v12354_v55 = vadd.f32 %v5659_v23, %v18335_v50  ;;  %v5661_v40 = vpop.f32.mrb[51].mxu1  ;;  %v5771_v4 = vmax.f32 %v12323_v38, 0.0  ;;  %v5764_v10 = vmax.f32 %v12352_v27, 0.0 }
 0x35b   :  { %v12355_v35 = vadd.f32 %v5661_v40, %v18337_v34  ;;  %v18523_v8 = vpack.c.bf16 %v5770_v43, %v5762_v32  ;;  %v5765_v14 = vmax.f32 %v12353_v48, 0.0  ;;  %v13490_v48 = vld [vmem:[%s19929_s5 + $0xc84] ss:$28 sps:$4 sm:$0xff]  }
 0x35c   :  { %v5772_v53 = vmax.f32 %v12354_v55, 0.0  ;;  %v18528_v23 = vpack.c.bf16 %v5771_v4, %v5763_v47  ;;  %9545 = vmatpush1.bf16.msra.mxu1 %v13476_v5  ;;  %v5213_v29 = vpop.f32.mrb[52].mxu0  ;;  %9093 = vmatpush1.bf16.msra.mxu0 %v13479_v2  ;;  %v13493_v5 = vld [vmem:[%s19929_s5 + $0xc7c] ss:$28 sps:$4 sm:$0xff]  }
 0x35d   :  { %20395 = vst [vmem:[#allocation31_spill] sm:$0xff] %v18523_v8  ;;  %v5773_v0 = vmax.f32 %v12355_v35, 0.0  ;;  %v12324_v27 = vadd.f32 %v5213_v29, %v18327_v15  ;;  %v5215_v38 = vpop.f32.mrb[53].mxu0  ;;  %9546 = vmatprep.subr.bf16.mxu1 %v13484_v41  ;;  %9094 = vmatprep.subr.bf16.mxu0 %v13487_v18  ;;  %v13488_v47 = vld [vmem:[%s19929_s5 + $0xc80] ss:$28 sps:$4 sm:$0xff]  }
 0x35e   :  { %20396 = vst [vmem:[#allocation34_spill] sm:$0xff] %v18528_v23  ;;  %v18533_v40 = vpack.c.bf16 %v5772_v53, %v5764_v10  ;;  %v12325_v43 = vadd.f32 %v5215_v38, %v18331_v6  ;;  %v5217_v53 = vpop.f32.mrb[54].mxu0  ;;  %9037 = vmatprep.mubr.bf16.mxu0 %v18528_v23  ;;  %9489 = vmatprep.mubr.bf16.mxu1 %v18528_v23  ;;  %v13496_v29 = vld [vmem:[%s19929_s5 + $0xcbc] ss:$28 sps:$4 sm:$0xff]  }
 0x35f   :  { %v18542_v2 = vpack.c.bf16 %v5773_v0, %v5765_v14  ;;  %v5665_v32 = vpop.f32.mrb[52].mxu1  ;;  %v12326_v55 = vadd.f32 %v5217_v53, %v18327_v15  ;;  %v5219_v18 = vpop.f32.mrb[55].mxu0  ;;  %9038 = vmatmul.mubr.bf16.gmra.mrb[80].mxu0 %v18523_v8  ;;  %9490 = vmatmul.mubr.bf16.gmra.mrb[80].mxu1 %v18523_v8  ;;  %v13491_v0 = vld [vmem:[%s19929_s5 + $0xc78] ss:$28 sps:$4 sm:$0xff]   ;;  %v5778_v38 = vmax.f32 %v12324_v27, 0.0 }
 0x360   :  { %v12356_v10 = vadd.f32 %v5665_v32, %v18335_v50  ;;  %v5667_v41 = vpop.f32.mrb[53].mxu1  ;;  %v12327_v14 = vadd.f32 %v5219_v18, %v18331_v6  ;;  %9547 = vmatpush1.bf16.msra.mxu1 %v13482_v51  ;;  %9095 = vmatpush1.bf16.msra.mxu0 %v13485_v54  ;;  %v13499_v51 = vld [vmem:[%s19929_s5 + $0xcb4] ss:$28 sps:$4 sm:$0xff]   ;;  %v5779_v54 = vmax.f32 %v12325_v43, 0.0 }
 0x361   :  { %v12357_v4 = vadd.f32 %v5667_v41, %v18337_v34  ;;  %v5669_v35 = vpop.f32.mrb[54].mxu1  ;;  %v5786_v32 = vmax.f32 %v12326_v55, 0.0  ;;  %9548 = vmatprep.subr.bf16.mxu1 %v13490_v48  ;;  %9096 = vmatprep.subr.bf16.mxu0 %v13493_v5  ;;  %v13494_v27 = vld [vmem:[%s19929_s5 + $0xcb8] ss:$28 sps:$4 sm:$0xff]   ;;  %v13497_v43 = vld [vmem:[%s19929_s5 + $0xcb0] ss:$28 sps:$4 sm:$0xff]  }
 0x362   :  { %v12358_v53 = vadd.f32 %v5669_v35, %v18335_v50  ;;  %v5671_v8 = vpop.f32.mrb[55].mxu1  ;;  %v5787_v41 = vmax.f32 %v12327_v14, 0.0  ;;  %v5780_v23 = vmax.f32 %v12356_v10, 0.0 }
 0x363   :  { %v12359_v18 = vadd.f32 %v5671_v8, %v18337_v34  ;;  %v18567_v56 = vpack.c.bf16 %v5786_v32, %v5778_v38  ;;  %v5781_v55 = vmax.f32 %v12357_v4, 0.0  ;;  %v13502_v4 = vld [vmem:[%s19929_s5 + $0xcf4] ss:$28 sps:$4 sm:$0xff]  }
 0x364   :  { %v5788_v45 = vmax.f32 %v12358_v53, 0.0  ;;  %v18572_v35 = vpack.c.bf16 %v5787_v41, %v5779_v54  ;;  %9549 = vmatpush1.bf16.msra.mxu1 %v13488_v47  ;;  %v5223_v5 = vpop.f32.mrb[56].mxu0  ;;  %9097 = vmatpush1.bf16.msra.mxu0 %v13491_v0  ;;  %v13505_v47 = vld [vmem:[%s19929_s5 + $0xcec] ss:$28 sps:$4 sm:$0xff]  }
 0x365   :  { %20397 = vst [vmem:[#allocation15_spill] sm:$0xff] %v18567_v56  ;;  %v5789_v48 = vmax.f32 %v12359_v18, 0.0  ;;  %v12328_v10 = vadd.f32 %v5223_v5, %v18327_v15  ;;  %v5225_v14 = vpop.f32.mrb[57].mxu0  ;;  %9550 = vmatprep.subr.bf16.mxu1 %v13496_v29  ;;  %9098 = vmatprep.subr.bf16.mxu0 %v13499_v51  ;;  %v13500_v54 = vld [vmem:[%s19929_s5 + $0xcf0] ss:$28 sps:$4 sm:$0xff]  }
 0x366   :  { %20398 = vst [vmem:[#allocation18_spill] sm:$0xff] %v18572_v35  ;;  %v18577_v8 = vpack.c.bf16 %v5788_v45, %v5780_v23  ;;  %v12329_v32 = vadd.f32 %v5225_v14, %v18331_v6  ;;  %v5227_v45 = vpop.f32.mrb[58].mxu0  ;;  %9047 = vmatprep.mubr.bf16.mxu0 %v18572_v35  ;;  %9499 = vmatprep.mubr.bf16.mxu1 %v18572_v35  ;;  %v13508_v5 = vld [vmem:[%s19929_s5 + $0xd2c] ss:$28 sps:$4 sm:$0xff]  }
 0x367   :  { %v18586_v0 = vpack.c.bf16 %v5789_v48, %v5781_v55  ;;  %v5675_v38 = vpop.f32.mrb[56].mxu1  ;;  %v12330_v53 = vadd.f32 %v5227_v45, %v18327_v15  ;;  %v5229_v51 = vpop.f32.mrb[59].mxu0  ;;  %9048 = vmatmul.mubr.bf16.gmra.mrb[84].mxu0 %v18567_v56  ;;  %9500 = vmatmul.mubr.bf16.gmra.mrb[84].mxu1 %v18567_v56  ;;  %v13503_v48 = vld [vmem:[%s19929_s5 + $0xce8] ss:$28 sps:$4 sm:$0xff]   ;;  %v5794_v14 = vmax.f32 %v12328_v10, 0.0 }
 0x368   :  { %v12360_v23 = vadd.f32 %v5675_v38, %v18335_v50  ;;  %v5677_v29 = vpop.f32.mrb[57].mxu1  ;;  %v12331_v55 = vadd.f32 %v5229_v51, %v18331_v6  ;;  %9551 = vmatpush1.bf16.msra.mxu1 %v13494_v27  ;;  %9099 = vmatpush1.bf16.msra.mxu0 %v13497_v43  ;;  %v13511_v27 = vld [vmem:[%s19929_s5 + $0xd24] ss:$28 sps:$4 sm:$0xff]   ;;  %v5795_v43 = vmax.f32 %v12329_v32, 0.0 }
 0x369   :  { %v12361_v41 = vadd.f32 %v5677_v29, %v18337_v34  ;;  %v5679_v18 = vpop.f32.mrb[58].mxu1  ;;  %v5802_v38 = vmax.f32 %v12330_v53, 0.0  ;;  %9552 = vmatprep.subr.bf16.mxu1 %v13502_v4  ;;  %9100 = vmatprep.subr.bf16.mxu0 %v13505_v47  ;;  %v13506_v10 = vld [vmem:[%s19929_s5 + $0xd28] ss:$28 sps:$4 sm:$0xff]   ;;  %v13509_v32 = vld [vmem:[%s19929_s5 + $0xd20] ss:$28 sps:$4 sm:$0xff]  }
 0x36a   :  { %v12362_v45 = vadd.f32 %v5679_v18, %v18335_v50  ;;  %v5681_v56 = vpop.f32.mrb[59].mxu1  ;;  %v5803_v29 = vmax.f32 %v12331_v55, 0.0  ;;  %v5796_v35 = vmax.f32 %v12360_v23, 0.0 }
 0x36b   :  { %v12363_v51 = vadd.f32 %v5681_v56, %v18337_v34  ;;  %v18611_v12 = vpack.c.bf16 %v5802_v38, %v5794_v14  ;;  %v5797_v53 = vmax.f32 %v12361_v41, 0.0  ;;  %v13514_v41 = vld [vmem:[%s19929_s5 + $0xd64] ss:$28 sps:$4 sm:$0xff]  }
 0x36c   :  { %v5804_v9 = vmax.f32 %v12362_v45, 0.0  ;;  %v18616_v18 = vpack.c.bf16 %v5803_v29, %v5795_v43  ;;  %9553 = vmatpush1.bf16.msra.mxu1 %v13500_v54  ;;  %v5233_v47 = vpop.f32.mrb[60].mxu0  ;;  %9101 = vmatpush1.bf16.msra.mxu0 %v13503_v48  ;;  %v13517_v54 = vld [vmem:[%s19929_s5 + $0xd5c] ss:$28 sps:$4 sm:$0xff]  }
 0x36d   :  { %20399 = vst [vmem:[#allocation14_spill] sm:$0xff] %v18611_v12  ;;  %v5805_v4 = vmax.f32 %v12363_v51, 0.0  ;;  %v12332_v23 = vadd.f32 %v5233_v47, %v18327_v15  ;;  %v5235_v55 = vpop.f32.mrb[61].mxu0  ;;  %9554 = vmatprep.subr.bf16.mxu1 %v13508_v5  ;;  %9102 = vmatprep.subr.bf16.mxu0 %v13511_v27  ;;  %v13512_v43 = vld [vmem:[%s19929_s5 + $0xd60] ss:$28 sps:$4 sm:$0xff]  }
 0x36e   :  { %20400 = vst [vmem:[#allocation41_spill] sm:$0xff] %v18616_v18  ;;  %v18621_v56 = vpack.c.bf16 %v5804_v9, %v5796_v35  ;;  %v12333_v38 = vadd.f32 %v5235_v55, %v18331_v6  ;;  %v5237_v9 = vpop.f32.mrb[62].mxu0  ;;  %9057 = vmatprep.mubr.bf16.mxu0 %v18616_v18  ;;  %9509 = vmatprep.mubr.bf16.mxu1 %v18616_v18 }
 0x36f   :  { %v18630_v48 = vpack.c.bf16 %v5805_v4, %v5797_v53  ;;  %v5685_v14 = vpop.f32.mrb[60].mxu1  ;;  %v12334_v45 = vadd.f32 %v5237_v9, %v18327_v15  ;;  %v5239_v27 = vpop.f32.mrb[63].mxu0  ;;  %9058 = vmatmul.mubr.bf16.gmra.mrb[88].mxu0 %v18611_v12  ;;  %9510 = vmatmul.mubr.bf16.gmra.mrb[88].mxu1 %v18611_v12  ;;  %v13515_v15 = vld [vmem:[%s19929_s5 + $0xd58] ss:$28 sps:$4 sm:$0xff]   ;;  %v5810_v47 = vmax.f32 %v12332_v23, 0.0 }
 0x370   :  { %v12364_v35 = vadd.f32 %v5685_v14, %v18335_v50  ;;  %v5687_v5 = vpop.f32.mrb[61].mxu1  ;;  %v12335_v53 = vadd.f32 %v5239_v27, %v18331_v6  ;;  %9555 = vmatpush1.bf16.msra.mxu1 %v13506_v10  ;;  %9103 = vmatpush1.bf16.msra.mxu0 %v13509_v32  ;;  %v13520_v4 = vld [vmem:[%s19929_s5 + $0xd9c] ss:$28 sps:$4 sm:$0xff]   ;;  %v13523_v6 = vld [vmem:[%s19929_s5 + $0xd94] ss:$28 sps:$4 sm:$0xff]   ;;  %v5811_v10 = vmax.f32 %v12333_v38, 0.0 }
 0x371   :  { %v12365_v29 = vadd.f32 %v5687_v5, %v18337_v34  ;;  %v5689_v51 = vpop.f32.mrb[62].mxu1  ;;  %v5818_v55 = vmax.f32 %v12334_v45, 0.0  ;;  %9556 = vmatprep.subr.bf16.mxu1 %v13514_v41  ;;  %9104 = vmatprep.subr.bf16.mxu0 %v13517_v54  ;;  %v13521_v41 = vld [vmem:[%s19929_s5 + $0xd90] ss:$28 sps:$4 sm:$0xff]  }
 0x372   :  { %v12366_v14 = vadd.f32 %v5689_v51, %v18335_v50  ;;  %v5691_v9 = vpop.f32.mrb[63].mxu1  ;;  %v5819_v32 = vmax.f32 %v12335_v53, 0.0  ;;  %v5812_v27 = vmax.f32 %v12364_v35, 0.0  ;;  %v13518_v50 = vld [vmem:[%s19929_s5 + $0xd98] ss:$28 sps:$4 sm:$0xff]  }
 0x373   :  { %v12367_v5 = vadd.f32 %v5691_v9, %v18337_v34  ;;  %v18655_v12 = vpack.c.bf16 %v5818_v55, %v5810_v47  ;;  %v5813_v61 = vmax.f32 %v12365_v29, 0.0  ;;  %v13526_v38 = vld [vmem:[%s19929_s5 + $0xdd4] ss:$28 sps:$4 sm:$0xff]   ;;  %v13529_v35 = vld [vmem:[%s19929_s5 + $0xdcc] ss:$28 sps:$4 sm:$0xff]  }
 0x374   :  { %v5820_v18 = vmax.f32 %v12366_v14, 0.0  ;;  %v18657_v23 = vpack.c.bf16 %v5819_v32, %v5811_v10  ;;  %9557 = vmatpush1.bf16.msra.mxu1 %v13512_v43  ;;  %9105 = vmatpush1.bf16.msra.mxu0 %v13515_v15  ;;  %v13530_v43 = vld [vmem:[%s19929_s5 + $0x1d8] ss:$28 sps:$4 sm:$0xff]   ;;  %v13531_v53 = vld [vmem:[%s19929_s5 + $0x10] ss:$28 sps:$4 sm:$0xff]  }
 0x375   :  { %v5821_v45 = vmax.f32 %v12367_v5, 0.0  ;;  %9558 = vmatprep.subr.bf16.mxu1 %v13520_v4  ;;  %9106 = vmatprep.subr.bf16.mxu0 %v13523_v6  ;;  %v13533_v29 = vld [vmem:[%s19929_s5 + $0x14] ss:$28 sps:$4 sm:$0xff]   ;;  %v13537_v15 = vld [vmem:[%s19929_s5 + $0x4c] ss:$28 sps:$4 sm:$0xff]  }
 0x376   :  { %v18665_v54 = vpack.c.bf16 %v5820_v18, %v5812_v27  ;;  %9067 = vmatprep.mubr.bf16.mxu0 %v18657_v23  ;;  %9519 = vmatprep.mubr.bf16.mxu1 %v18657_v23  ;;  %v13527_v18 = vld [vmem:[%s19929_s5 + $0xdc8] ss:$28 sps:$4 sm:$0xff]   ;;  %v13534_v51 = vld [vmem:[%s19929_s5 + $0x18] ss:$28 sps:$4 sm:$0xff]   ;;  %v13538_v4 = vld [vmem:[%s19929_s5 + $0x210] ss:$28 sps:$4 sm:$0xff]  }
 0x377   :  { %v18667_v34 = vpack.c.bf16 %v5821_v45, %v5813_v61  ;;  %9068 = vmatmul.mubr.bf16.gmra.mrb[92].mxu0 %v18655_v12  ;;  %9520 = vmatmul.mubr.bf16.gmra.mrb[92].mxu1 %v18655_v12  ;;  %v13524_v61 = vld [vmem:[%s19929_s5 + $0xdd0] ss:$28 sps:$4 sm:$0xff]   ;;  %v13535_v55 = vld [vmem:[%s19929_s5 + $0x48] ss:$28 sps:$4 sm:$0xff]   ;;  %v13539_v6 = vld [vmem:[%s19929_s5 + $0x80] ss:$28 sps:$4 sm:$0xff]  }
 0x378   :  { %9559 = vmatpush1.bf16.msra.mxu1 %v13518_v50  ;;  %9107 = vmatpush1.bf16.msra.mxu0 %v13521_v41  ;;  %v13542_v47 = vld [vmem:[%s19929_s5 + $0x50] ss:$28 sps:$4 sm:$0xff]   ;;  %v13546_v14 = vld [vmem:[%s19929_s5 + $0x248] ss:$28 sps:$4 sm:$0xff]   ;;  %v13545_v32 = vld [vmem:[%s19929_s5 + $0xbc] ss:$28 sps:$4 sm:$0xff]  }
 0x379   :  { %9110 = vmatprep.mubr.bf16.mxu0 %v18366_v46  ;;  %9562 = vmatprep.mubr.bf16.mxu1 %v18366_v46  ;;  %v13541_v9 = vld [vmem:[%s19929_s5 + $0x84] ss:$28 sps:$4 sm:$0xff]   ;;  %v13543_v27 = vld [vmem:[%s19929_s5 + $0xb8] ss:$28 sps:$4 sm:$0xff]  }
 0x37a   :  { %9560 = vmatprep.subr.bf16.mxu1 %v13526_v38  ;;  %9108 = vmatprep.subr.bf16.mxu0 %v13529_v35  ;;  %v13550_v10 = vld [vmem:[%s19929_s5 + $0x88] ss:$28 sps:$4 sm:$0xff]   ;;  %v13554_v5 = vld [vmem:[%s19929_s5 + $0x280] ss:$28 sps:$4 sm:$0xff]   ;;  %v13549_v50 = vld [vmem:[%s19929_s5 + $0xf4] ss:$28 sps:$4 sm:$0xff]  }
 0x37b   :  { %v13558_v45 = vld [vmem:[%s19929_s5 + $0xc0] ss:$28 sps:$4 sm:$0xff]   ;;  %v13562_v41 = vld [vmem:[%s19929_s5 + $0x2b8] ss:$28 sps:$4 sm:$0xff]   ;;  %v13547_v38 = vld [vmem:[%s19929_s5 + $0xf0] ss:$28 sps:$4 sm:$0xff]  }
 0x37c   :  { %9561 = vmatpush1.bf16.msra.mxu1 %v13524_v61  ;;  %9109 = vmatpush1.bf16.msra.mxu0 %v13527_v18  ;;  %v13566_v35 = vld [vmem:[%s19929_s5 + $0xf8] ss:$28 sps:$4 sm:$0xff]   ;;  %v13553_v61 = vld [vmem:[%s19929_s5 + $0x12c] ss:$28 sps:$4 sm:$0xff]  }
 0x37d   :  { %11984 = vmatprep.subr.bf16.mxu1 %v13530_v43  ;;  %9643 = vmatprep.subr.bf16.mxu0 %v13533_v29  ;;  %v13570_v18 = vld [vmem:[%s19929_s5 + $0x2f0] ss:$28 sps:$4 sm:$0xff]   ;;  %v13551_v43 = vld [vmem:[%s19929_s5 + $0x128] ss:$28 sps:$4 sm:$0xff]  }
 0x37e   :  { %v13574_v29 = vld [vmem:[%s19929_s5 + $0x130] ss:$28 sps:$4 sm:$0xff]  }
 0x37f   :  { %9111 = vmatmul.mubr.bf16.vlgmr.msra.gmra.mrb[64].mxu0 %v18357_v37  ;;  %9563 = vmatmul.mubr.bf16.vlgmr.msra.gmra.mrb[64].mxu1 %v18357_v37 }
 0x380   :  { %11985 = vmatpush3.bf16.msra.mxu1 %v13534_v51  ;;  %9120 = vmatprep.mubr.bf16.mxu0 %v18410_v19  ;;  %v13557_v51 = vld [vmem:[%s19929_s5 + $0x164] ss:$28 sps:$4 sm:$0xff]  }
 0x381   :  { %9572 = vmatprep.mubr.bf16.mxu1 %v18410_v19  ;;  %9644 = vmatpush1.bf16.msra.mxu0 %v13531_v53  ;;  %v13578_v53 = vld [vmem:[%s19929_s5 + $0x328] ss:$28 sps:$4 sm:$0xff]  }
 0x382   :  { %9645 = vmatprep.subr.bf16.mxu0 %v13537_v15  ;;  %11986 = vmatprep.subr.bf16.mxu1 %v13538_v4  ;;  %v13555_v15 = vld [vmem:[%s19929_s5 + $0x160] ss:$28 sps:$4 sm:$0xff]   ;;  %v13582_v4 = vld [vmem:[%s19929_s5 + $0x168] ss:$28 sps:$4 sm:$0xff]  }
 0x384   :  { %11987 = vmatpush3.bf16.msra.mxu1 %v13542_v47  ;;  %v13561_v47 = vld [vmem:[%s19929_s5 + $0x19c] ss:$28 sps:$4 sm:$0xff]  }
 0x385   :  { %9646 = vmatpush1.bf16.msra.mxu0 %v13535_v55  ;;  %11988 = vmatprep.subr.bf16.mxu1 %v13546_v14  ;;  %v13586_v55 = vld [vmem:[%s19929_s5 + $0x360] ss:$28 sps:$4 sm:$0xff]   ;;  %v13559_v14 = vld [vmem:[%s19929_s5 + $0x198] ss:$28 sps:$4 sm:$0xff]  }
 0x386   :  { %9647 = vmatprep.subr.bf16.mxu0 %v13541_v9  ;;  %v13590_v9 = vld [vmem:[%s19929_s5 + $0x1a0] ss:$28 sps:$4 sm:$0xff]  }
 0x387   :  { %9121 = vmatmul.mubr.bf16.gmra.mrb[68].mxu0 %v18401_v3  ;;  %9573 = vmatmul.mubr.bf16.gmra.mrb[68].mxu1 %v18401_v3 }
 0x388   :  { %9130 = vmatprep.mubr.bf16.mxu0 %v18454_v36  ;;  %9582 = vmatprep.mubr.bf16.mxu1 %v18454_v36 }
 0x389   :  { %9648 = vmatpush1.bf16.msra.mxu0 %v13539_v6  ;;  %11989 = vmatpush3.bf16.msra.mxu1 %v13550_v10  ;;  %v13565_v6 = vld [vmem:[%s19929_s5 + $0x1d4] ss:$28 sps:$4 sm:$0xff]  }
 0x38a   :  { %9649 = vmatprep.subr.bf16.mxu0 %v13545_v32  ;;  %11990 = vmatprep.subr.bf16.mxu1 %v13554_v5  ;;  %v13594_v10 = vld [vmem:[%s19929_s5 + $0x558] ss:$28 sps:$4 sm:$0xff]   ;;  %v13563_v32 = vld [vmem:[%s19929_s5 + $0x1d0] ss:$28 sps:$4 sm:$0xff]  }
 0x38b   :  { %v13569_v5 = vld [vmem:[%s19929_s5 + $0x20c] ss:$28 sps:$4 sm:$0xff]  }
 0x38d   :  { %9650 = vmatpush1.bf16.msra.mxu0 %v13543_v27  ;;  %11991 = vmatpush3.bf16.msra.mxu1 %v13558_v45  ;;  %v13567_v27 = vld [vmem:[%s19929_s5 + $0x208] ss:$28 sps:$4 sm:$0xff]  }
 0x38e   :  { %9651 = vmatprep.subr.bf16.mxu0 %v13549_v50  ;;  %11992 = vmatprep.subr.bf16.mxu1 %v13562_v41  ;;  %v13573_v45 = vld [vmem:[%s19929_s5 + $0x244] ss:$28 sps:$4 sm:$0xff]   ;;  %v13577_v41 = vld [vmem:[%s19929_s5 + $0x27c] ss:$28 sps:$4 sm:$0xff]  }
 0x38f   :  { %9131 = vmatmul.mubr.bf16.gmra.mrb[72].mxu0 %v18445_v62  ;;  %9583 = vmatmul.mubr.bf16.gmra.mrb[72].mxu1 %v18445_v62  ;;  %v13571_v50 = vld [vmem:[%s19929_s5 + $0x240] ss:$28 sps:$4 sm:$0xff]  }
 0x390   :  { %9140 = vmatprep.mubr.bf16.mxu0 %v18498_v21  ;;  %9592 = vmatprep.mubr.bf16.mxu1 %v18498_v21 }
 0x391   :  { %9652 = vmatpush1.bf16.msra.mxu0 %v13547_v38  ;;  %11993 = vmatpush3.bf16.msra.mxu1 %v13566_v35  ;;  %v13575_v38 = vld [vmem:[%s19929_s5 + $0x278] ss:$28 sps:$4 sm:$0xff]  }
 0x392   :  { %9653 = vmatprep.subr.bf16.mxu0 %v13553_v61  ;;  %11994 = vmatprep.subr.bf16.mxu1 %v13570_v18  ;;  %v13581_v35 = vld [vmem:[%s19929_s5 + $0x2b4] ss:$28 sps:$4 sm:$0xff]   ;;  %v13585_v18 = vld [vmem:[%s19929_s5 + $0x2ec] ss:$28 sps:$4 sm:$0xff]  }
 0x393   :  { %v13579_v61 = vld [vmem:[%s19929_s5 + $0x2b0] ss:$28 sps:$4 sm:$0xff]  }
 0x395   :  { %9654 = vmatpush1.bf16.msra.mxu0 %v13551_v43  ;;  %11995 = vmatpush3.bf16.msra.mxu1 %v13574_v29  ;;  %v13583_v43 = vld [vmem:[%s19929_s5 + $0x2e8] ss:$28 sps:$4 sm:$0xff]  }
 0x396   :  { %9655 = vmatprep.subr.bf16.mxu0 %v13557_v51  ;;  %11996 = vmatprep.subr.bf16.mxu1 %v13578_v53  ;;  %v13589_v29 = vld [vmem:[%s19929_s5 + $0x324] ss:$28 sps:$4 sm:$0xff]   ;;  %v13593_v53 = vld [vmem:[%s19929_s5 + $0x35c] ss:$28 sps:$4 sm:$0xff]  }
 0x397   :  { %9141 = vmatmul.mubr.bf16.gmra.mrb[76].mxu0 %v18489_v16  ;;  %9593 = vmatmul.mubr.bf16.gmra.mrb[76].mxu1 %v18489_v16  ;;  %v13587_v51 = vld [vmem:[%s19929_s5 + $0x320] ss:$28 sps:$4 sm:$0xff]  }
 0x398   :  { %9150 = vmatprep.mubr.bf16.mxu0 %v18542_v2  ;;  %9602 = vmatprep.mubr.bf16.mxu1 %v18542_v2 }
 0x399   :  { %9656 = vmatpush1.bf16.msra.mxu0 %v13555_v15  ;;  %11997 = vmatpush3.bf16.msra.mxu1 %v13582_v4  ;;  %v13591_v15 = vld [vmem:[%s19929_s5 + $0x358] ss:$28 sps:$4 sm:$0xff]  }
 0x39a   :  { %9657 = vmatprep.subr.bf16.mxu0 %v13561_v47  ;;  %11998 = vmatprep.subr.bf16.mxu1 %v13586_v55  ;;  %v13597_v4 = vld [vmem:[%s19929_s5 + $0x394] ss:$28 sps:$4 sm:$0xff]  }
 0x39b   :  { %v13598_v47 = vld [vmem:[%s19929_s5 + $0x398] ss:$28 sps:$4 sm:$0xff]   ;;  %v13595_v55 = vld [vmem:[%s19929_s5 + $0x390] ss:$28 sps:$4 sm:$0xff]  }
 0x39d   :  { %9658 = vmatpush1.bf16.msra.mxu0 %v13559_v14  ;;  %11999 = vmatpush3.bf16.msra.mxu1 %v13590_v9  ;;  %v13602_v14 = vld [vmem:[%s19929_s5 + $0x590] ss:$28 sps:$4 sm:$0xff]  }
 0x39e   :  { %9659 = vmatprep.subr.bf16.mxu0 %v13565_v6  ;;  %12048 = vmatprep.subr.bf16.mxu1 %v13594_v10  ;;  %v13606_v9 = vld [vmem:[%s19929_s5 + $0x3d0] ss:$28 sps:$4 sm:$0xff]   ;;  %v13599_v6 = vld [vmem:[%s19929_s5 + $0x3c8] ss:$28 sps:$4 sm:$0xff]  }
 0x39f   :  { %9151 = vmatmul.mubr.bf16.gmra.mrb[80].mxu0 %v18533_v40  ;;  %9603 = vmatmul.mubr.bf16.gmra.mrb[80].mxu1 %v18533_v40  ;;  %v13610_v10 = vld [vmem:[%s19929_s5 + $0x5c8] ss:$28 sps:$4 sm:$0xff]  }
 0x3a0   :  { %9160 = vmatprep.mubr.bf16.mxu0 %v18586_v0  ;;  %9612 = vmatprep.mubr.bf16.mxu1 %v18586_v0 }
 0x3a1   :  { %9660 = vmatpush1.bf16.msra.mxu0 %v13563_v32  ;;  %v13603_v32 = vld [vmem:[%s19929_s5 + $0x400] ss:$28 sps:$4 sm:$0xff]  }
 0x3a2   :  { %9661 = vmatprep.subr.bf16.mxu0 %v13569_v5  ;;  %v13609_v5 = vld [vmem:[%s19929_s5 + $0x43c] ss:$28 sps:$4 sm:$0xff]  }
 0x3a5   :  { %9662 = vmatpush1.bf16.msra.mxu0 %v13567_v27  ;;  %v13618_v27 = vld [vmem:[%s19929_s5 + $0x600] ss:$28 sps:$4 sm:$0xff]  }
 0x3a6   :  { %9663 = vmatprep.subr.bf16.mxu0 %v13573_v45  ;;  %v13607_v45 = vld [vmem:[%s19929_s5 + $0x438] ss:$28 sps:$4 sm:$0xff]  }
 0x3a7   :  { %9161 = vmatmul.mubr.bf16.gmra.mrb[84].mxu0 %v18577_v8  ;;  %9613 = vmatmul.mubr.bf16.gmra.mrb[84].mxu1 %v18577_v8 }
 0x3a8   :  { %9170 = vmatprep.mubr.bf16.mxu0 %v18630_v48  ;;  %9622 = vmatprep.mubr.bf16.mxu1 %v18630_v48 }
 0x3a9   :  { %9664 = vmatpush1.bf16.msra.mxu0 %v13571_v50  ;;  %v13613_v50 = vld [vmem:[%s19929_s5 + $0x474] ss:$28 sps:$4 sm:$0xff]  }
 0x3aa   :  { %9665 = vmatprep.subr.bf16.mxu0 %v13577_v41  ;;  %v13622_v41 = vld [vmem:[%s19929_s5 + $0x440] ss:$28 sps:$4 sm:$0xff]  }
 0x3ad   :  { %9666 = vmatpush1.bf16.msra.mxu0 %v13575_v38  ;;  %v13617_v38 = vld [vmem:[%s19929_s5 + $0x4ac] ss:$28 sps:$4 sm:$0xff]  }
 0x3ae   :  { %9667 = vmatprep.subr.bf16.mxu0 %v13581_v35  ;;  %v13630_v35 = vld [vmem:[%s19929_s5 + $0x478] ss:$28 sps:$4 sm:$0xff]  }
 0x3af   :  { %9171 = vmatmul.mubr.bf16.gmra.mrb[88].mxu0 %v18621_v56  ;;  %9623 = vmatmul.mubr.bf16.gmra.mrb[88].mxu1 %v18621_v56 }
 0x3b0   :  { %9180 = vmatprep.mubr.bf16.mxu0 %v18667_v34  ;;  %9632 = vmatprep.mubr.bf16.mxu1 %v18667_v34 }
 0x3b1   :  { %9668 = vmatpush1.bf16.msra.mxu0 %v13579_v61  ;;  %v13634_v61 = vld [vmem:[%s19929_s5 + $0x670] ss:$28 sps:$4 sm:$0xff]  }
 0x3b2   :  { %9669 = vmatprep.subr.bf16.mxu0 %v13585_v18  ;;  %v13615_v18 = vld [vmem:[%s19929_s5 + $0x4a8] ss:$28 sps:$4 sm:$0xff]  }
 0x3b5   :  { %9670 = vmatpush1.bf16.msra.mxu0 %v13583_v43  ;;  %v13621_v43 = vld [vmem:[%s19929_s5 + $0x4e4] ss:$28 sps:$4 sm:$0xff]  }
 0x3b6   :  { %9671 = vmatprep.subr.bf16.mxu0 %v13589_v29  ;;  %v13638_v29 = vld [vmem:[%s19929_s5 + $0x4b0] ss:$28 sps:$4 sm:$0xff]  }
 0x3b7   :  { %9181 = vmatmul.mubr.bf16.gmra.mrb[92].mxu0 %v18665_v54  ;;  %9633 = vmatmul.mubr.bf16.gmra.mrb[92].mxu1 %v18665_v54 }
 0x3b8   :  { %9675 = vmatprep.mubr.bf16.mxu0 %v17315_v13  ;;  %10127 = vmatprep.mubr.bf16.mxu1 %v17315_v13  ;;  %v13601_v13 = vld [vmem:[%s19929_s5 + $0x3cc] ss:$28 sps:$4 sm:$0xff]  }
 0x3b9   :  { %9672 = vmatpush1.bf16.msra.mxu0 %v13587_v51  ;;  %v13625_v51 = vld [vmem:[%s19929_s5 + $0x51c] ss:$28 sps:$4 sm:$0xff]  }
 0x3ba   :  { %9673 = vmatprep.subr.bf16.mxu0 %v13593_v53  ;;  %v13646_v53 = vld [vmem:[%s19929_s5 + $0x4e8] ss:$28 sps:$4 sm:$0xff]  }
 0x3bd   :  { %9674 = vmatpush1.bf16.msra.mxu0 %v13591_v15  ;;  %v13650_v15 = vld [vmem:[%s19929_s5 + $0x6e0] ss:$28 sps:$4 sm:$0xff]  }
 0x3be   :  { %9756 = vmatprep.subr.bf16.mxu0 %v13597_v4  ;;  %v13623_v4 = vld [vmem:[%s19929_s5 + $0x518] ss:$28 sps:$4 sm:$0xff]  }
 0x3bf   :  { %10128 = vmatmul.mubr.bf16.vlgmr.msra.gmra.mrb[96].mxu1 %v17310_v11 }
 0x3c0   :  { %9676 = vmatmul.mubr.bf16.vlgmr.msra.gmra.mrb[96].mxu0 %v17310_v11  ;;  %12049 = vmatpush3.bf16.msra.mxu1 %v13598_v47  ;;  %v13605_v11 = vld [vmem:[%s19929_s5 + $0x404] ss:$28 sps:$4 sm:$0xff]   ;;  %v13629_v47 = vld [vmem:[%s19929_s5 + $0x554] ss:$28 sps:$4 sm:$0xff]  }
 0x3c1   :  { %9685 = vmatprep.mubr.bf16.mxu0 %v17391_v1  ;;  %9757 = vmatpush1.bf16.msra.mxu0 %v13595_v55  ;;  %v13654_v55 = vld [vmem:[%s19929_s5 + $0x520] ss:$28 sps:$4 sm:$0xff]  }
 0x3c2   :  { %10135 = vmatprep.mubr.bf16.mxu1 %v17391_v1  ;;  %9758 = vmatprep.subr.bf16.mxu0 %v13601_v13  ;;  %v13614_v1 = vld [vmem:[%s19929_s5 + $0x408] ss:$28 sps:$4 sm:$0xff]  }
 0x3c3   :  { %12050 = vmatprep.subr.bf16.mxu1 %v13602_v14  ;;  %v13633_v13 = vld [vmem:[%s19929_s5 + $0x58c] ss:$28 sps:$4 sm:$0xff]  }
 0x3c4   :  { %12051 = vmatpush3.bf16.msra.mxu1 %v13606_v9  ;;  %v13631_v14 = vld [vmem:[%s19929_s5 + $0x588] ss:$28 sps:$4 sm:$0xff]  }
 0x3c5   :  { %9759 = vmatpush1.bf16.msra.mxu0 %v13599_v6  ;;  %12052 = vmatprep.subr.bf16.mxu1 %v13610_v10  ;;  %v13637_v9 = vld [vmem:[%s19929_s5 + $0x5c4] ss:$28 sps:$4 sm:$0xff]   ;;  %v13645_v10 = vld [vmem:[%s19929_s5 + $0x634] ss:$28 sps:$4 sm:$0xff]  }
 0x3c6   :  { %9760 = vmatprep.subr.bf16.mxu0 %v13605_v11  ;;  %v13635_v6 = vld [vmem:[%s19929_s5 + $0x5c0] ss:$28 sps:$4 sm:$0xff]   ;;  %v13643_v11 = vld [vmem:[%s19929_s5 + $0x630] ss:$28 sps:$4 sm:$0xff]  }
 0x3c7   :  { %10136 = vmatmul.mubr.bf16.gmra.mrb[100].mxu1 %v17386_v20 }
 0x3c8   :  { %9686 = vmatmul.mubr.bf16.gmra.mrb[100].mxu0 %v17386_v20  ;;  %10143 = vmatprep.mubr.bf16.mxu1 %v17467_v52  ;;  %v13626_v20 = vld [vmem:[%s19929_s5 + $0x638] ss:$28 sps:$4 sm:$0xff]  }
 0x3c9   :  { %9695 = vmatprep.mubr.bf16.mxu0 %v17467_v52  ;;  %9761 = vmatpush1.bf16.msra.mxu0 %v13603_v32  ;;  %v13611_v52 = vld [vmem:[%s19929_s5 + $0x470] ss:$28 sps:$4 sm:$0xff]   ;;  %v13653_v32 = vld [vmem:[%s19929_s5 + $0x6a4] ss:$28 sps:$4 sm:$0xff]  }
 0x3ca   :  { %9762 = vmatprep.subr.bf16.mxu0 %v13609_v5  ;;  %12053 = vmatpush3.bf16.msra.mxu1 %v13614_v1  ;;  %v13651_v5 = vld [vmem:[%s19929_s5 + $0x6a0] ss:$28 sps:$4 sm:$0xff]   ;;  %v13661_v1 = vld [vmem:[%s19929_s5 + $0x714] ss:$28 sps:$4 sm:$0xff]  }
 0x3cb   :  { %12054 = vmatprep.subr.bf16.mxu1 %v13618_v27  ;;  %v13662_v27 = vld [vmem:[%s19929_s5 + $0x718] ss:$28 sps:$4 sm:$0xff]  }
 0x3cd   :  { %9763 = vmatpush1.bf16.msra.mxu0 %v13607_v45  ;;  %v13666_v45 = vld [vmem:[%s19929_s5 + $0x910] ss:$28 sps:$4 sm:$0xff]  }
 0x3ce   :  { %9764 = vmatprep.subr.bf16.mxu0 %v13613_v50  ;;  %12055 = vmatpush3.bf16.msra.mxu1 %v13622_v41  ;;  %v13670_v50 = vld [vmem:[%s19929_s5 + $0x750] ss:$28 sps:$4 sm:$0xff]   ;;  %v13663_v41 = vld [vmem:[%s19929_s5 + $0x748] ss:$28 sps:$4 sm:$0xff]  }
 0x3cf   :  { %10144 = vmatmul.mubr.bf16.gmra.mrb[104].mxu1 %v17462_v57  ;;  %12056 = vmatprep.subr.bf16.mxu1 %v13626_v20  ;;  %v13674_v20 = vld [vmem:[%s19929_s5 + $0x948] ss:$28 sps:$4 sm:$0xff]  }
 0x3d0   :  { %9696 = vmatmul.mubr.bf16.gmra.mrb[104].mxu0 %v17462_v57  ;;  %10151 = vmatprep.mubr.bf16.mxu1 %v17541_v60  ;;  %v13642_v57 = vld [vmem:[%s19929_s5 + $0x6a8] ss:$28 sps:$4 sm:$0xff]  }
 0x3d1   :  { %9705 = vmatprep.mubr.bf16.mxu0 %v17541_v60  ;;  %9765 = vmatpush1.bf16.msra.mxu0 %v13611_v52  ;;  %v13619_v60 = vld [vmem:[%s19929_s5 + $0x4e0] ss:$28 sps:$4 sm:$0xff]  }
 0x3d2   :  { %9766 = vmatprep.subr.bf16.mxu0 %v13617_v38  ;;  %12057 = vmatpush3.bf16.msra.mxu1 %v13630_v35  ;;  %v13667_v52 = vld [vmem:[%s19929_s5 + $0x780] ss:$28 sps:$4 sm:$0xff]  }
 0x3d3   :  { %12058 = vmatprep.subr.bf16.mxu1 %v13634_v61  ;;  %v13673_v38 = vld [vmem:[%s19929_s5 + $0x7bc] ss:$28 sps:$4 sm:$0xff]  }
 0x3d4   :  { %v13682_v35 = vld [vmem:[%s19929_s5 + $0x980] ss:$28 sps:$4 sm:$0xff]   ;;  %v13671_v61 = vld [vmem:[%s19929_s5 + $0x7b8] ss:$28 sps:$4 sm:$0xff]  }
 0x3d5   :  { %9767 = vmatpush1.bf16.msra.mxu0 %v13615_v18  ;;  %v13677_v18 = vld [vmem:[%s19929_s5 + $0x7f4] ss:$28 sps:$4 sm:$0xff]  }
 0x3d6   :  { %9768 = vmatprep.subr.bf16.mxu0 %v13621_v43  ;;  %12059 = vmatpush3.bf16.msra.mxu1 %v13638_v29  ;;  %v13686_v43 = vld [vmem:[%s19929_s5 + $0x7c0] ss:$28 sps:$4 sm:$0xff]   ;;  %v13681_v29 = vld [vmem:[%s19929_s5 + $0x82c] ss:$28 sps:$4 sm:$0xff]  }
 0x3d7   :  { %10152 = vmatmul.mubr.bf16.gmra.mrb[108].mxu1 %v17536_v49  ;;  %12060 = vmatprep.subr.bf16.mxu1 %v13642_v57  ;;  %v13694_v57 = vld [vmem:[%s19929_s5 + $0x7f8] ss:$28 sps:$4 sm:$0xff]  }
 0x3d8   :  { %9706 = vmatmul.mubr.bf16.gmra.mrb[108].mxu0 %v17536_v49  ;;  %10159 = vmatprep.mubr.bf16.mxu1 %v17588_v17  ;;  %v13658_v49 = vld [vmem:[%s19929_s5 + $0x8d8] ss:$28 sps:$4 sm:$0xff]  }
 0x3d9   :  { %9715 = vmatprep.mubr.bf16.mxu0 %v17588_v17  ;;  %9769 = vmatpush1.bf16.msra.mxu0 %v13619_v60  ;;  %v13627_v17 = vld [vmem:[%s19929_s5 + $0x550] ss:$28 sps:$4 sm:$0xff]  }
 0x3da   :  { %9770 = vmatprep.subr.bf16.mxu0 %v13625_v51  ;;  %12061 = vmatpush3.bf16.msra.mxu1 %v13646_v53  ;;  %v13698_v60 = vld [vmem:[%s19929_s5 + $0x9f0] ss:$28 sps:$4 sm:$0xff]   ;;  %v13679_v51 = vld [vmem:[%s19929_s5 + $0x828] ss:$28 sps:$4 sm:$0xff]  }
 0x3db   :  { %12062 = vmatprep.subr.bf16.mxu1 %v13650_v15  ;;  %v13685_v53 = vld [vmem:[%s19929_s5 + $0x864] ss:$28 sps:$4 sm:$0xff]   ;;  %v13702_v15 = vld [vmem:[%s19929_s5 + $0x830] ss:$28 sps:$4 sm:$0xff]  }
 0x3dd   :  { %9771 = vmatpush1.bf16.msra.mxu0 %v13623_v4  ;;  %v13689_v4 = vld [vmem:[%s19929_s5 + $0x89c] ss:$28 sps:$4 sm:$0xff]  }
 0x3de   :  { %9772 = vmatprep.subr.bf16.mxu0 %v13629_v47  ;;  %12063 = vmatpush3.bf16.msra.mxu1 %v13654_v55  ;;  %v13710_v47 = vld [vmem:[%s19929_s5 + $0x868] ss:$28 sps:$4 sm:$0xff]   ;;  %v13714_v55 = vld [vmem:[%s19929_s5 + $0xa60] ss:$28 sps:$4 sm:$0xff]  }
 0x3df   :  { %10160 = vmatmul.mubr.bf16.gmra.mrb[112].mxu1 %v17582_v42  ;;  %12112 = vmatprep.subr.bf16.mxu1 %v13658_v49  ;;  %v20401_v49 = vld [vmem:[#allocation16_spill] sm:$0xff] }
 0x3e0   :  { %9716 = vmatmul.mubr.bf16.gmra.mrb[112].mxu0 %v17582_v42  ;;  %10167 = vmatprep.mubr.bf16.mxu1 %v17637_v30  ;;  %v13641_v42 = vld [vmem:[%s19929_s5 + $0x5fc] ss:$28 sps:$4 sm:$0xff]  }
 0x3e1   :  { %9725 = vmatprep.mubr.bf16.mxu0 %v17637_v30  ;;  %9773 = vmatpush1.bf16.msra.mxu0 %v13627_v17  ;;  %v13639_v30 = vld [vmem:[%s19929_s5 + $0x5f8] ss:$28 sps:$4 sm:$0xff]  }
 0x3e2   :  { %9774 = vmatprep.subr.bf16.mxu0 %v13633_v13  ;;  %v13687_v17 = vld [vmem:[%s19929_s5 + $0x898] ss:$28 sps:$4 sm:$0xff]  }
 0x3e3   :  { %v13693_v13 = vld [vmem:[%s19929_s5 + $0x8d4] ss:$28 sps:$4 sm:$0xff]  }
 0x3e5   :  { %9775 = vmatpush1.bf16.msra.mxu0 %v13631_v14  ;;  %v13718_v14 = vld [vmem:[%s19929_s5 + $0x8a0] ss:$28 sps:$4 sm:$0xff]  }
 0x3e6   :  { %9776 = vmatprep.subr.bf16.mxu0 %v13637_v9  ;;  %v13691_v9 = vld [vmem:[%s19929_s5 + $0x8d0] ss:$28 sps:$4 sm:$0xff]  }
 0x3e7   :  { %10168 = vmatmul.mubr.bf16.gmra.mrb[116].mxu1 %v17631_v22 }
 0x3e8   :  { %9726 = vmatmul.mubr.bf16.gmra.mrb[116].mxu0 %v17631_v22  ;;  %10175 = vmatprep.mubr.bf16.mxu1 %v17681_v63  ;;  %v13649_v22 = vld [vmem:[%s19929_s5 + $0x66c] ss:$28 sps:$4 sm:$0xff]  }
 0x3e9   :  { %9735 = vmatprep.mubr.bf16.mxu0 %v17681_v63  ;;  %9777 = vmatpush1.bf16.msra.mxu0 %v13635_v6  ;;  %v13647_v63 = vld [vmem:[%s19929_s5 + $0x668] ss:$28 sps:$4 sm:$0xff]  }
 0x3ea   :  { %9778 = vmatprep.subr.bf16.mxu0 %v13641_v42  ;;  %v13697_v6 = vld [vmem:[%s19929_s5 + $0x90c] ss:$28 sps:$4 sm:$0xff]  }
 0x3eb   :  { %v20402_v42 = vld [vmem:[#allocation7_spill] sm:$0xff] }
 0x3ed   :  { %9779 = vmatpush1.bf16.msra.mxu0 %v13639_v30  ;;  %v20403_v30 = vld [vmem:[#allocation51_spill] sm:$0xff] }
 0x3ee   :  { %9780 = vmatprep.subr.bf16.mxu0 %v13645_v10  ;;  %v13695_v10 = vld [vmem:[%s19929_s5 + $0x908] ss:$28 sps:$4 sm:$0xff]  }
 0x3ef   :  { %10176 = vmatmul.mubr.bf16.gmra.mrb[120].mxu1 %v17675_v24 }
 0x3f0   :  { %9736 = vmatmul.mubr.bf16.gmra.mrb[120].mxu0 %v17675_v24  ;;  %10183 = vmatprep.mubr.bf16.mxu1 %v17725_v33  ;;  %v13657_v24 = vld [vmem:[%s19929_s5 + $0x6dc] ss:$28 sps:$4 sm:$0xff]  }
 0x3f1   :  { %9745 = vmatprep.mubr.bf16.mxu0 %v17725_v33  ;;  %9781 = vmatpush1.bf16.msra.mxu0 %v13643_v11  ;;  %v13655_v33 = vld [vmem:[%s19929_s5 + $0x6d8] ss:$28 sps:$4 sm:$0xff]   ;;  %v13701_v11 = vld [vmem:[%s19929_s5 + $0x944] ss:$28 sps:$4 sm:$0xff]  }
 0x3f2   :  { %9782 = vmatprep.subr.bf16.mxu0 %v13649_v22  ;;  %v13699_v22 = vld [vmem:[%s19929_s5 + $0x940] ss:$28 sps:$4 sm:$0xff]  }
 0x3f5   :  { %9783 = vmatpush1.bf16.msra.mxu0 %v13647_v63  ;;  %v13705_v63 = vld [vmem:[%s19929_s5 + $0x97c] ss:$28 sps:$4 sm:$0xff]  }
 0x3f6   :  { %9784 = vmatprep.subr.bf16.mxu0 %v13653_v32  ;;  %v20404_v32 = vld [vmem:[#allocation32_spill] sm:$0xff] }
 0x3f7   :  { %10184 = vmatmul.mubr.bf16.gmra.mrb[124].mxu1 %v17719_v31 }
 0x3f8   :  { %9746 = vmatmul.mubr.bf16.gmra.mrb[124].mxu0 %v17719_v31  ;;  %10224 = vmatprep.mubr.bf16.mxu1 %v17345_v28  ;;  %v13659_v31 = vld [vmem:[%s19929_s5 + $0x710] ss:$28 sps:$4 sm:$0xff]  }
 0x3f9   :  { %9785 = vmatpush1.bf16.msra.mxu0 %v13651_v5  ;;  %9788 = vmatprep.mubr.bf16.mxu0 %v17345_v28  ;;  %v13665_v28 = vld [vmem:[%s19929_s5 + $0x74c] ss:$28 sps:$4 sm:$0xff]   ;;  %v20405_v5 = vld [vmem:[#allocation4_spill] sm:$0xff] }
 0x3fa   :  { %9786 = vmatprep.subr.bf16.mxu0 %v13657_v24  ;;  %v13703_v24 = vld [vmem:[%s19929_s5 + $0x978] ss:$28 sps:$4 sm:$0xff]  }
 0x3fd   :  { %9787 = vmatpush1.bf16.msra.mxu0 %v13655_v33  ;;  %v13709_v33 = vld [vmem:[%s19929_s5 + $0x9b4] ss:$28 sps:$4 sm:$0xff]  }
 0x3fe   :  { %9869 = vmatprep.subr.bf16.mxu0 %v13661_v1  ;;  %v13707_v1 = vld [vmem:[%s19929_s5 + $0x9b0] ss:$28 sps:$4 sm:$0xff]  }
 0x3ff   :  { %10225 = vmatmul.mubr.bf16.vlgmr.msra.gmra.mrb[128].mxu1 %v17330_v26 }
 0x400   :  { %9789 = vmatmul.mubr.bf16.vlgmr.msra.gmra.mrb[96].mxu0 %v17330_v26  ;;  %12113 = vmatpush3.bf16.msra.mxu1 %v13662_v27  ;;  %v13669_v26 = vld [vmem:[%s19929_s5 + $0x784] ss:$28 sps:$4 sm:$0xff]   ;;  %v13713_v27 = vld [vmem:[%s19929_s5 + $0x9ec] ss:$28 sps:$4 sm:$0xff]  }
 0x401   :  { %9798 = vmatprep.mubr.bf16.mxu0 %v17421_v44  ;;  %9870 = vmatpush1.bf16.msra.mxu0 %v13659_v31  ;;  %v20406_v31 = vld [vmem:[#allocation52_spill] sm:$0xff] }
 0x402   :  { %10232 = vmatprep.mubr.bf16.mxu1 %v17421_v44  ;;  %9871 = vmatprep.subr.bf16.mxu0 %v13665_v28  ;;  %v13678_v44 = vld [vmem:[%s19929_s5 + $0x788] ss:$28 sps:$4 sm:$0xff]  }
 0x403   :  { %12114 = vmatprep.subr.bf16.mxu1 %v13666_v45  ;;  %v20407_v28 = vld [vmem:[#allocation38_spill] sm:$0xff] }
 0x404   :  { %12115 = vmatpush3.bf16.msra.mxu1 %v13670_v50  ;;  %v13711_v45 = vld [vmem:[%s19929_s5 + $0x9e8] ss:$28 sps:$4 sm:$0xff]  }
 0x405   :  { %9872 = vmatpush1.bf16.msra.mxu0 %v13663_v41  ;;  %12116 = vmatprep.subr.bf16.mxu1 %v13674_v20  ;;  %v13717_v50 = vld [vmem:[%s19929_s5 + $0xa24] ss:$28 sps:$4 sm:$0xff]   ;;  %v13721_v20 = vld [vmem:[%s19929_s5 + $0xa5c] ss:$28 sps:$4 sm:$0xff]  }
 0x406   :  { %9873 = vmatprep.subr.bf16.mxu0 %v13669_v26  ;;  %v13715_v41 = vld [vmem:[%s19929_s5 + $0xa20] ss:$28 sps:$4 sm:$0xff]   ;;  %v20408_v26 = vld [vmem:[#allocation19_spill] sm:$0xff] }
 0x407   :  { %10233 = vmatmul.mubr.bf16.gmra.mrb[132].mxu1 %v17406_v7 }
 0x408   :  { %9799 = vmatmul.mubr.bf16.gmra.mrb[100].mxu0 %v17406_v7  ;;  %10240 = vmatprep.mubr.bf16.mxu1 %v17497_v58  ;;  %v13690_v7 = vld [vmem:[%s19929_s5 + $0x9b8] ss:$28 sps:$4 sm:$0xff]  }
 0x409   :  { %9808 = vmatprep.mubr.bf16.mxu0 %v17497_v58  ;;  %9874 = vmatpush1.bf16.msra.mxu0 %v13667_v52  ;;  %v13675_v58 = vld [vmem:[%s19929_s5 + $0x7f0] ss:$28 sps:$4 sm:$0xff]  }
 0x40a   :  { %9875 = vmatprep.subr.bf16.mxu0 %v13673_v38  ;;  %12117 = vmatpush3.bf16.msra.mxu1 %v13678_v44  ;;  %v20409_v52 = vld [vmem:[#allocation36_spill] sm:$0xff] }
 0x40b   :  { %12118 = vmatprep.subr.bf16.mxu1 %v13682_v35  ;;  %v13719_v38 = vld [vmem:[%s19929_s5 + $0xa58] ss:$28 sps:$4 sm:$0xff]  }
 0x40c   :  { %v13725_v44 = vld [vmem:[%s19929_s5 + $0xa94] ss:$28 sps:$4 sm:$0xff]  }
 0x40d   :  { %9876 = vmatpush1.bf16.msra.mxu0 %v13671_v61  ;;  %v13726_v35 = vld [vmem:[%s19929_s5 + $0xa98] ss:$28 sps:$4 sm:$0xff]   ;;  %v13723_v61 = vld [vmem:[%s19929_s5 + $0xa90] ss:$28 sps:$4 sm:$0xff]  }
 0x40e   :  { %9877 = vmatprep.subr.bf16.mxu0 %v13677_v18  ;;  %12119 = vmatpush3.bf16.msra.mxu1 %v13686_v43  ;;  %v13729_v18 = vld [vmem:[%s19929_s5 + $0xacc] ss:$28 sps:$4 sm:$0xff]   ;;  %v20410_v43 = vld [vmem:[#allocation8_spill] sm:$0xff] }
 0x40f   :  { %10241 = vmatmul.mubr.bf16.gmra.mrb[136].mxu1 %v17482_v59  ;;  %12120 = vmatprep.subr.bf16.mxu1 %v13690_v7  ;;  %v13730_v7 = vld [vmem:[%s19929_s5 + $0xc90] ss:$28 sps:$4 sm:$0xff]  }
 0x410   :  { %9809 = vmatmul.mubr.bf16.gmra.mrb[104].mxu0 %v17482_v59  ;;  %10248 = vmatprep.mubr.bf16.mxu1 %v17566_v25  ;;  %v13706_v59 = vld [vmem:[%s19929_s5 + $0xa28] ss:$28 sps:$4 sm:$0xff]  }
 0x411   :  { %9818 = vmatprep.mubr.bf16.mxu0 %v17566_v25  ;;  %9878 = vmatpush1.bf16.msra.mxu0 %v13675_v58  ;;  %v13683_v25 = vld [vmem:[%s19929_s5 + $0x860] ss:$28 sps:$4 sm:$0xff]   ;;  %v13734_v58 = vld [vmem:[%s19929_s5 + $0xad0] ss:$28 sps:$4 sm:$0xff]  }
 0x412   :  { %9879 = vmatprep.subr.bf16.mxu0 %v13681_v29  ;;  %12121 = vmatpush3.bf16.msra.mxu1 %v13694_v57  ;;  %v20411_v29 = vld [vmem:[#allocation6_spill] sm:$0xff] }
 0x413   :  { %12122 = vmatprep.subr.bf16.mxu1 %v13698_v60  ;;  %v13727_v57 = vld [vmem:[%s19929_s5 + $0xac8] ss:$28 sps:$4 sm:$0xff]  }
 0x414   :  { %v13738_v60 = vld [vmem:[%s19929_s5 + $0xcc8] ss:$28 sps:$4 sm:$0xff]  }
 0x415   :  { %9880 = vmatpush1.bf16.msra.mxu0 %v13679_v51  ;;  %v13733_v51 = vld [vmem:[%s19929_s5 + $0xb04] ss:$28 sps:$4 sm:$0xff]  }
 0x416   :  { %9881 = vmatprep.subr.bf16.mxu0 %v13685_v53  ;;  %12123 = vmatpush3.bf16.msra.mxu1 %v13702_v15  ;;  %v13731_v53 = vld [vmem:[%s19929_s5 + $0xb00] ss:$28 sps:$4 sm:$0xff]  }
 0x417   :  { %10249 = vmatmul.mubr.bf16.gmra.mrb[140].mxu1 %v17552_v39  ;;  %12124 = vmatprep.subr.bf16.mxu1 %v13706_v59  ;;  %v13737_v15 = vld [vmem:[%s19929_s5 + $0xb3c] ss:$28 sps:$4 sm:$0xff]   ;;  %v13742_v59 = vld [vmem:[%s19929_s5 + $0xb08] ss:$28 sps:$4 sm:$0xff]  }
 0x418   :  { %9819 = vmatmul.mubr.bf16.gmra.mrb[108].mxu0 %v17552_v39  ;;  %10256 = vmatprep.mubr.bf16.mxu1 %v20401_v49  ;;  %v13722_v39 = vld [vmem:[%s19929_s5 + $0xc58] ss:$28 sps:$4 sm:$0xff]  }
 0x419   :  { %9828 = vmatprep.mubr.bf16.mxu0 %v20401_v49  ;;  %9882 = vmatpush1.bf16.msra.mxu0 %v13683_v25  ;;  %v20412_v25 = vld [vmem:[#allocation50_spill] sm:$0xff]  ;;  %v13741_v49 = vld [vmem:[%s19929_s5 + $0xb74] ss:$28 sps:$4 sm:$0xff]  }
 0x41a   :  { %9883 = vmatprep.subr.bf16.mxu0 %v13689_v4  ;;  %12125 = vmatpush3.bf16.msra.mxu1 %v13710_v47  ;;  %v13746_v4 = vld [vmem:[%s19929_s5 + $0xd00] ss:$28 sps:$4 sm:$0xff]  }
 0x41b   :  { %12126 = vmatprep.subr.bf16.mxu1 %v13714_v55  ;;  %v20413_v47 = vld [vmem:[#allocation29_spill] sm:$0xff] }
 0x41c   :  { %v13735_v55 = vld [vmem:[%s19929_s5 + $0xb38] ss:$28 sps:$4 sm:$0xff]  }
 0x41d   :  { %9884 = vmatpush1.bf16.msra.mxu0 %v13687_v17  ;;  %v13750_v17 = vld [vmem:[%s19929_s5 + $0xb40] ss:$28 sps:$4 sm:$0xff]  }
 0x41e   :  { %9885 = vmatprep.subr.bf16.mxu0 %v13693_v13  ;;  %12127 = vmatpush3.bf16.msra.mxu1 %v13718_v14  ;;  %v13754_v13 = vld [vmem:[%s19929_s5 + $0xd38] ss:$28 sps:$4 sm:$0xff]   ;;  %v13739_v14 = vld [vmem:[%s19929_s5 + $0xb70] ss:$28 sps:$4 sm:$0xff]  }
 0x41f   :  { %10257 = vmatmul.mubr.bf16.gmra.mrb[144].mxu1 %v20402_v42  ;;  %12176 = vmatprep.subr.bf16.mxu1 %v13722_v39  ;;  %v19283_v39 = vld [vmem:[%s19931_s6] sm:$0x7f] }
 0x420   :  { %9829 = vmatmul.mubr.bf16.gmra.mrb[112].mxu0 %v20402_v42  ;;  %10264 = vmatprep.mubr.bf16.mxu1 %v20403_v30  ;;  %v20414_v42 = vld [vmem:[#allocation28_spill] sm:$0xff] }
 0x421   :  { %9838 = vmatprep.mubr.bf16.mxu0 %v20403_v30  ;;  %9886 = vmatpush1.bf16.msra.mxu0 %v13691_v9  ;;  %v13745_v9 = vld [vmem:[%s19929_s5 + $0xbac] ss:$28 sps:$4 sm:$0xff]  }
 0x422   :  { %9887 = vmatprep.subr.bf16.mxu0 %v13697_v6  ;;  %v13758_v6 = vld [vmem:[%s19929_s5 + $0xb78] ss:$28 sps:$4 sm:$0xff]   ;;  %v13762_v30 = vld [vmem:[%s19929_s5 + $0xd70] ss:$28 sps:$4 sm:$0xff]  }
 0x425   :  { %9888 = vmatpush1.bf16.msra.mxu0 %v13695_v10  ;;  %v20415_v10 = vld [vmem:[#allocation13_spill] sm:$0xff] }
 0x426   :  { %9889 = vmatprep.subr.bf16.mxu0 %v13701_v11  ;;  %v20416_v11 = vld [vmem:[#allocation3_spill] sm:$0xff] }
 0x427   :  { %10265 = vmatmul.mubr.bf16.gmra.mrb[148].mxu1 %v20404_v32 }
 0x428   :  { %9839 = vmatmul.mubr.bf16.gmra.mrb[116].mxu0 %v20404_v32  ;;  %10272 = vmatprep.mubr.bf16.mxu1 %v20405_v5 }
 0x429   :  { %9848 = vmatprep.mubr.bf16.mxu0 %v20405_v5  ;;  %9890 = vmatpush1.bf16.msra.mxu0 %v13699_v22  ;;  %v19299_v22 = vrot.slane %v19283_v39, %v20416_v11 }
 0x42a   :  { %9891 = vmatprep.subr.bf16.mxu0 %v13705_v63  ;;  %v20417_v63 = vld [vmem:[#allocation2_spill] sm:$0xff] }
 0x42b   :  { %v20418_v32 = vsub.s32 2, %v20417_v63 }
 0x42d   :  { %9892 = vmatpush1.bf16.msra.mxu0 %v13703_v24  ;;  %v19305_v5 = vrot.slane %v19283_v39, %v20418_v32  ;;  %v20419_v24 = vsub.s32 1, %v20417_v63 }
 0x42e   :  { %9893 = vmatprep.subr.bf16.mxu0 %v13709_v33 }
 0x42f   :  { %10273 = vmatmul.mubr.bf16.gmra.mrb[152].mxu1 %v20406_v31  ;;  %v19310_v33 = vrot.slane %v19283_v39, %v20419_v24 }
 0x430   :  { %9849 = vmatmul.mubr.bf16.gmra.mrb[120].mxu0 %v20406_v31  ;;  %10280 = vmatprep.mubr.bf16.mxu1 %v20407_v28 }
 0x431   :  { %9858 = vmatprep.mubr.bf16.mxu0 %v20407_v28  ;;  %9894 = vmatpush1.bf16.msra.mxu0 %v13707_v1  ;;  %v13743_v1 = vld [vmem:[%s19929_s5 + $0xba8] ss:$28 sps:$4 sm:$0xff]   ;;  %v20420_v28 = vsub.s32 3, %v20417_v63 }
 0x432   :  { %9895 = vmatprep.subr.bf16.mxu0 %v13713_v27 }
 0x435   :  { %9896 = vmatpush1.bf16.msra.mxu0 %v13711_v45  ;;  %v19318_v45 = vrot.slane %v19283_v39, %v20420_v28 }
 0x436   :  { %9897 = vmatprep.subr.bf16.mxu0 %v13717_v50  ;;  %v13749_v50 = vld [vmem:[%s19929_s5 + $0xbe4] ss:$28 sps:$4 sm:$0xff]  }
 0x437   :  { %10281 = vmatmul.mubr.bf16.gmra.mrb[156].mxu1 %v20408_v26 }
 0x438   :  { %9859 = vmatmul.mubr.bf16.gmra.mrb[124].mxu0 %v20408_v26  ;;  %10321 = vmatprep.mubr.bf16.mxu1 %v20409_v52 }
 0x439   :  { %9898 = vmatpush1.bf16.msra.mxu0 %v13715_v41  ;;  %9901 = vmatprep.mubr.bf16.mxu0 %v20409_v52  ;;  %v13766_v41 = vld [vmem:[%s19929_s5 + $0xbb0] ss:$28 sps:$4 sm:$0xff]   ;;  %v13770_v52 = vld [vmem:[%s19929_s5 + $0xda8] ss:$28 sps:$4 sm:$0xff]  }
 0x43a   :  { %9899 = vmatprep.subr.bf16.mxu0 %v13721_v20 }
 0x43d   :  { %9900 = vmatpush1.bf16.msra.mxu0 %v13719_v38 }
 0x43e   :  { %9982 = vmatprep.subr.bf16.mxu0 %v13725_v44 }
 0x43f   :  { %10322 = vmatmul.mubr.bf16.vlgmr.msra.gmra.mrb[160].mxu1 %v20410_v43 }
 0x440   :  { %9902 = vmatmul.mubr.bf16.vlgmr.msra.gmra.mrb[96].mxu0 %v20410_v43  ;;  %12177 = vmatpush3.bf16.msra.mxu1 %v13726_v35 }
 0x441   :  { %9911 = vmatprep.mubr.bf16.mxu0 %v20411_v29  ;;  %9983 = vmatpush1.bf16.msra.mxu0 %v13723_v61 }
 0x442   :  { %10329 = vmatprep.mubr.bf16.mxu1 %v20411_v29  ;;  %9984 = vmatprep.subr.bf16.mxu0 %v13729_v18 }
 0x443   :  { %12178 = vmatprep.subr.bf16.mxu1 %v13730_v7 }
 0x444   :  { %12179 = vmatpush3.bf16.msra.mxu1 %v13734_v58 }
 0x445   :  { %9985 = vmatpush1.bf16.msra.mxu0 %v13727_v57  ;;  %12180 = vmatprep.subr.bf16.mxu1 %v13738_v60  ;;  %v13747_v57 = vld [vmem:[%s19929_s5 + $0xbe0] ss:$28 sps:$4 sm:$0xff]  }
 0x446   :  { %9986 = vmatprep.subr.bf16.mxu0 %v13733_v51 }
 0x447   :  { %10330 = vmatmul.mubr.bf16.gmra.mrb[164].mxu1 %v20412_v25 }
 0x448   :  { %9912 = vmatmul.mubr.bf16.gmra.mrb[100].mxu0 %v20412_v25  ;;  %10337 = vmatprep.mubr.bf16.mxu1 %v20413_v47 }
 0x449   :  { %9921 = vmatprep.mubr.bf16.mxu0 %v20413_v47  ;;  %9987 = vmatpush1.bf16.msra.mxu0 %v13731_v53  ;;  %v20421_v47 = vld [vmem:[#allocation21_spill] sm:$0xff] }
 0x44a   :  { %9988 = vmatprep.subr.bf16.mxu0 %v13737_v15  ;;  %12181 = vmatpush3.bf16.msra.mxu1 %v13742_v59  ;;  %v13753_v15 = vld [vmem:[%s19929_s5 + $0xc1c] ss:$28 sps:$4 sm:$0xff]   ;;  %v13774_v59 = vld [vmem:[%s19929_s5 + $0xbe8] ss:$28 sps:$4 sm:$0xff]  }
 0x44b   :  { %12182 = vmatprep.subr.bf16.mxu1 %v13746_v4 }
 0x44d   :  { %9989 = vmatpush1.bf16.msra.mxu0 %v13735_v55  ;;  %v13778_v55 = vld [vmem:[%s19929_s5 + $0xde0] ss:$28 sps:$4 sm:$0xff]  }
 0x44e   :  { %9990 = vmatprep.subr.bf16.mxu0 %v13741_v49  ;;  %12183 = vmatpush3.bf16.msra.mxu1 %v13750_v17 }
 0x44f   :  { %10338 = vmatmul.mubr.bf16.gmra.mrb[168].mxu1 %v20414_v42  ;;  %12184 = vmatprep.subr.bf16.mxu1 %v13754_v13  ;;  %v20422_v13 = vld [vmem:[#allocation34_spill] sm:$0xff] }
 0x450   :  { %9922 = vmatmul.mubr.bf16.gmra.mrb[104].mxu0 %v20414_v42  ;;  %10345 = vmatprep.mubr.bf16.mxu1 %v20415_v10  ;;  %v13757_v42 = vld [vmem:[%s19929_s5 + $0xc54] ss:$28 sps:$4 sm:$0xff]  }
 0x451   :  { %9931 = vmatprep.mubr.bf16.mxu0 %v20415_v10  ;;  %9991 = vmatpush1.bf16.msra.mxu0 %v13739_v14  ;;  %v13751_v14 = vld [vmem:[%s19929_s5 + $0xc18] ss:$28 sps:$4 sm:$0xff]  }
 0x452   :  { %v9112_v27 = vpop.f32.mrb[64].mxu0  ;;  %v9564_v31 = vpop.f32.mrb[64].mxu1  ;;  %9992 = vmatprep.subr.bf16.mxu0 %v13745_v9  ;;  %12185 = vmatpush3.bf16.msra.mxu1 %v13758_v6 }
 0x453   :  { %v9114_v20 = vpop.f32.mrb[65].mxu0  ;;  %v9566_v26 = vpop.f32.mrb[65].mxu1  ;;  %12186 = vmatprep.subr.bf16.mxu1 %v13762_v30  ;;  %v12368_v38 = vadd.f32 %v9112_v27, %v19299_v22  ;;  %v12400_v61 = vadd.f32 %v9564_v31, %v19305_v5  ;;  %v13782_v30 = vld [vmem:[%s19929_s5 + $0xc20] ss:$28 sps:$4 sm:$0xff]  }
 0x454   :  { %v9116_v44 = vpop.f32.mrb[66].mxu0  ;;  %v9568_v35 = vpop.f32.mrb[66].mxu1  ;;  %v12369_v18 = vadd.f32 %v9114_v20, %v19310_v33  ;;  %v12401_v60 = vadd.f32 %v9566_v26, %v19318_v45  ;;  %v13755_v26 = vld [vmem:[%s19929_s5 + $0xc50] ss:$28 sps:$4 sm:$0xff]  }
 0x455   :  { %v12370_v43 = vadd.f32 %v9116_v44, %v19299_v22  ;;  %v12402_v7 = vadd.f32 %v9568_v35, %v19305_v5  ;;  %9993 = vmatpush1.bf16.msra.mxu0 %v13743_v1  ;;  %v9118_v58 = vpop.f32.mrb[67].mxu0  ;;  %v9570_v29 = vpop.f32.mrb[67].mxu1  ;;  %v13761_v35 = vld [vmem:[%s19929_s5 + $0xc8c] ss:$28 sps:$4 sm:$0xff]  }
 0x456   :  { %v12371_v51 = vadd.f32 %v9118_v58, %v19310_v33  ;;  %v12403_v53 = vadd.f32 %v9570_v29, %v19318_v45  ;;  %9994 = vmatprep.subr.bf16.mxu0 %v13749_v50  ;;  %12187 = vmatpush3.bf16.msra.mxu1 %v13766_v41  ;;  %v20424_v29 = vld [vmem:[#allocation18_spill] sm:$0xff] }
 0x457   :  { %v10483_v25 = vpack.c.bf16 %v12370_v43, %v12368_v38  ;;  %v10485_v4 = vpack.c.bf16 %v12402_v7, %v12400_v61  ;;  %10346 = vmatmul.mubr.bf16.gmra.mrb[172].mxu1 %v20421_v47  ;;  %12188 = vmatprep.subr.bf16.mxu1 %v13770_v52  ;;  %v20423_v43 = vld [vmem:[#allocation31_spill] sm:$0xff] }
 0x458   :  { %v10484_v49 = vpack.c.bf16 %v12371_v51, %v12369_v18  ;;  %v10486_v17 = vpack.c.bf16 %v12403_v53, %v12401_v60  ;;  %9932 = vmatmul.mubr.bf16.gmra.mrb[108].mxu0 %v20421_v47  ;;  %10353 = vmatprep.mubr.bf16.mxu1 %v20422_v13  ;;  %v13765_v53 = vld [vmem:[%s19929_s5 + $0xcc4] ss:$28 sps:$4 sm:$0xff]  }
 0x459   :  { %13786 = vtanh.bf16 %v10483_v25  ;;  %9941 = vmatprep.mubr.bf16.mxu0 %v20422_v13  ;;  %9995 = vmatpush1.bf16.msra.mxu0 %v13747_v57  ;;  %v13759_v57 = vld [vmem:[%s19929_s5 + $0xc88] ss:$28 sps:$4 sm:$0xff]  }
 0x45a   :  { %13788 = vtanh.bf16 %v10485_v4  ;;  %v9122_v9 = vpop.f32.mrb[68].mxu0  ;;  %v9574_v6 = vpop.f32.mrb[68].mxu1  ;;  %9996 = vmatprep.subr.bf16.mxu0 %v13753_v15  ;;  %12189 = vmatpush3.bf16.msra.mxu1 %v13774_v59 }
 0x45b   :  { %13790 = vtanh.bf16 %v10484_v49  ;;  %v9124_v10 = vpop.f32.mrb[69].mxu0  ;;  %v9576_v11 = vpop.f32.mrb[69].mxu1  ;;  %12190 = vmatprep.subr.bf16.mxu1 %v13778_v55  ;;  %v12372_v32 = vadd.f32 %v9122_v9, %v19299_v22  ;;  %v12404_v27 = vadd.f32 %v9574_v6, %v19305_v5 }
 0x45c   :  { %13792 = vtanh.bf16 %v10486_v17  ;;  %v9126_v24 = vpop.f32.mrb[70].mxu0  ;;  %v9578_v1 = vpop.f32.mrb[70].mxu1  ;;  %v12373_v31 = vadd.f32 %v9124_v10, %v19310_v33  ;;  %v12405_v52 = vadd.f32 %v9576_v11, %v19318_v45 }
 0x45d   :  { %v12374_v28 = vadd.f32 %v9126_v24, %v19299_v22  ;;  %v12406_v50 = vadd.f32 %v9578_v1, %v19305_v5  ;;  %9997 = vmatpush1.bf16.msra.mxu0 %v13751_v14  ;;  %v9128_v41 = vpop.f32.mrb[71].mxu0  ;;  %v9580_v20 = vpop.f32.mrb[71].mxu1  ;;  %v13769_v1 = vld [vmem:[%s19929_s5 + $0xcfc] ss:$28 sps:$4 sm:$0xff]  }
 0x45e   :  { %v12375_v38 = vadd.f32 %v9128_v41, %v19310_v33  ;;  %v12407_v44 = vadd.f32 %v9580_v20, %v19318_v45  ;;  %9998 = vmatprep.subr.bf16.mxu0 %v13757_v42  ;;  %12191 = vmatpush3.bf16.msra.mxu1 %v13782_v30  ;;  %v13763_v42 = vld [vmem:[%s19929_s5 + $0xcc0] ss:$28 sps:$4 sm:$0xff]   ;;  %v20425_v20 = vld [vmem:[#allocation15_spill] sm:$0xff] }
 0x45f   :  { %v10490_v61 = vpack.c.bf16 %v12374_v28, %v12372_v32  ;;  %v10492_v18 = vpack.c.bf16 %v12406_v50, %v12404_v27  ;;  %10354 = vmatmul.mubr.bf16.gmra.mrb[176].mxu1 %v20423_v43 }
 0x460   :  { %v10491_v7 = vpack.c.bf16 %v12375_v38, %v12373_v31  ;;  %v10493_v58 = vpack.c.bf16 %v12407_v44, %v12405_v52  ;;  %9942 = vmatmul.mubr.bf16.gmra.mrb[112].mxu0 %v20423_v43  ;;  %10361 = vmatprep.mubr.bf16.mxu1 %v20424_v29 }
 0x461   :  { %13794 = vtanh.bf16 %v10490_v61  ;;  %9951 = vmatprep.mubr.bf16.mxu0 %v20424_v29  ;;  %9999 = vmatpush1.bf16.msra.mxu0 %v13755_v26  ;;  %v13767_v61 = vld [vmem:[%s19929_s5 + $0xcf8] ss:$28 sps:$4 sm:$0xff]  }
 0x462   :  { %13796 = vtanh.bf16 %v10492_v18  ;;  %v9132_v60 = vpop.f32.mrb[72].mxu0  ;;  %v9584_v51 = vpop.f32.mrb[72].mxu1  ;;  %10000 = vmatprep.subr.bf16.mxu0 %v13761_v35  ;;  %v20426_v35 = vld [vmem:[#allocation41_spill] sm:$0xff] }
 0x463   :  { %13798 = vtanh.bf16 %v10491_v7  ;;  %v9134_v15 = vpop.f32.mrb[73].mxu0  ;;  %v9586_v59 = vpop.f32.mrb[73].mxu1  ;;  %v12376_v49 = vadd.f32 %v9132_v60, %v19299_v22  ;;  %v12408_v17 = vadd.f32 %v9584_v51, %v19305_v5  ;;  %v13773_v7 = vld [vmem:[%s19929_s5 + $0xd34] ss:$28 sps:$4 sm:$0xff]  }
 0x464   :  { %v13787_v25 = vpop.eup %13786  ;;  %13800 = vtanh.bf16 %v10493_v58  ;;  %v9136_v4 = vpop.f32.mrb[74].mxu0  ;;  %v12377_v10 = vadd.f32 %v9134_v15, %v19310_v33  ;;  %v12409_v11 = vadd.f32 %v9586_v59, %v19318_v45 }
 0x465   :  { %v9588_v47 = vpop.f32.mrb[74].mxu1  ;;  %v13789_v55 = vpop.eup %13788  ;;  %v12378_v13 = vadd.f32 %v9136_v4, %v19299_v22  ;;  %10001 = vmatpush1.bf16.msra.mxu0 %v13759_v57 }
 0x466   :  { %v12410_v14 = vadd.f32 %v9588_v47, %v19305_v5  ;;  %v9138_v9 = vpop.f32.mrb[75].mxu0  ;;  %v9590_v6 = vpop.f32.mrb[75].mxu1  ;;  %10002 = vmatprep.subr.bf16.mxu0 %v13765_v53 }
 0x467   :  { %v13791_v30 = vpop.eup %13790  ;;  %v12379_v32 = vadd.f32 %v9138_v9, %v19310_v33  ;;  %v12411_v24 = vadd.f32 %v9590_v6, %v19318_v45  ;;  %v10497_v50 = vpack.c.bf16 %v12378_v13, %v12376_v49  ;;  %10362 = vmatmul.mubr.bf16.gmra.mrb[180].mxu1 %v20425_v20  ;;  %v13771_v49 = vld [vmem:[%s19929_s5 + $0xd30] ss:$28 sps:$4 sm:$0xff]  }
 0x468   :  { %v13793_v27 = vpop.eup %13792  ;;  %v11920_v31 = vcombine.low %v13787_v25, %v13791_v30  ;;  %v11924_v28 = vcombine.high %v13787_v25, %v13791_v30  ;;  %v10499_v41 = vpack.c.bf16 %v12410_v14, %v12408_v17  ;;  %9952 = vmatmul.mubr.bf16.gmra.mrb[116].mxu0 %v20425_v20  ;;  %10369 = vmatprep.mubr.bf16.mxu1 %v20426_v35 }
 0x469   :  { %v11921_v26 = vcombine.low %v13789_v55, %v13793_v27  ;;  %v11925_v52 = vcombine.high %v13789_v55, %v13793_v27  ;;  %v10498_v38 = vpack.c.bf16 %v12379_v32, %v12377_v10  ;;  %v10500_v44 = vpack.c.bf16 %v12411_v24, %v12409_v11  ;;  %9961 = vmatprep.mubr.bf16.mxu0 %v20426_v35 }
 0x46a   :  { %10891 = vst [vmem:[%s19932_s7] sm:$0xff] %v11920_v31  ;;  %10896 = vst [vmem:[%s19932_s7 + $0x1c] sm:$0xff] %v11924_v28  ;;  %13802 = vtanh.bf16 %v10497_v50  ;;  %10003 = vmatpush1.bf16.msra.mxu0 %v13763_v42  ;;  %v9142_v18 = vpop.f32.mrb[76].mxu0  ;;  %v9594_v43 = vpop.f32.mrb[76].mxu1  ;;  %v13777_v42 = vld [vmem:[%s19929_s5 + $0xd6c] ss:$28 sps:$4 sm:$0xff]  }
 0x46b   :  { %10892 = vst [vmem:[%s19932_s7 + $0x8] sm:$0xff] %v11921_v26  ;;  %10897 = vst [vmem:[%s19932_s7 + $0x24] sm:$0xff] %v11925_v52  ;;  %13804 = vtanh.bf16 %v10499_v41  ;;  %10004 = vmatprep.subr.bf16.mxu0 %v13769_v1  ;;  %v9144_v58 = vpop.f32.mrb[77].mxu0  ;;  %v9596_v29 = vpop.f32.mrb[77].mxu1  ;;  %v12380_v15 = vadd.f32 %v9142_v18, %v19299_v22  ;;  %v12412_v59 = vadd.f32 %v9594_v43, %v19305_v5  ;;  %v20427_v1 = vld [vmem:[#allocation14_spill] sm:$0xff] }
 0x46c   :  { %13806 = vtanh.bf16 %v10498_v38  ;;  %v13795_v57 = vpop.eup %13794  ;;  %v9146_v60 = vpop.f32.mrb[78].mxu0  ;;  %v12381_v13 = vadd.f32 %v9144_v58, %v19310_v33  ;;  %v12413_v14 = vadd.f32 %v9596_v29, %v19318_v45  ;;  %v13775_v41 = vld [vmem:[%s19929_s5 + $0xd68] ss:$28 sps:$4 sm:$0xff]  }
 0x46d   :  { %13808 = vtanh.bf16 %v10500_v44  ;;  %v9598_v51 = vpop.f32.mrb[78].mxu1  ;;  %v13797_v53 = vpop.eup %13796  ;;  %v12382_v25 = vadd.f32 %v9146_v60, %v19299_v22  ;;  %v13781_v52 = vld [vmem:[%s19929_s5 + $0xda4] ss:$28 sps:$4 sm:$0xff]  }
 0x46e   :  { %v12414_v4 = vadd.f32 %v9598_v51, %v19305_v5  ;;  %10005 = vmatpush1.bf16.msra.mxu0 %v13767_v61  ;;  %v9148_v47 = vpop.f32.mrb[79].mxu0  ;;  %v9600_v55 = vpop.f32.mrb[79].mxu1  ;;  %v13779_v51 = vld [vmem:[%s19929_s5 + $0xda0] ss:$28 sps:$4 sm:$0xff]  }
 0x46f   :  { %v13799_v17 = vpop.eup %13798  ;;  %v12383_v9 = vadd.f32 %v9148_v47, %v19310_v33  ;;  %v12415_v6 = vadd.f32 %v9600_v55, %v19318_v45  ;;  %10006 = vmatprep.subr.bf16.mxu0 %v13773_v7  ;;  %v10504_v32 = vpack.c.bf16 %v12382_v25, %v12380_v15  ;;  %10370 = vmatmul.mubr.bf16.gmra.mrb[184].mxu1 %v20427_v1  ;;  %v13785_v47 = vld [vmem:[%s19929_s5 + $0xddc] ss:$28 sps:$4 sm:$0xff]  }
 0x470   :  { %v13801_v30 = vpop.eup %13800  ;;  %v11928_v10 = vcombine.low %v13795_v57, %v13799_v17  ;;  %v11932_v11 = vcombine.high %v13795_v57, %v13799_v17  ;;  %v10506_v24 = vpack.c.bf16 %v12414_v4, %v12412_v59  ;;  %9962 = vmatmul.mubr.bf16.gmra.mrb[120].mxu0 %v20427_v1  ;;  %10377 = vmatprep.mubr.bf16.mxu1 %v18657_v23 }
 0x471   :  { %v11929_v27 = vcombine.low %v13797_v53, %v13801_v30  ;;  %v11933_v31 = vcombine.high %v13797_v53, %v13801_v30  ;;  %v10505_v28 = vpack.c.bf16 %v12383_v9, %v12381_v13  ;;  %v10507_v50 = vpack.c.bf16 %v12415_v6, %v12413_v14  ;;  %9971 = vmatprep.mubr.bf16.mxu0 %v18657_v23 }
 0x472   :  { %10900 = vst [vmem:[%s19932_s7 + $0x38] sm:$0xff] %v11928_v10  ;;  %10904 = vst [vmem:[%s19932_s7 + $0x54] sm:$0xff] %v11932_v11  ;;  %13810 = vtanh.bf16 %v10504_v32  ;;  %10007 = vmatpush1.bf16.msra.mxu0 %v13771_v49  ;;  %v9152_v20 = vpop.f32.mrb[80].mxu0  ;;  %v9604_v26 = vpop.f32.mrb[80].mxu1  ;;  %v13783_v10 = vld [vmem:[%s19929_s5 + $0xdd8] ss:$28 sps:$4 sm:$0xff]  }
 0x473   :  { %10901 = vst [vmem:[%s19932_s7 + $0x40] sm:$0xff] %v11929_v27  ;;  %10905 = vst [vmem:[%s19932_s7 + $0x5c] sm:$0xff] %v11933_v31  ;;  %13812 = vtanh.bf16 %v10506_v24  ;;  %10008 = vmatprep.subr.bf16.mxu0 %v13777_v42  ;;  %v9154_v38 = vpop.f32.mrb[81].mxu0  ;;  %v9606_v44 = vpop.f32.mrb[81].mxu1  ;;  %v12384_v7 = vadd.f32 %v9152_v20, %v19299_v22  ;;  %v12416_v58 = vadd.f32 %v9604_v26, %v19305_v5 }
 0x474   :  { %13814 = vtanh.bf16 %v10505_v28  ;;  %v9156_v61 = vpop.f32.mrb[82].mxu0  ;;  %v9608_v18 = vpop.f32.mrb[82].mxu1  ;;  %v12385_v15 = vadd.f32 %v9154_v38, %v19310_v33  ;;  %v12417_v59 = vadd.f32 %v9606_v44, %v19318_v45 }
 0x475   :  { %v13803_v35 = vpop.eup %13802  ;;  %13816 = vtanh.bf16 %v10507_v50  ;;  %v12386_v23 = vadd.f32 %v9156_v61, %v19299_v22  ;;  %v12418_v29 = vadd.f32 %v9608_v18, %v19305_v5  ;;  %v9158_v57 = vpop.f32.mrb[83].mxu0 }
 0x476   :  { %v13805_v43 = vpop.eup %13804  ;;  %10009 = vmatpush1.bf16.msra.mxu0 %v13775_v41  ;;  %v9610_v60 = vpop.f32.mrb[83].mxu1  ;;  %v12387_v25 = vadd.f32 %v9158_v57, %v19310_v33 }
 0x477   :  { %v13807_v53 = vpop.eup %13806  ;;  %v12419_v4 = vadd.f32 %v9610_v60, %v19318_v45  ;;  %10010 = vmatprep.subr.bf16.mxu0 %v13781_v52  ;;  %v10511_v13 = vpack.c.bf16 %v12386_v23, %v12384_v7  ;;  %v10513_v14 = vpack.c.bf16 %v12418_v29, %v12416_v58  ;;  %10378 = vmatmul.mubr.bf16.gmra.mrb[188].mxu1 %v18655_v12 }
 0x478   :  { %v13809_v55 = vpop.eup %13808  ;;  %v11936_v49 = vcombine.low %v13803_v35, %v13807_v53  ;;  %v11940_v17 = vcombine.high %v13803_v35, %v13807_v53  ;;  %v10512_v42 = vpack.c.bf16 %v12387_v25, %v12385_v15  ;;  %9972 = vmatmul.mubr.bf16.gmra.mrb[124].mxu0 %v18655_v12  ;;  %10418 = vmatprep.mubr.bf16.mxu1 %v18366_v46 }
 0x479   :  { %v11937_v9 = vcombine.low %v13805_v43, %v13809_v55  ;;  %v11941_v6 = vcombine.high %v13805_v43, %v13809_v55  ;;  %v10514_v30 = vpack.c.bf16 %v12419_v4, %v12417_v59  ;;  %13818 = vtanh.bf16 %v10511_v13  ;;  %10014 = vmatprep.mubr.bf16.mxu0 %v18366_v46 }
 0x47a   :  { %10908 = vst [vmem:[%s19932_s7 + $0x70] sm:$0xff] %v11936_v49  ;;  %10912 = vst [vmem:[%s19932_s7 + $0x8c] sm:$0xff] %v11940_v17  ;;  %10011 = vmatpush1.bf16.msra.mxu0 %v13779_v51  ;;  %13820 = vtanh.bf16 %v10513_v14  ;;  %v9162_v12 = vpop.f32.mrb[84].mxu0  ;;  %v9614_v11 = vpop.f32.mrb[84].mxu1 }
 0x47b   :  { %10909 = vst [vmem:[%s19932_s7 + $0x78] sm:$0xff] %v11937_v9  ;;  %10913 = vst [vmem:[%s19932_s7 + $0x94] sm:$0xff] %v11941_v6  ;;  %10012 = vmatprep.subr.bf16.mxu0 %v13785_v47  ;;  %13822 = vtanh.bf16 %v10512_v42  ;;  %v9164_v32 = vpop.f32.mrb[85].mxu0  ;;  %v9616_v24 = vpop.f32.mrb[85].mxu1  ;;  %v12388_v50 = vadd.f32 %v9162_v12, %v19299_v22  ;;  %v12420_v41 = vadd.f32 %v9614_v11, %v19305_v5 }
 0x47c   :  { %13824 = vtanh.bf16 %v10514_v30  ;;  %v9166_v27 = vpop.f32.mrb[86].mxu0  ;;  %v9618_v31 = vpop.f32.mrb[86].mxu1  ;;  %v12389_v44 = vadd.f32 %v9164_v32, %v19310_v33  ;;  %v12421_v35 = vadd.f32 %v9616_v24, %v19318_v45 }
 0x47d   :  { %v13811_v1 = vpop.eup %13810  ;;  %v12390_v20 = vadd.f32 %v9166_v27, %v19299_v22  ;;  %v12422_v26 = vadd.f32 %v9618_v31, %v19305_v5  ;;  %v9168_v46 = vpop.f32.mrb[87].mxu0 }
 0x47e   :  { %v13813_v28 = vpop.eup %13812  ;;  %10013 = vmatpush1.bf16.msra.mxu0 %v13783_v10  ;;  %v9620_v52 = vpop.f32.mrb[87].mxu1  ;;  %v12391_v61 = vadd.f32 %v9168_v46, %v19310_v33 }
 0x47f   :  { %v13815_v38 = vpop.eup %13814  ;;  %v12423_v18 = vadd.f32 %v9620_v52, %v19318_v45  ;;  %v10518_v23 = vpack.c.bf16 %v12390_v20, %v12388_v50  ;;  %v10520_v29 = vpack.c.bf16 %v12422_v26, %v12420_v41  ;;  %10419 = vmatmul.mubr.bf16.vlgmr.msra.gmra.mrb[192].mxu1 %v18357_v37 }
 0x480   :  { %v13817_v43 = vpop.eup %13816  ;;  %v11944_v7 = vcombine.low %v13811_v1, %v13815_v38  ;;  %v11948_v58 = vcombine.high %v13811_v1, %v13815_v38  ;;  %v10519_v51 = vpack.c.bf16 %v12391_v61, %v12389_v44  ;;  %10426 = vmatprep.mubr.bf16.mxu1 %v18410_v19 }
 0x481   :  { %v11945_v57 = vcombine.low %v13813_v28, %v13817_v43  ;;  %v11949_v60 = vcombine.high %v13813_v28, %v13817_v43  ;;  %v10521_v53 = vpack.c.bf16 %v12423_v18, %v12421_v35  ;;  %10015 = vmatmul.mubr.bf16.vlgmr.msra.gmra.mrb[96].mxu0 %v18357_v37  ;;  %13826 = vtanh.bf16 %v10518_v23 }
 0x482   :  { %10916 = vst [vmem:[%s19932_s7 + $0xa8] sm:$0xff] %v11944_v7  ;;  %10920 = vst [vmem:[%s19932_s7 + $0xc4] sm:$0xff] %v11948_v58  ;;  %10024 = vmatprep.mubr.bf16.mxu0 %v18410_v19  ;;  %13828 = vtanh.bf16 %v10520_v29  ;;  %v9172_v37 = vpop.f32.mrb[88].mxu0  ;;  %v9624_v15 = vpop.f32.mrb[88].mxu1 }
 0x483   :  { %10917 = vst [vmem:[%s19932_s7 + $0xb0] sm:$0xff] %v11945_v57  ;;  %10921 = vst [vmem:[%s19932_s7 + $0xcc] sm:$0xff] %v11949_v60  ;;  %13830 = vtanh.bf16 %v10519_v51  ;;  %v9174_v59 = vpop.f32.mrb[89].mxu0  ;;  %v9626_v25 = vpop.f32.mrb[89].mxu1  ;;  %v12392_v19 = vadd.f32 %v9172_v37, %v19299_v22  ;;  %v12424_v17 = vadd.f32 %v9624_v15, %v19305_v5 }
 0x484   :  { %v13819_v4 = vpop.eup %13818  ;;  %13832 = vtanh.bf16 %v10521_v53  ;;  %v9176_v47 = vpop.f32.mrb[90].mxu0  ;;  %v12393_v30 = vadd.f32 %v9174_v59, %v19310_v33  ;;  %v12425_v10 = vadd.f32 %v9626_v25, %v19318_v45 }
 0x485   :  { %v9628_v55 = vpop.f32.mrb[90].mxu1  ;;  %v13821_v49 = vpop.eup %13820  ;;  %v12394_v13 = vadd.f32 %v9176_v47, %v19299_v22 }
 0x486   :  { %v12426_v14 = vadd.f32 %v9628_v55, %v19305_v5  ;;  %v9178_v9 = vpop.f32.mrb[91].mxu0  ;;  %v9630_v6 = vpop.f32.mrb[91].mxu1 }
 0x487   :  { %v13823_v42 = vpop.eup %13822  ;;  %v12395_v12 = vadd.f32 %v9178_v9, %v19310_v33  ;;  %v12427_v11 = vadd.f32 %v9630_v6, %v19318_v45  ;;  %v10525_v27 = vpack.c.bf16 %v12394_v13, %v12392_v19  ;;  %10427 = vmatmul.mubr.bf16.gmra.mrb[196].mxu1 %v18401_v3 }
 0x488   :  { %v13825_v32 = vpop.eup %13824  ;;  %v11952_v24 = vcombine.low %v13819_v4, %v13823_v42  ;;  %v11956_v1 = vcombine.high %v13819_v4, %v13823_v42  ;;  %v10527_v31 = vpack.c.bf16 %v12426_v14, %v12424_v17  ;;  %10434 = vmatprep.mubr.bf16.mxu1 %v18454_v36 }
 0x489   :  { %v11953_v28 = vcombine.low %v13821_v49, %v13825_v32  ;;  %v11957_v50 = vcombine.high %v13821_v49, %v13825_v32  ;;  %v10526_v41 = vpack.c.bf16 %v12395_v12, %v12393_v30  ;;  %v10528_v20 = vpack.c.bf16 %v12427_v11, %v12425_v10  ;;  %10025 = vmatmul.mubr.bf16.gmra.mrb[100].mxu0 %v18401_v3 }
 0x48a   :  { %10924 = vst [vmem:[%s19932_s7 + $0xe0] sm:$0xff] %v11952_v24  ;;  %10928 = vst [vmem:[%s19932_s7 + $0xfc] sm:$0xff] %v11956_v1  ;;  %13834 = vtanh.bf16 %v10525_v27  ;;  %10034 = vmatprep.mubr.bf16.mxu0 %v18454_v36  ;;  %v9182_v3 = vpop.f32.mrb[92].mxu0  ;;  %v9634_v26 = vpop.f32.mrb[92].mxu1 }
 0x48b   :  { %10925 = vst [vmem:[%s19932_s7 + $0xe8] sm:$0xff] %v11953_v28  ;;  %10929 = vst [vmem:[%s19932_s7 + $0x104] sm:$0xff] %v11957_v50  ;;  %13836 = vtanh.bf16 %v10527_v31  ;;  %v9184_v46 = vpop.f32.mrb[93].mxu0  ;;  %v9636_v52 = vpop.f32.mrb[93].mxu1  ;;  %v12396_v36 = vadd.f32 %v9182_v3, %v19299_v22  ;;  %v12428_v18 = vadd.f32 %v9634_v26, %v19305_v5 }
 0x48c   :  { %13838 = vtanh.bf16 %v10526_v41  ;;  %v13827_v38 = vpop.eup %13826  ;;  %v9186_v44 = vpop.f32.mrb[94].mxu0  ;;  %v12397_v57 = vadd.f32 %v9184_v46, %v19310_v33  ;;  %v12429_v60 = vadd.f32 %v9636_v52, %v19318_v45 }
 0x48d   :  { %13840 = vtanh.bf16 %v10528_v20  ;;  %v9638_v35 = vpop.f32.mrb[94].mxu1  ;;  %v13829_v61 = vpop.eup %13828  ;;  %v12398_v43 = vadd.f32 %v9186_v44, %v19299_v22 }
 0x48e   :  { %v12430_v7 = vadd.f32 %v9638_v35, %v19305_v5  ;;  %v9188_v58 = vpop.f32.mrb[95].mxu0  ;;  %v9640_v23 = vpop.f32.mrb[95].mxu1 }
 0x48f   :  { %v13831_v29 = vpop.eup %13830  ;;  %v12399_v51 = vadd.f32 %v9188_v58, %v19310_v33  ;;  %v12431_v53 = vadd.f32 %v9640_v23, %v19318_v45  ;;  %v10532_v25 = vpack.c.bf16 %v12398_v43, %v12396_v36  ;;  %10435 = vmatmul.mubr.bf16.gmra.mrb[200].mxu1 %v18445_v62 }
 0x490   :  { %v13833_v37 = vpop.eup %13832  ;;  %v11960_v15 = vcombine.low %v13827_v38, %v13831_v29  ;;  %v11964_v59 = vcombine.high %v13827_v38, %v13831_v29  ;;  %v10534_v4 = vpack.c.bf16 %v12430_v7, %v12428_v18  ;;  %10442 = vmatprep.mubr.bf16.mxu1 %v18498_v21 }
 0x491   :  { %v11961_v22 = vcombine.low %v13829_v61, %v13833_v37  ;;  %v11965_v5 = vcombine.high %v13829_v61, %v13833_v37  ;;  %v10533_v47 = vpack.c.bf16 %v12399_v51, %v12397_v57  ;;  %v10535_v55 = vpack.c.bf16 %v12431_v53, %v12429_v60  ;;  %10035 = vmatmul.mubr.bf16.gmra.mrb[104].mxu0 %v18445_v62 }
 0x492   :  { %10932 = vst [vmem:[%s19932_s7 + $0x118] sm:$0xff] %v11960_v15  ;;  %10936 = vst [vmem:[%s19932_s7 + $0x134] sm:$0xff] %v11964_v59  ;;  %13842 = vtanh.bf16 %v10532_v25  ;;  %10044 = vmatprep.mubr.bf16.mxu0 %v18498_v21  ;;  %v12000_v62 = vpop.f32.mrb[96].mxu1 }
 0x493   :  { %10933 = vst [vmem:[%s19932_s7 + $0x120] sm:$0xff] %v11961_v22  ;;  %10937 = vst [vmem:[%s19932_s7 + $0x13c] sm:$0xff] %v11965_v5  ;;  %13844 = vtanh.bf16 %v10534_v4  ;;  %v12001_v33 = vpop.f32.mrb[97].mxu1 }
 0x494   :  { %13846 = vtanh.bf16 %v10533_v47  ;;  %v19563_v49 = vadd.f32 %v12001_v33, %v12000_v62  ;;  %v12003_v19 = vpop.f32.mrb[98].mxu1 }
 0x495   :  { %v13835_v45 = vpop.eup %13834  ;;  %13848 = vtanh.bf16 %v10535_v55  ;;  %v12004_v13 = vpop.f32.mrb[99].mxu1 }
 0x496   :  { %v13837_v17 = vpop.eup %13836  ;;  %v19565_v14 = vadd.f32 %v12004_v13, %v12003_v19 }
 0x497   :  { %v13839_v21 = vpop.eup %13838  ;;  %10443 = vmatmul.mubr.bf16.gmra.mrb[204].mxu1 %v18489_v16 }
 0x498   :  { %v13841_v9 = vpop.eup %13840  ;;  %v11968_v6 = vcombine.low %v13835_v45, %v13839_v21  ;;  %v11972_v42 = vcombine.high %v13835_v45, %v13839_v21  ;;  %10450 = vmatprep.mubr.bf16.mxu1 %v18542_v2  ;;  %v20428_v45 = vsub.s32 6, %v20417_v63 }
 0x499   :  { %v11969_v30 = vcombine.low %v13837_v17, %v13841_v9  ;;  %v11973_v10 = vcombine.high %v13837_v17, %v13841_v9  ;;  %10045 = vmatmul.mubr.bf16.gmra.mrb[108].mxu0 %v18489_v16 }
 0x49a   :  { %10940 = vst [vmem:[%s19932_s7 + $0x150] sm:$0xff] %v11968_v6  ;;  %10944 = vst [vmem:[%s19932_s7 + $0x16c] sm:$0xff] %v11972_v42  ;;  %10054 = vmatprep.mubr.bf16.mxu0 %v18542_v2  ;;  %v12006_v16 = vpop.f32.mrb[100].mxu1  ;;  %v19640_v19 = vrot.slane %v19283_v39, %v20428_v45 }
 0x49b   :  { %10941 = vst [vmem:[%s19932_s7 + $0x158] sm:$0xff] %v11969_v30  ;;  %10945 = vst [vmem:[%s19932_s7 + $0x174] sm:$0xff] %v11973_v10  ;;  %v12007_v12 = vpop.f32.mrb[101].mxu1 }
 0x49c   :  { %v19583_v32 = vadd.f32 %v12007_v12, %v12006_v16  ;;  %v12009_v24 = vpop.f32.mrb[102].mxu1  ;;  %v10130_v21 = vadd.f32 %v19563_v49, %v19640_v19  ;;  %v10133_v30 = vadd.f32 %v19565_v14, %v19640_v19 }
 0x49d   :  { %v13843_v11 = vpop.eup %13842  ;;  %v12010_v27 = vpop.f32.mrb[103].mxu1 }
 0x49e   :  { %v13845_v1 = vpop.eup %13844  ;;  %v19585_v28 = vadd.f32 %v12010_v27, %v12009_v24  ;;  %v10138_v39 = vadd.f32 %v19583_v32, %v19640_v19 }
 0x49f   :  { %v13847_v31 = vpop.eup %13846  ;;  %10451 = vmatmul.mubr.bf16.gmra.mrb[208].mxu1 %v18533_v40 }
 0x4a0   :  { %v13849_v2 = vpop.eup %13848  ;;  %v11976_v50 = vcombine.low %v13843_v11, %v13847_v31  ;;  %v11980_v41 = vcombine.high %v13843_v11, %v13847_v31  ;;  %10458 = vmatprep.mubr.bf16.mxu1 %v18586_v0  ;;  %v10141_v49 = vadd.f32 %v19585_v28, %v19640_v19 }
 0x4a1   :  { %v11977_v20 = vcombine.low %v13845_v1, %v13849_v2  ;;  %v11981_v3 = vcombine.high %v13845_v1, %v13849_v2  ;;  %10055 = vmatmul.mubr.bf16.gmra.mrb[112].mxu0 %v18533_v40 }
 0x4a2   :  { %10948 = vst [vmem:[%s19932_s7 + $0x188] sm:$0xff] %v11976_v50  ;;  %10952 = vst [vmem:[%s19932_s7 + $0x1a4] sm:$0xff] %v11980_v41  ;;  %10064 = vmatprep.mubr.bf16.mxu0 %v18586_v0  ;;  %v12012_v40 = vpop.f32.mrb[104].mxu1 }
 0x4a3   :  { %10949 = vst [vmem:[%s19932_s7 + $0x190] sm:$0xff] %v11977_v20  ;;  %10953 = vst [vmem:[%s19932_s7 + $0x1ac] sm:$0xff] %v11981_v3  ;;  %v12013_v26 = vpop.f32.mrb[105].mxu1 }
 0x4a4   :  { %v19603_v46 = vadd.f32 %v12013_v26, %v12012_v40  ;;  %v12015_v52 = vpop.f32.mrb[106].mxu1 }
 0x4a5   :  { %v12016_v38 = vpop.f32.mrb[107].mxu1 }
 0x4a6   :  { %v19605_v44 = vadd.f32 %v12016_v38, %v12015_v52  ;;  %v10146_v3 = vadd.f32 %v19603_v46, %v19640_v19 }
 0x4a7   :  { %10459 = vmatmul.mubr.bf16.gmra.mrb[212].mxu1 %v18577_v8 }
 0x4a8   :  { %10466 = vmatprep.mubr.bf16.mxu1 %v18630_v48  ;;  %v10149_v32 = vadd.f32 %v19605_v44, %v19640_v19 }
 0x4a9   :  { %10065 = vmatmul.mubr.bf16.gmra.mrb[116].mxu0 %v18577_v8 }
 0x4aa   :  { %10074 = vmatprep.mubr.bf16.mxu0 %v18630_v48  ;;  %v12018_v0 = vpop.f32.mrb[108].mxu1 }
 0x4ab   :  { %v12019_v35 = vpop.f32.mrb[109].mxu1 }
 0x4ac   :  { %v19611_v61 = vadd.f32 %v12019_v35, %v12018_v0  ;;  %v12021_v36 = vpop.f32.mrb[110].mxu1 }
 0x4ad   :  { %v12022_v18 = vpop.f32.mrb[111].mxu1 }
 0x4ae   :  { %v19613_v43 = vadd.f32 %v12022_v18, %v12021_v36  ;;  %v10154_v18 = vadd.f32 %v19611_v61, %v19640_v19 }
 0x4af   :  { %10467 = vmatmul.mubr.bf16.gmra.mrb[216].mxu1 %v18621_v56 }
 0x4b0   :  { %10474 = vmatprep.mubr.bf16.mxu1 %v18667_v34  ;;  %v10157_v46 = vadd.f32 %v19613_v43, %v19640_v19 }
 0x4b1   :  { %10075 = vmatmul.mubr.bf16.gmra.mrb[120].mxu0 %v18621_v56 }
 0x4b2   :  { %10084 = vmatprep.mubr.bf16.mxu0 %v18667_v34  ;;  %v12024_v8 = vpop.f32.mrb[112].mxu1 }
 0x4b3   :  { %v12025_v7 = vpop.f32.mrb[113].mxu1 }
 0x4b4   :  { %v19619_v58 = vadd.f32 %v12025_v7, %v12024_v8  ;;  %v12027_v48 = vpop.f32.mrb[114].mxu1 }
 0x4b5   :  { %v12028_v23 = vpop.f32.mrb[115].mxu1 }
 0x4b6   :  { %v19621_v29 = vadd.f32 %v12028_v23, %v12027_v48 }
 0x4b7   :  { %10475 = vmatmul.mubr.bf16.gmra.mrb[220].mxu1 %v18665_v54 }
 0x4b8   :  { %v10165_v61 = vadd.f32 %v19621_v29, %v19640_v19 }
 0x4b9   :  { %10085 = vmatmul.mubr.bf16.gmra.mrb[124].mxu0 %v18665_v54 }
 0x4ba   :  { %v12030_v57 = vpop.f32.mrb[116].mxu1 }
 0x4bb   :  { %v12031_v60 = vpop.f32.mrb[117].mxu1 }
 0x4bc   :  { %v19625_v51 = vadd.f32 %v12031_v60, %v12030_v57  ;;  %v12033_v56 = vpop.f32.mrb[118].mxu1 }
 0x4bd   :  { %v12034_v53 = vpop.f32.mrb[119].mxu1 }
 0x4be   :  { %v19627_v37 = vadd.f32 %v12034_v53, %v12033_v56  ;;  %v10162_v53 = vadd.f32 %v19619_v58, %v19640_v19 }
 0x4c0   :  { %v10173_v58 = vadd.f32 %v19627_v37, %v19640_v19 }
 0x4c2   :  { %v12036_v34 = vpop.f32.mrb[120].mxu1 }
 0x4c3   :  { %v12037_v15 = vpop.f32.mrb[121].mxu1 }
 0x4c4   :  { %v19629_v59 = vadd.f32 %v12037_v15, %v12036_v34  ;;  %v12039_v25 = vpop.f32.mrb[122].mxu1 }
 0x4c5   :  { %v12040_v4 = vpop.f32.mrb[123].mxu1 }
 0x4c6   :  { %v19631_v22 = vadd.f32 %v12040_v4, %v12039_v25 }
 0x4ca   :  { %v12042_v5 = vpop.f32.mrb[124].mxu1 }
 0x4cb   :  { %v12043_v47 = vpop.f32.mrb[125].mxu1 }
 0x4cc   :  { %v19633_v55 = vadd.f32 %v12043_v47, %v12042_v5  ;;  %v12045_v54 = vpop.f32.mrb[126].mxu1 }
 0x4cd   :  { %v12046_v62 = vpop.f32.mrb[127].mxu1 }
 0x4ce   :  { %v19635_v33 = vadd.f32 %v12046_v62, %v12045_v54  ;;  %v10170_v62 = vadd.f32 %v19625_v51, %v19640_v19  ;;  %v10181_v51 = vadd.f32 %v19631_v22, %v19640_v19 }
 0x4d2   :  { %v12064_v17 = vpop.f32.mrb[128].mxu1 }
 0x4d3   :  { %v12065_v13 = vpop.f32.mrb[129].mxu1 }
 0x4d4   :  { %v12066_v9 = vadd.f32 %v12065_v13, %v12064_v17  ;;  %v12067_v6 = vpop.f32.mrb[130].mxu1 }
 0x4d5   :  { %v12068_v42 = vpop.f32.mrb[131].mxu1 }
 0x4d6   :  { %v19646_v10 = vadd.f32 %v12066_v9, %v10130_v21  ;;  %v12069_v16 = vadd.f32 %v12068_v42, %v12067_v6 }
 0x4d8   :  { %v19648_v12 = vadd.f32 %v12069_v16, %v10133_v30  ;;  %v10178_v30 = vadd.f32 %v19629_v59, %v19640_v19  ;;  %v10189_v59 = vadd.f32 %v19635_v33, %v19640_v19 }
 0x4da   :  { %v12070_v11 = vpop.f32.mrb[132].mxu1 }
 0x4db   :  { %v12071_v24 = vpop.f32.mrb[133].mxu1 }
 0x4dc   :  { %v12072_v1 = vadd.f32 %v12071_v24, %v12070_v11  ;;  %v12073_v27 = vpop.f32.mrb[134].mxu1 }
 0x4dd   :  { %v12074_v31 = vpop.f32.mrb[135].mxu1 }
 0x4de   :  { %v19654_v2 = vadd.f32 %v12072_v1, %v10138_v39  ;;  %v12075_v50 = vadd.f32 %v12074_v31, %v12073_v27 }
 0x4e0   :  { %v19656_v14 = vadd.f32 %v12075_v50, %v10141_v49  ;;  %v10186_v49 = vadd.f32 %v19633_v55, %v19640_v19 }
 0x4e2   :  { %v12076_v41 = vpop.f32.mrb[136].mxu1 }
 0x4e3   :  { %v12077_v20 = vpop.f32.mrb[137].mxu1 }
 0x4e4   :  { %v12078_v40 = vadd.f32 %v12077_v20, %v12076_v41  ;;  %v12079_v26 = vpop.f32.mrb[138].mxu1 }
 0x4e5   :  { %v12080_v52 = vpop.f32.mrb[139].mxu1 }
 0x4e6   :  { %v19662_v38 = vadd.f32 %v12078_v40, %v10146_v3  ;;  %v12081_v0 = vadd.f32 %v12080_v52, %v12079_v26 }
 0x4e8   :  { %v19664_v28 = vadd.f32 %v12081_v0, %v10149_v32 }
 0x4ea   :  { %v12082_v35 = vpop.f32.mrb[140].mxu1 }
 0x4eb   :  { %v12083_v36 = vpop.f32.mrb[141].mxu1 }
 0x4ec   :  { %v12084_v8 = vadd.f32 %v12083_v36, %v12082_v35  ;;  %v12085_v7 = vpop.f32.mrb[142].mxu1 }
 0x4ed   :  { %v12086_v48 = vpop.f32.mrb[143].mxu1 }
 0x4ee   :  { %v19670_v23 = vadd.f32 %v12084_v8, %v10154_v18  ;;  %v12087_v57 = vadd.f32 %v12086_v48, %v12085_v7 }
 0x4f0   :  { %v19672_v44 = vadd.f32 %v12087_v57, %v10157_v46 }
 0x4f2   :  { %v12088_v60 = vpop.f32.mrb[144].mxu1 }
 0x4f3   :  { %v12089_v56 = vpop.f32.mrb[145].mxu1 }
 0x4f4   :  { %v12090_v34 = vadd.f32 %v12089_v56, %v12088_v60  ;;  %v12091_v15 = vpop.f32.mrb[146].mxu1 }
 0x4f5   :  { %v12092_v25 = vpop.f32.mrb[147].mxu1 }
 0x4f6   :  { %v19678_v4 = vadd.f32 %v12090_v34, %v10162_v53  ;;  %v12093_v5 = vadd.f32 %v12092_v25, %v12091_v15 }
 0x4f8   :  { %v19680_v43 = vadd.f32 %v12093_v5, %v10165_v61 }
 0x4fa   :  { %v12094_v47 = vpop.f32.mrb[148].mxu1 }
 0x4fb   :  { %v12095_v54 = vpop.f32.mrb[149].mxu1 }
 0x4fc   :  { %v12096_v45 = vadd.f32 %v12095_v54, %v12094_v47  ;;  %v12097_v17 = vpop.f32.mrb[150].mxu1 }
 0x4fd   :  { %v12098_v13 = vpop.f32.mrb[151].mxu1 }
 0x4fe   :  { %v19686_v21 = vadd.f32 %v12096_v45, %v10170_v62  ;;  %v12099_v9 = vadd.f32 %v12098_v13, %v12097_v17 }
 0x500   :  { %v19688_v29 = vadd.f32 %v12099_v9, %v10173_v58 }
 0x502   :  { %v12100_v6 = vpop.f32.mrb[152].mxu1 }
 0x503   :  { %v12101_v42 = vpop.f32.mrb[153].mxu1 }
 0x504   :  { %v12102_v16 = vadd.f32 %v12101_v42, %v12100_v6  ;;  %v12103_v11 = vpop.f32.mrb[154].mxu1 }
 0x505   :  { %v12104_v24 = vpop.f32.mrb[155].mxu1 }
 0x506   :  { %v19694_v39 = vadd.f32 %v12102_v16, %v10178_v30  ;;  %v12105_v1 = vadd.f32 %v12104_v24, %v12103_v11 }
 0x508   :  { %v19696_v37 = vadd.f32 %v12105_v1, %v10181_v51 }
 0x50a   :  { %v12106_v27 = vpop.f32.mrb[156].mxu1 }
 0x50b   :  { %v12107_v31 = vpop.f32.mrb[157].mxu1 }
 0x50c   :  { %v12108_v50 = vadd.f32 %v12107_v31, %v12106_v27  ;;  %v12109_v41 = vpop.f32.mrb[158].mxu1 }
 0x50d   :  { %v12110_v20 = vpop.f32.mrb[159].mxu1 }
 0x50e   :  { %v19702_v3 = vadd.f32 %v12108_v50, %v10186_v49  ;;  %v12111_v40 = vadd.f32 %v12110_v20, %v12109_v41 }
 0x510   :  { %v19704_v22 = vadd.f32 %v12111_v40, %v10189_v59 }
 0x512   :  { %v12128_v26 = vpop.f32.mrb[160].mxu1 }
 0x513   :  { %v12129_v52 = vpop.f32.mrb[161].mxu1 }
 0x514   :  { %v12130_v32 = vadd.f32 %v12129_v52, %v12128_v26  ;;  %v12131_v0 = vpop.f32.mrb[162].mxu1 }
 0x515   :  { %v12132_v35 = vpop.f32.mrb[163].mxu1 }
 0x516   :  { %v19707_v36 = vadd.f32 %v12130_v32, %v19646_v10  ;;  %v12133_v55 = vadd.f32 %v12132_v35, %v12131_v0 }
 0x518   :  { %v19710_v18 = vadd.f32 %v12133_v55, %v19648_v12  ;;  %v20429_v55 = vsub.s32 4, %v20417_v63 }
 0x51a   :  { %v12134_v8 = vpop.f32.mrb[164].mxu1 }
 0x51b   :  { %v12135_v7 = vpop.f32.mrb[165].mxu1 }
 0x51c   :  { %v12136_v33 = vadd.f32 %v12135_v7, %v12134_v8  ;;  %v12137_v19 = vpop.f32.mrb[166].mxu1 }
 0x51d   :  { %v12138_v48 = vpop.f32.mrb[167].mxu1 }
 0x51e   :  { %v19713_v46 = vadd.f32 %v12136_v33, %v19654_v2  ;;  %v12139_v57 = vadd.f32 %v12138_v48, %v12137_v19  ;;  %v20430_v33 = vsub.s32 5, %v20417_v63 }
 0x520   :  { %v19716_v60 = vadd.f32 %v12139_v57, %v19656_v14 }
 0x522   :  { %v12140_v56 = vpop.f32.mrb[168].mxu1 }
 0x523   :  { %v12141_v53 = vpop.f32.mrb[169].mxu1 }
 0x524   :  { %v12142_v10 = vadd.f32 %v12141_v53, %v12140_v56  ;;  %v12143_v34 = vpop.f32.mrb[170].mxu1 }
 0x525   :  { %v12144_v15 = vpop.f32.mrb[171].mxu1 }
 0x526   :  { %v19719_v12 = vadd.f32 %v12142_v10, %v19662_v38  ;;  %v12145_v25 = vadd.f32 %v12144_v15, %v12143_v34 }
 0x528   :  { %v19722_v61 = vadd.f32 %v12145_v25, %v19664_v28 }
 0x52a   :  { %v12146_v5 = vpop.f32.mrb[172].mxu1 }
 0x52b   :  { %v12147_v47 = vpop.f32.mrb[173].mxu1 }
 0x52c   :  { %v12148_v2 = vadd.f32 %v12147_v47, %v12146_v5  ;;  %v12149_v54 = vpop.f32.mrb[174].mxu1 }
 0x52d   :  { %v12150_v62 = vpop.f32.mrb[175].mxu1 }
 0x52e   :  { %v19725_v14 = vadd.f32 %v12148_v2, %v19670_v23  ;;  %v12151_v45 = vadd.f32 %v12150_v62, %v12149_v54 }
 0x530   :  { %v19728_v17 = vadd.f32 %v12151_v45, %v19672_v44 }
 0x532   :  { %v12152_v13 = vpop.f32.mrb[176].mxu1 }
 0x533   :  { %v12153_v58 = vpop.f32.mrb[177].mxu1 }
 0x534   :  { %v12154_v38 = vadd.f32 %v12153_v58, %v12152_v13  ;;  %v12155_v9 = vpop.f32.mrb[178].mxu1 }
 0x535   :  { %v12156_v6 = vpop.f32.mrb[179].mxu1 }
 0x536   :  { %v19731_v28 = vadd.f32 %v12154_v38, %v19678_v4  ;;  %v12157_v42 = vadd.f32 %v12156_v6, %v12155_v9 }
 0x538   :  { %v19734_v30 = vadd.f32 %v12157_v42, %v19680_v43 }
 0x53a   :  { %v12158_v16 = vpop.f32.mrb[180].mxu1 }
 0x53b   :  { %v12159_v11 = vpop.f32.mrb[181].mxu1 }
 0x53c   :  { %v12160_v23 = vadd.f32 %v12159_v11, %v12158_v16  ;;  %v12161_v24 = vpop.f32.mrb[182].mxu1 }
 0x53d   :  { %v12162_v51 = vpop.f32.mrb[183].mxu1 }
 0x53e   :  { %v19737_v44 = vadd.f32 %v12160_v23, %v19686_v21  ;;  %v12163_v1 = vadd.f32 %v12162_v51, %v12161_v24 }
 0x540   :  { %v19740_v27 = vadd.f32 %v12163_v1, %v19688_v29 }
 0x542   :  { %v12164_v31 = vpop.f32.mrb[184].mxu1 }
 0x543   :  { %v12165_v49 = vpop.f32.mrb[185].mxu1 }
 0x544   :  { %v12166_v4 = vadd.f32 %v12165_v49, %v12164_v31  ;;  %v12167_v50 = vpop.f32.mrb[186].mxu1 }
 0x545   :  { %v12168_v41 = vpop.f32.mrb[187].mxu1 }
 0x546   :  { %v19743_v43 = vadd.f32 %v12166_v4, %v19694_v39  ;;  %v12169_v20 = vadd.f32 %v12168_v41, %v12167_v50  ;;  %v13899_v39 = vld [vmem:[%s19931_s6] sm:$0x7f] }
 0x547   :  { %v19763_v19 = vrot.slane %v13899_v39, %v20430_v33 }
 0x548   :  { %v19746_v59 = vadd.f32 %v12169_v20, %v19696_v37  ;;  %v19759_v37 = vrot.slane %v13899_v39, %v20429_v55 }
 0x54a   :  { %v12170_v40 = vpop.f32.mrb[188].mxu1 }
 0x54b   :  { %v12171_v26 = vpop.f32.mrb[189].mxu1 }
 0x54c   :  { %v12172_v21 = vadd.f32 %v12171_v26, %v12170_v40  ;;  %v12173_v52 = vpop.f32.mrb[190].mxu1 }
 0x54d   :  { %v12174_v32 = vpop.f32.mrb[191].mxu1 }
 0x54e   :  { %v19749_v29 = vadd.f32 %v12172_v21, %v19702_v3  ;;  %v12175_v0 = vadd.f32 %v12174_v32, %v12173_v52 }
 0x550   :  { %v19752_v35 = vadd.f32 %v12175_v0, %v19704_v22 }
 0x552   :  { %v12192_v8 = vpop.f32.mrb[192].mxu1 }
 0x553   :  { %v12193_v3 = vpop.f32.mrb[193].mxu1 }
 0x554   :  { %v10016_v7 = vpop.f32.mrb[96].mxu0  ;;  %v12194_v57 = vadd.f32 %v12193_v3, %v12192_v8  ;;  %v12195_v56 = vpop.f32.mrb[194].mxu1 }
 0x555   :  { %v10018_v48 = vpop.f32.mrb[97].mxu0  ;;  %v12196_v53 = vpop.f32.mrb[195].mxu1  ;;  %v12432_v10 = vadd.f32 %v10016_v7, %v19759_v37 }
 0x556   :  { %v10020_v22 = vpop.f32.mrb[98].mxu0  ;;  %v10421_v34 = vadd.f32 %v12194_v57, %v19707_v36  ;;  %v12197_v5 = vadd.f32 %v12196_v53, %v12195_v56  ;;  %v12433_v47 = vadd.f32 %v10018_v48, %v19763_v19 }
 0x557   :  { %v12434_v15 = vadd.f32 %v10020_v22, %v19759_v37  ;;  %v10022_v25 = vpop.f32.mrb[99].mxu0 }
 0x558   :  { %v12435_v63 = vadd.f32 %v10022_v25, %v19763_v19  ;;  %v10424_v54 = vadd.f32 %v12197_v5, %v19710_v18 }
 0x559   :  { %v10487_v2 = vpack.c.bf16 %v12434_v15, %v12432_v10 }
 0x55a   :  { %v10488_v62 = vpack.c.bf16 %v12435_v63, %v12433_v47  ;;  %v10489_v45 = vpack.c.bf16 %v10424_v54, %v10421_v34  ;;  %v12198_v13 = vpop.f32.mrb[196].mxu1 }
 0x55b   :  { %13850 = vtanh.bf16 %v10487_v2  ;;  %v12199_v38 = vpop.f32.mrb[197].mxu1 }
 0x55c   :  { %13852 = vtanh.bf16 %v10488_v62  ;;  %v10026_v58 = vpop.f32.mrb[100].mxu0  ;;  %v12200_v9 = vadd.f32 %v12199_v38, %v12198_v13  ;;  %v12201_v6 = vpop.f32.mrb[198].mxu1 }
 0x55d   :  { %13854 = vtanh.bf16 %v10489_v45  ;;  %v10028_v36 = vpop.f32.mrb[101].mxu0  ;;  %v12202_v16 = vpop.f32.mrb[199].mxu1  ;;  %v12436_v11 = vadd.f32 %v10026_v58, %v19759_v37 }
 0x55e   :  { %v10030_v42 = vpop.f32.mrb[102].mxu0  ;;  %v10429_v23 = vadd.f32 %v12200_v9, %v19713_v46  ;;  %v12203_v51 = vadd.f32 %v12202_v16, %v12201_v6  ;;  %v12437_v1 = vadd.f32 %v10028_v36, %v19763_v19 }
 0x55f   :  { %v12438_v24 = vadd.f32 %v10030_v42, %v19759_v37  ;;  %v10032_v18 = vpop.f32.mrb[103].mxu0 }
 0x560   :  { %v12439_v31 = vadd.f32 %v10032_v18, %v19763_v19  ;;  %v10432_v4 = vadd.f32 %v12203_v51, %v19716_v60 }
 0x561   :  { %v10494_v49 = vpack.c.bf16 %v12438_v24, %v12436_v11 }
 0x562   :  { %v10495_v50 = vpack.c.bf16 %v12439_v31, %v12437_v1  ;;  %v10496_v41 = vpack.c.bf16 %v10432_v4, %v10429_v23  ;;  %v12204_v20 = vpop.f32.mrb[200].mxu1 }
 0x563   :  { %13856 = vtanh.bf16 %v10494_v49  ;;  %v12205_v26 = vpop.f32.mrb[201].mxu1 }
 0x564   :  { %13858 = vtanh.bf16 %v10495_v50  ;;  %v10036_v40 = vpop.f32.mrb[104].mxu0  ;;  %v12206_v21 = vadd.f32 %v12205_v26, %v12204_v20  ;;  %v12207_v52 = vpop.f32.mrb[202].mxu1 }
 0x565   :  { %13860 = vtanh.bf16 %v10496_v41  ;;  %v10038_v46 = vpop.f32.mrb[105].mxu0  ;;  %v12208_v39 = vpop.f32.mrb[203].mxu1  ;;  %v12440_v8 = vadd.f32 %v10036_v40, %v19759_v37 }
 0x566   :  { %v13851_v32 = vpop.eup %13850  ;;  %v10040_v0 = vpop.f32.mrb[106].mxu0  ;;  %v10437_v60 = vadd.f32 %v12206_v21, %v19719_v12  ;;  %v12209_v3 = vadd.f32 %v12208_v39, %v12207_v52  ;;  %v12441_v22 = vadd.f32 %v10038_v46, %v19763_v19 }
 0x567   :  { %v13853_v55 = vpop.eup %13852  ;;  %v12442_v7 = vadd.f32 %v10040_v0, %v19759_v37  ;;  %v10042_v33 = vpop.f32.mrb[107].mxu0 }
 0x568   :  { %v13855_v48 = vpop.eup %13854  ;;  %v11922_v57 = vcombine.low %v13851_v32, %v13853_v55  ;;  %v11926_v56 = vcombine.high %v13851_v32, %v13853_v55  ;;  %v12443_v53 = vadd.f32 %v10042_v33, %v19763_v19  ;;  %v10440_v25 = vadd.f32 %v12209_v3, %v19722_v61 }
 0x569   :  { %v11923_v10 = vcombine.low %v13855_v48, %v13855_v48  ;;  %v11927_v34 = vcombine.high %v13855_v48, %v13855_v48  ;;  %v10501_v15 = vpack.c.bf16 %v12442_v7, %v12440_v8 }
 0x56a   :  { %10893 = vst [vmem:[%s19932_s7 + $0x10] sm:$0xff] %v11922_v57  ;;  %10898 = vst [vmem:[%s19932_s7 + $0x2c] sm:$0xff] %v11926_v56  ;;  %v10502_v12 = vpack.c.bf16 %v12443_v53, %v12441_v22  ;;  %v10503_v61 = vpack.c.bf16 %v10440_v25, %v10437_v60  ;;  %v12210_v5 = vpop.f32.mrb[204].mxu1 }
 0x56b   :  { %10895 = vst.msk [vmem:[%s19932_s7 + $0x18] sm:$0xf] %vm10894_vm0, %v11923_v10  ;;  %10899 = vst.msk [vmem:[%s19932_s7 + $0x34] sm:$0xf] %vm10894_vm0, %v11927_v34  ;;  %13862 = vtanh.bf16 %v10501_v15  ;;  %v12211_v63 = vpop.f32.mrb[205].mxu1 }
 0x56c   :  { %13864 = vtanh.bf16 %v10502_v12  ;;  %v10046_v47 = vpop.f32.mrb[108].mxu0  ;;  %v12212_v54 = vadd.f32 %v12211_v63, %v12210_v5  ;;  %v12213_v62 = vpop.f32.mrb[206].mxu1 }
 0x56d   :  { %13866 = vtanh.bf16 %v10503_v61  ;;  %v10048_v2 = vpop.f32.mrb[109].mxu0  ;;  %v12214_v58 = vpop.f32.mrb[207].mxu1  ;;  %v12444_v36 = vadd.f32 %v10046_v47, %v19759_v37 }
 0x56e   :  { %v13857_v45 = vpop.eup %13856  ;;  %v10050_v13 = vpop.f32.mrb[110].mxu0  ;;  %v10445_v9 = vadd.f32 %v12212_v54, %v19725_v14  ;;  %v12215_v16 = vadd.f32 %v12214_v58, %v12213_v62  ;;  %v12445_v18 = vadd.f32 %v10048_v2, %v19763_v19 }
 0x56f   :  { %v13859_v38 = vpop.eup %13858  ;;  %v12446_v6 = vadd.f32 %v10050_v13, %v19759_v37  ;;  %v10052_v42 = vpop.f32.mrb[111].mxu0 }
 0x570   :  { %v13861_v11 = vpop.eup %13860  ;;  %v11930_v23 = vcombine.low %v13857_v45, %v13859_v38  ;;  %v11934_v24 = vcombine.high %v13857_v45, %v13859_v38  ;;  %v12447_v51 = vadd.f32 %v10052_v42, %v19763_v19  ;;  %v10448_v4 = vadd.f32 %v12215_v16, %v19728_v17 }
 0x571   :  { %v11931_v1 = vcombine.low %v13861_v11, %v13861_v11  ;;  %v11935_v31 = vcombine.high %v13861_v11, %v13861_v11  ;;  %v10508_v49 = vpack.c.bf16 %v12446_v6, %v12444_v36 }
 0x572   :  { %10902 = vst [vmem:[%s19932_s7 + $0x48] sm:$0xff] %v11930_v23  ;;  %10906 = vst [vmem:[%s19932_s7 + $0x64] sm:$0xff] %v11934_v24  ;;  %v10509_v14 = vpack.c.bf16 %v12447_v51, %v12445_v18  ;;  %v10510_v17 = vpack.c.bf16 %v10448_v4, %v10445_v9  ;;  %v12216_v50 = vpop.f32.mrb[208].mxu1 }
 0x573   :  { %10903 = vst.msk [vmem:[%s19932_s7 + $0x50] sm:$0xf] %vm10894_vm0, %v11931_v1  ;;  %10907 = vst.msk [vmem:[%s19932_s7 + $0x6c] sm:$0xf] %vm10894_vm0, %v11935_v31  ;;  %13868 = vtanh.bf16 %v10508_v49  ;;  %v12217_v20 = vpop.f32.mrb[209].mxu1 }
 0x574   :  { %13870 = vtanh.bf16 %v10509_v14  ;;  %v10056_v41 = vpop.f32.mrb[112].mxu0  ;;  %v12218_v26 = vadd.f32 %v12217_v20, %v12216_v50  ;;  %v12219_v46 = vpop.f32.mrb[210].mxu1 }
 0x575   :  { %13872 = vtanh.bf16 %v10510_v17  ;;  %v10058_v40 = vpop.f32.mrb[113].mxu0  ;;  %v12220_v32 = vpop.f32.mrb[211].mxu1  ;;  %v12448_v39 = vadd.f32 %v10056_v41, %v19759_v37 }
 0x576   :  { %v13863_v21 = vpop.eup %13862  ;;  %v10060_v52 = vpop.f32.mrb[114].mxu0  ;;  %v10453_v55 = vadd.f32 %v12218_v26, %v19731_v28  ;;  %v12221_v7 = vadd.f32 %v12220_v32, %v12219_v46  ;;  %v12449_v57 = vadd.f32 %v10058_v40, %v19763_v19 }
 0x577   :  { %v13865_v0 = vpop.eup %13864  ;;  %v12450_v8 = vadd.f32 %v10060_v52, %v19759_v37  ;;  %v10062_v60 = vpop.f32.mrb[115].mxu0 }
 0x578   :  { %v13867_v33 = vpop.eup %13866  ;;  %v11938_v3 = vcombine.low %v13863_v21, %v13865_v0  ;;  %v11942_v48 = vcombine.high %v13863_v21, %v13865_v0  ;;  %v12451_v56 = vadd.f32 %v10062_v60, %v19763_v19  ;;  %v10456_v34 = vadd.f32 %v12221_v7, %v19734_v30 }
 0x579   :  { %v11939_v22 = vcombine.low %v13867_v33, %v13867_v33  ;;  %v11943_v53 = vcombine.high %v13867_v33, %v13867_v33  ;;  %v10515_v10 = vpack.c.bf16 %v12450_v8, %v12448_v39 }
 0x57a   :  { %10910 = vst [vmem:[%s19932_s7 + $0x80] sm:$0xff] %v11938_v3  ;;  %10914 = vst [vmem:[%s19932_s7 + $0x9c] sm:$0xff] %v11942_v48  ;;  %v10516_v28 = vpack.c.bf16 %v12451_v56, %v12449_v57  ;;  %v10517_v30 = vpack.c.bf16 %v10456_v34, %v10453_v55  ;;  %v12222_v15 = vpop.f32.mrb[212].mxu1 }
 0x57b   :  { %10911 = vst.msk [vmem:[%s19932_s7 + $0x88] sm:$0xf] %vm10894_vm0, %v11939_v22  ;;  %10915 = vst.msk [vmem:[%s19932_s7 + $0xa4] sm:$0xf] %vm10894_vm0, %v11943_v53  ;;  %13874 = vtanh.bf16 %v10515_v10  ;;  %v12223_v12 = vpop.f32.mrb[213].mxu1 }
 0x57c   :  { %13876 = vtanh.bf16 %v10516_v28  ;;  %v10066_v25 = vpop.f32.mrb[116].mxu0  ;;  %v12224_v5 = vadd.f32 %v12223_v12, %v12222_v15  ;;  %v12225_v47 = vpop.f32.mrb[214].mxu1 }
 0x57d   :  { %13878 = vtanh.bf16 %v10517_v30  ;;  %v10068_v61 = vpop.f32.mrb[117].mxu0  ;;  %v12226_v54 = vpop.f32.mrb[215].mxu1  ;;  %v12452_v45 = vadd.f32 %v10066_v25, %v19759_v37 }
 0x57e   :  { %v13869_v63 = vpop.eup %13868  ;;  %v10070_v2 = vpop.f32.mrb[118].mxu0  ;;  %v10461_v13 = vadd.f32 %v12224_v5, %v19737_v44  ;;  %v12227_v36 = vadd.f32 %v12226_v54, %v12225_v47  ;;  %v12453_v16 = vadd.f32 %v10068_v61, %v19763_v19 }
 0x57f   :  { %v13871_v62 = vpop.eup %13870  ;;  %v12454_v58 = vadd.f32 %v10070_v2, %v19759_v37  ;;  %v10072_v38 = vpop.f32.mrb[119].mxu0 }
 0x580   :  { %v13873_v9 = vpop.eup %13872  ;;  %v11946_v6 = vcombine.low %v13869_v63, %v13871_v62  ;;  %v11950_v42 = vcombine.high %v13869_v63, %v13871_v62  ;;  %v12455_v11 = vadd.f32 %v10072_v38, %v19763_v19  ;;  %v10464_v51 = vadd.f32 %v12227_v36, %v19740_v27 }
 0x581   :  { %v11947_v23 = vcombine.low %v13873_v9, %v13873_v9  ;;  %v11951_v24 = vcombine.high %v13873_v9, %v13873_v9  ;;  %v10522_v18 = vpack.c.bf16 %v12454_v58, %v12452_v45 }
 0x582   :  { %10918 = vst [vmem:[%s19932_s7 + $0xb8] sm:$0xff] %v11946_v6  ;;  %10922 = vst [vmem:[%s19932_s7 + $0xd4] sm:$0xff] %v11950_v42  ;;  %v10523_v44 = vpack.c.bf16 %v12455_v11, %v12453_v16  ;;  %v10524_v27 = vpack.c.bf16 %v10464_v51, %v10461_v13  ;;  %v12228_v1 = vpop.f32.mrb[216].mxu1 }
 0x583   :  { %10919 = vst.msk [vmem:[%s19932_s7 + $0xc0] sm:$0xf] %vm10894_vm0, %v11947_v23  ;;  %10923 = vst.msk [vmem:[%s19932_s7 + $0xdc] sm:$0xf] %vm10894_vm0, %v11951_v24  ;;  %13880 = vtanh.bf16 %v10522_v18  ;;  %v12229_v49 = vpop.f32.mrb[217].mxu1 }
 0x584   :  { %13882 = vtanh.bf16 %v10523_v44  ;;  %v10076_v31 = vpop.f32.mrb[120].mxu0  ;;  %v12230_v14 = vadd.f32 %v12229_v49, %v12228_v1  ;;  %v12231_v17 = vpop.f32.mrb[218].mxu1 }
 0x585   :  { %13884 = vtanh.bf16 %v10524_v27  ;;  %v10078_v4 = vpop.f32.mrb[121].mxu0  ;;  %v12232_v20 = vpop.f32.mrb[219].mxu1  ;;  %v12456_v26 = vadd.f32 %v10076_v31, %v19759_v37 }
 0x586   :  { %v13875_v50 = vpop.eup %13874  ;;  %v10080_v41 = vpop.f32.mrb[122].mxu0  ;;  %v10469_v46 = vadd.f32 %v12230_v14, %v19743_v43  ;;  %v12233_v32 = vadd.f32 %v12232_v20, %v12231_v17  ;;  %v12457_v8 = vadd.f32 %v10078_v4, %v19763_v19 }
 0x587   :  { %v13877_v40 = vpop.eup %13876  ;;  %v12458_v21 = vadd.f32 %v10080_v41, %v19759_v37  ;;  %v10082_v52 = vpop.f32.mrb[123].mxu0 }
 0x588   :  { %v13879_v0 = vpop.eup %13878  ;;  %v11954_v39 = vcombine.low %v13875_v50, %v13877_v40  ;;  %v11958_v55 = vcombine.high %v13875_v50, %v13877_v40  ;;  %v12459_v60 = vadd.f32 %v10082_v52, %v19763_v19  ;;  %v10472_v48 = vadd.f32 %v12233_v32, %v19746_v59 }
 0x589   :  { %v11955_v7 = vcombine.low %v13879_v0, %v13879_v0  ;;  %v11959_v33 = vcombine.high %v13879_v0, %v13879_v0  ;;  %v10529_v3 = vpack.c.bf16 %v12458_v21, %v12456_v26 }
 0x58a   :  { %10926 = vst [vmem:[%s19932_s7 + $0xf0] sm:$0xff] %v11954_v39  ;;  %10930 = vst [vmem:[%s19932_s7 + $0x10c] sm:$0xff] %v11958_v55  ;;  %v10530_v43 = vpack.c.bf16 %v12459_v60, %v12457_v8  ;;  %v10531_v59 = vpack.c.bf16 %v10472_v48, %v10469_v46  ;;  %v12234_v57 = vpop.f32.mrb[220].mxu1 }
 0x58b   :  { %10927 = vst.msk [vmem:[%s19932_s7 + $0xf8] sm:$0xf] %vm10894_vm0, %v11955_v7  ;;  %10931 = vst.msk [vmem:[%s19932_s7 + $0x114] sm:$0xf] %vm10894_vm0, %v11959_v33  ;;  %13886 = vtanh.bf16 %v10529_v3  ;;  %v12235_v22 = vpop.f32.mrb[221].mxu1 }
 0x58c   :  { %13888 = vtanh.bf16 %v10530_v43  ;;  %v10086_v56 = vpop.f32.mrb[124].mxu0  ;;  %v12236_v10 = vadd.f32 %v12235_v22, %v12234_v57  ;;  %v12237_v34 = vpop.f32.mrb[222].mxu1 }
 0x58d   :  { %13890 = vtanh.bf16 %v10531_v59  ;;  %v10088_v53 = vpop.f32.mrb[125].mxu0  ;;  %v12238_v15 = vpop.f32.mrb[223].mxu1  ;;  %v12460_v12 = vadd.f32 %v10086_v56, %v19759_v37 }
 0x58e   :  { %v13881_v28 = vpop.eup %13880  ;;  %v10090_v30 = vpop.f32.mrb[126].mxu0  ;;  %v10477_v61 = vadd.f32 %v12236_v10, %v19749_v29  ;;  %v12239_v63 = vadd.f32 %v12238_v15, %v12237_v34  ;;  %v12461_v45 = vadd.f32 %v10088_v53, %v19763_v19 }
 0x58f   :  { %v13883_v25 = vpop.eup %13882  ;;  %v12462_v5 = vadd.f32 %v10090_v30, %v19759_v37  ;;  %v10092_v47 = vpop.f32.mrb[127].mxu0 }
 0x590   :  { %v13885_v2 = vpop.eup %13884  ;;  %v11962_v54 = vcombine.low %v13881_v28, %v13883_v25  ;;  %v11966_v62 = vcombine.high %v13881_v28, %v13883_v25  ;;  %v12463_v13 = vadd.f32 %v10092_v47, %v19763_v19  ;;  %v10480_v9 = vadd.f32 %v12239_v63, %v19752_v35 }
 0x591   :  { %v11963_v58 = vcombine.low %v13885_v2, %v13885_v2  ;;  %v11967_v38 = vcombine.high %v13885_v2, %v13885_v2  ;;  %v10536_v36 = vpack.c.bf16 %v12462_v5, %v12460_v12 }
 0x592   :  { %10934 = vst [vmem:[%s19932_s7 + $0x128] sm:$0xff] %v11962_v54  ;;  %10938 = vst [vmem:[%s19932_s7 + $0x144] sm:$0xff] %v11966_v62  ;;  %v10537_v29 = vpack.c.bf16 %v12463_v13, %v12461_v45  ;;  %v10538_v35 = vpack.c.bf16 %v10480_v9, %v10477_v61 }
 0x593   :  { %10935 = vst.msk [vmem:[%s19932_s7 + $0x130] sm:$0xf] %vm10894_vm0, %v11963_v58  ;;  %10939 = vst.msk [vmem:[%s19932_s7 + $0x14c] sm:$0xf] %vm10894_vm0, %v11967_v38  ;;  %13892 = vtanh.bf16 %v10536_v36 }
 0x594   :  { %13894 = vtanh.bf16 %v10537_v29 }
 0x595   :  { %13896 = vtanh.bf16 %v10538_v35 }
 0x596   :  { %v13887_v37 = vpop.eup %13886 }
 0x597   :  { %v13889_v19 = vpop.eup %13888 }
 0x598   :  { %v13891_v6 = vpop.eup %13890  ;;  %v11970_v42 = vcombine.low %v13887_v37, %v13889_v19  ;;  %v11974_v16 = vcombine.high %v13887_v37, %v13889_v19 }
 0x599   :  { %v11971_v11 = vcombine.low %v13891_v6, %v13891_v6  ;;  %v11975_v23 = vcombine.high %v13891_v6, %v13891_v6 }
 0x59a   :  { %10942 = vst [vmem:[%s19932_s7 + $0x160] sm:$0xff] %v11970_v42  ;;  %10946 = vst [vmem:[%s19932_s7 + $0x17c] sm:$0xff] %v11974_v16 }
 0x59b   :  { %10943 = vst.msk [vmem:[%s19932_s7 + $0x168] sm:$0xf] %vm10894_vm0, %v11971_v11  ;;  %10947 = vst.msk [vmem:[%s19932_s7 + $0x184] sm:$0xf] %vm10894_vm0, %v11975_v23 }
 0x59e   :  { %v13893_v24 = vpop.eup %13892 }
 0x59f   :  { %v13895_v18 = vpop.eup %13894 }
 0x5a0   :  { %v13897_v51 = vpop.eup %13896  ;;  %v11978_v44 = vcombine.low %v13893_v24, %v13895_v18  ;;  %v11982_v27 = vcombine.high %v13893_v24, %v13895_v18 }
 0x5a1   :  { %v11979_v1 = vcombine.low %v13897_v51, %v13897_v51  ;;  %v11983_v31 = vcombine.high %v13897_v51, %v13897_v51 }
 0x5a2   :  { %10950 = vst [vmem:[%s19932_s7 + $0x198] sm:$0xff] %v11978_v44  ;;  %10954 = vst [vmem:[%s19932_s7 + $0x1b4] sm:$0xff] %v11982_v27 }
 0x5a3   :  { %10951 = vst.msk [vmem:[%s19932_s7 + $0x1a0] sm:$0xf] %vm10894_vm0, %v11979_v1  ;;  %10955 = vst.msk [vmem:[%s19932_s7 + $0x1bc] sm:$0xf] %vm10894_vm0, %v11983_v31 }

</bundles_post_ra>
